<compile_context>
chip_gen: v6e
topology: v6e:2x2x1
jax: 0.10.0
libtpu: 0.0.40
codegen_flags: <defaults>
</compile_context>

<pallas_src>
import functools

import jax
import jax.numpy as jnp
from jax.experimental import pallas as pl
from jax.experimental.pallas import tpu as pltpu

EPS = 1e-5  # torch BatchNorm1d default


def _softplus(x):
    # torch.nn.Softplus(beta=1, threshold=20)
    return jnp.where(x > 20.0, x, jnp.log(1.0 + jnp.exp(jnp.minimum(x, 20.0))))


def _batchnorm_train(x, gamma, beta):
    # Training-mode BatchNorm1d: per-channel batch stats, biased variance,
    # single pass over x (E[x^2] - mu^2).
    mu = jnp.mean(x, axis=0, keepdims=True)
    var = jnp.maximum(jnp.mean(x * x, axis=0, keepdims=True) - mu * mu, 0.0)
    return (x - mu) * jax.lax.rsqrt(var + EPS) * gamma + beta


def _vmem_spec():
    return pl.BlockSpec(memory_space=pltpu.MemorySpace.VMEM)


# --------------------------- fused forward kernel ----------------------------
def _cgcnn_kernel(n_conv, M,
                  atom_in_ref, bond_ref, nbr_idx_ref, pool_ref,
                  emb_w_ref, emb_b_ref,
                  wf_self_ref, wc_self_ref, wf_nbr_ref, wc_nbr_ref,
                  wf_bond_ref, wc_bond_ref, bf_ref, bc_ref,
                  g1f_ref, g1c_ref, be1f_ref, be1c_ref, g2_ref, be2_ref,
                  fc1_w_ref, fc1_b_ref, out_w_ref, out_b_ref,
                  out_ref, crysfea_ref, atom_scr):
    N, F = atom_scr.shape
    NM = bond_ref.shape[0]

    # ---- embedding: atom features persist in VMEM scratch across layers ----
    atom_scr[...] = (
        jnp.dot(atom_in_ref[...], emb_w_ref[...],
                preferred_element_type=jnp.float32) + emb_b_ref[...])

    # ---- structural one-hot matrices (loop-invariant), built in-kernel ----
    # Pair row p = i*M + m  <->  center atom i, neighbor atom nbr_idx[p].
    # Combined "self-expand | neighbor-gather" matrix sg_mat (NM, 2N):
    #   column a      : 1 iff pair p belongs to center atom a  (p // M == a,
    #                    expressed as 0 <= p - a*M < M to avoid integer div)
    #   column N + a  : 1 iff neighbor atom of pair p is a      (nbr_idx[p]==a)
    row = jax.lax.broadcasted_iota(jnp.int32, (NM, 2 * N), 0)
    col = jax.lax.broadcasted_iota(jnp.int32, (NM, 2 * N), 1)
    d = row - col * M
    expand_part = (col < N) & (d >= 0) & (d < M)
    gather_part = (col >= N) & ((col - N) == nbr_idx_ref[...])
    sg_mat = jnp.where(expand_part | gather_part, 1.0, 0.0).astype(jnp.float32)

    # Neighbor-sum matrix (N, NM): row a sums the M pair rows of atom a.
    p_idx = jax.lax.broadcasted_iota(jnp.int32, (N, NM), 1)
    a_idx = jax.lax.broadcasted_iota(jnp.int32, (N, NM), 0)
    d2 = p_idx - a_idx * M
    sum_mat = jnp.where((d2 >= 0) & (d2 < M), 1.0, 0.0).astype(jnp.float32)

    bond = bond_ref[...]                                           # (NM, B)

    # ---- n_conv ConvLayers, fully fused; stacked weights indexed per layer ----
    # n_conv is small and static -> unrolled Python loop (switch to
    # lax.fori_loop over the same stacked refs for large n_conv).
    for l in range(n_conv):
        atom = atom_scr[...]                                       # (N, F)
        # fc_full split: self/nbr contributions computed at N rows, not N*M.
        hs_f = jnp.dot(atom, wf_self_ref[l], preferred_element_type=jnp.float32)
        hn_f = jnp.dot(atom, wf_nbr_ref[l], preferred_element_type=jnp.float32)
        hs_c = jnp.dot(atom, wc_self_ref[l], preferred_element_type=jnp.float32)
        hn_c = jnp.dot(atom, wc_nbr_ref[l], preferred_element_type=jnp.float32)
        # Stack [self ; nbr] along sublanes (N=16 is 8-aligned -> cheap copy)
        # so expand + gather is ONE one-hot MXU matmul per column half.
        hsn_f = jnp.concatenate([hs_f, hn_f], axis=0)              # (2N, F)
        hsn_c = jnp.concatenate([hs_c, hn_c], axis=0)              # (2N, F)
        z_f = (jnp.dot(sg_mat, hsn_f, preferred_element_type=jnp.float32)
               + jnp.dot(bond, wf_bond_ref[l], preferred_element_type=jnp.float32)
               + bf_ref[l])
        z_c = (jnp.dot(sg_mat, hsn_c, preferred_element_type=jnp.float32)
               + jnp.dot(bond, wc_bond_ref[l], preferred_element_type=jnp.float32)
               + bc_ref[l])
        # bn1 over all N*M pair rows (per-channel, split by filter/core halves)
        z_f = _batchnorm_train(z_f, g1f_ref[l], be1f_ref[l])
        z_c = _batchnorm_train(z_c, g1c_ref[l], be1c_ref[l])
        # sigmoid gate * softplus core ; sum over the M neighbors (MXU matmul)
        gate = 1.0 / (1.0 + jnp.exp(-z_f))                         # exact sigmoid
        prod = gate * _softplus(z_c)                               # (NM, F)
        nbr_sumed = jnp.dot(sum_mat, prod, preferred_element_type=jnp.float32)
        nbr_sumed = _batchnorm_train(nbr_sumed, g2_ref[l], be2_ref[l])
        atom_scr[...] = _softplus(atom + nbr_sumed)                # softplus2

    # ---- per-crystal mean pooling + head, fused in the same kernel ----
    pooled = jnp.dot(pool_ref[...], atom_scr[...],
                     preferred_element_type=jnp.float32)           # (N0, F)
    h = _softplus(pooled)                                          # conv_to_fc_softplus
    h = jnp.dot(h, fc1_w_ref[...],
                preferred_element_type=jnp.float32) + fc1_b_ref[...]
    h = _softplus(h)                                               # conv_to_fc_softplus
    crysfea_ref[...] = h                                           # returned crys_fea
    out_ref[...] = (jnp.dot(h, out_w_ref[...],
                            preferred_element_type=jnp.float32) + out_b_ref[...])


# ------------------------------ param packing --------------------------------
def pack_conv_params(convs, F):
    """Split each fc_full weight (2F+B, 2F) into [self|nbr|bond] row blocks and
    [filter|core] column halves, and stack all per-layer params on a leading
    layer axis (done once at setup, outside the hot path)."""
    def stk(fn):
        return jnp.stack([fn(p) for p in convs])
    return dict(
        wf_self=stk(lambda p: p["w"][:F, :F]),
        wc_self=stk(lambda p: p["w"][:F, F:]),
        wf_nbr=stk(lambda p: p["w"][F:2 * F, :F]),
        wc_nbr=stk(lambda p: p["w"][F:2 * F, F:]),
        wf_bond=stk(lambda p: p["w"][2 * F:, :F]),
        wc_bond=stk(lambda p: p["w"][2 * F:, F:]),
        bf=stk(lambda p: p["b"][:, :F]),
        bc=stk(lambda p: p["b"][:, F:]),
        g1f=stk(lambda p: p["g1"][:, :F]),
        g1c=stk(lambda p: p["g1"][:, F:]),
        be1f=stk(lambda p: p["be1"][:, :F]),
        be1c=stk(lambda p: p["be1"][:, F:]),
        g2=stk(lambda p: p["g2"]),
        be2=stk(lambda p: p["be2"]),
    )


# ------------------------------ full model -----------------------------------
@jax.jit
def crystal_graph_conv_net(params, atom_fea, nbr_fea, nbr_fea_idx, pool_mat):
    N, M, B = nbr_fea.shape
    F = params["emb_w"].shape[1]
    H = params["fc1_w"].shape[1]
    N0 = pool_mat.shape[0]
    cp = params["convs"]
    n_conv = cp["wf_self"].shape[0]

    bond_flat = nbr_fea.reshape(N * M, B)
    nbr_idx_flat = nbr_fea_idx.reshape(N * M, 1).astype(jnp.int32)

    kernel = functools.partial(_cgcnn_kernel, n_conv, M)
    out, crys_fea = pl.pallas_call(
        kernel,
        out_shape=(jax.ShapeDtypeStruct((N0, params["out_w"].shape[1]), jnp.float32),
                   jax.ShapeDtypeStruct((N0, H), jnp.float32)),
        in_specs=[_vmem_spec()] * 24,
        out_specs=(_vmem_spec(), _vmem_spec()),
        scratch_shapes=[pltpu.VMEM((N, F), jnp.float32)],
    )(atom_fea, bond_flat, nbr_idx_flat, pool_mat,
      params["emb_w"], params["emb_b"],
      cp["wf_self"], cp["wc_self"], cp["wf_nbr"], cp["wc_nbr"],
      cp["wf_bond"], cp["wc_bond"], cp["bf"], cp["bc"],
      cp["g1f"], cp["g1c"], cp["be1f"], cp["be1c"], cp["g2"], cp["be2"],
      params["fc1_w"], params["fc1_b"], params["out_w"], params["out_b"])
    return out, crys_fea


# --------------------------------- main ---------------------------------------
if __name__ == "__main__":
    N, M = 16, 8
    orig_atom_fea_len = 24
    nbr_fea_len = 16
    atom_fea_len = 32
    n_conv = 3
    h_fea_len = 64
    crystal_sizes = [10, 6]           # crystal_atom_idx: atoms 0..9 and 10..15
    N0 = len(crystal_sizes)

    keys = iter(jax.random.split(jax.random.PRNGKey(0), 64))

    def nrm(shape, s=0.1):
        return jax.random.normal(next(keys), shape, jnp.float32) * s

    raw_convs = []
    for _ in range(n_conv):
        raw_convs.append({
            "w": nrm((2 * atom_fea_len + nbr_fea_len, 2 * atom_fea_len)),
            "b": nrm((1, 2 * atom_fea_len)),
            "g1": 1.0 + nrm((1, 2 * atom_fea_len)),
            "be1": nrm((1, 2 * atom_fea_len)),
            "g2": 1.0 + nrm((1, atom_fea_len)),
            "be2": nrm((1, atom_fea_len)),
        })

    params = {
        "emb_w": nrm((orig_atom_fea_len, atom_fea_len)),
        "emb_b": nrm((1, atom_fea_len)),
        "convs": pack_conv_params(raw_convs, atom_fea_len),
        "fc1_w": nrm((atom_fea_len, h_fea_len)),
        "fc1_b": nrm((1, h_fea_len)),
        "out_w": nrm((h_fea_len, 1)),
        "out_b": nrm((1, 1)),
    }

    atom_fea = jax.random.normal(next(keys), (N, orig_atom_fea_len), jnp.float32)
    nbr_fea = jax.random.normal(next(keys), (N, M, nbr_fea_len), jnp.float32)
    nbr_fea_idx = jax.random.randint(next(keys), (N, M), 0, N, dtype=jnp.int32)

    # crystal_atom_idx (ragged list) -> dense mean-pooling matrix (N0, N)
    pool_rows = []
    start = 0
    for sz in crystal_sizes:
        row = jnp.zeros((N,), jnp.float32).at[start:start + sz].set(1.0 / sz)
        pool_rows.append(row)
        start += sz
    pool_mat = jnp.stack(pool_rows, axis=0)

    out, crys_fea = crystal_graph_conv_net(params, atom_fea, nbr_fea,
                                           nbr_fea_idx, pool_mat)
    jax.block_until_ready((out, crys_fea))
    assert out.shape == (N0, 1) and crys_fea.shape == (N0, h_fea_len)
    print("KERNEL_OK")
</pallas_src>

<mosaic_0001>
module attributes {stable_mosaic.version = 11 : i64} {
  func.func @_cgcnn_kernel(%arg0: memref<16x24xf32, #tpu.memory_space<vmem>>, %arg1: memref<128x16xf32, #tpu.memory_space<vmem>>, %arg2: memref<128x1xi32, #tpu.memory_space<vmem>>, %arg3: memref<2x16xf32, #tpu.memory_space<vmem>>, %arg4: memref<24x32xf32, #tpu.memory_space<vmem>>, %arg5: memref<1x32xf32, #tpu.memory_space<vmem>>, %arg6: memref<3x32x32xf32, #tpu.memory_space<vmem>>, %arg7: memref<3x32x32xf32, #tpu.memory_space<vmem>>, %arg8: memref<3x32x32xf32, #tpu.memory_space<vmem>>, %arg9: memref<3x32x32xf32, #tpu.memory_space<vmem>>, %arg10: memref<3x16x32xf32, #tpu.memory_space<vmem>>, %arg11: memref<3x16x32xf32, #tpu.memory_space<vmem>>, %arg12: memref<3x1x32xf32, #tpu.memory_space<vmem>>, %arg13: memref<3x1x32xf32, #tpu.memory_space<vmem>>, %arg14: memref<3x1x32xf32, #tpu.memory_space<vmem>>, %arg15: memref<3x1x32xf32, #tpu.memory_space<vmem>>, %arg16: memref<3x1x32xf32, #tpu.memory_space<vmem>>, %arg17: memref<3x1x32xf32, #tpu.memory_space<vmem>>, %arg18: memref<3x1x32xf32, #tpu.memory_space<vmem>>, %arg19: memref<3x1x32xf32, #tpu.memory_space<vmem>>, %arg20: memref<32x64xf32, #tpu.memory_space<vmem>>, %arg21: memref<1x64xf32, #tpu.memory_space<vmem>>, %arg22: memref<64x1xf32, #tpu.memory_space<vmem>>, %arg23: memref<1x1xf32, #tpu.memory_space<vmem>>, %arg24: memref<2x1xf32, #tpu.memory_space<vmem>>, %arg25: memref<2x64xf32, #tpu.memory_space<vmem>>, %arg26: memref<16x32xf32, #tpu.memory_space<vmem>>) attributes {dimension_semantics = [], scalar_prefetch = 0 : i64, scratch_operands = 1 : i64, tpu.core_type = #tpu.core_type<tc>} {
    %c0 = arith.constant 0 : index
    %c0_0 = arith.constant 0 : index
    %0 = vector.load %arg0[%c0, %c0_0] : memref<16x24xf32, #tpu.memory_space<vmem>>, vector<16x24xf32>
    %c0_1 = arith.constant 0 : index
    %c0_2 = arith.constant 0 : index
    %1 = vector.load %arg4[%c0_1, %c0_2] : memref<24x32xf32, #tpu.memory_space<vmem>>, vector<24x32xf32>
    %cst = arith.constant dense<0.000000e+00> : vector<16x32xf32>
    %2 = tpu.matmul %0, %1, %cst {dimension_numbers = #tpu.dot_dimension_numbers<[1], [0], [0], [1], [0, 0, 1, 1], [], []>} : vector<16x24xf32>, vector<24x32xf32>, vector<16x32xf32> -> vector<16x32xf32>
    %c0_3 = arith.constant 0 : index
    %c0_4 = arith.constant 0 : index
    %3 = vector.load %arg5[%c0_3, %c0_4] : memref<1x32xf32, #tpu.memory_space<vmem>>, vector<1x32xf32>
    %4 = vector.broadcast %3 : vector<1x32xf32> to vector<16x32xf32>
    %5 = arith.addf %2, %4 : vector<16x32xf32>
    %c0_5 = arith.constant 0 : index
    %c0_6 = arith.constant 0 : index
    %6 = vector.load %arg26[%c0_5, %c0_6] : memref<16x32xf32, #tpu.memory_space<vmem>>, vector<16x32xf32>
    tpu.vector_store %arg26[%c0_5, %c0_6], %5 {strides = array<i32>} : memref<16x32xf32, #tpu.memory_space<vmem>>, vector<16x32xf32>,
    %7 = tpu.iota {dimensions = array<i32: 0>} : vector<128x32xi32>
    %8 = tpu.iota {dimensions = array<i32: 1>} : vector<128x32xi32>
    %c8_i32 = arith.constant 8 : i32
    %9 = vector.broadcast %c8_i32 : i32 to vector<128x32xi32>
    %10 = arith.muli %8, %9 : vector<128x32xi32>
    %11 = arith.subi %7, %10 : vector<128x32xi32>
    %c16_i32 = arith.constant 16 : i32
    %12 = vector.broadcast %c16_i32 : i32 to vector<128x32xi32>
    %13 = arith.cmpi slt, %8, %12 : vector<128x32xi32>
    %c0_i32 = arith.constant 0 : i32
    %14 = vector.broadcast %c0_i32 : i32 to vector<128x32xi32>
    %15 = arith.cmpi sge, %11, %14 : vector<128x32xi32>
    %16 = arith.andi %13, %15 : vector<128x32xi1>
    %c8_i32_7 = arith.constant 8 : i32
    %17 = vector.broadcast %c8_i32_7 : i32 to vector<128x32xi32>
    %18 = arith.cmpi slt, %11, %17 : vector<128x32xi32>
    %19 = arith.andi %16, %18 : vector<128x32xi1>
    %c16_i32_8 = arith.constant 16 : i32
    %20 = vector.broadcast %c16_i32_8 : i32 to vector<128x32xi32>
    %21 = arith.cmpi sge, %8, %20 : vector<128x32xi32>
    %c16_i32_9 = arith.constant 16 : i32
    %22 = vector.broadcast %c16_i32_9 : i32 to vector<128x32xi32>
    %23 = arith.subi %8, %22 : vector<128x32xi32>
    %c0_10 = arith.constant 0 : index
    %c0_11 = arith.constant 0 : index
    %24 = vector.load %arg2[%c0_10, %c0_11] : memref<128x1xi32, #tpu.memory_space<vmem>>, vector<128x1xi32>
    %25 = vector.broadcast %24 : vector<128x1xi32> to vector<128x32xi32>
    %26 = arith.cmpi eq, %23, %25 : vector<128x32xi32>
    %27 = arith.andi %21, %26 : vector<128x32xi1>
    %28 = arith.ori %19, %27 : vector<128x32xi1>
    %cst_12 = arith.constant 1.000000e+00 : f32
    %cst_13 = arith.constant 0.000000e+00 : f32
    %29 = vector.broadcast %cst_12 : f32 to vector<128x32xf32>
    %30 = vector.broadcast %cst_13 : f32 to vector<128x32xf32>
    %31 = arith.select %28, %29, %30 : vector<128x32xi1>, vector<128x32xf32>
    %32 = tpu.iota {dimensions = array<i32: 1>} : vector<16x128xi32>
    %33 = tpu.iota {dimensions = array<i32: 0>} : vector<16x128xi32>
    %c8_i32_14 = arith.constant 8 : i32
    %34 = vector.broadcast %c8_i32_14 : i32 to vector<16x128xi32>
    %35 = arith.muli %33, %34 : vector<16x128xi32>
    %36 = arith.subi %32, %35 : vector<16x128xi32>
    %c0_i32_15 = arith.constant 0 : i32
    %37 = vector.broadcast %c0_i32_15 : i32 to vector<16x128xi32>
    %38 = arith.cmpi sge, %36, %37 : vector<16x128xi32>
    %c8_i32_16 = arith.constant 8 : i32
    %39 = vector.broadcast %c8_i32_16 : i32 to vector<16x128xi32>
    %40 = arith.cmpi slt, %36, %39 : vector<16x128xi32>
    %41 = arith.andi %38, %40 : vector<16x128xi1>
    %cst_17 = arith.constant 1.000000e+00 : f32
    %cst_18 = arith.constant 0.000000e+00 : f32
    %42 = vector.broadcast %cst_17 : f32 to vector<16x128xf32>
    %43 = vector.broadcast %cst_18 : f32 to vector<16x128xf32>
    %44 = arith.select %41, %42, %43 : vector<16x128xi1>, vector<16x128xf32>
    %c0_19 = arith.constant 0 : index
    %c0_20 = arith.constant 0 : index
    %45 = vector.load %arg1[%c0_19, %c0_20] : memref<128x16xf32, #tpu.memory_space<vmem>>, vector<128x16xf32>
    %c0_21 = arith.constant 0 : index
    %c0_22 = arith.constant 0 : index
    %46 = vector.load %arg26[%c0_21, %c0_22] : memref<16x32xf32, #tpu.memory_space<vmem>>, vector<16x32xf32>
    %c0_23 = arith.constant 0 : index
    %c0_24 = arith.constant 0 : index
    %c0_25 = arith.constant 0 : index
    %47 = vector.load %arg6[%c0_23, %c0_24, %c0_25] : memref<3x32x32xf32, #tpu.memory_space<vmem>>, vector<1x32x32xf32>
    %48 = vector.shape_cast %47 : vector<1x32x32xf32> to vector<32x32xf32>
    %cst_26 = arith.constant dense<0.000000e+00> : vector<16x32xf32>
    %49 = tpu.matmul %46, %48, %cst_26 {dimension_numbers = #tpu.dot_dimension_numbers<[1], [0], [0], [1], [0, 0, 1, 1], [], []>} : vector<16x32xf32>, vector<32x32xf32>, vector<16x32xf32> -> vector<16x32xf32>
    %c0_27 = arith.constant 0 : index
    %c0_28 = arith.constant 0 : index
    %c0_29 = arith.constant 0 : index
    %50 = vector.load %arg8[%c0_27, %c0_28, %c0_29] : memref<3x32x32xf32, #tpu.memory_space<vmem>>, vector<1x32x32xf32>
    %51 = vector.shape_cast %50 : vector<1x32x32xf32> to vector<32x32xf32>
    %cst_30 = arith.constant dense<0.000000e+00> : vector<16x32xf32>
    %52 = tpu.matmul %46, %51, %cst_30 {dimension_numbers = #tpu.dot_dimension_numbers<[1], [0], [0], [1], [0, 0, 1, 1], [], []>} : vector<16x32xf32>, vector<32x32xf32>, vector<16x32xf32> -> vector<16x32xf32>
    %c0_31 = arith.constant 0 : index
    %c0_32 = arith.constant 0 : index
    %c0_33 = arith.constant 0 : index
    %53 = vector.load %arg7[%c0_31, %c0_32, %c0_33] : memref<3x32x32xf32, #tpu.memory_space<vmem>>, vector<1x32x32xf32>
    %54 = vector.shape_cast %53 : vector<1x32x32xf32> to vector<32x32xf32>
    %cst_34 = arith.constant dense<0.000000e+00> : vector<16x32xf32>
    %55 = tpu.matmul %46, %54, %cst_34 {dimension_numbers = #tpu.dot_dimension_numbers<[1], [0], [0], [1], [0, 0, 1, 1], [], []>} : vector<16x32xf32>, vector<32x32xf32>, vector<16x32xf32> -> vector<16x32xf32>
    %c0_35 = arith.constant 0 : index
    %c0_36 = arith.constant 0 : index
    %c0_37 = arith.constant 0 : index
    %56 = vector.load %arg9[%c0_35, %c0_36, %c0_37] : memref<3x32x32xf32, #tpu.memory_space<vmem>>, vector<1x32x32xf32>
    %57 = vector.shape_cast %56 : vector<1x32x32xf32> to vector<32x32xf32>
    %cst_38 = arith.constant dense<0.000000e+00> : vector<16x32xf32>
    %58 = tpu.matmul %46, %57, %cst_38 {dimension_numbers = #tpu.dot_dimension_numbers<[1], [0], [0], [1], [0, 0, 1, 1], [], []>} : vector<16x32xf32>, vector<32x32xf32>, vector<16x32xf32> -> vector<16x32xf32>
    %59 = tpu.concatenate %49, %52 in 0 : vector<16x32xf32>, vector<16x32xf32> -> vector<32x32xf32>
    %60 = tpu.concatenate %55, %58 in 0 : vector<16x32xf32>, vector<16x32xf32> -> vector<32x32xf32>
    %cst_39 = arith.constant dense<0.000000e+00> : vector<128x32xf32>
    %61 = tpu.matmul %31, %59, %cst_39 {dimension_numbers = #tpu.dot_dimension_numbers<[1], [0], [0], [1], [0, 0, 1, 1], [], []>} : vector<128x32xf32>, vector<32x32xf32>, vector<128x32xf32> -> vector<128x32xf32>
    %c0_40 = arith.constant 0 : index
    %c0_41 = arith.constant 0 : index
    %c0_42 = arith.constant 0 : index
    %62 = vector.load %arg10[%c0_40, %c0_41, %c0_42] : memref<3x16x32xf32, #tpu.memory_space<vmem>>, vector<1x16x32xf32>
    %63 = vector.shape_cast %62 : vector<1x16x32xf32> to vector<16x32xf32>
    %cst_43 = arith.constant dense<0.000000e+00> : vector<128x32xf32>
    %64 = tpu.matmul %45, %63, %cst_43 {dimension_numbers = #tpu.dot_dimension_numbers<[1], [0], [0], [1], [0, 0, 1, 1], [], []>} : vector<128x16xf32>, vector<16x32xf32>, vector<128x32xf32> -> vector<128x32xf32>
    %65 = arith.addf %61, %64 : vector<128x32xf32>
    %c0_44 = arith.constant 0 : index
    %c0_45 = arith.constant 0 : index
    %c0_46 = arith.constant 0 : index
    %66 = vector.load %arg12[%c0_44, %c0_45, %c0_46] : memref<3x1x32xf32, #tpu.memory_space<vmem>>, vector<1x1x32xf32>
    %67 = vector.shape_cast %66 : vector<1x1x32xf32> to vector<1x32xf32>
    %68 = vector.broadcast %67 : vector<1x32xf32> to vector<128x32xf32>
    %69 = arith.addf %65, %68 : vector<128x32xf32>
    %cst_47 = arith.constant dense<0.000000e+00> : vector<128x32xf32>
    %70 = tpu.matmul %31, %60, %cst_47 {dimension_numbers = #tpu.dot_dimension_numbers<[1], [0], [0], [1], [0, 0, 1, 1], [], []>} : vector<128x32xf32>, vector<32x32xf32>, vector<128x32xf32> -> vector<128x32xf32>
    %c0_48 = arith.constant 0 : index
    %c0_49 = arith.constant 0 : index
    %c0_50 = arith.constant 0 : index
    %71 = vector.load %arg11[%c0_48, %c0_49, %c0_50] : memref<3x16x32xf32, #tpu.memory_space<vmem>>, vector<1x16x32xf32>
    %72 = vector.shape_cast %71 : vector<1x16x32xf32> to vector<16x32xf32>
    %cst_51 = arith.constant dense<0.000000e+00> : vector<128x32xf32>
    %73 = tpu.matmul %45, %72, %cst_51 {dimension_numbers = #tpu.dot_dimension_numbers<[1], [0], [0], [1], [0, 0, 1, 1], [], []>} : vector<128x16xf32>, vector<16x32xf32>, vector<128x32xf32> -> vector<128x32xf32>
    %74 = arith.addf %70, %73 : vector<128x32xf32>
    %c0_52 = arith.constant 0 : index
    %c0_53 = arith.constant 0 : index
    %c0_54 = arith.constant 0 : index
    %75 = vector.load %arg13[%c0_52, %c0_53, %c0_54] : memref<3x1x32xf32, #tpu.memory_space<vmem>>, vector<1x1x32xf32>
    %76 = vector.shape_cast %75 : vector<1x1x32xf32> to vector<1x32xf32>
    %77 = vector.broadcast %76 : vector<1x32xf32> to vector<128x32xf32>
    %78 = arith.addf %74, %77 : vector<128x32xf32>
    %c0_55 = arith.constant 0 : index
    %c0_56 = arith.constant 0 : index
    %c0_57 = arith.constant 0 : index
    %79 = vector.load %arg14[%c0_55, %c0_56, %c0_57] : memref<3x1x32xf32, #tpu.memory_space<vmem>>, vector<1x1x32xf32>
    %80 = vector.shape_cast %79 : vector<1x1x32xf32> to vector<1x32xf32>
    %c0_58 = arith.constant 0 : index
    %c0_59 = arith.constant 0 : index
    %c0_60 = arith.constant 0 : index
    %81 = vector.load %arg16[%c0_58, %c0_59, %c0_60] : memref<3x1x32xf32, #tpu.memory_space<vmem>>, vector<1x1x32xf32>
    %82 = vector.shape_cast %81 : vector<1x1x32xf32> to vector<1x32xf32>
    %cst_61 = arith.constant dense<0.000000e+00> : vector<32xf32>
    %83 = vector.multi_reduction <add>, %69, %cst_61 [0] : vector<128x32xf32> to vector<32xf32>
    %84 = vector.shape_cast %83 : vector<32xf32> to vector<1x32xf32>
    %cst_62 = arith.constant 1.280000e+02 : f32
    %85 = vector.broadcast %cst_62 : f32 to vector<1x32xf32>
    %86 = arith.divf %84, %85 : vector<1x32xf32>
    %87 = arith.mulf %69, %69 : vector<128x32xf32>
    %cst_63 = arith.constant dense<0.000000e+00> : vector<32xf32>
    %88 = vector.multi_reduction <add>, %87, %cst_63 [0] : vector<128x32xf32> to vector<32xf32>
    %89 = vector.shape_cast %88 : vector<32xf32> to vector<1x32xf32>
    %cst_64 = arith.constant 1.280000e+02 : f32
    %90 = vector.broadcast %cst_64 : f32 to vector<1x32xf32>
    %91 = arith.divf %89, %90 : vector<1x32xf32>
    %92 = arith.mulf %86, %86 : vector<1x32xf32>
    %93 = arith.subf %91, %92 : vector<1x32xf32>
    %cst_65 = arith.constant 0.000000e+00 : f32
    %94 = vector.broadcast %cst_65 : f32 to vector<1x32xf32>
    %95 = arith.maximumf %93, %94 : vector<1x32xf32>
    %96 = vector.broadcast %86 : vector<1x32xf32> to vector<128x32xf32>
    %97 = arith.subf %69, %96 : vector<128x32xf32>
    %cst_66 = arith.constant 9.99999974E-6 : f32
    %98 = vector.broadcast %cst_66 : f32 to vector<1x32xf32>
    %99 = arith.addf %95, %98 : vector<1x32xf32>
    %100 = math.rsqrt %99 : vector<1x32xf32>
    %101 = vector.broadcast %100 : vector<1x32xf32> to vector<128x32xf32>
    %102 = arith.mulf %97, %101 : vector<128x32xf32>
    %103 = vector.broadcast %80 : vector<1x32xf32> to vector<128x32xf32>
    %104 = arith.mulf %102, %103 : vector<128x32xf32>
    %105 = vector.broadcast %82 : vector<1x32xf32> to vector<128x32xf32>
    %106 = arith.addf %104, %105 : vector<128x32xf32>
    %c0_67 = arith.constant 0 : index
    %c0_68 = arith.constant 0 : index
    %c0_69 = arith.constant 0 : index
    %107 = vector.load %arg15[%c0_67, %c0_68, %c0_69] : memref<3x1x32xf32, #tpu.memory_space<vmem>>, vector<1x1x32xf32>
    %108 = vector.shape_cast %107 : vector<1x1x32xf32> to vector<1x32xf32>
    %c0_70 = arith.constant 0 : index
    %c0_71 = arith.constant 0 : index
    %c0_72 = arith.constant 0 : index
    %109 = vector.load %arg17[%c0_70, %c0_71, %c0_72] : memref<3x1x32xf32, #tpu.memory_space<vmem>>, vector<1x1x32xf32>
    %110 = vector.shape_cast %109 : vector<1x1x32xf32> to vector<1x32xf32>
    %cst_73 = arith.constant dense<0.000000e+00> : vector<32xf32>
    %111 = vector.multi_reduction <add>, %78, %cst_73 [0] : vector<128x32xf32> to vector<32xf32>
    %112 = vector.shape_cast %111 : vector<32xf32> to vector<1x32xf32>
    %cst_74 = arith.constant 1.280000e+02 : f32
    %113 = vector.broadcast %cst_74 : f32 to vector<1x32xf32>
    %114 = arith.divf %112, %113 : vector<1x32xf32>
    %115 = arith.mulf %78, %78 : vector<128x32xf32>
    %cst_75 = arith.constant dense<0.000000e+00> : vector<32xf32>
    %116 = vector.multi_reduction <add>, %115, %cst_75 [0] : vector<128x32xf32> to vector<32xf32>
    %117 = vector.shape_cast %116 : vector<32xf32> to vector<1x32xf32>
    %cst_76 = arith.constant 1.280000e+02 : f32
    %118 = vector.broadcast %cst_76 : f32 to vector<1x32xf32>
    %119 = arith.divf %117, %118 : vector<1x32xf32>
    %120 = arith.mulf %114, %114 : vector<1x32xf32>
    %121 = arith.subf %119, %120 : vector<1x32xf32>
    %cst_77 = arith.constant 0.000000e+00 : f32
    %122 = vector.broadcast %cst_77 : f32 to vector<1x32xf32>
    %123 = arith.maximumf %121, %122 : vector<1x32xf32>
    %124 = vector.broadcast %114 : vector<1x32xf32> to vector<128x32xf32>
    %125 = arith.subf %78, %124 : vector<128x32xf32>
    %cst_78 = arith.constant 9.99999974E-6 : f32
    %126 = vector.broadcast %cst_78 : f32 to vector<1x32xf32>
    %127 = arith.addf %123, %126 : vector<1x32xf32>
    %128 = math.rsqrt %127 : vector<1x32xf32>
    %129 = vector.broadcast %128 : vector<1x32xf32> to vector<128x32xf32>
    %130 = arith.mulf %125, %129 : vector<128x32xf32>
    %131 = vector.broadcast %108 : vector<1x32xf32> to vector<128x32xf32>
    %132 = arith.mulf %130, %131 : vector<128x32xf32>
    %133 = vector.broadcast %110 : vector<1x32xf32> to vector<128x32xf32>
    %134 = arith.addf %132, %133 : vector<128x32xf32>
    %cst_79 = arith.constant 0.000000e+00 : f32
    %135 = vector.broadcast %cst_79 : f32 to vector<128x32xf32>
    %136 = arith.subf %135, %106 : vector<128x32xf32>
    %137 = math.exp %136 : vector<128x32xf32>
    %cst_80 = arith.constant 1.000000e+00 : f32
    %138 = vector.broadcast %cst_80 : f32 to vector<128x32xf32>
    %139 = arith.addf %138, %137 : vector<128x32xf32>
    %cst_81 = arith.constant 1.000000e+00 : f32
    %140 = vector.broadcast %cst_81 : f32 to vector<128x32xf32>
    %141 = arith.divf %140, %139 : vector<128x32xf32>
    %cst_82 = arith.constant 2.000000e+01 : f32
    %142 = vector.broadcast %cst_82 : f32 to vector<128x32xf32>
    %143 = arith.cmpf ogt, %134, %142 : vector<128x32xf32>
    %cst_83 = arith.constant 2.000000e+01 : f32
    %144 = vector.broadcast %cst_83 : f32 to vector<128x32xf32>
    %145 = arith.minimumf %134, %144 : vector<128x32xf32>
    %146 = math.exp %145 : vector<128x32xf32>
    %cst_84 = arith.constant 1.000000e+00 : f32
    %147 = vector.broadcast %cst_84 : f32 to vector<128x32xf32>
    %148 = arith.addf %147, %146 : vector<128x32xf32>
    %149 = math.log %148 : vector<128x32xf32>
    %150 = arith.select %143, %134, %149 : vector<128x32xi1>, vector<128x32xf32>
    %151 = arith.mulf %141, %150 : vector<128x32xf32>
    %cst_85 = arith.constant dense<0.000000e+00> : vector<16x32xf32>
    %152 = tpu.matmul %44, %151, %cst_85 {dimension_numbers = #tpu.dot_dimension_numbers<[1], [0], [0], [1], [0, 0, 1, 1], [], []>} : vector<16x128xf32>, vector<128x32xf32>, vector<16x32xf32> -> vector<16x32xf32>
    %c0_86 = arith.constant 0 : index
    %c0_87 = arith.constant 0 : index
    %c0_88 = arith.constant 0 : index
    %153 = vector.load %arg18[%c0_86, %c0_87, %c0_88] : memref<3x1x32xf32, #tpu.memory_space<vmem>>, vector<1x1x32xf32>
    %154 = vector.shape_cast %153 : vector<1x1x32xf32> to vector<1x32xf32>
    %c0_89 = arith.constant 0 : index
    %c0_90 = arith.constant 0 : index
    %c0_91 = arith.constant 0 : index
    %155 = vector.load %arg19[%c0_89, %c0_90, %c0_91] : memref<3x1x32xf32, #tpu.memory_space<vmem>>, vector<1x1x32xf32>
    %156 = vector.shape_cast %155 : vector<1x1x32xf32> to vector<1x32xf32>
    %cst_92 = arith.constant dense<0.000000e+00> : vector<32xf32>
    %157 = vector.multi_reduction <add>, %152, %cst_92 [0] : vector<16x32xf32> to vector<32xf32>
    %158 = vector.shape_cast %157 : vector<32xf32> to vector<1x32xf32>
    %cst_93 = arith.constant 1.600000e+01 : f32
    %159 = vector.broadcast %cst_93 : f32 to vector<1x32xf32>
    %160 = arith.divf %158, %159 : vector<1x32xf32>
    %161 = arith.mulf %152, %152 : vector<16x32xf32>
    %cst_94 = arith.constant dense<0.000000e+00> : vector<32xf32>
    %162 = vector.multi_reduction <add>, %161, %cst_94 [0] : vector<16x32xf32> to vector<32xf32>
    %163 = vector.shape_cast %162 : vector<32xf32> to vector<1x32xf32>
    %cst_95 = arith.constant 1.600000e+01 : f32
    %164 = vector.broadcast %cst_95 : f32 to vector<1x32xf32>
    %165 = arith.divf %163, %164 : vector<1x32xf32>
    %166 = arith.mulf %160, %160 : vector<1x32xf32>
    %167 = arith.subf %165, %166 : vector<1x32xf32>
    %cst_96 = arith.constant 0.000000e+00 : f32
    %168 = vector.broadcast %cst_96 : f32 to vector<1x32xf32>
    %169 = arith.maximumf %167, %168 : vector<1x32xf32>
    %170 = vector.broadcast %160 : vector<1x32xf32> to vector<16x32xf32>
    %171 = arith.subf %152, %170 : vector<16x32xf32>
    %cst_97 = arith.constant 9.99999974E-6 : f32
    %172 = vector.broadcast %cst_97 : f32 to vector<1x32xf32>
    %173 = arith.addf %169, %172 : vector<1x32xf32>
    %174 = math.rsqrt %173 : vector<1x32xf32>
    %175 = vector.broadcast %174 : vector<1x32xf32> to vector<16x32xf32>
    %176 = arith.mulf %171, %175 : vector<16x32xf32>
    %177 = vector.broadcast %154 : vector<1x32xf32> to vector<16x32xf32>
    %178 = arith.mulf %176, %177 : vector<16x32xf32>
    %179 = vector.broadcast %156 : vector<1x32xf32> to vector<16x32xf32>
    %180 = arith.addf %178, %179 : vector<16x32xf32>
    %181 = arith.addf %46, %180 : vector<16x32xf32>
    %cst_98 = arith.constant 2.000000e+01 : f32
    %182 = vector.broadcast %cst_98 : f32 to vector<16x32xf32>
    %183 = arith.cmpf ogt, %181, %182 : vector<16x32xf32>
    %cst_99 = arith.constant 2.000000e+01 : f32
    %184 = vector.broadcast %cst_99 : f32 to vector<16x32xf32>
    %185 = arith.minimumf %181, %184 : vector<16x32xf32>
    %186 = math.exp %185 : vector<16x32xf32>
    %cst_100 = arith.constant 1.000000e+00 : f32
    %187 = vector.broadcast %cst_100 : f32 to vector<16x32xf32>
    %188 = arith.addf %187, %186 : vector<16x32xf32>
    %189 = math.log %188 : vector<16x32xf32>
    %190 = arith.select %183, %181, %189 : vector<16x32xi1>, vector<16x32xf32>
    %c0_101 = arith.constant 0 : index
    %c0_102 = arith.constant 0 : index
    %191 = vector.load %arg26[%c0_101, %c0_102] : memref<16x32xf32, #tpu.memory_space<vmem>>, vector<16x32xf32>
    tpu.vector_store %arg26[%c0_101, %c0_102], %190 {strides = array<i32>} : memref<16x32xf32, #tpu.memory_space<vmem>>, vector<16x32xf32>,
    %c0_103 = arith.constant 0 : index
    %c0_104 = arith.constant 0 : index
    %192 = vector.load %arg26[%c0_103, %c0_104] : memref<16x32xf32, #tpu.memory_space<vmem>>, vector<16x32xf32>
    %c1 = arith.constant 1 : index
    %c0_105 = arith.constant 0 : index
    %c0_106 = arith.constant 0 : index
    %193 = vector.load %arg6[%c1, %c0_105, %c0_106] : memref<3x32x32xf32, #tpu.memory_space<vmem>>, vector<1x32x32xf32>
    %194 = vector.shape_cast %193 : vector<1x32x32xf32> to vector<32x32xf32>
    %cst_107 = arith.constant dense<0.000000e+00> : vector<16x32xf32>
    %195 = tpu.matmul %192, %194, %cst_107 {dimension_numbers = #tpu.dot_dimension_numbers<[1], [0], [0], [1], [0, 0, 1, 1], [], []>} : vector<16x32xf32>, vector<32x32xf32>, vector<16x32xf32> -> vector<16x32xf32>
    %c1_108 = arith.constant 1 : index
    %c0_109 = arith.constant 0 : index
    %c0_110 = arith.constant 0 : index
    %196 = vector.load %arg8[%c1_108, %c0_109, %c0_110] : memref<3x32x32xf32, #tpu.memory_space<vmem>>, vector<1x32x32xf32>
    %197 = vector.shape_cast %196 : vector<1x32x32xf32> to vector<32x32xf32>
    %cst_111 = arith.constant dense<0.000000e+00> : vector<16x32xf32>
    %198 = tpu.matmul %192, %197, %cst_111 {dimension_numbers = #tpu.dot_dimension_numbers<[1], [0], [0], [1], [0, 0, 1, 1], [], []>} : vector<16x32xf32>, vector<32x32xf32>, vector<16x32xf32> -> vector<16x32xf32>
    %c1_112 = arith.constant 1 : index
    %c0_113 = arith.constant 0 : index
    %c0_114 = arith.constant 0 : index
    %199 = vector.load %arg7[%c1_112, %c0_113, %c0_114] : memref<3x32x32xf32, #tpu.memory_space<vmem>>, vector<1x32x32xf32>
    %200 = vector.shape_cast %199 : vector<1x32x32xf32> to vector<32x32xf32>
    %cst_115 = arith.constant dense<0.000000e+00> : vector<16x32xf32>
    %201 = tpu.matmul %192, %200, %cst_115 {dimension_numbers = #tpu.dot_dimension_numbers<[1], [0], [0], [1], [0, 0, 1, 1], [], []>} : vector<16x32xf32>, vector<32x32xf32>, vector<16x32xf32> -> vector<16x32xf32>
    %c1_116 = arith.constant 1 : index
    %c0_117 = arith.constant 0 : index
    %c0_118 = arith.constant 0 : index
    %202 = vector.load %arg9[%c1_116, %c0_117, %c0_118] : memref<3x32x32xf32, #tpu.memory_space<vmem>>, vector<1x32x32xf32>
    %203 = vector.shape_cast %202 : vector<1x32x32xf32> to vector<32x32xf32>
    %cst_119 = arith.constant dense<0.000000e+00> : vector<16x32xf32>
    %204 = tpu.matmul %192, %203, %cst_119 {dimension_numbers = #tpu.dot_dimension_numbers<[1], [0], [0], [1], [0, 0, 1, 1], [], []>} : vector<16x32xf32>, vector<32x32xf32>, vector<16x32xf32> -> vector<16x32xf32>
    %205 = tpu.concatenate %195, %198 in 0 : vector<16x32xf32>, vector<16x32xf32> -> vector<32x32xf32>
    %206 = tpu.concatenate %201, %204 in 0 : vector<16x32xf32>, vector<16x32xf32> -> vector<32x32xf32>
    %cst_120 = arith.constant dense<0.000000e+00> : vector<128x32xf32>
    %207 = tpu.matmul %31, %205, %cst_120 {dimension_numbers = #tpu.dot_dimension_numbers<[1], [0], [0], [1], [0, 0, 1, 1], [], []>} : vector<128x32xf32>, vector<32x32xf32>, vector<128x32xf32> -> vector<128x32xf32>
    %c1_121 = arith.constant 1 : index
    %c0_122 = arith.constant 0 : index
    %c0_123 = arith.constant 0 : index
    %208 = vector.load %arg10[%c1_121, %c0_122, %c0_123] : memref<3x16x32xf32, #tpu.memory_space<vmem>>, vector<1x16x32xf32>
    %209 = vector.shape_cast %208 : vector<1x16x32xf32> to vector<16x32xf32>
    %cst_124 = arith.constant dense<0.000000e+00> : vector<128x32xf32>
    %210 = tpu.matmul %45, %209, %cst_124 {dimension_numbers = #tpu.dot_dimension_numbers<[1], [0], [0], [1], [0, 0, 1, 1], [], []>} : vector<128x16xf32>, vector<16x32xf32>, vector<128x32xf32> -> vector<128x32xf32>
    %211 = arith.addf %207, %210 : vector<128x32xf32>
    %c1_125 = arith.constant 1 : index
    %c0_126 = arith.constant 0 : index
    %c0_127 = arith.constant 0 : index
    %212 = vector.load %arg12[%c1_125, %c0_126, %c0_127] : memref<3x1x32xf32, #tpu.memory_space<vmem>>, vector<1x1x32xf32>
    %213 = vector.shape_cast %212 : vector<1x1x32xf32> to vector<1x32xf32>
    %214 = vector.broadcast %213 : vector<1x32xf32> to vector<128x32xf32>
    %215 = arith.addf %211, %214 : vector<128x32xf32>
    %cst_128 = arith.constant dense<0.000000e+00> : vector<128x32xf32>
    %216 = tpu.matmul %31, %206, %cst_128 {dimension_numbers = #tpu.dot_dimension_numbers<[1], [0], [0], [1], [0, 0, 1, 1], [], []>} : vector<128x32xf32>, vector<32x32xf32>, vector<128x32xf32> -> vector<128x32xf32>
    %c1_129 = arith.constant 1 : index
    %c0_130 = arith.constant 0 : index
    %c0_131 = arith.constant 0 : index
    %217 = vector.load %arg11[%c1_129, %c0_130, %c0_131] : memref<3x16x32xf32, #tpu.memory_space<vmem>>, vector<1x16x32xf32>
    %218 = vector.shape_cast %217 : vector<1x16x32xf32> to vector<16x32xf32>
    %cst_132 = arith.constant dense<0.000000e+00> : vector<128x32xf32>
    %219 = tpu.matmul %45, %218, %cst_132 {dimension_numbers = #tpu.dot_dimension_numbers<[1], [0], [0], [1], [0, 0, 1, 1], [], []>} : vector<128x16xf32>, vector<16x32xf32>, vector<128x32xf32> -> vector<128x32xf32>
    %220 = arith.addf %216, %219 : vector<128x32xf32>
    %c1_133 = arith.constant 1 : index
    %c0_134 = arith.constant 0 : index
    %c0_135 = arith.constant 0 : index
    %221 = vector.load %arg13[%c1_133, %c0_134, %c0_135] : memref<3x1x32xf32, #tpu.memory_space<vmem>>, vector<1x1x32xf32>
    %222 = vector.shape_cast %221 : vector<1x1x32xf32> to vector<1x32xf32>
    %223 = vector.broadcast %222 : vector<1x32xf32> to vector<128x32xf32>
    %224 = arith.addf %220, %223 : vector<128x32xf32>
    %c1_136 = arith.constant 1 : index
    %c0_137 = arith.constant 0 : index
    %c0_138 = arith.constant 0 : index
    %225 = vector.load %arg14[%c1_136, %c0_137, %c0_138] : memref<3x1x32xf32, #tpu.memory_space<vmem>>, vector<1x1x32xf32>
    %226 = vector.shape_cast %225 : vector<1x1x32xf32> to vector<1x32xf32>
    %c1_139 = arith.constant 1 : index
    %c0_140 = arith.constant 0 : index
    %c0_141 = arith.constant 0 : index
    %227 = vector.load %arg16[%c1_139, %c0_140, %c0_141] : memref<3x1x32xf32, #tpu.memory_space<vmem>>, vector<1x1x32xf32>
    %228 = vector.shape_cast %227 : vector<1x1x32xf32> to vector<1x32xf32>
    %cst_142 = arith.constant dense<0.000000e+00> : vector<32xf32>
    %229 = vector.multi_reduction <add>, %215, %cst_142 [0] : vector<128x32xf32> to vector<32xf32>
    %230 = vector.shape_cast %229 : vector<32xf32> to vector<1x32xf32>
    %cst_143 = arith.constant 1.280000e+02 : f32
    %231 = vector.broadcast %cst_143 : f32 to vector<1x32xf32>
    %232 = arith.divf %230, %231 : vector<1x32xf32>
    %233 = arith.mulf %215, %215 : vector<128x32xf32>
    %cst_144 = arith.constant dense<0.000000e+00> : vector<32xf32>
    %234 = vector.multi_reduction <add>, %233, %cst_144 [0] : vector<128x32xf32> to vector<32xf32>
    %235 = vector.shape_cast %234 : vector<32xf32> to vector<1x32xf32>
    %cst_145 = arith.constant 1.280000e+02 : f32
    %236 = vector.broadcast %cst_145 : f32 to vector<1x32xf32>
    %237 = arith.divf %235, %236 : vector<1x32xf32>
    %238 = arith.mulf %232, %232 : vector<1x32xf32>
    %239 = arith.subf %237, %238 : vector<1x32xf32>
    %cst_146 = arith.constant 0.000000e+00 : f32
    %240 = vector.broadcast %cst_146 : f32 to vector<1x32xf32>
    %241 = arith.maximumf %239, %240 : vector<1x32xf32>
    %242 = vector.broadcast %232 : vector<1x32xf32> to vector<128x32xf32>
    %243 = arith.subf %215, %242 : vector<128x32xf32>
    %cst_147 = arith.constant 9.99999974E-6 : f32
    %244 = vector.broadcast %cst_147 : f32 to vector<1x32xf32>
    %245 = arith.addf %241, %244 : vector<1x32xf32>
    %246 = math.rsqrt %245 : vector<1x32xf32>
    %247 = vector.broadcast %246 : vector<1x32xf32> to vector<128x32xf32>
    %248 = arith.mulf %243, %247 : vector<128x32xf32>
    %249 = vector.broadcast %226 : vector<1x32xf32> to vector<128x32xf32>
    %250 = arith.mulf %248, %249 : vector<128x32xf32>
    %251 = vector.broadcast %228 : vector<1x32xf32> to vector<128x32xf32>
    %252 = arith.addf %250, %251 : vector<128x32xf32>
    %c1_148 = arith.constant 1 : index
    %c0_149 = arith.constant 0 : index
    %c0_150 = arith.constant 0 : index
    %253 = vector.load %arg15[%c1_148, %c0_149, %c0_150] : memref<3x1x32xf32, #tpu.memory_space<vmem>>, vector<1x1x32xf32>
    %254 = vector.shape_cast %253 : vector<1x1x32xf32> to vector<1x32xf32>
    %c1_151 = arith.constant 1 : index
    %c0_152 = arith.constant 0 : index
    %c0_153 = arith.constant 0 : index
    %255 = vector.load %arg17[%c1_151, %c0_152, %c0_153] : memref<3x1x32xf32, #tpu.memory_space<vmem>>, vector<1x1x32xf32>
    %256 = vector.shape_cast %255 : vector<1x1x32xf32> to vector<1x32xf32>
    %cst_154 = arith.constant dense<0.000000e+00> : vector<32xf32>
    %257 = vector.multi_reduction <add>, %224, %cst_154 [0] : vector<128x32xf32> to vector<32xf32>
    %258 = vector.shape_cast %257 : vector<32xf32> to vector<1x32xf32>
    %cst_155 = arith.constant 1.280000e+02 : f32
    %259 = vector.broadcast %cst_155 : f32 to vector<1x32xf32>
    %260 = arith.divf %258, %259 : vector<1x32xf32>
    %261 = arith.mulf %224, %224 : vector<128x32xf32>
    %cst_156 = arith.constant dense<0.000000e+00> : vector<32xf32>
    %262 = vector.multi_reduction <add>, %261, %cst_156 [0] : vector<128x32xf32> to vector<32xf32>
    %263 = vector.shape_cast %262 : vector<32xf32> to vector<1x32xf32>
    %cst_157 = arith.constant 1.280000e+02 : f32
    %264 = vector.broadcast %cst_157 : f32 to vector<1x32xf32>
    %265 = arith.divf %263, %264 : vector<1x32xf32>
    %266 = arith.mulf %260, %260 : vector<1x32xf32>
    %267 = arith.subf %265, %266 : vector<1x32xf32>
    %cst_158 = arith.constant 0.000000e+00 : f32
    %268 = vector.broadcast %cst_158 : f32 to vector<1x32xf32>
    %269 = arith.maximumf %267, %268 : vector<1x32xf32>
    %270 = vector.broadcast %260 : vector<1x32xf32> to vector<128x32xf32>
    %271 = arith.subf %224, %270 : vector<128x32xf32>
    %cst_159 = arith.constant 9.99999974E-6 : f32
    %272 = vector.broadcast %cst_159 : f32 to vector<1x32xf32>
    %273 = arith.addf %269, %272 : vector<1x32xf32>
    %274 = math.rsqrt %273 : vector<1x32xf32>
    %275 = vector.broadcast %274 : vector<1x32xf32> to vector<128x32xf32>
    %276 = arith.mulf %271, %275 : vector<128x32xf32>
    %277 = vector.broadcast %254 : vector<1x32xf32> to vector<128x32xf32>
    %278 = arith.mulf %276, %277 : vector<128x32xf32>
    %279 = vector.broadcast %256 : vector<1x32xf32> to vector<128x32xf32>
    %280 = arith.addf %278, %279 : vector<128x32xf32>
    %cst_160 = arith.constant 0.000000e+00 : f32
    %281 = vector.broadcast %cst_160 : f32 to vector<128x32xf32>
    %282 = arith.subf %281, %252 : vector<128x32xf32>
    %283 = math.exp %282 : vector<128x32xf32>
    %cst_161 = arith.constant 1.000000e+00 : f32
    %284 = vector.broadcast %cst_161 : f32 to vector<128x32xf32>
    %285 = arith.addf %284, %283 : vector<128x32xf32>
    %cst_162 = arith.constant 1.000000e+00 : f32
    %286 = vector.broadcast %cst_162 : f32 to vector<128x32xf32>
    %287 = arith.divf %286, %285 : vector<128x32xf32>
    %cst_163 = arith.constant 2.000000e+01 : f32
    %288 = vector.broadcast %cst_163 : f32 to vector<128x32xf32>
    %289 = arith.cmpf ogt, %280, %288 : vector<128x32xf32>
    %cst_164 = arith.constant 2.000000e+01 : f32
    %290 = vector.broadcast %cst_164 : f32 to vector<128x32xf32>
    %291 = arith.minimumf %280, %290 : vector<128x32xf32>
    %292 = math.exp %291 : vector<128x32xf32>
    %cst_165 = arith.constant 1.000000e+00 : f32
    %293 = vector.broadcast %cst_165 : f32 to vector<128x32xf32>
    %294 = arith.addf %293, %292 : vector<128x32xf32>
    %295 = math.log %294 : vector<128x32xf32>
    %296 = arith.select %289, %280, %295 : vector<128x32xi1>, vector<128x32xf32>
    %297 = arith.mulf %287, %296 : vector<128x32xf32>
    %cst_166 = arith.constant dense<0.000000e+00> : vector<16x32xf32>
    %298 = tpu.matmul %44, %297, %cst_166 {dimension_numbers = #tpu.dot_dimension_numbers<[1], [0], [0], [1], [0, 0, 1, 1], [], []>} : vector<16x128xf32>, vector<128x32xf32>, vector<16x32xf32> -> vector<16x32xf32>
    %c1_167 = arith.constant 1 : index
    %c0_168 = arith.constant 0 : index
    %c0_169 = arith.constant 0 : index
    %299 = vector.load %arg18[%c1_167, %c0_168, %c0_169] : memref<3x1x32xf32, #tpu.memory_space<vmem>>, vector<1x1x32xf32>
    %300 = vector.shape_cast %299 : vector<1x1x32xf32> to vector<1x32xf32>
    %c1_170 = arith.constant 1 : index
    %c0_171 = arith.constant 0 : index
    %c0_172 = arith.constant 0 : index
    %301 = vector.load %arg19[%c1_170, %c0_171, %c0_172] : memref<3x1x32xf32, #tpu.memory_space<vmem>>, vector<1x1x32xf32>
    %302 = vector.shape_cast %301 : vector<1x1x32xf32> to vector<1x32xf32>
    %cst_173 = arith.constant dense<0.000000e+00> : vector<32xf32>
    %303 = vector.multi_reduction <add>, %298, %cst_173 [0] : vector<16x32xf32> to vector<32xf32>
    %304 = vector.shape_cast %303 : vector<32xf32> to vector<1x32xf32>
    %cst_174 = arith.constant 1.600000e+01 : f32
    %305 = vector.broadcast %cst_174 : f32 to vector<1x32xf32>
    %306 = arith.divf %304, %305 : vector<1x32xf32>
    %307 = arith.mulf %298, %298 : vector<16x32xf32>
    %cst_175 = arith.constant dense<0.000000e+00> : vector<32xf32>
    %308 = vector.multi_reduction <add>, %307, %cst_175 [0] : vector<16x32xf32> to vector<32xf32>
    %309 = vector.shape_cast %308 : vector<32xf32> to vector<1x32xf32>
    %cst_176 = arith.constant 1.600000e+01 : f32
    %310 = vector.broadcast %cst_176 : f32 to vector<1x32xf32>
    %311 = arith.divf %309, %310 : vector<1x32xf32>
    %312 = arith.mulf %306, %306 : vector<1x32xf32>
    %313 = arith.subf %311, %312 : vector<1x32xf32>
    %cst_177 = arith.constant 0.000000e+00 : f32
    %314 = vector.broadcast %cst_177 : f32 to vector<1x32xf32>
    %315 = arith.maximumf %313, %314 : vector<1x32xf32>
    %316 = vector.broadcast %306 : vector<1x32xf32> to vector<16x32xf32>
    %317 = arith.subf %298, %316 : vector<16x32xf32>
    %cst_178 = arith.constant 9.99999974E-6 : f32
    %318 = vector.broadcast %cst_178 : f32 to vector<1x32xf32>
    %319 = arith.addf %315, %318 : vector<1x32xf32>
    %320 = math.rsqrt %319 : vector<1x32xf32>
    %321 = vector.broadcast %320 : vector<1x32xf32> to vector<16x32xf32>
    %322 = arith.mulf %317, %321 : vector<16x32xf32>
    %323 = vector.broadcast %300 : vector<1x32xf32> to vector<16x32xf32>
    %324 = arith.mulf %322, %323 : vector<16x32xf32>
    %325 = vector.broadcast %302 : vector<1x32xf32> to vector<16x32xf32>
    %326 = arith.addf %324, %325 : vector<16x32xf32>
    %327 = arith.addf %192, %326 : vector<16x32xf32>
    %cst_179 = arith.constant 2.000000e+01 : f32
    %328 = vector.broadcast %cst_179 : f32 to vector<16x32xf32>
    %329 = arith.cmpf ogt, %327, %328 : vector<16x32xf32>
    %cst_180 = arith.constant 2.000000e+01 : f32
    %330 = vector.broadcast %cst_180 : f32 to vector<16x32xf32>
    %331 = arith.minimumf %327, %330 : vector<16x32xf32>
    %332 = math.exp %331 : vector<16x32xf32>
    %cst_181 = arith.constant 1.000000e+00 : f32
    %333 = vector.broadcast %cst_181 : f32 to vector<16x32xf32>
    %334 = arith.addf %333, %332 : vector<16x32xf32>
    %335 = math.log %334 : vector<16x32xf32>
    %336 = arith.select %329, %327, %335 : vector<16x32xi1>, vector<16x32xf32>
    %c0_182 = arith.constant 0 : index
    %c0_183 = arith.constant 0 : index
    %337 = vector.load %arg26[%c0_182, %c0_183] : memref<16x32xf32, #tpu.memory_space<vmem>>, vector<16x32xf32>
    tpu.vector_store %arg26[%c0_182, %c0_183], %336 {strides = array<i32>} : memref<16x32xf32, #tpu.memory_space<vmem>>, vector<16x32xf32>,
    %c0_184 = arith.constant 0 : index
    %c0_185 = arith.constant 0 : index
    %338 = vector.load %arg26[%c0_184, %c0_185] : memref<16x32xf32, #tpu.memory_space<vmem>>, vector<16x32xf32>
    %c2 = arith.constant 2 : index
    %c0_186 = arith.constant 0 : index
    %c0_187 = arith.constant 0 : index
    %339 = vector.load %arg6[%c2, %c0_186, %c0_187] : memref<3x32x32xf32, #tpu.memory_space<vmem>>, vector<1x32x32xf32>
    %340 = vector.shape_cast %339 : vector<1x32x32xf32> to vector<32x32xf32>
    %cst_188 = arith.constant dense<0.000000e+00> : vector<16x32xf32>
    %341 = tpu.matmul %338, %340, %cst_188 {dimension_numbers = #tpu.dot_dimension_numbers<[1], [0], [0], [1], [0, 0, 1, 1], [], []>} : vector<16x32xf32>, vector<32x32xf32>, vector<16x32xf32> -> vector<16x32xf32>
    %c2_189 = arith.constant 2 : index
    %c0_190 = arith.constant 0 : index
    %c0_191 = arith.constant 0 : index
    %342 = vector.load %arg8[%c2_189, %c0_190, %c0_191] : memref<3x32x32xf32, #tpu.memory_space<vmem>>, vector<1x32x32xf32>
    %343 = vector.shape_cast %342 : vector<1x32x32xf32> to vector<32x32xf32>
    %cst_192 = arith.constant dense<0.000000e+00> : vector<16x32xf32>
    %344 = tpu.matmul %338, %343, %cst_192 {dimension_numbers = #tpu.dot_dimension_numbers<[1], [0], [0], [1], [0, 0, 1, 1], [], []>} : vector<16x32xf32>, vector<32x32xf32>, vector<16x32xf32> -> vector<16x32xf32>
    %c2_193 = arith.constant 2 : index
    %c0_194 = arith.constant 0 : index
    %c0_195 = arith.constant 0 : index
    %345 = vector.load %arg7[%c2_193, %c0_194, %c0_195] : memref<3x32x32xf32, #tpu.memory_space<vmem>>, vector<1x32x32xf32>
    %346 = vector.shape_cast %345 : vector<1x32x32xf32> to vector<32x32xf32>
    %cst_196 = arith.constant dense<0.000000e+00> : vector<16x32xf32>
    %347 = tpu.matmul %338, %346, %cst_196 {dimension_numbers = #tpu.dot_dimension_numbers<[1], [0], [0], [1], [0, 0, 1, 1], [], []>} : vector<16x32xf32>, vector<32x32xf32>, vector<16x32xf32> -> vector<16x32xf32>
    %c2_197 = arith.constant 2 : index
    %c0_198 = arith.constant 0 : index
    %c0_199 = arith.constant 0 : index
    %348 = vector.load %arg9[%c2_197, %c0_198, %c0_199] : memref<3x32x32xf32, #tpu.memory_space<vmem>>, vector<1x32x32xf32>
    %349 = vector.shape_cast %348 : vector<1x32x32xf32> to vector<32x32xf32>
    %cst_200 = arith.constant dense<0.000000e+00> : vector<16x32xf32>
    %350 = tpu.matmul %338, %349, %cst_200 {dimension_numbers = #tpu.dot_dimension_numbers<[1], [0], [0], [1], [0, 0, 1, 1], [], []>} : vector<16x32xf32>, vector<32x32xf32>, vector<16x32xf32> -> vector<16x32xf32>
    %351 = tpu.concatenate %341, %344 in 0 : vector<16x32xf32>, vector<16x32xf32> -> vector<32x32xf32>
    %352 = tpu.concatenate %347, %350 in 0 : vector<16x32xf32>, vector<16x32xf32> -> vector<32x32xf32>
    %cst_201 = arith.constant dense<0.000000e+00> : vector<128x32xf32>
    %353 = tpu.matmul %31, %351, %cst_201 {dimension_numbers = #tpu.dot_dimension_numbers<[1], [0], [0], [1], [0, 0, 1, 1], [], []>} : vector<128x32xf32>, vector<32x32xf32>, vector<128x32xf32> -> vector<128x32xf32>
    %c2_202 = arith.constant 2 : index
    %c0_203 = arith.constant 0 : index
    %c0_204 = arith.constant 0 : index
    %354 = vector.load %arg10[%c2_202, %c0_203, %c0_204] : memref<3x16x32xf32, #tpu.memory_space<vmem>>, vector<1x16x32xf32>
    %355 = vector.shape_cast %354 : vector<1x16x32xf32> to vector<16x32xf32>
    %cst_205 = arith.constant dense<0.000000e+00> : vector<128x32xf32>
    %356 = tpu.matmul %45, %355, %cst_205 {dimension_numbers = #tpu.dot_dimension_numbers<[1], [0], [0], [1], [0, 0, 1, 1], [], []>} : vector<128x16xf32>, vector<16x32xf32>, vector<128x32xf32> -> vector<128x32xf32>
    %357 = arith.addf %353, %356 : vector<128x32xf32>
    %c2_206 = arith.constant 2 : index
    %c0_207 = arith.constant 0 : index
    %c0_208 = arith.constant 0 : index
    %358 = vector.load %arg12[%c2_206, %c0_207, %c0_208] : memref<3x1x32xf32, #tpu.memory_space<vmem>>, vector<1x1x32xf32>
    %359 = vector.shape_cast %358 : vector<1x1x32xf32> to vector<1x32xf32>
    %360 = vector.broadcast %359 : vector<1x32xf32> to vector<128x32xf32>
    %361 = arith.addf %357, %360 : vector<128x32xf32>
    %cst_209 = arith.constant dense<0.000000e+00> : vector<128x32xf32>
    %362 = tpu.matmul %31, %352, %cst_209 {dimension_numbers = #tpu.dot_dimension_numbers<[1], [0], [0], [1], [0, 0, 1, 1], [], []>} : vector<128x32xf32>, vector<32x32xf32>, vector<128x32xf32> -> vector<128x32xf32>
    %c2_210 = arith.constant 2 : index
    %c0_211 = arith.constant 0 : index
    %c0_212 = arith.constant 0 : index
    %363 = vector.load %arg11[%c2_210, %c0_211, %c0_212] : memref<3x16x32xf32, #tpu.memory_space<vmem>>, vector<1x16x32xf32>
    %364 = vector.shape_cast %363 : vector<1x16x32xf32> to vector<16x32xf32>
    %cst_213 = arith.constant dense<0.000000e+00> : vector<128x32xf32>
    %365 = tpu.matmul %45, %364, %cst_213 {dimension_numbers = #tpu.dot_dimension_numbers<[1], [0], [0], [1], [0, 0, 1, 1], [], []>} : vector<128x16xf32>, vector<16x32xf32>, vector<128x32xf32> -> vector<128x32xf32>
    %366 = arith.addf %362, %365 : vector<128x32xf32>
    %c2_214 = arith.constant 2 : index
    %c0_215 = arith.constant 0 : index
    %c0_216 = arith.constant 0 : index
    %367 = vector.load %arg13[%c2_214, %c0_215, %c0_216] : memref<3x1x32xf32, #tpu.memory_space<vmem>>, vector<1x1x32xf32>
    %368 = vector.shape_cast %367 : vector<1x1x32xf32> to vector<1x32xf32>
    %369 = vector.broadcast %368 : vector<1x32xf32> to vector<128x32xf32>
    %370 = arith.addf %366, %369 : vector<128x32xf32>
    %c2_217 = arith.constant 2 : index
    %c0_218 = arith.constant 0 : index
    %c0_219 = arith.constant 0 : index
    %371 = vector.load %arg14[%c2_217, %c0_218, %c0_219] : memref<3x1x32xf32, #tpu.memory_space<vmem>>, vector<1x1x32xf32>
    %372 = vector.shape_cast %371 : vector<1x1x32xf32> to vector<1x32xf32>
    %c2_220 = arith.constant 2 : index
    %c0_221 = arith.constant 0 : index
    %c0_222 = arith.constant 0 : index
    %373 = vector.load %arg16[%c2_220, %c0_221, %c0_222] : memref<3x1x32xf32, #tpu.memory_space<vmem>>, vector<1x1x32xf32>
    %374 = vector.shape_cast %373 : vector<1x1x32xf32> to vector<1x32xf32>
    %cst_223 = arith.constant dense<0.000000e+00> : vector<32xf32>
    %375 = vector.multi_reduction <add>, %361, %cst_223 [0] : vector<128x32xf32> to vector<32xf32>
    %376 = vector.shape_cast %375 : vector<32xf32> to vector<1x32xf32>
    %cst_224 = arith.constant 1.280000e+02 : f32
    %377 = vector.broadcast %cst_224 : f32 to vector<1x32xf32>
    %378 = arith.divf %376, %377 : vector<1x32xf32>
    %379 = arith.mulf %361, %361 : vector<128x32xf32>
    %cst_225 = arith.constant dense<0.000000e+00> : vector<32xf32>
    %380 = vector.multi_reduction <add>, %379, %cst_225 [0] : vector<128x32xf32> to vector<32xf32>
    %381 = vector.shape_cast %380 : vector<32xf32> to vector<1x32xf32>
    %cst_226 = arith.constant 1.280000e+02 : f32
    %382 = vector.broadcast %cst_226 : f32 to vector<1x32xf32>
    %383 = arith.divf %381, %382 : vector<1x32xf32>
    %384 = arith.mulf %378, %378 : vector<1x32xf32>
    %385 = arith.subf %383, %384 : vector<1x32xf32>
    %cst_227 = arith.constant 0.000000e+00 : f32
    %386 = vector.broadcast %cst_227 : f32 to vector<1x32xf32>
    %387 = arith.maximumf %385, %386 : vector<1x32xf32>
    %388 = vector.broadcast %378 : vector<1x32xf32> to vector<128x32xf32>
    %389 = arith.subf %361, %388 : vector<128x32xf32>
    %cst_228 = arith.constant 9.99999974E-6 : f32
    %390 = vector.broadcast %cst_228 : f32 to vector<1x32xf32>
    %391 = arith.addf %387, %390 : vector<1x32xf32>
    %392 = math.rsqrt %391 : vector<1x32xf32>
    %393 = vector.broadcast %392 : vector<1x32xf32> to vector<128x32xf32>
    %394 = arith.mulf %389, %393 : vector<128x32xf32>
    %395 = vector.broadcast %372 : vector<1x32xf32> to vector<128x32xf32>
    %396 = arith.mulf %394, %395 : vector<128x32xf32>
    %397 = vector.broadcast %374 : vector<1x32xf32> to vector<128x32xf32>
    %398 = arith.addf %396, %397 : vector<128x32xf32>
    %c2_229 = arith.constant 2 : index
    %c0_230 = arith.constant 0 : index
    %c0_231 = arith.constant 0 : index
    %399 = vector.load %arg15[%c2_229, %c0_230, %c0_231] : memref<3x1x32xf32, #tpu.memory_space<vmem>>, vector<1x1x32xf32>
    %400 = vector.shape_cast %399 : vector<1x1x32xf32> to vector<1x32xf32>
    %c2_232 = arith.constant 2 : index
    %c0_233 = arith.constant 0 : index
    %c0_234 = arith.constant 0 : index
    %401 = vector.load %arg17[%c2_232, %c0_233, %c0_234] : memref<3x1x32xf32, #tpu.memory_space<vmem>>, vector<1x1x32xf32>
    %402 = vector.shape_cast %401 : vector<1x1x32xf32> to vector<1x32xf32>
    %cst_235 = arith.constant dense<0.000000e+00> : vector<32xf32>
    %403 = vector.multi_reduction <add>, %370, %cst_235 [0] : vector<128x32xf32> to vector<32xf32>
    %404 = vector.shape_cast %403 : vector<32xf32> to vector<1x32xf32>
    %cst_236 = arith.constant 1.280000e+02 : f32
    %405 = vector.broadcast %cst_236 : f32 to vector<1x32xf32>
    %406 = arith.divf %404, %405 : vector<1x32xf32>
    %407 = arith.mulf %370, %370 : vector<128x32xf32>
    %cst_237 = arith.constant dense<0.000000e+00> : vector<32xf32>
    %408 = vector.multi_reduction <add>, %407, %cst_237 [0] : vector<128x32xf32> to vector<32xf32>
    %409 = vector.shape_cast %408 : vector<32xf32> to vector<1x32xf32>
    %cst_238 = arith.constant 1.280000e+02 : f32
    %410 = vector.broadcast %cst_238 : f32 to vector<1x32xf32>
    %411 = arith.divf %409, %410 : vector<1x32xf32>
    %412 = arith.mulf %406, %406 : vector<1x32xf32>
    %413 = arith.subf %411, %412 : vector<1x32xf32>
    %cst_239 = arith.constant 0.000000e+00 : f32
    %414 = vector.broadcast %cst_239 : f32 to vector<1x32xf32>
    %415 = arith.maximumf %413, %414 : vector<1x32xf32>
    %416 = vector.broadcast %406 : vector<1x32xf32> to vector<128x32xf32>
    %417 = arith.subf %370, %416 : vector<128x32xf32>
    %cst_240 = arith.constant 9.99999974E-6 : f32
    %418 = vector.broadcast %cst_240 : f32 to vector<1x32xf32>
    %419 = arith.addf %415, %418 : vector<1x32xf32>
    %420 = math.rsqrt %419 : vector<1x32xf32>
    %421 = vector.broadcast %420 : vector<1x32xf32> to vector<128x32xf32>
    %422 = arith.mulf %417, %421 : vector<128x32xf32>
    %423 = vector.broadcast %400 : vector<1x32xf32> to vector<128x32xf32>
    %424 = arith.mulf %422, %423 : vector<128x32xf32>
    %425 = vector.broadcast %402 : vector<1x32xf32> to vector<128x32xf32>
    %426 = arith.addf %424, %425 : vector<128x32xf32>
    %cst_241 = arith.constant 0.000000e+00 : f32
    %427 = vector.broadcast %cst_241 : f32 to vector<128x32xf32>
    %428 = arith.subf %427, %398 : vector<128x32xf32>
    %429 = math.exp %428 : vector<128x32xf32>
    %cst_242 = arith.constant 1.000000e+00 : f32
    %430 = vector.broadcast %cst_242 : f32 to vector<128x32xf32>
    %431 = arith.addf %430, %429 : vector<128x32xf32>
    %cst_243 = arith.constant 1.000000e+00 : f32
    %432 = vector.broadcast %cst_243 : f32 to vector<128x32xf32>
    %433 = arith.divf %432, %431 : vector<128x32xf32>
    %cst_244 = arith.constant 2.000000e+01 : f32
    %434 = vector.broadcast %cst_244 : f32 to vector<128x32xf32>
    %435 = arith.cmpf ogt, %426, %434 : vector<128x32xf32>
    %cst_245 = arith.constant 2.000000e+01 : f32
    %436 = vector.broadcast %cst_245 : f32 to vector<128x32xf32>
    %437 = arith.minimumf %426, %436 : vector<128x32xf32>
    %438 = math.exp %437 : vector<128x32xf32>
    %cst_246 = arith.constant 1.000000e+00 : f32
    %439 = vector.broadcast %cst_246 : f32 to vector<128x32xf32>
    %440 = arith.addf %439, %438 : vector<128x32xf32>
    %441 = math.log %440 : vector<128x32xf32>
    %442 = arith.select %435, %426, %441 : vector<128x32xi1>, vector<128x32xf32>
    %443 = arith.mulf %433, %442 : vector<128x32xf32>
    %cst_247 = arith.constant dense<0.000000e+00> : vector<16x32xf32>
    %444 = tpu.matmul %44, %443, %cst_247 {dimension_numbers = #tpu.dot_dimension_numbers<[1], [0], [0], [1], [0, 0, 1, 1], [], []>} : vector<16x128xf32>, vector<128x32xf32>, vector<16x32xf32> -> vector<16x32xf32>
    %c2_248 = arith.constant 2 : index
    %c0_249 = arith.constant 0 : index
    %c0_250 = arith.constant 0 : index
    %445 = vector.load %arg18[%c2_248, %c0_249, %c0_250] : memref<3x1x32xf32, #tpu.memory_space<vmem>>, vector<1x1x32xf32>
    %446 = vector.shape_cast %445 : vector<1x1x32xf32> to vector<1x32xf32>
    %c2_251 = arith.constant 2 : index
    %c0_252 = arith.constant 0 : index
    %c0_253 = arith.constant 0 : index
    %447 = vector.load %arg19[%c2_251, %c0_252, %c0_253] : memref<3x1x32xf32, #tpu.memory_space<vmem>>, vector<1x1x32xf32>
    %448 = vector.shape_cast %447 : vector<1x1x32xf32> to vector<1x32xf32>
    %cst_254 = arith.constant dense<0.000000e+00> : vector<32xf32>
    %449 = vector.multi_reduction <add>, %444, %cst_254 [0] : vector<16x32xf32> to vector<32xf32>
    %450 = vector.shape_cast %449 : vector<32xf32> to vector<1x32xf32>
    %cst_255 = arith.constant 1.600000e+01 : f32
    %451 = vector.broadcast %cst_255 : f32 to vector<1x32xf32>
    %452 = arith.divf %450, %451 : vector<1x32xf32>
    %453 = arith.mulf %444, %444 : vector<16x32xf32>
    %cst_256 = arith.constant dense<0.000000e+00> : vector<32xf32>
    %454 = vector.multi_reduction <add>, %453, %cst_256 [0] : vector<16x32xf32> to vector<32xf32>
    %455 = vector.shape_cast %454 : vector<32xf32> to vector<1x32xf32>
    %cst_257 = arith.constant 1.600000e+01 : f32
    %456 = vector.broadcast %cst_257 : f32 to vector<1x32xf32>
    %457 = arith.divf %455, %456 : vector<1x32xf32>
    %458 = arith.mulf %452, %452 : vector<1x32xf32>
    %459 = arith.subf %457, %458 : vector<1x32xf32>
    %cst_258 = arith.constant 0.000000e+00 : f32
    %460 = vector.broadcast %cst_258 : f32 to vector<1x32xf32>
    %461 = arith.maximumf %459, %460 : vector<1x32xf32>
    %462 = vector.broadcast %452 : vector<1x32xf32> to vector<16x32xf32>
    %463 = arith.subf %444, %462 : vector<16x32xf32>
    %cst_259 = arith.constant 9.99999974E-6 : f32
    %464 = vector.broadcast %cst_259 : f32 to vector<1x32xf32>
    %465 = arith.addf %461, %464 : vector<1x32xf32>
    %466 = math.rsqrt %465 : vector<1x32xf32>
    %467 = vector.broadcast %466 : vector<1x32xf32> to vector<16x32xf32>
    %468 = arith.mulf %463, %467 : vector<16x32xf32>
    %469 = vector.broadcast %446 : vector<1x32xf32> to vector<16x32xf32>
    %470 = arith.mulf %468, %469 : vector<16x32xf32>
    %471 = vector.broadcast %448 : vector<1x32xf32> to vector<16x32xf32>
    %472 = arith.addf %470, %471 : vector<16x32xf32>
    %473 = arith.addf %338, %472 : vector<16x32xf32>
    %cst_260 = arith.constant 2.000000e+01 : f32
    %474 = vector.broadcast %cst_260 : f32 to vector<16x32xf32>
    %475 = arith.cmpf ogt, %473, %474 : vector<16x32xf32>
    %cst_261 = arith.constant 2.000000e+01 : f32
    %476 = vector.broadcast %cst_261 : f32 to vector<16x32xf32>
    %477 = arith.minimumf %473, %476 : vector<16x32xf32>
    %478 = math.exp %477 : vector<16x32xf32>
    %cst_262 = arith.constant 1.000000e+00 : f32
    %479 = vector.broadcast %cst_262 : f32 to vector<16x32xf32>
    %480 = arith.addf %479, %478 : vector<16x32xf32>
    %481 = math.log %480 : vector<16x32xf32>
    %482 = arith.select %475, %473, %481 : vector<16x32xi1>, vector<16x32xf32>
    %c0_263 = arith.constant 0 : index
    %c0_264 = arith.constant 0 : index
    %483 = vector.load %arg26[%c0_263, %c0_264] : memref<16x32xf32, #tpu.memory_space<vmem>>, vector<16x32xf32>
    tpu.vector_store %arg26[%c0_263, %c0_264], %482 {strides = array<i32>} : memref<16x32xf32, #tpu.memory_space<vmem>>, vector<16x32xf32>,
    %c0_265 = arith.constant 0 : index
    %c0_266 = arith.constant 0 : index
    %484 = vector.load %arg3[%c0_265, %c0_266] : memref<2x16xf32, #tpu.memory_space<vmem>>, vector<2x16xf32>
    %c0_267 = arith.constant 0 : index
    %c0_268 = arith.constant 0 : index
    %485 = vector.load %arg26[%c0_267, %c0_268] : memref<16x32xf32, #tpu.memory_space<vmem>>, vector<16x32xf32>
    %cst_269 = arith.constant dense<0.000000e+00> : vector<2x32xf32>
    %486 = tpu.matmul %484, %485, %cst_269 {dimension_numbers = #tpu.dot_dimension_numbers<[1], [0], [0], [1], [0, 0, 1, 1], [], []>} : vector<2x16xf32>, vector<16x32xf32>, vector<2x32xf32> -> vector<2x32xf32>
    %cst_270 = arith.constant 2.000000e+01 : f32
    %487 = vector.broadcast %cst_270 : f32 to vector<2x32xf32>
    %488 = arith.cmpf ogt, %486, %487 : vector<2x32xf32>
    %cst_271 = arith.constant 2.000000e+01 : f32
    %489 = vector.broadcast %cst_271 : f32 to vector<2x32xf32>
    %490 = arith.minimumf %486, %489 : vector<2x32xf32>
    %491 = math.exp %490 : vector<2x32xf32>
    %cst_272 = arith.constant 1.000000e+00 : f32
    %492 = vector.broadcast %cst_272 : f32 to vector<2x32xf32>
    %493 = arith.addf %492, %491 : vector<2x32xf32>
    %494 = math.log %493 : vector<2x32xf32>
    %495 = arith.select %488, %486, %494 : vector<2x32xi1>, vector<2x32xf32>
    %c0_273 = arith.constant 0 : index
    %c0_274 = arith.constant 0 : index
    %496 = vector.load %arg20[%c0_273, %c0_274] : memref<32x64xf32, #tpu.memory_space<vmem>>, vector<32x64xf32>
    %cst_275 = arith.constant dense<0.000000e+00> : vector<2x64xf32>
    %497 = tpu.matmul %495, %496, %cst_275 {dimension_numbers = #tpu.dot_dimension_numbers<[1], [0], [0], [1], [0, 0, 1, 1], [], []>} : vector<2x32xf32>, vector<32x64xf32>, vector<2x64xf32> -> vector<2x64xf32>
    %c0_276 = arith.constant 0 : index
    %c0_277 = arith.constant 0 : index
    %498 = vector.load %arg21[%c0_276, %c0_277] : memref<1x64xf32, #tpu.memory_space<vmem>>, vector<1x64xf32>
    %499 = vector.broadcast %498 : vector<1x64xf32> to vector<2x64xf32>
    %500 = arith.addf %497, %499 : vector<2x64xf32>
    %cst_278 = arith.constant 2.000000e+01 : f32
    %501 = vector.broadcast %cst_278 : f32 to vector<2x64xf32>
    %502 = arith.cmpf ogt, %500, %501 : vector<2x64xf32>
    %cst_279 = arith.constant 2.000000e+01 : f32
    %503 = vector.broadcast %cst_279 : f32 to vector<2x64xf32>
    %504 = arith.minimumf %500, %503 : vector<2x64xf32>
    %505 = math.exp %504 : vector<2x64xf32>
    %cst_280 = arith.constant 1.000000e+00 : f32
    %506 = vector.broadcast %cst_280 : f32 to vector<2x64xf32>
    %507 = arith.addf %506, %505 : vector<2x64xf32>
    %508 = math.log %507 : vector<2x64xf32>
    %509 = arith.select %502, %500, %508 : vector<2x64xi1>, vector<2x64xf32>
    %c0_281 = arith.constant 0 : index
    %c0_282 = arith.constant 0 : index
    %510 = vector.load %arg25[%c0_281, %c0_282] : memref<2x64xf32, #tpu.memory_space<vmem>>, vector<2x64xf32>
    tpu.vector_store %arg25[%c0_281, %c0_282], %509 {strides = array<i32>} : memref<2x64xf32, #tpu.memory_space<vmem>>, vector<2x64xf32>,
    %c0_283 = arith.constant 0 : index
    %c0_284 = arith.constant 0 : index
    %511 = vector.load %arg22[%c0_283, %c0_284] : memref<64x1xf32, #tpu.memory_space<vmem>>, vector<64x1xf32>
    %cst_285 = arith.constant dense<0.000000e+00> : vector<2x1xf32>
    %512 = tpu.matmul %509, %511, %cst_285 {dimension_numbers = #tpu.dot_dimension_numbers<[1], [0], [0], [1], [0, 0, 1, 1], [], []>} : vector<2x64xf32>, vector<64x1xf32>, vector<2x1xf32> -> vector<2x1xf32>
    %c0_286 = arith.constant 0 : index
    %c0_287 = arith.constant 0 : index
    %513 = vector.load %arg23[%c0_286, %c0_287] : memref<1x1xf32, #tpu.memory_space<vmem>>, vector<1x1xf32>
    %514 = vector.broadcast %513 : vector<1x1xf32> to vector<2x1xf32>
    %515 = arith.addf %512, %514 : vector<2x1xf32>
    %c0_288 = arith.constant 0 : index
    %c0_289 = arith.constant 0 : index
    %516 = vector.load %arg24[%c0_288, %c0_289] : memref<2x1xf32, #tpu.memory_space<vmem>>, vector<2x1xf32>
    tpu.vector_store %arg24[%c0_288, %c0_289], %515 {strides = array<i32>} : memref<2x1xf32, #tpu.memory_space<vmem>>, vector<2x1xf32>,
    return
  }
}

</mosaic_0001>

<bundles_post_ra>
// kernel: crystal_graph_conv_net.1
= control target key start
LH: loop header
LB: loop body
LE: loop exit
PB: predicated region body
PF: predicated region fallthrough
CT: control target
= control target key end

     0   :  { %s11532_s0 = inlined_call_operand.vmem [shape: f32[16,24], index: 0, kind: input, shape index: {}]   ;;  %s11533_s1 = inlined_call_operand.vmem [shape: f32[128,16], index: 1, kind: input, shape index: {}]   ;;  %s11534_s2 = inlined_call_operand.vmem [shape: s32[128,1], index: 2, kind: input, shape index: {}]   ;;  %s11535_s3 = inlined_call_operand.hbm [shape: f32[2,16], index: 3, kind: input, shape index: {}]   ;;  %s11536_s4 = inlined_call_operand.vmem [shape: f32[24,32], index: 4, kind: input, shape index: {}]   ;;  %s11537_s5 = inlined_call_operand.vmem [shape: f32[1,32], index: 5, kind: input, shape index: {}]   ;;  %s11538_s6 = inlined_call_operand.vmem [shape: f32[3,32,32], index: 6, kind: input, shape index: {}]   ;;  %s11539_s7 = inlined_call_operand.hbm [shape: f32[3,32,32], index: 7, kind: input, shape index: {}]   ;;  %s11540_s8 = inlined_call_operand.hbm [shape: f32[3,32,32], index: 8, kind: input, shape index: {}]   ;;  %s11541_s9 = inlined_call_operand.hbm [shape: f32[3,32,32], index: 9, kind: input, shape index: {}]   ;;  %s11542_s10 = inlined_call_operand.hbm [shape: f32[3,16,32], index: 10, kind: input, shape index: {}]   ;;  %s11543_s11 = inlined_call_operand.hbm [shape: f32[3,16,32], index: 11, kind: input, shape index: {}]   ;;  %s11544_s12 = inlined_call_operand.hbm [shape: f32[3,1,32], index: 12, kind: input, shape index: {}]   ;;  %s11545_s13 = inlined_call_operand.hbm [shape: f32[3,1,32], index: 13, kind: input, shape index: {}]   ;;  %s11546_s14 = inlined_call_operand.hbm [shape: f32[3,1,32], index: 14, kind: input, shape index: {}]   ;;  %s11547_s15 = inlined_call_operand.hbm [shape: f32[3,1,32], index: 15, kind: input, shape index: {}]   ;;  %s11548_s16 = inlined_call_operand.hbm [shape: f32[3,1,32], index: 16, kind: input, shape index: {}]   ;;  %s11549_s17 = inlined_call_operand.hbm [shape: f32[3,1,32], index: 17, kind: input, shape index: {}]   ;;  %s11550_s18 = inlined_call_operand.hbm [shape: f32[3,1,32], index: 18, kind: input, shape index: {}]   ;;  %s11551_s19 = inlined_call_operand.hbm [shape: f32[3,1,32], index: 19, kind: input, shape index: {}]   ;;  %s11552_s20 = inlined_call_operand.hbm [shape: f32[32,64], index: 20, kind: input, shape index: {}]   ;;  %s11553_s21 = inlined_call_operand.hbm [shape: f32[1,64], index: 21, kind: input, shape index: {}]   ;;  %s11554_s22 = inlined_call_operand.vmem [shape: f32[64,1], index: 22, kind: input, shape index: {}]   ;;  %s11555_s23 = inlined_call_operand.<no memory space> [shape: f32[1,1], index: 23, kind: input, shape index: {}]   ;;  %s11556_s24 = inlined_call_operand.vmem [shape: f32[2,1], index: 24, kind: output, shape index: {0}]   ;;  %s11557_s25 = inlined_call_operand.hbm [shape: f32[2,64], index: 25, kind: output, shape index: {1}]  }
   0x1   :  { %11599 = sst [smem:[#allocation51_spill]] %s11532_s0  ;;  %v31_v0 = vstv %s11555_s23 }
   0x2   :  { %11600 = sst [smem:[#allocation52_spill]] %s11533_s1  ;;  %32 = vst [vmem:[#allocation3] sm:$0x1] %v31_v0 }
   0x3   :  { %11601 = sst [smem:[#allocation53_spill]] %s11534_s2 }
   0x4   :  { %11602 = sst [smem:[#allocation54_spill]] %s11535_s3 }
   0x5   :  { %11603 = sst [smem:[#allocation55_spill]] %s11536_s4 }
   0x6   :  { %11604 = sst [smem:[#allocation56_spill]] %s11537_s5 }
   0x7   :  { %11605 = sst [smem:[#allocation57_spill]] %s11538_s6 }
   0x8   :  { %11606 = sst [smem:[#allocation58_spill]] %s11539_s7 }
   0x9   :  { %11607 = sst [smem:[#allocation59_spill]] %s11540_s8 }
   0xa   :  { %11608 = sst [smem:[#allocation60_spill]] %s11541_s9 }
   0xb   :  { %33 = vsyncpa [#allocation5], 0 }
   0xc   :  { %34 = vsyncpa [#allocation8], 0 }
   0xd   :  { %35 = vsyncpa [#allocation11], 0 }
   0xe   :  { %36 = vsyncpa [#allocation14], 0 }
   0xf   :  { %37 = vsyncpa [#allocation17], 0 }
  0x10   :  { %38 = vsyncpa [#allocation20], 0 }
  0x11   :  { %39 = vsyncpa [#allocation23], 0 }
  0x12   :  { %40 = vsyncpa [#allocation26], 0 }
  0x13   :  { %41 = vsyncpa [#allocation29], 0 }
  0x14   :  { %42 = vsyncpa [#allocation6], 0  ;;  %s8283_s6 = smov [#allocation7]  }
  0x15   :  { %s70_s30 = sshll.u32 %s8283_s6, 4  ;;  %s71_s30 = int_to_ptr.vmem [resolvable:$true] %s70_s30 }
  0x16   :  { %s7931_s7 = scalar_lea.vmem %s71_s30, 1536  ;;  %p7936_p1 = scmp.lt.s32.totalorder %s71_s30, %s71_s30 }
  0x17   :  { %p7932_p0 = scmp.ne.s32.totalorder %s71_s30, %s7931_s7  ;;  %p7937_p2 = scmp.lt.s32.totalorder %s7931_s7, %s7931_s7 }
  0x19   :  { %p7938_p3 = por %p7937_p2, %p7936_p1 }
  0x1b   :  { %p7939_p4 = pnand %p7938_p3, %p7932_p0 }
  0x1d   :  { %7942 = shalt.err (!%p7939_p4)
}
  0x1e   :  { %s8284_s23 = smov 128   ;;  %s8285_s3 = smov 8  }
  0x1f   :  { %s11609_s8 = sld [smem:[#allocation58_spill]]  ;;  %s8286_s27 = smov [#allocation10]  }
  0x20   :  { %s94_s4 = sshll.u32 %s8286_s27, 4  ;;  %s8287_s28 = smov [#allocation13]   ;;  %s95_s4 = int_to_ptr.vmem [resolvable:$true] %s94_s4 }
  0x21   :  { %s118_s9 = sshll.u32 %s8287_s28, 4  ;;  %s7951_s5 = scalar_lea.vmem %s95_s4, 1536  ;;  %s119_s9 = int_to_ptr.vmem [resolvable:$true] %s118_s9 }
  0x22   :  { %p7952_p5 = scmp.ne.s32.totalorder %s95_s4, %s7951_s5  ;;  %p7956_p6 = scmp.lt.s32.totalorder %s95_s4, %s95_s4 }
  0x23   :  { %p7957_p7 = scmp.lt.s32.totalorder %s7951_s5, %s7951_s5 }
  0x25   :  { %76 = dma.hbm_to_vmem [thread:$0]  %s11609_s8, 1536, %s71_s30, [#allocation8], %s8284_s23, %s8284_s23, %s8285_s3  }
  0x26   :  { %p7958_p8 = por %p7957_p7, %p7956_p6 }
  0x28   :  { %p7959_p9 = pnand %p7958_p8, %p7952_p5 }
  0x2a   :  { %7962 = shalt.err (!%p7959_p9)
}
  0x2b   :  { %s11610_s2 = sld [smem:[#allocation60_spill]]  ;;  %s7971_s6 = scalar_lea.vmem %s119_s9, 768 }
  0x2c   :  { %p7972_p10 = scmp.ne.s32.totalorder %s119_s9, %s7971_s6  ;;  %p7976_p11 = scmp.lt.s32.totalorder %s119_s9, %s119_s9 }
  0x2d   :  { %p7977_p12 = scmp.lt.s32.totalorder %s7971_s6, %s7971_s6 }
  0x2f   :  { %p7978_p13 = por %p7977_p12, %p7976_p11 }
  0x31   :  { %100 = dma.hbm_to_vmem [thread:$0]  %s11610_s2, 1536, %s95_s4, [#allocation11], %s8284_s23, %s8284_s23, %s8285_s3  }
  0x32   :  { %p7979_p0 = pnand %p7978_p13, %p7972_p10 }
  0x34   :  { %7982 = shalt.err (!%p7979_p0)
}
  0x35   :  { %124 = dma.hbm_to_vmem [thread:$0]  %s11543_s11, 768, %s119_s9, [#allocation14], %s8284_s23, %s8284_s23, %s8285_s3  }
  0x36   :  { %s8288_s26 = smov [#allocation16]   ;;  %s8289_s8 = smov [#allocation19]  }
  0x37   :  { %s142_s1 = sshll.u32 %s8288_s26, 4  ;;  %s166_s27 = sshll.u32 %s8289_s8, 4  ;;  %s143_s1 = int_to_ptr.vmem [resolvable:$true] %s142_s1  ;;  %s167_s27 = int_to_ptr.vmem [resolvable:$true] %s166_s27 }
  0x38   :  { %s7991_s4 = scalar_lea.vmem %s143_s1, 48  ;;  %s7995_s28 = scalar_lea.vmem %s143_s1, 64 }
  0x39   :  { %p7992_p1 = scmp.ne.s32.totalorder %s143_s1, %s7991_s4  ;;  %p7996_p2 = scmp.lt.s32.totalorder %s143_s1, %s143_s1 }
  0x3a   :  { %p7997_p3 = scmp.lt.s32.totalorder %s7995_s28, %s7991_s4 }
  0x3c   :  { %p7998_p4 = por %p7997_p3, %p7996_p2 }
  0x3e   :  { %p7999_p5 = pnand %p7998_p4, %p7992_p1 }
  0x40   :  { %8002 = shalt.err (!%p7999_p5)
}
  0x41   :  { %s8290_s5 = smov 16   ;;  %s8291_s0 = smov 1  }
  0x42   :  { %148 = dma.hbm_to_vmem [thread:$0]  %s11545_s13, 48, %s143_s1, [#allocation17], %s8290_s5, %s8290_s5, %s8291_s0  }
  0x43   :  { %s8011_s9 = scalar_lea.vmem %s167_s27, 48  ;;  %s8015_s2 = scalar_lea.vmem %s167_s27, 64 }
  0x44   :  { %p8012_p6 = scmp.ne.s32.totalorder %s167_s27, %s8011_s9  ;;  %p8016_p7 = scmp.lt.s32.totalorder %s167_s27, %s167_s27 }
  0x45   :  { %p8017_p8 = scmp.lt.s32.totalorder %s8015_s2, %s8011_s9 }
  0x47   :  { %p8018_p9 = por %p8017_p8, %p8016_p7 }
  0x49   :  { %p8019_p10 = pnand %p8018_p9, %p8012_p6 }
  0x4b   :  { %8022 = shalt.err (!%p8019_p10)
}
  0x4c   :  { %172 = dma.hbm_to_vmem [thread:$0]  %s11547_s15, 48, %s167_s27, [#allocation20], %s8290_s5, %s8290_s5, %s8291_s0  }
  0x4d   :  { %s8292_s7 = smov [#allocation22]   ;;  %s8293_s13 = smov [#allocation25]  }
  0x4e   :  { %s190_s26 = sshll.u32 %s8292_s7, 4  ;;  %s214_s1 = sshll.u32 %s8293_s13, 4  ;;  %s191_s26 = int_to_ptr.vmem [resolvable:$true] %s190_s26  ;;  %s215_s1 = int_to_ptr.vmem [resolvable:$true] %s214_s1 }
  0x4f   :  { %s8031_s8 = scalar_lea.vmem %s191_s26, 48  ;;  %s8035_s4 = scalar_lea.vmem %s191_s26, 64 }
  0x50   :  { %p8032_p11 = scmp.ne.s32.totalorder %s191_s26, %s8031_s8  ;;  %p8036_p12 = scmp.lt.s32.totalorder %s191_s26, %s191_s26 }
  0x51   :  { %p8037_p13 = scmp.lt.s32.totalorder %s8035_s4, %s8031_s8 }
  0x53   :  { %p8038_p0 = por %p8037_p13, %p8036_p12 }
  0x55   :  { %p8039_p1 = pnand %p8038_p0, %p8032_p11 }
  0x57   :  { %8042 = shalt.err (!%p8039_p1)
}
  0x58   :  { %196 = dma.hbm_to_vmem [thread:$0]  %s11549_s17, 48, %s191_s26, [#allocation23], %s8290_s5, %s8290_s5, %s8291_s0  }
  0x59   :  { %s8051_s15 = scalar_lea.vmem %s215_s1, 48  ;;  %s8055_s27 = scalar_lea.vmem %s215_s1, 64 }
  0x5a   :  { %p8052_p2 = scmp.ne.s32.totalorder %s215_s1, %s8051_s15  ;;  %p8056_p3 = scmp.lt.s32.totalorder %s215_s1, %s215_s1 }
  0x5b   :  { %p8057_p4 = scmp.lt.s32.totalorder %s8055_s27, %s8051_s15 }
  0x5d   :  { %p8058_p5 = por %p8057_p4, %p8056_p3 }
  0x5f   :  { %p8059_p6 = pnand %p8058_p5, %p8052_p2 }
  0x61   :  { %8062 = shalt.err (!%p8059_p6)
}
  0x62   :  { %220 = dma.hbm_to_vmem [thread:$0]  %s11551_s19, 48, %s215_s1, [#allocation26], %s8290_s5, %s8290_s5, %s8291_s0  }
  0x63   :  { %s8294_s2 = smov [#allocation4]   ;;  %s8295_s17 = smov [#allocation9]  }
  0x64   :  { %s55_s6 = sshll.u32 %s8294_s2, 4  ;;  %s82_s30 = sshll.u32 %s8295_s17, 4  ;;  %s56_s6 = int_to_ptr.vmem [resolvable:$true] %s55_s6  ;;  %s83_s30 = int_to_ptr.vmem [resolvable:$true] %s82_s30 }
  0x65   :  { %s8071_s7 = scalar_lea.vmem %s56_s6, 32  ;;  %p8076_p8 = scmp.lt.s32.totalorder %s56_s6, %s56_s6 }
  0x66   :  { %p8072_p7 = scmp.ne.s32.totalorder %s56_s6, %s8071_s7  ;;  %p8077_p9 = scmp.lt.s32.totalorder %s8071_s7, %s8071_s7 }
  0x68   :  { %p8078_p10 = por %p8077_p9, %p8076_p8 }
  0x6a   :  { %p8079_p11 = pnand %p8078_p10, %p8072_p7 }
  0x6c   :  { %8082 = shalt.err (!%p8079_p11)
}
  0x6d   :  { %s11611_s8 = sld [smem:[#allocation54_spill]]  ;;  %s8091_s4 = scalar_lea.vmem %s83_s30, 1536 }
  0x6e   :  { %p8092_p12 = scmp.ne.s32.totalorder %s83_s30, %s8091_s4  ;;  %p8096_p13 = scmp.lt.s32.totalorder %s83_s30, %s83_s30 }
  0x6f   :  { %p8097_p0 = scmp.lt.s32.totalorder %s8091_s4, %s8091_s4 }
  0x71   :  { %p8098_p1 = por %p8097_p0, %p8096_p13 }
  0x73   :  { %58 = dma.hbm_to_vmem [thread:$0]  %s11611_s8, 32, %s56_s6, [#allocation5]  }
  0x74   :  { %p8099_p2 = pnand %p8098_p1, %p8092_p12 }
  0x76   :  { %8102 = shalt.err (!%p8099_p2)
}
  0x77   :  { %s11612_s28 = sld [smem:[#allocation59_spill]]  ;;  %s8296_s29 = smov [#allocation12]  }
  0x78   :  { %s106_s15 = sshll.u32 %s8296_s29, 4  ;;  %s8297_s27 = smov [#allocation15]   ;;  %s107_s15 = int_to_ptr.vmem [resolvable:$true] %s106_s15 }
  0x79   :  { %s130_s11 = sshll.u32 %s8297_s27, 4  ;;  %s8111_s9 = scalar_lea.vmem %s107_s15, 768  ;;  %s131_s11 = int_to_ptr.vmem [resolvable:$true] %s130_s11 }
  0x7a   :  { %p8112_p3 = scmp.ne.s32.totalorder %s107_s15, %s8111_s9  ;;  %p8116_p4 = scmp.lt.s32.totalorder %s107_s15, %s107_s15 }
  0x7b   :  { %p8117_p5 = scmp.lt.s32.totalorder %s8111_s9, %s8111_s9 }
  0x7d   :  { %88 = dma.hbm_to_vmem [thread:$0]  %s11612_s28, 1536, %s83_s30, [#allocation8], %s8284_s23, %s8284_s23, %s8285_s3  }
  0x7e   :  { %p8118_p6 = por %p8117_p5, %p8116_p4 }
  0x80   :  { %p8119_p7 = pnand %p8118_p6, %p8112_p3 }
  0x82   :  { %8122 = shalt.err (!%p8119_p7)
}
  0x83   :  { %112 = dma.hbm_to_vmem [thread:$0]  %s11542_s10, 768, %s107_s15, [#allocation11], %s8284_s23, %s8284_s23, %s8285_s3  }
  0x84   :  { %s8131_s17 = scalar_lea.vmem %s131_s11, 48  ;;  %s8135_s30 = scalar_lea.vmem %s131_s11, 64 }
  0x85   :  { %p8132_p8 = scmp.ne.s32.totalorder %s131_s11, %s8131_s17  ;;  %p8136_p9 = scmp.lt.s32.totalorder %s131_s11, %s131_s11 }
  0x86   :  { %p8137_p10 = scmp.lt.s32.totalorder %s8135_s30, %s8131_s17 }
  0x88   :  { %p8138_p11 = por %p8137_p10, %p8136_p9 }
  0x8a   :  { %p8139_p12 = pnand %p8138_p11, %p8132_p8 }
  0x8c   :  { %8142 = shalt.err (!%p8139_p12)
}
  0x8d   :  { %136 = dma.hbm_to_vmem [thread:$0]  %s11544_s12, 48, %s131_s11, [#allocation14], %s8290_s5, %s8290_s5, %s8291_s0  }
  0x8e   :  { %s8298_s13 = smov [#allocation18]   ;;  %s8299_s10 = smov [#allocation21]  }
  0x8f   :  { %s154_s8 = sshll.u32 %s8298_s13, 4  ;;  %s178_s4 = sshll.u32 %s8299_s10, 4  ;;  %s155_s8 = int_to_ptr.vmem [resolvable:$true] %s154_s8  ;;  %s179_s4 = int_to_ptr.vmem [resolvable:$true] %s178_s4 }
  0x90   :  { %s8151_s19 = scalar_lea.vmem %s155_s8, 48  ;;  %s8155_s1 = scalar_lea.vmem %s155_s8, 64 }
  0x91   :  { %p8152_p13 = scmp.ne.s32.totalorder %s155_s8, %s8151_s19  ;;  %p8156_p0 = scmp.lt.s32.totalorder %s155_s8, %s155_s8 }
  0x92   :  { %p8157_p1 = scmp.lt.s32.totalorder %s8155_s1, %s8151_s19 }
  0x94   :  { %p8158_p2 = por %p8157_p1, %p8156_p0 }
  0x96   :  { %p8159_p3 = pnand %p8158_p2, %p8152_p13 }
  0x98   :  { %8162 = shalt.err (!%p8159_p3)
}
  0x99   :  { %160 = dma.hbm_to_vmem [thread:$0]  %s11546_s14, 48, %s155_s8, [#allocation17], %s8290_s5, %s8290_s5, %s8291_s0  }
  0x9a   :  { %s8171_s12 = scalar_lea.vmem %s179_s4, 48  ;;  %s8175_s15 = scalar_lea.vmem %s179_s4, 64 }
  0x9b   :  { %p8172_p4 = scmp.ne.s32.totalorder %s179_s4, %s8171_s12  ;;  %p8176_p5 = scmp.lt.s32.totalorder %s179_s4, %s179_s4 }
  0x9c   :  { %p8177_p6 = scmp.lt.s32.totalorder %s8175_s15, %s8171_s12 }
  0x9e   :  { %p8178_p7 = por %p8177_p6, %p8176_p5 }
  0xa0   :  { %p8179_p8 = pnand %p8178_p7, %p8172_p4 }
  0xa2   :  { %8182 = shalt.err (!%p8179_p8)
}
  0xa3   :  { %184 = dma.hbm_to_vmem [thread:$0]  %s11548_s16, 48, %s179_s4, [#allocation20], %s8290_s5, %s8290_s5, %s8291_s0  }
  0xa4   :  { %s8300_s9 = smov [#allocation24]   ;;  %s8301_s14 = smov [#allocation27]  }
  0xa5   :  { %s202_s2 = sshll.u32 %s8300_s9, 4  ;;  %s226_s6 = sshll.u32 %s8301_s14, 4  ;;  %s203_s2 = int_to_ptr.vmem [resolvable:$true] %s202_s2  ;;  %s227_s6 = int_to_ptr.vmem [resolvable:$true] %s226_s6 }
  0xa6   :  { %s8191_s17 = scalar_lea.vmem %s203_s2, 48  ;;  %s8195_s30 = scalar_lea.vmem %s203_s2, 64 }
  0xa7   :  { %p8192_p9 = scmp.ne.s32.totalorder %s203_s2, %s8191_s17  ;;  %p8196_p10 = scmp.lt.s32.totalorder %s203_s2, %s203_s2 }
  0xa8   :  { %p8197_p11 = scmp.lt.s32.totalorder %s8195_s30, %s8191_s17 }
  0xaa   :  { %p8198_p12 = por %p8197_p11, %p8196_p10 }
  0xac   :  { %p8199_p13 = pnand %p8198_p12, %p8192_p9 }
  0xae   :  { %8202 = shalt.err (!%p8199_p13)
}
  0xaf   :  { %208 = dma.hbm_to_vmem [thread:$0]  %s11550_s18, 48, %s203_s2, [#allocation23], %s8290_s5, %s8290_s5, %s8291_s0  }
  0xb0   :  { %s8211_s16 = scalar_lea.vmem %s227_s6, 512  ;;  %p8216_p1 = scmp.lt.s32.totalorder %s227_s6, %s227_s6 }
  0xb1   :  { %p8212_p0 = scmp.ne.s32.totalorder %s227_s6, %s8211_s16  ;;  %p8217_p2 = scmp.lt.s32.totalorder %s8211_s16, %s8211_s16 }
  0xb3   :  { %p8218_p3 = por %p8217_p2, %p8216_p1 }
  0xb5   :  { %p8219_p4 = pnand %p8218_p3, %p8212_p0 }
  0xb7   :  { %8222 = shalt.err (!%p8219_p4)
}
  0xb8   :  { %232 = dma.hbm_to_vmem [thread:$0]  %s11552_s20, 512, %s227_s6, [#allocation26], %s8284_s23, %s8284_s23, %s8285_s3  }
  0xb9   :  { %s8302_s10 = smov [#allocation28]  }
  0xba   :  { %s239_s4 = sshll.u32 %s8302_s10, 4  ;;  %s240_s4 = int_to_ptr.vmem [resolvable:$true] %s239_s4 }
  0xbb   :  { %s8231_s19 = scalar_lea.vmem %s240_s4, 16  ;;  %s8235_s18 = scalar_lea.vmem %s240_s4, 32 }
  0xbc   :  { %p8232_p5 = scmp.ne.s32.totalorder %s240_s4, %s8231_s19  ;;  %p8236_p6 = scmp.lt.s32.totalorder %s240_s4, %s240_s4 }
  0xbd   :  { %p8237_p7 = scmp.lt.s32.totalorder %s8235_s18, %s8231_s19 }
  0xbf   :  { %p8238_p8 = por %p8237_p7, %p8236_p6 }
  0xc1   :  { %p8239_p9 = pnand %p8238_p8, %p8232_p5 }
  0xc3   :  { %8242 = shalt.err (!%p8239_p9)
}
  0xc4   :  { %242 = dma.hbm_to_vmem [thread:$0]  %s11553_s21, 16, %s240_s4, [#allocation29]  }
  0xc5   :  { %8263 = dma.done.wait [#allocation5], 32  }
  0xc6   :  { %8264 = vsyncadd [#allocation5], 4294967264 }
  0xc7   :  { %8265 = dma.done.wait [#allocation8], 3072  }
  0xc8   :  { %8266 = vsyncadd [#allocation8], 4294964224 }
  0xc9   :  { %8267 = dma.done.wait [#allocation11], 2304  }
  0xca   :  { %8268 = vsyncadd [#allocation11], 4294964992 }
  0xcb   :  { %8269 = dma.done.wait [#allocation14], 816  }
  0xcc   :  { %8270 = vsyncadd [#allocation14], 4294966480 }
  0xcd   :  { %8271 = dma.done.wait [#allocation17], 96  }
  0xce   :  { %8272 = vsyncadd [#allocation17], 4294967200 }
  0xcf   :  { %8273 = dma.done.wait [#allocation20], 96  }
  0xd0   :  { %8274 = vsyncadd [#allocation20], 4294967200 }
  0xd1   :  { %8275 = dma.done.wait [#allocation23], 96  }
  0xd2   :  { %8276 = vsyncadd [#allocation23], 4294967200 }
  0xd3   :  { %8277 = dma.done.wait [#allocation26], 560  }
  0xd4   :  { %8278 = vsyncadd [#allocation26], 4294966736 }
  0xd5   :  { %8279 = dma.done.wait [#allocation29], 16  }
  0xd6   :  { %8280 = vsyncadd [#allocation29], 4294967280  ;;  %vm307_vm0 = vcmask 195584   ;;  %s11613_s23 = sld [smem:[#allocation55_spill]]  ;;  %v741_v7 = vld [vmem:[#allocation9 + $0x18] sm:$0xff]  ;;  %v740_v9 = vld [vmem:[#allocation9 + $0x10] sm:$0xff]  ;;  %v392_v34 = vlaneseq }
  0xd7   :  { %s11614_s12 = sld [smem:[#allocation51_spill]]  ;;  %v739_v11 = vld [vmem:[#allocation9 + $0x8] sm:$0xff]  ;;  %v738_v13 = vld [vmem:[#allocation9] sm:$0xff]  ;;  %v820_v14 = vld [vmem:[#allocation7 + $0x18] sm:$0xff]  ;;  %v8303_v18 = vmov 0   ;;  %vm11563_vm1 = vcmask 261120  }
  0xd8   :  { %s11615_s6 = sld [smem:[#allocation57_spill]]  ;;  %v899_v15 = vld [vmem:[#allocation10 + $0x18] sm:$0xff]  ;;  %7449 = vset.pattern.permute.xlu0 %v8303_v18  ;;  %7450 = vset.pattern.permute.xlu1 %v8303_v18  ;;  %v8609_v38 = vand.u32 127, %v392_v34  ;;  %v8616_v41 = vshrl.u32 %v392_v34, 7  ;;  %v819_v45 = vld [vmem:[#allocation7 + $0x10] sm:$0xff]  ;;  %v818_v47 = vld [vmem:[#allocation7 + $0x8] sm:$0xff] }
  0xd9   :  { %s11616_s4 = sld [smem:[#allocation53_spill]]  ;;  %v898_v46 = vld [vmem:[#allocation10 + $0x10] sm:$0xff]  ;;  %v897_v48 = vld [vmem:[#allocation10 + $0x8] sm:$0xff]  ;;  %v817_v50 = vld [vmem:[#allocation7] sm:$0xff]  ;;  %v11566_v54 = vmov 0.0   ;;  %v11620_v59 = vmov 0 }
  0xda   :  { %v8614_v40 = vmul.u32 8, %v8609_v38  ;;  %vm11564_vm2 = vcmp.lt.s32.totalorder %v8609_v38, 16  ;;  %v8630_v49 = vadd.s32 4294967280, %v8609_v38  ;;  %v896_v51 = vld [vmem:[#allocation10] sm:$0xff]  ;;  %vm493_vm6 = vcmp.ge.s32.totalorder %v8609_v38, 16  ;;  %s11648_s1 = sld [smem:[#allocation52_spill]] }
  0xdb   :  { %v11622_v60 = vmov 0  ;;  %v11624_v63 = vmov 0  ;;  %v11626_v0 = vmov 0  ;;  %v11644_v18 = vmov 0  ;;  %v1387_v34 = vld [vmem:[#allocation13] sm:$0xff] }
  0xdc   :  { %v299_v1 = vld [vmem:[%s11613_s23 + $0x10] sm:$0xff]  ;;  %v298_v2 = vld [vmem:[%s11613_s23 + $0x8] sm:$0xff]  ;;  %v297_v4 = vld [vmem:[%s11613_s23] sm:$0xff]  ;;  %s11617_s23 = sld [smem:[#allocation56_spill]]  ;;  %v412_v42 = vsub.s32 %v8616_v41, %v8614_v40 }
  0xdd   :  { %6777 = vmatprep.subr.mxu0 %v299_v1  ;;  %v295_v3 = vld [vmem:[%s11614_s12] sm:$0xff]  ;;  %v296_v5 = vld [vmem:[%s11614_s12 + $0x8] sm:$0xff] }
  0xde   :  { %6778 = vmatpush3.msra.mxu0 %v299_v1  ;;  %6783 = vmatprep.mubr.msk.f32.mxu0 %vm307_vm0, %v295_v3  ;;  %v656_v6 = vld [vmem:[%s11615_s6 + $0x18] sm:$0xff]  ;;  %v655_v8 = vld [vmem:[%s11615_s6 + $0x10] sm:$0xff]  ;;  %v654_v10 = vld [vmem:[%s11615_s6 + $0x8] sm:$0xff]  ;;  %vm429_vm3 = vcmp.ge.s32.totalorder %v412_v42, 0  ;;  %vm461_vm5 = vcmp.lt.s32.totalorder %v412_v42, 8  ;;  %v11628_v3 = vmov 0 }
  0xdf   :  { %6779 = vmatprep.subr.mxu0 %v298_v2  ;;  %6786 = vmatprep.subr.mxu1 %v656_v6  ;;  %v653_v12 = vld [vmem:[%s11615_s6] sm:$0xff]  ;;  %v497_v17 = vld [vmem:[%s11616_s4 + $0x10] sm:$0xff]  ;;  %v496_v19 = vld [vmem:[%s11616_s4 + $0x8] sm:$0xff] }
  0xe0   :  { %6780 = vmatpush3.msra.mxu0 %v298_v2  ;;  %6787 = vmatpush3.msra.mxu1 %v656_v6  ;;  %v495_v16 = vld [vmem:[%s11616_s4] sm:$0xff]  ;;  %v498_v20 = vld [vmem:[%s11616_s4 + $0x18] sm:$0xff]  ;;  %v500_v22 = vld [vmem:[%s11616_s4 + $0x28] sm:$0xff] }
  0xe1   :  { %6781 = vmatprep.subr.mxu0 %v297_v4  ;;  %6788 = vmatprep.subr.mxu1 %v655_v8  ;;  %v499_v21 = vld [vmem:[%s11616_s4 + $0x20] sm:$0xff]  ;;  %v501_v23 = vld [vmem:[%s11616_s4 + $0x30] sm:$0xff]  ;;  %v502_v24 = vld [vmem:[%s11616_s4 + $0x38] sm:$0xff] }
  0xe2   :  { %6782 = vmatpush3.msra.mxu0 %v297_v4  ;;  %6789 = vmatpush3.msra.mxu1 %v655_v8  ;;  %v503_v25 = vld [vmem:[%s11616_s4 + $0x40] sm:$0xff]  ;;  %v504_v26 = vld [vmem:[%s11616_s4 + $0x48] sm:$0xff]  ;;  %v505_v27 = vld [vmem:[%s11616_s4 + $0x50] sm:$0xff]  ;;  %v11630_v4 = vmov 0  ;;  %v11634_v8 = vmov 0 }
  0xe3   :  { %6784 = vmatmul.mubr.msk.f32.vlgmr.msra.gmra.mxu0 %vm307_vm0, %v296_v5  ;;  %6797 = vmatprep.subr.mxu0 %v741_v7  ;;  %v506_v28 = vld [vmem:[%s11616_s4 + $0x58] sm:$0xff]  ;;  %v507_v29 = vld [vmem:[%s11616_s4 + $0x60] sm:$0xff]  ;;  %v508_v30 = vld [vmem:[%s11616_s4 + $0x68] sm:$0xff] }
  0xe4   :  { %6798 = vmatpush3.msra.mxu0 %v741_v7  ;;  %6790 = vmatprep.subr.mxu1 %v654_v10  ;;  %v509_v31 = vld [vmem:[%s11616_s4 + $0x70] sm:$0xff]  ;;  %v510_v32 = vld [vmem:[%s11616_s4 + $0x78] sm:$0xff]  ;;  %v6138_v33 = vld [vmem:[%s11617_s23] ss:$0 sm:$0xff]  ;;  %v11632_v7 = vmov 0 }
  0xe5   :  { %6799 = vmatprep.subr.mxu0 %v740_v9  ;;  %6791 = vmatpush3.msra.mxu1 %v654_v10  ;;  %vm445_vm4 = vmand %vm11564_vm2, %vm429_vm3  ;;  %v649_v42 = vld [vmem:[%s11648_s1 + $0x70] sm:$0xff] }
  0xe6   :  { %6800 = vmatpush3.msra.mxu0 %v740_v9  ;;  %6792 = vmatprep.subr.mxu1 %v653_v12  ;;  %vm477_vm7 = vmand %vm445_vm4, %vm461_vm5 }
  0xe7   :  { %6801 = vmatprep.subr.mxu0 %v739_v11  ;;  %6793 = vmatpush3.msra.mxu1 %v653_v12  ;;  %v11638_v12 = vmov 0 }
  0xe8   :  { %6802 = vmatpush3.msra.mxu0 %v739_v11  ;;  %6808 = vmatprep.subr.mxu1 %v820_v14  ;;  %v11636_v11 = vmov 0 }
  0xe9   :  { %6803 = vmatprep.subr.mxu0 %v738_v13  ;;  %512 = vperm.xlu0 %7449, %v495_v16   ;;  %v11642_v16 = vmov 0 }
  0xea   :  { %6804 = vmatpush3.msra.mxu0 %v738_v13  ;;  %518 = vperm.xlu1 %7450, %v497_v17  }
  0xeb   :  { %6819 = vmatprep.subr.mxu0 %v899_v15 }
  0xed   :  { %515 = vperm.xlu0 %7449, %v496_v19   ;;  %v976_v19 = vld [vmem:[#allocation12 + $0x8] sm:$0xff] }
  0xee   :  { %521 = vperm.xlu1 %7450, %v498_v20  }
  0xf1   :  { %524 = vperm.xlu0 %7449, %v499_v21   ;;  %v975_v21 = vld [vmem:[#allocation12] sm:$0xff] }
  0xf2   :  { %527 = vperm.xlu1 %7450, %v500_v22   ;;  %v11646_v22 = vmov 0 }
  0xf5   :  { %530 = vperm.xlu0 %7449, %v501_v23   ;;  %v635_v23 = vld [vmem:[%s11648_s1] sm:$0xff] }
  0xf6   :  { %533 = vperm.xlu1 %7450, %v502_v24   ;;  %v636_v24 = vld [vmem:[%s11648_s1 + $0x8] sm:$0xff] }
  0xf9   :  { %536 = vperm.xlu0 %7449, %v503_v25   ;;  %v1388_v25 = vld [vmem:[#allocation13 + $0x8] sm:$0xff] }
  0xfa   :  { %539 = vperm.xlu1 %7450, %v504_v26   ;;  %v637_v26 = vld [vmem:[%s11648_s1 + $0x10] sm:$0xff] }
  0xfd   :  { %542 = vperm.xlu0 %7449, %v505_v27   ;;  %v638_v27 = vld [vmem:[%s11648_s1 + $0x18] sm:$0xff] }
  0xfe   :  { %545 = vperm.xlu1 %7450, %v506_v28   ;;  %v639_v28 = vld [vmem:[%s11648_s1 + $0x20] sm:$0xff] }
 0x101   :  { %548 = vperm.xlu0 %7449, %v507_v29   ;;  %v640_v29 = vld [vmem:[%s11648_s1 + $0x28] sm:$0xff] }
 0x102   :  { %551 = vperm.xlu1 %7450, %v508_v30   ;;  %v641_v30 = vld [vmem:[%s11648_s1 + $0x30] sm:$0xff] }
 0x105   :  { %554 = vperm.xlu0 %7449, %v509_v31   ;;  %v642_v31 = vld [vmem:[%s11648_s1 + $0x38] sm:$0xff] }
 0x106   :  { %557 = vperm.xlu1 %7450, %v510_v32   ;;  %v643_v32 = vld [vmem:[%s11648_s1 + $0x40] sm:$0xff] }
 0x164   :  { %v513_v52 = vpop.permute.xlu0 %512 }
 0x165   :  { %v519_v53 = vpop.permute.xlu1 %518  ;;  %vm559_vm8 = vcmp.eq.s32.totalorder %v8630_v49, %v513_v52 }
 0x166   :  { %vm561_vm9 = vcmp.eq.s32.totalorder %v8630_v49, %v519_v53  ;;  %vm575_vm10 = vmand %vm493_vm6, %vm559_vm8  ;;  %v399_v53 = vadd.s32 48, %v8616_v41 }
 0x167   :  { %vm591_vm11 = vmor %vm477_vm7, %vm575_vm10 }
 0x168   :  { %v8640_v55 = vsel %vm591_vm11, 1.0, %v11566_v54  ;;  %vm8644_vm12 = vmand %vm493_vm6, %vm561_vm9  ;;  %v516_v57 = vpop.permute.xlu0 %515 }
 0x169   :  { %v522_v58 = vpop.permute.xlu1 %521  ;;  %vm560_vm13 = vcmp.eq.s32.totalorder %v8630_v49, %v516_v57  ;;  %v400_v57 = vadd.s32 56, %v8616_v41 }
 0x16a   :  { %vm562_vm14 = vcmp.eq.s32.totalorder %v8630_v49, %v522_v58  ;;  %vm8654_vm15 = vmand %vm493_vm6, %vm560_vm13  ;;  %v401_v58 = vadd.s32 64, %v8616_v41 }
 0x16b   :  { %v11621_v59 = vsel %vm8654_vm15, 4294967295, %v11620_v59  ;;  %vm8660_vm0 = vmand %vm493_vm6, %vm562_vm14 }
 0x16c   :  { %v11623_v60 = vsel %vm8660_vm0, 4294967295, %v11622_v60  ;;  %v525_v61 = vpop.permute.xlu0 %524 }
 0x16d   :  { %v528_v62 = vpop.permute.xlu1 %527  ;;  %vm563_vm3 = vcmp.eq.s32.totalorder %v8630_v49, %v525_v61 }
 0x16e   :  { %vm564_vm4 = vcmp.eq.s32.totalorder %v8630_v49, %v528_v62  ;;  %vm8668_vm5 = vmand %vm493_vm6, %vm563_vm3  ;;  %v11650_v62 = vmov 0 }
 0x16f   :  { %v11625_v63 = vsel %vm8668_vm5, 4294967295, %v11624_v63  ;;  %vm8674_vm7 = vmand %vm493_vm6, %vm564_vm4 }
 0x170   :  { %v11627_v0 = vsel %vm8674_vm7, 4294967295, %v11626_v0  ;;  %v531_v1 = vpop.permute.xlu0 %530 }
 0x171   :  { %v534_v2 = vpop.permute.xlu1 %533  ;;  %vm565_vm8 = vcmp.eq.s32.totalorder %v8630_v49, %v531_v1  ;;  %v418_v1 = vsub.s32 %v399_v53, %v8614_v40 }
 0x172   :  { %vm566_vm9 = vcmp.eq.s32.totalorder %v8630_v49, %v534_v2  ;;  %vm8682_vm10 = vmand %vm493_vm6, %vm565_vm8  ;;  %v419_v2 = vsub.s32 %v400_v57, %v8614_v40 }
 0x173   :  { %v11629_v3 = vsel %vm8682_vm10, 4294967295, %v11628_v3  ;;  %vm8688_vm11 = vmand %vm493_vm6, %vm566_vm9 }
 0x174   :  { %v11631_v4 = vsel %vm8688_vm11, 4294967295, %v11630_v4  ;;  %v537_v5 = vpop.permute.xlu0 %536 }
 0x175   :  { %v540_v6 = vpop.permute.xlu1 %539  ;;  %vm567_vm13 = vcmp.eq.s32.totalorder %v8630_v49, %v537_v5  ;;  %v420_v5 = vsub.s32 %v401_v58, %v8614_v40  ;;  %v408_v58 = vadd.s32 120, %v8616_v41 }
 0x176   :  { %vm568_vm14 = vcmp.eq.s32.totalorder %v8630_v49, %v540_v6  ;;  %vm8696_vm3 = vmand %vm493_vm6, %vm567_vm13  ;;  %v402_v6 = vadd.s32 72, %v8616_v41 }
 0x177   :  { %v11633_v7 = vsel %vm8696_vm3, 4294967295, %v11632_v7  ;;  %vm8702_vm4 = vmand %vm493_vm6, %vm568_vm14 }
 0x178   :  { %v11635_v8 = vsel %vm8702_vm4, 4294967295, %v11634_v8  ;;  %v543_v9 = vpop.permute.xlu0 %542 }
 0x179   :  { %v546_v10 = vpop.permute.xlu1 %545  ;;  %vm569_vm8 = vcmp.eq.s32.totalorder %v8630_v49, %v543_v9  ;;  %v11655_v9 = vmov 0 }
 0x17a   :  { %vm570_vm9 = vcmp.eq.s32.totalorder %v8630_v49, %v546_v10  ;;  %v403_v10 = vadd.s32 80, %v8616_v41 }
 0x17b   :  { %vm8716_vm13 = vmand %vm493_vm6, %vm570_vm9 }
 0x17c   :  { %v11639_v12 = vsel %vm8716_vm13, 4294967295, %v11638_v12  ;;  %v549_v13 = vpop.permute.xlu0 %548 }
 0x17d   :  { %vm571_vm14 = vcmp.eq.s32.totalorder %v8630_v49, %v549_v13 }
 0x17e   :  { %vm8724_vm4 = vmand %vm493_vm6, %vm571_vm14 }
 0x180   :  { %v555_v17 = vpop.permute.xlu0 %554 }
 0x181   :  { %vm573_vm9 = vcmp.eq.s32.totalorder %v8630_v49, %v555_v17 }
 0x182   :  { %vm8737_vm13 = vmand %vm493_vm6, %vm573_vm9  ;;  %vm11565_vm9 = vcmask 130048  }
 0x183   :  { %v11645_v18 = vsel %vm8737_vm13, 4294967295, %v11644_v18 }
 0x1a3   :  { %v6785_v35 = vpop.f32.mrf.mxu0 }
 0x1a4   :  { %v386_v36 = vadd.f32 %v6785_v35, %v6138_v33  ;;  %v645_v35 = vld [vmem:[%s11648_s1 + $0x50] sm:$0xff] }
 0x1a5   :  { %v380_v37 = vpop.f32.mrf.mxu0 }
 0x1a6   :  { %391 = vst.msk [vmem:[#allocation2 + $0x8] sm:$0xff] %vm11563_vm1, %v386_v36  ;;  %v381_v39 = vadd.f32 %v6138_v33, %v380_v37  ;;  %v644_v33 = vld [vmem:[%s11648_s1 + $0x48] sm:$0xff]  ;;  %v646_v36 = vld [vmem:[%s11648_s1 + $0x58] sm:$0xff]  ;;  %v647_v37 = vld [vmem:[%s11648_s1 + $0x60] sm:$0xff] }
 0x1a8   :  { %390 = vst.msk [vmem:[#allocation2] sm:$0xff] %vm11563_vm1, %v381_v39  ;;  %v648_v39 = vld [vmem:[%s11648_s1 + $0x68] sm:$0xff] }
 0x1ad   :  { %v652_v44 = vld [vmem:[#allocation2 + $0x8] sm:$0xff] }
 0x1af   :  { %v651_v43 = vld [vmem:[#allocation2] sm:$0xff] }
 0x1b0   :  { %6794 = vmatprep.mubr.msk.f32.mxu1 %vm11563_vm1, %v651_v43  ;;  %6805 = vmatprep.mubr.msk.f32.mxu0 %vm11563_vm1, %v651_v43 }
 0x1b1   :  { %6795 = vmatmul.mubr.msk.f32.vlgmr.msra.gmra.mxu1 %vm11563_vm1, %v652_v44  ;;  %6806 = vmatmul.mubr.msk.f32.vlgmr.msra.gmra.mxu0 %vm11563_vm1, %v652_v44 }
 0x1b2   :  { %6809 = vmatpush3.msra.mxu1 %v820_v14  ;;  %6820 = vmatpush3.msra.mxu0 %v899_v15  ;;  %v552_v14 = vpop.permute.xlu1 %551  ;;  %v11640_v15 = vmov 0 }
 0x1b3   :  { %6810 = vmatprep.subr.mxu1 %v819_v45  ;;  %6816 = vmatprep.mubr.msk.f32.mxu1 %vm11563_vm1, %v651_v43  ;;  %vm572_vm2 = vcmp.eq.s32.totalorder %v8630_v49, %v552_v14  ;;  %v11641_v15 = vsel %vm8724_vm4, 4294967295, %v11640_v15  ;;  %v11659_v14 = vmov 0 }
 0x1b4   :  { %6821 = vmatprep.subr.mxu0 %v898_v46  ;;  %6827 = vmatprep.mubr.msk.f32.mxu0 %vm11563_vm1, %v651_v43  ;;  %v650_v43 = vld [vmem:[%s11648_s1 + $0x78] sm:$0xff] }
 0x1b5   :  { %6811 = vmatpush3.msra.mxu1 %v819_v45  ;;  %6822 = vmatpush3.msra.mxu0 %v898_v46  ;;  %v8831_v46 = vadd.s32 8, %v8616_v41 }
 0x1b6   :  { %6812 = vmatprep.subr.mxu1 %v818_v47  ;;  %6823 = vmatprep.subr.mxu0 %v897_v48  ;;  %v558_v20 = vpop.permute.xlu1 %557 }
 0x1b7   :  { %6813 = vmatpush3.msra.mxu1 %v818_v47  ;;  %6824 = vmatpush3.msra.mxu0 %v897_v48  ;;  %vm574_vm14 = vcmp.eq.s32.totalorder %v8630_v49, %v558_v20  ;;  %v396_v47 = vadd.s32 24, %v8616_v41  ;;  %v397_v48 = vadd.s32 32, %v8616_v41  ;;  %v413_v49 = vsub.s32 %v8831_v46, %v8614_v40 }
 0x1b8   :  { %6814 = vmatprep.subr.mxu1 %v817_v50  ;;  %6825 = vmatprep.subr.mxu0 %v896_v51  ;;  %v421_v20 = vsub.s32 %v402_v6, %v8614_v40 }
 0x1b9   :  { %6815 = vmatpush3.msra.mxu1 %v817_v50  ;;  %6826 = vmatpush3.msra.mxu0 %v896_v51  ;;  %v415_v50 = vsub.s32 %v396_v47, %v8614_v40  ;;  %v398_v51 = vadd.s32 40, %v8616_v41  ;;  %v416_v52 = vsub.s32 %v397_v48, %v8614_v40  ;;  %vm430_vm13 = vcmp.ge.s32.totalorder %v413_v49, 0 }
 0x1ba   :  { %6817 = vmatmul.mubr.msk.f32.vlgmr.msra.gmra.mxu1 %vm11563_vm1, %v652_v44  ;;  %6828 = vmatmul.mubr.msk.f32.vlgmr.msra.gmra.mxu0 %vm11563_vm1, %v652_v44  ;;  %v395_v44 = vadd.s32 16, %v8616_v41 }
 0x1bb   :  { %6866 = vmatprep.mubr.msk.f32.mxu0 %vm11563_vm1, %v8640_v55  ;;  %vm8710_vm1 = vmand %vm493_vm6, %vm569_vm8  ;;  %6830 = vmatprep.subr.mxu1 %v976_v19  ;;  %v417_v61 = vsub.s32 %v398_v51, %v8614_v40  ;;  %vm464_vm7 = vcmp.lt.s32.totalorder %v415_v50, 8  ;;  %vm465_vm5 = vcmp.lt.s32.totalorder %v416_v52, 8 }
 0x1bc   :  { %v11637_v11 = vsel %vm8710_vm1, 4294967295, %v11636_v11  ;;  %vm8730_vm8 = vmand %vm493_vm6, %vm572_vm2  ;;  %6831 = vmatpush3.msra.mxu1 %v976_v19  ;;  %6834 = vmatprep.mubr.msk.f32.mxu1 %vm11565_vm9, %v635_v23  ;;  %v414_v45 = vsub.s32 %v395_v44, %v8614_v40  ;;  %vm433_vm1 = vcmp.ge.s32.totalorder %v416_v52, 0 }
 0x1bd   :  { %v11643_v16 = vsel %vm8730_vm8, 4294967295, %v11642_v16  ;;  %vm8744_vm2 = vmand %vm493_vm6, %vm574_vm14  ;;  %6832 = vmatprep.subr.mxu1 %v975_v21  ;;  %vm11649_vm14 = vcmp.lt.s32.totalorder %v8609_v38, 16  ;;  %vm432_vm8 = vcmp.ge.s32.totalorder %v415_v50, 0  ;;  %vm434_vm0 = vcmp.ge.s32.totalorder %v417_v61, 0 }
 0x1be   :  { %v11647_v22 = vsel %vm8744_vm2, 4294967295, %v11646_v22  ;;  %6833 = vmatpush3.msra.mxu1 %v975_v21  ;;  %vm431_vm6 = vcmp.ge.s32.totalorder %v414_v45, 0  ;;  %vm463_vm2 = vcmp.lt.s32.totalorder %v414_v45, 8  ;;  %vm11652_vm3 = vmmov %vm11649_vm14  ;;  %v404_v21 = vadd.s32 88, %v8616_v41 }
 0x1bf   :  { %6835 = vmatmul.mubr.msk.f32.vlgmr.msra.gmra.mxu1 %vm11565_vm9, %v636_v24  ;;  %6890 = vmatprep.subr.mxu1 %v1388_v25  ;;  %vm446_vm11 = vmand %vm11652_vm3, %vm430_vm13 }
 0x1c0   :  { %6837 = vmatprep.mubr.msk.f32.mxu1 %vm11565_vm9, %v637_v26  ;;  %6891 = vmatpush3.msra.mxu1 %v1388_v25  ;;  %v405_v25 = vadd.s32 96, %v8616_v41 }
 0x1c1   :  { %6892 = vmatprep.subr.mxu1 %v1387_v34 }
 0x1c2   :  { %6893 = vmatpush3.msra.mxu1 %v1387_v34  ;;  %v424_v56 = vsub.s32 %v405_v25, %v8614_v40 }
 0x1c3   :  { %6838 = vmatmul.mubr.msk.f32.gmra.mxu1 %vm11565_vm9, %v638_v27 }
 0x1c4   :  { %6840 = vmatprep.mubr.msk.f32.mxu1 %vm11565_vm9, %v639_v28 }
 0x1c7   :  { %6841 = vmatmul.mubr.msk.f32.gmra.mxu1 %vm11565_vm9, %v640_v29 }
 0x1c8   :  { %6843 = vmatprep.mubr.msk.f32.mxu1 %vm11565_vm9, %v641_v30 }
 0x1cb   :  { %6844 = vmatmul.mubr.msk.f32.gmra.mxu1 %vm11565_vm9, %v642_v31 }
 0x1cc   :  { %6846 = vmatprep.mubr.msk.f32.mxu1 %vm11565_vm9, %v643_v32 }
 0x1cf   :  { %6847 = vmatmul.mubr.msk.f32.gmra.mxu1 %vm11565_vm9, %v644_v33 }
 0x1d0   :  { %6849 = vmatprep.mubr.msk.f32.mxu1 %vm11565_vm9, %v645_v35 }
 0x1d3   :  { %6850 = vmatmul.mubr.msk.f32.gmra.mxu1 %vm11565_vm9, %v646_v36 }
 0x1d4   :  { %6852 = vmatprep.mubr.msk.f32.mxu1 %vm11565_vm9, %v647_v37 }
 0x1d7   :  { %6853 = vmatmul.mubr.msk.f32.gmra.mxu1 %vm11565_vm9, %v648_v39 }
 0x1d8   :  { %6855 = vmatprep.mubr.msk.f32.mxu1 %vm11565_vm9, %v649_v42 }
 0x1db   :  { %6856 = vmatmul.mubr.msk.f32.gmra.mxu1 %vm11565_vm9, %v650_v43 }
 0x1dc   :  { %6894 = vmatprep.mubr.msk.f32.mxu1 %vm11565_vm9, %v635_v23 }
 0x1df   :  { %6895 = vmatmul.mubr.msk.f32.vlgmr.msra.gmra.mxu1 %vm11565_vm9, %v636_v24  ;;  %v422_v24 = vsub.s32 %v403_v10, %v8614_v40 }
 0x1e0   :  { %6897 = vmatprep.mubr.msk.f32.mxu1 %vm11565_vm9, %v637_v26 }
 0x1e3   :  { %6898 = vmatmul.mubr.msk.f32.gmra.mxu1 %vm11565_vm9, %v638_v27 }
 0x1e4   :  { %6900 = vmatprep.mubr.msk.f32.mxu1 %vm11565_vm9, %v639_v28  ;;  %v11668_v28 = vmov 0 }
 0x1e7   :  { %6901 = vmatmul.mubr.msk.f32.gmra.mxu1 %vm11565_vm9, %v640_v29  ;;  %v9170_v29 = vld [vmem:[#allocation15] ss:$0 sm:$0xff] }
 0x1e8   :  { %6903 = vmatprep.mubr.msk.f32.mxu1 %vm11565_vm9, %v641_v30  ;;  %v423_v30 = vsub.s32 %v404_v21, %v8614_v40 }
 0x1eb   :  { %6904 = vmatmul.mubr.msk.f32.gmra.mxu1 %vm11565_vm9, %v642_v31 }
 0x1ec   :  { %6906 = vmatprep.mubr.msk.f32.mxu1 %vm11565_vm9, %v643_v32 }
 0x1ef   :  { %6907 = vmatmul.mubr.msk.f32.gmra.mxu1 %vm11565_vm9, %v644_v33 }
 0x1f0   :  { %6909 = vmatprep.mubr.msk.f32.mxu1 %vm11565_vm9, %v645_v35 }
 0x1f3   :  { %6910 = vmatmul.mubr.msk.f32.gmra.mxu1 %vm11565_vm9, %v646_v36 }
 0x1f4   :  { %6912 = vmatprep.mubr.msk.f32.mxu1 %vm11565_vm9, %v647_v37 }
 0x1f7   :  { %6913 = vmatmul.mubr.msk.f32.gmra.mxu1 %vm11565_vm9, %v648_v39  ;;  %v406_v39 = vadd.s32 104, %v8616_v41 }
 0x1f8   :  { %6915 = vmatprep.mubr.msk.f32.mxu1 %vm11565_vm9, %v649_v42 }
 0x1f9   :  { %v425_v50 = vsub.s32 %v406_v39, %v8614_v40 }
 0x1fb   :  { %6916 = vmatmul.mubr.msk.f32.gmra.mxu1 %vm11565_vm9, %v650_v43  ;;  %vm447_vm9 = vmand %vm11649_vm14, %vm431_vm6  ;;  %vm462_vm6 = vcmp.lt.s32.totalorder %v413_v49, 8  ;;  %v407_v43 = vadd.s32 112, %v8616_v41 }
 0x1fc   :  { %vm8846_vm4 = vmand %vm447_vm9, %vm463_vm2 }
 0x1fd   :  { %v11651_v62 = vsel %vm8846_vm4, 4294967295, %v11650_v62  ;;  %vm11653_vm14 = vmmov %vm11652_vm3  ;;  %vm466_vm4 = vcmp.lt.s32.totalorder %v417_v61, 8  ;;  %v426_v52 = vsub.s32 %v407_v43, %v8614_v40 }
 0x1fe   :  { %vm448_vm10 = vmand %vm11653_vm14, %vm432_vm8  ;;  %vm436_vm8 = vcmp.ge.s32.totalorder %v419_v2, 0 }
 0x1ff   :  { %vm11654_vm2 = vmmov %vm11652_vm3  ;;  %vm435_vm3 = vcmp.ge.s32.totalorder %v418_v1, 0 }
 0x200   :  { %vm449_vm9 = vmand %vm11654_vm2, %vm433_vm1 }
 0x201   :  { %vm8860_vm15 = vmand %vm446_vm11, %vm462_vm6  ;;  %vm437_vm11 = vcmp.ge.s32.totalorder %v420_v5, 0 }
 0x202   :  { %v11656_v9 = vsel %vm8860_vm15, 4294967295, %v11655_v9  ;;  %vm8865_vm13 = vmand %vm448_vm10, %vm464_vm7  ;;  %vm467_vm10 = vcmp.lt.s32.totalorder %v418_v1, 8 }
 0x203   :  { %vm8869_vm14 = vmand %vm449_vm9, %vm465_vm5 }
 0x204   :  { %v11660_v14 = vsel %vm8869_vm14, 4294967295, %v11659_v14  ;;  %vm11661_vm1 = vmmov %vm11654_vm2  ;;  %vm438_vm14 = vcmp.ge.s32.totalorder %v421_v20, 0 }
 0x205   :  { %vm450_vm2 = vmand %vm11661_vm1, %vm434_vm0 }
 0x206   :  { %vm11662_vm6 = vmmov %vm11661_vm1 }
 0x207   :  { %vm8877_vm15 = vmand %vm11662_vm6, %vm435_vm3  ;;  %vm468_vm6 = vcmp.lt.s32.totalorder %v419_v2, 8 }
 0x208   :  { %vm11665_vm5 = vmmov %vm11661_vm1 }
 0x209   :  { %vm8885_vm7 = vmand %vm11665_vm5, %vm436_vm8  ;;  %vm11673_vm8 = vnez %v11651_v62  ;;  %v427_v62 = vsub.s32 %v408_v58, %v8614_v40 }
 0x20a   :  { %vm8891_vm0 = vmand %vm450_vm2, %vm466_vm4  ;;  %vm11674_vm4 = vnez %v11621_v59  ;;  %vm11675_vm2 = vnez %v11656_v9 }
 0x20b   :  { %v11669_v28 = vsel %vm8891_vm0, 4294967295, %v11668_v28  ;;  %vm11670_vm9 = vmmov %vm11661_vm1  ;;  %vm469_vm0 = vcmp.lt.s32.totalorder %v420_v5, 8 }
 0x20c   :  { %vm8897_vm3 = vmand %vm11670_vm9, %vm437_vm11  ;;  %vm439_vm9 = vcmp.ge.s32.totalorder %v422_v24, 0 }
 0x20d   :  { %vm593_vm1 = vmor %vm11673_vm8, %vm8644_vm12 }
 0x20e   :  { %vm592_vm5 = vmor %vm11675_vm2, %vm11674_vm4  ;;  %v8918_v59 = vsel %vm593_vm1, 1.0, %v11566_v54  ;;  %vm471_vm4 = vcmp.lt.s32.totalorder %v422_v24, 8 }
 0x20f   :  { %vm8912_vm11 = vmand %vm8877_vm15, %vm467_vm10  ;;  %v8927_v34 = vsel %vm592_vm5, 1.0, %v11566_v54  ;;  %vm11682_vm10 = vcmp.lt.s32.totalorder %v8609_v38, 16  ;;  %vm441_vm5 = vcmp.ge.s32.totalorder %v424_v56, 0 }
 0x210   :  { %vm8922_vm12 = vmand %vm8885_vm7, %vm468_vm6  ;;  %vm470_vm7 = vcmp.lt.s32.totalorder %v421_v20, 8 }
 0x211   :  { %vm8931_vm15 = vmand %vm8897_vm3, %vm469_vm0  ;;  %vm11688_vm0 = vcmask 261120  }
 0x212   :  { %vm8937_vm8 = vmand %vm11682_vm10, %vm438_vm14  ;;  %vm11689_vm14 = vnez %v11623_v60 }
 0x213   :  { %vm11685_vm1 = vmmov %vm11682_vm10  ;;  %vm11691_vm10 = vnez %v11625_v63 }
 0x214   :  { %vm8943_vm6 = vmand %vm11685_vm1, %vm439_vm9  ;;  %vm11692_vm1 = vnez %v11660_v14 }
 0x215   :  { %vm594_vm3 = vmor %vm8865_vm13, %vm11689_vm14  ;;  %vm11697_vm14 = vcmp.ge.s32.totalorder %v423_v30, 0 }
 0x216   :  { %vm11690_vm9 = vmmov %vm11688_vm0  ;;  %v8982_v48 = vsel %vm594_vm3, 1.0, %v11566_v54  ;;  %vm473_vm3 = vcmp.lt.s32.totalorder %v424_v56, 8 }
 0x217   :  { %vm595_vm2 = vmor %vm11692_vm1, %vm11691_vm10 }
 0x218   :  { %vm8970_vm13 = vmand %vm8943_vm6, %vm471_vm4  ;;  %v8992_v51 = vsel %vm595_vm2, 1.0, %v11566_v54  ;;  %vm11704_vm6 = vnez %v11627_v0  ;;  %vm11705_vm4 = vnez %v11669_v28 }
 0x271   :  { %v6807_v17 = vpop.f32.mrf.mxu0  ;;  %v6796_v26 = vpop.f32.mrf.mxu1 }
 0x272   :  { %6858 = vmatprep.subr.mxu0 %v6807_v17 }
 0x273   :  { %v808_v27 = vpop.f32.mrf.mxu0  ;;  %6859 = vmatpush3.msra.mxu0 %v6807_v17  ;;  %v729_v32 = vpop.f32.mrf.mxu1 }
 0x274   :  { %6860 = vmatprep.subr.mxu0 %v808_v27 }
 0x275   :  { %6861 = vmatpush3.msra.mxu0 %v808_v27 }
 0x276   :  { %6862 = vmatprep.subr.mxu0 %v6796_v26 }
 0x277   :  { %6863 = vmatpush3.msra.mxu0 %v6796_v26 }
 0x278   :  { %6864 = vmatprep.subr.mxu0 %v729_v32 }
 0x279   :  { %6865 = vmatpush3.msra.mxu0 %v729_v32 }
 0x27a   :  { %v6829_v42 = vpop.f32.mrf.mxu0  ;;  %6867 = vmatmul.mubr.msk.f32.vlgmr.msra.gmra.mxu0 %vm11688_vm0, %v8927_v34  ;;  %vm8963_vm0 = vmand %vm8937_vm8, %vm470_vm7  ;;  %v6818_v60 = vpop.f32.mrf.mxu1  ;;  %vm472_vm8 = vcmp.lt.s32.totalorder %v423_v30, 8 }
 0x27b   :  { %6918 = vmatprep.subr.mxu0 %v6829_v42  ;;  %6869 = vmatprep.mubr.msk.f32.mxu0 %vm11690_vm9, %v8918_v59  ;;  %vm11698_vm9 = vcmp.lt.s32.totalorder %v8609_v38, 16 }
 0x27c   :  { %v966_v45 = vpop.f32.mrf.mxu0  ;;  %6919 = vmatpush3.msra.mxu0 %v6829_v42  ;;  %vm8977_vm10 = vmand %vm11698_vm9, %vm11697_vm14  ;;  %v887_v53 = vpop.f32.mrf.mxu1 }
 0x27d   :  { %6920 = vmatprep.subr.mxu0 %v966_v45  ;;  %vm11701_vm7 = vmmov %vm11698_vm9  ;;  %vm11706_vm9 = vcmask 261120  }
 0x27e   :  { %vm8986_vm1 = vmand %vm11701_vm7, %vm441_vm5  ;;  %6921 = vmatpush3.msra.mxu0 %v966_v45  ;;  %vm11707_vm5 = vnez %v11629_v3  ;;  %v11711_v3 = vmov 0 }
 0x27f   :  { %vm596_vm14 = vmor %vm11705_vm4, %vm11704_vm6  ;;  %6870 = vmatmul.mubr.msk.f32.gmra.mxu0 %vm11706_vm9, %v8982_v48  ;;  %6922 = vmatprep.subr.mxu0 %v6818_v60 }
 0x280   :  { %vm597_vm7 = vmor %vm8912_vm11, %vm11707_vm5  ;;  %6923 = vmatpush3.msra.mxu0 %v6818_v60  ;;  %v9014_v57 = vsel %vm596_vm14, 1.0, %v11566_v54  ;;  %vm442_vm11 = vcmp.ge.s32.totalorder %v425_v50, 0  ;;  %vm443_vm14 = vcmp.ge.s32.totalorder %v426_v52, 0 }
 0x281   :  { %vm11708_vm2 = vmmov %vm11706_vm9  ;;  %6924 = vmatprep.subr.mxu0 %v887_v53  ;;  %v9024_v61 = vsel %vm597_vm7, 1.0, %v11566_v54  ;;  %vm11718_vm7 = vcmp.lt.s32.totalorder %v8609_v38, 16 }
 0x282   :  { %6872 = vmatprep.mubr.msk.f32.mxu0 %vm11708_vm2, %v8992_v51  ;;  %vm9009_vm6 = vmand %vm8977_vm10, %vm472_vm8  ;;  %6925 = vmatpush3.msra.mxu0 %v887_v53  ;;  %11713 = vst [vmem:[#allocation41_spill] sm:$0xff] %v9024_v61  ;;  %vm11714_vm10 = vnez %v11631_v4 }
 0x283   :  { %vm9018_vm4 = vmand %vm8986_vm1, %vm473_vm3  ;;  %vm11716_vm1 = vnez %v11633_v7 }
 0x284   :  { %v11712_v3 = vsel %vm9018_vm4, 4294967295, %v11711_v3  ;;  %vm598_vm8 = vmor %vm8922_vm12, %vm11714_vm10  ;;  %vm474_vm4 = vcmp.lt.s32.totalorder %v425_v50, 8 }
 0x285   :  { %vm11715_vm9 = vmmov %vm11708_vm2  ;;  %v9041_v4 = vsel %vm598_vm8, 1.0, %v11566_v54  ;;  %vm11724_vm8 = vnez %v11637_v11 }
 0x286   :  { %6873 = vmatmul.mubr.msk.f32.gmra.mxu0 %vm11715_vm9, %v9014_v57  ;;  %vm599_vm3 = vmor %vm8931_vm15, %vm11716_vm1  ;;  %11719 = vst [vmem:[#allocation42_spill] sm:$0xff] %v9041_v4  ;;  %vm11722_vm15 = vnez %v11635_v8  ;;  %vm475_vm1 = vcmp.lt.s32.totalorder %v426_v52, 8 }
 0x287   :  { %vm11717_vm5 = vmmov %vm11708_vm2  ;;  %v9047_v7 = vsel %vm599_vm3, 1.0, %v11566_v54  ;;  %vm444_vm3 = vcmp.ge.s32.totalorder %v427_v62, 0 }
 0x288   :  { %6875 = vmatprep.mubr.msk.f32.mxu0 %vm11717_vm5, %v9024_v61  ;;  %vm458_vm2 = vmand %vm11718_vm7, %vm442_vm11  ;;  %11721 = vst [vmem:[#allocation43_spill] sm:$0xff] %v9047_v7 }
 0x289   :  { %vm11720_vm12 = vmmov %vm11718_vm7 }
 0x28a   :  { %vm459_vm10 = vmand %vm11720_vm12, %vm443_vm14 }
 0x28b   :  { %vm600_vm9 = vmor %vm8963_vm0, %vm11722_vm15  ;;  %vm11735_vm15 = vnez %v11712_v3 }
 0x28c   :  { %vm11723_vm11 = vmmov %vm11717_vm5  ;;  %v9066_v8 = vsel %vm600_vm9, 1.0, %v11566_v54 }
 0x28d   :  { %6876 = vmatmul.mubr.msk.f32.gmra.mxu0 %vm11723_vm11, %v9041_v4  ;;  %vm601_vm5 = vmor %vm8970_vm13, %vm11724_vm8  ;;  %11728 = vst [vmem:[#allocation44_spill] sm:$0xff] %v9066_v8  ;;  %vm11732_vm13 = vnez %v11639_v12  ;;  %vm476_vm8 = vcmp.lt.s32.totalorder %v427_v62, 8 }
 0x28e   :  { %vm11725_vm14 = vmmov %vm11723_vm11  ;;  %v9073_v11 = vsel %vm601_vm5, 1.0, %v11566_v54 }
 0x28f   :  { %6878 = vmatprep.mubr.msk.f32.mxu0 %vm11725_vm14, %v9047_v7  ;;  %vm9061_vm7 = vmand %vm458_vm2, %vm474_vm4  ;;  %11731 = vst [vmem:[#allocation45_spill] sm:$0xff] %v9073_v11  ;;  %vm11734_vm2 = vnez %v11641_v15  ;;  %vm11741_vm14 = vnez %v11645_v18 }
 0x290   :  { %vm9068_vm0 = vmand %vm459_vm10, %vm475_vm1  ;;  %vm11737_vm1 = vcmp.lt.s32.totalorder %v8609_v38, 16 }
 0x291   :  { %vm602_vm12 = vmor %vm9009_vm6, %vm11732_vm13  ;;  %vm11739_vm6 = vnez %v11643_v16 }
 0x292   :  { %vm11733_vm4 = vmmov %vm11723_vm11  ;;  %v9090_v12 = vsel %vm602_vm12, 1.0, %v11566_v54 }
 0x293   :  { %6879 = vmatmul.mubr.msk.f32.gmra.mxu0 %vm11733_vm4, %v9066_v8  ;;  %vm603_vm10 = vmor %vm11735_vm15, %vm11734_vm2  ;;  %11738 = vst [vmem:[#allocation46_spill] sm:$0xff] %v9090_v12 }
 0x294   :  { %vm11736_vm9 = vmmov %vm11733_vm4  ;;  %v9097_v15 = vsel %vm603_vm10, 1.0, %v11566_v54 }
 0x295   :  { %6881 = vmatprep.mubr.msk.f32.mxu0 %vm11736_vm9, %v9073_v11  ;;  %vm460_vm11 = vmand %vm11737_vm1, %vm444_vm3  ;;  %11740 = vst [vmem:[#allocation47_spill] sm:$0xff] %v9097_v15 }
 0x296   :  { %vm604_vm5 = vmor %vm9061_vm7, %vm11739_vm6  ;;  %vm11745_vm7 = vnez %v11647_v22  ;;  %v6836_v22 = vpop.f32.mrf.mxu1 }
 0x297   :  { %vm605_vm13 = vmor %vm9068_vm0, %vm11741_vm14  ;;  %6882 = vmatmul.mubr.msk.f32.gmra.mxu0 %vm11733_vm4, %v9090_v12  ;;  %v9108_v16 = vsel %vm604_vm5, 1.0, %v11566_v54 }
 0x298   :  { %vm492_vm3 = vmand %vm460_vm11, %vm476_vm8  ;;  %11743 = vst [vmem:[#allocation48_spill] sm:$0xff] %v9108_v16  ;;  %v9111_v2 = vsel %vm605_vm13, 1.0, %v11566_v54  ;;  %v1092_v5 = vpop.f32.mrf.mxu1 }
 0x299   :  { %vm11742_vm12 = vmmov %vm11733_vm4  ;;  %11744 = vst [vmem:[#allocation49_spill] sm:$0xff] %v9111_v2 }
 0x29a   :  { %6884 = vmatprep.mubr.msk.f32.mxu0 %vm11742_vm12, %v9097_v15  ;;  %vm606_vm2 = vmor %vm492_vm3, %vm11745_vm7  ;;  %v6839_v6 = vpop.f32.mrf.mxu1 }
 0x29b   :  { %vm11746_vm15 = vmmov %vm11733_vm4  ;;  %v9120_v18 = vsel %vm606_vm2, 1.0, %v11566_v54 }
 0x29c   :  { %6885 = vmatmul.mubr.msk.f32.gmra.mxu0 %vm11746_vm15, %v9108_v16  ;;  %vm11747_vm0 = vmmov %vm11733_vm4  ;;  %11748 = vst [vmem:[#allocation50_spill] sm:$0xff] %v9120_v18  ;;  %v1102_v9 = vpop.f32.mrf.mxu1 }
 0x29d   :  { %6887 = vmatprep.mubr.msk.f32.mxu0 %vm11747_vm0, %v9111_v2  ;;  %vm11749_vm10 = vmmov %vm11747_vm0 }
 0x29e   :  { %vm11750_vm9 = vmmov %vm11747_vm0  ;;  %v6842_v10 = vpop.f32.mrf.mxu1 }
 0x29f   :  { %vm11751_vm1 = vmmov %vm11747_vm0 }
 0x2a0   :  { %6888 = vmatmul.mubr.msk.f32.gmra.mxu0 %vm11749_vm10, %v9120_v18  ;;  %vm11752_vm11 = vmmov %vm11747_vm0  ;;  %v1112_v13 = vpop.f32.mrf.mxu1 }
 0x2a1   :  { %6926 = vmatprep.mubr.msk.f32.mxu0 %vm11750_vm9, %v8640_v55  ;;  %vm11753_vm8 = vmmov %vm11747_vm0 }
 0x2a2   :  { %vm11754_vm6 = vmmov %vm11747_vm0  ;;  %v6845_v14 = vpop.f32.mrf.mxu1 }
 0x2a3   :  { %vm11755_vm5 = vmmov %vm11747_vm0 }
 0x2a4   :  { %6927 = vmatmul.mubr.msk.f32.vlgmr.msra.gmra.mxu0 %vm11751_vm1, %v8927_v34  ;;  %vm11756_vm14 = vmmov %vm11747_vm0  ;;  %v1122_v17 = vpop.f32.mrf.mxu1 }
 0x2a5   :  { %6929 = vmatprep.mubr.msk.f32.mxu0 %vm11752_vm11, %v8918_v59  ;;  %vm11757_vm13 = vmmov %vm11747_vm0 }
 0x2a6   :  { %vm11758_vm4 = vmmov %vm11747_vm0  ;;  %v9156_v19 = vpop.f32.mrf.mxu1 }
 0x2a7   :  { %vm11759_vm3 = vmmov %vm11747_vm0 }
 0x2a8   :  { %6930 = vmatmul.mubr.msk.f32.gmra.mxu0 %vm11753_vm8, %v8982_v48  ;;  %vm11760_vm12 = vmmov %vm11747_vm0  ;;  %v9158_v20 = vpop.f32.mrf.mxu1 }
 0x2a9   :  { %6932 = vmatprep.mubr.msk.f32.mxu0 %vm11754_vm6, %v8992_v51  ;;  %vm11761_vm7 = vmmov %vm11747_vm0 }
 0x2aa   :  { %vm11762_vm2 = vmmov %vm11747_vm0  ;;  %v9160_v21 = vpop.f32.mrf.mxu1 }
 0x2ab   :  { %vm11763_vm15 = vmmov %vm11747_vm0 }
 0x2ac   :  { %6933 = vmatmul.mubr.msk.f32.gmra.mxu0 %vm11755_vm5, %v9014_v57  ;;  %vm11764_vm10 = vmmov %vm11747_vm0  ;;  %v9162_v23 = vpop.f32.mrf.mxu1 }
 0x2ad   :  { %6935 = vmatprep.mubr.msk.f32.mxu0 %vm11756_vm14, %v9024_v61  ;;  %vm11765_vm9 = vmmov %vm11747_vm0 }
 0x2ae   :  { %v9164_v24 = vpop.f32.mrf.mxu1  ;;  %vm11766_vm1 = vmmov %vm11747_vm0 }
 0x2af   :  { %vm11767_vm11 = vmmov %vm11747_vm0 }
 0x2b0   :  { %6936 = vmatmul.mubr.msk.f32.gmra.mxu0 %vm11757_vm13, %v9041_v4  ;;  %v9166_v25 = vpop.f32.mrf.mxu1  ;;  %vm11768_vm8 = vmmov %vm11747_vm0 }
 0x2b1   :  { %6938 = vmatprep.mubr.msk.f32.mxu0 %vm11758_vm4, %v9047_v7  ;;  %vm11769_vm6 = vmmov %vm11747_vm0 }
 0x2b2   :  { %v9168_v26 = vpop.f32.mrf.mxu1  ;;  %vm11770_vm5 = vmmov %vm11747_vm0 }
 0x2b3   :  { %vm11771_vm14 = vmmov %vm11747_vm0 }
 0x2b4   :  { %6939 = vmatmul.mubr.msk.f32.gmra.mxu0 %vm11759_vm3, %v9066_v8  ;;  %v9172_v30 = vpop.f32.mrf.mxu1  ;;  %vm11772_vm13 = vmmov %vm11747_vm0 }
 0x2b5   :  { %6941 = vmatprep.mubr.msk.f32.mxu0 %vm11760_vm12, %v9073_v11  ;;  %vm11773_vm4 = vmmov %vm11747_vm0 }
 0x2b6   :  { %v9180_v36 = vpop.f32.mrf.mxu1  ;;  %vm11774_vm3 = vmmov %vm11747_vm0 }
 0x2b7   :  { %vm11775_vm12 = vmmov %vm11747_vm0 }
 0x2b8   :  { %6942 = vmatmul.mubr.msk.f32.gmra.mxu0 %vm11761_vm7, %v9090_v12  ;;  %v9191_v63 = vpop.f32.mrf.mxu1  ;;  %vm11776_vm7 = vmmov %vm11747_vm0 }
 0x2b9   :  { %6944 = vmatprep.mubr.msk.f32.mxu0 %vm11762_vm2, %v9097_v15  ;;  %vm11777_vm2 = vmmov %vm11747_vm0 }
 0x2bc   :  { %6945 = vmatmul.mubr.msk.f32.gmra.mxu0 %vm11763_vm15, %v9108_v16  ;;  %vm11778_vm15 = vmmov %vm11747_vm0 }
 0x2bd   :  { %6947 = vmatprep.mubr.msk.f32.mxu0 %vm11747_vm0, %v9111_v2 }
 0x2c0   :  { %6948 = vmatmul.mubr.msk.f32.gmra.mxu0 %vm11764_vm10, %v9120_v18  ;;  %vm11779_vm10 = vmmov %vm11747_vm0 }
 0x33a   :  { %v6868_v27 = vpop.f32.mrf.mxu0 }
 0x33b   :  { %v1291_v28 = vadd.f32 %v6868_v27, %v6836_v22 }
 0x33c   :  { %v1285_v31 = vpop.f32.mrf.mxu0 }
 0x33d   :  { %v1286_v56 = vadd.f32 %v1285_v31, %v1092_v5  ;;  %v9175_v32 = vadd.f32 %v9170_v29, %v1291_v28  ;;  %v9209_v28 = vpop.f32.mrf.mxu1 }
 0x33f   :  { %v9178_v33 = vadd.f32 %v9170_v29, %v1286_v56  ;;  %v6871_v35 = vpop.f32.mrf.mxu0  ;;  %v1744_v43 = vmul.f32 %v9175_v32, %v9175_v32  ;;  %v1705_v49 = vsel %vm11766_vm1, %v9175_v32, 0.0  ;;  %vm11781_vm1 = vmmov %vm11747_vm0 }
 0x340   :  { %v1301_v37 = vadd.f32 %v6871_v35, %v6839_v6 }
 0x341   :  { %v1743_v39 = vmul.f32 %v9178_v33, %v9178_v33  ;;  %v1295_v42 = vpop.f32.mrf.mxu0  ;;  %v1704_v44 = vsel %vm11765_vm9, %v9178_v33, 0.0  ;;  %v1760_v62 = vsel %vm11768_vm8, %v1744_v43, 0.0  ;;  %vm11780_vm9 = vmmov %vm11747_vm0 }
 0x342   :  { %v9189_v60 = vadd.f32 %v9170_v29, %v1301_v37  ;;  %v1296_v45 = vadd.f32 %v1295_v42, %v1102_v9  ;;  %v1706_v53 = vadd.f32 %v1705_v49, %v1704_v44  ;;  %vm11783_vm8 = vmmov %vm11747_vm0 }
 0x343   :  { %v1759_v50 = vsel %vm11767_vm11, %v1743_v39, 0.0  ;;  %vm11782_vm11 = vmmov %vm11747_vm0 }
 0x344   :  { %v9197_v52 = vadd.f32 %v9170_v29, %v1296_v45  ;;  %v1746_v0 = vmul.f32 %v9189_v60, %v9189_v60  ;;  %v1761_v5 = vadd.f32 %v1760_v62, %v1759_v50 }
 0x346   :  { %v6874_v47 = vpop.f32.mrf.mxu0  ;;  %v1707_v40 = vsel %vm11769_vm6, %v9197_v52, 0.0  ;;  %v1745_v1 = vmul.f32 %v9197_v52, %v9197_v52  ;;  %v1764_v37 = vsel %vm11772_vm13, %v1746_v0, 0.0  ;;  %v9227_v0 = vpop.f32.mrf.mxu1  ;;  %vm11784_vm6 = vmmov %vm11747_vm0 }
 0x347   :  { %v1311_v3 = vadd.f32 %v6874_v47, %v6842_v10  ;;  %v1708_v6 = vadd.f32 %v1707_v40, %v1706_v53  ;;  %v1709_v10 = vsel %vm11770_vm5, %v9189_v60, 0.0  ;;  %vm11785_vm5 = vmmov %vm11747_vm0 }
 0x348   :  { %v1305_v58 = vpop.f32.mrf.mxu0  ;;  %v1762_v31 = vsel %vm11771_vm14, %v1745_v1, 0.0  ;;  %vm11786_vm14 = vmmov %vm11747_vm0 }
 0x349   :  { %v1306_v22 = vadd.f32 %v1305_v58, %v1112_v13  ;;  %v9207_v9 = vadd.f32 %v9170_v29, %v1311_v3  ;;  %v1763_v13 = vadd.f32 %v1762_v31, %v1761_v5  ;;  %v1710_v42 = vadd.f32 %v1709_v10, %v1708_v6  ;;  %vm11787_vm13 = vmmov %vm11747_vm0 }
 0x34b   :  { %v9215_v56 = vadd.f32 %v9170_v29, %v1306_v22  ;;  %v1748_v39 = vmul.f32 %v9207_v9, %v9207_v9  ;;  %v1713_v3 = vsel %vm11774_vm3, %v9207_v9, 0.0  ;;  %vm11789_vm3 = vmmov %vm11747_vm0 }
 0x34d   :  { %v6877_v27 = vpop.f32.mrf.mxu0  ;;  %v1711_v44 = vsel %vm11773_vm4, %v9215_v56, 0.0  ;;  %v1747_v45 = vmul.f32 %v9215_v56, %v9215_v56  ;;  %v1768_v6 = vsel %vm11776_vm7, %v1748_v39, 0.0  ;;  %vm11788_vm4 = vmmov %vm11747_vm0 }
 0x34e   :  { %v1321_v35 = vadd.f32 %v6877_v27, %v6845_v14  ;;  %v1712_v50 = vadd.f32 %v1711_v44, %v1710_v42  ;;  %v1765_v14 = vadd.f32 %v1764_v37, %v1763_v13  ;;  %vm11791_vm7 = vmmov %vm11747_vm0 }
 0x34f   :  { %v1315_v43 = vpop.f32.mrf.mxu0  ;;  %v1766_v58 = vsel %vm11775_vm12, %v1747_v45, 0.0  ;;  %vm11790_vm12 = vmmov %vm11747_vm0 }
 0x350   :  { %v9225_v47 = vadd.f32 %v9170_v29, %v1321_v35  ;;  %v1316_v49 = vadd.f32 %v1315_v43, %v1122_v17  ;;  %v1767_v40 = vadd.f32 %v1766_v58, %v1765_v14  ;;  %v1714_v22 = vadd.f32 %v1713_v3, %v1712_v50  ;;  %v9247_v43 = vpop.f32.mrf.mxu1 }
 0x352   :  { %v9233_v62 = vadd.f32 %v9170_v29, %v1316_v49  ;;  %v1750_v1 = vmul.f32 %v9225_v47, %v9225_v47  ;;  %v1769_v37 = vadd.f32 %v1768_v6, %v1767_v40 }
 0x353   :  { %v6880_v53 = vpop.f32.mrf.mxu0 }
 0x354   :  { %v1331_v17 = vadd.f32 %v6880_v53, %v9156_v19  ;;  %v1715_v27 = vsel %vm11777_vm2, %v9233_v62, 0.0  ;;  %v1749_v10 = vmul.f32 %v9233_v62, %v9233_v62  ;;  %v1717_v19 = vsel %vm11778_vm15, %v9225_v47, 0.0  ;;  %vm11792_vm2 = vmmov %vm11747_vm0 }
 0x355   :  { %v1325_v5 = vpop.f32.mrf.mxu0  ;;  %v1716_v35 = vadd.f32 %v1715_v27, %v1714_v22  ;;  %vm11793_vm15 = vmmov %vm11747_vm0 }
 0x356   :  { %v1326_v31 = vadd.f32 %v1325_v5, %v9158_v20  ;;  %v9245_v13 = vadd.f32 %v9170_v29, %v1331_v17  ;;  %v1770_v39 = vsel %vm11747_vm0, %v1749_v10, 0.0  ;;  %v1772_v20 = vsel %vm11779_vm10, %v1750_v1, 0.0  ;;  %v9267_v5 = vpop.f32.mrf.mxu1  ;;  %vm11794_vm10 = vmmov %vm11747_vm0 }
 0x357   :  { %v6883_v42 = vpop.f32.mrf.mxu0  ;;  %v1771_v49 = vadd.f32 %v1770_v39, %v1769_v37  ;;  %v1718_v14 = vadd.f32 %v1717_v19, %v1716_v35 }
 0x358   :  { %v9253_v44 = vadd.f32 %v9170_v29, %v1326_v31  ;;  %v1341_v45 = vadd.f32 %v6883_v42, %v9160_v21  ;;  %v1752_v50 = vmul.f32 %v9245_v13, %v9245_v13  ;;  %v1721_v6 = vsel %vm11781_vm1, %v9245_v13, 0.0  ;;  %vm11796_vm1 = vmmov %vm11747_vm0 }
 0x359   :  { %v1335_v53 = vpop.f32.mrf.mxu0  ;;  %v1773_v17 = vadd.f32 %v1772_v20, %v1771_v49 }
 0x35a   :  { %v1719_v3 = vsel %vm11780_vm9, %v9253_v44, 0.0  ;;  %v1751_v58 = vmul.f32 %v9253_v44, %v9253_v44  ;;  %v9264_v40 = vadd.f32 %v9170_v29, %v1341_v45  ;;  %v1336_v22 = vadd.f32 %v1335_v53, %v9162_v23  ;;  %vm11795_vm9 = vmmov %vm11747_vm0 }
 0x35b   :  { %v1720_v21 = vadd.f32 %v1719_v3, %v1718_v14  ;;  %v1776_v19 = vsel %vm11783_vm8, %v1752_v50, 0.0  ;;  %vm11798_vm8 = vmmov %vm11747_vm0 }
 0x35c   :  { %v6886_v1 = vpop.f32.mrf.mxu0  ;;  %v1774_v27 = vsel %vm11782_vm11, %v1751_v58, 0.0  ;;  %v9273_v10 = vadd.f32 %v9170_v29, %v1336_v22  ;;  %v1754_v35 = vmul.f32 %v9264_v40, %v9264_v40  ;;  %v9287_v58 = vpop.f32.mrf.mxu1  ;;  %vm11797_vm11 = vmmov %vm11747_vm0 }
 0x35d   :  { %v1775_v31 = vadd.f32 %v1774_v27, %v1773_v17  ;;  %v1722_v37 = vadd.f32 %v1721_v6, %v1720_v21  ;;  %v1351_v23 = vadd.f32 %v6886_v1, %v9164_v24  ;;  %v1725_v24 = vsel %vm11785_vm5, %v9264_v40, 0.0  ;;  %vm11800_vm5 = vmmov %vm11747_vm0 }
 0x35e   :  { %v1345_v42 = vpop.f32.mrf.mxu0  ;;  %v1723_v39 = vsel %vm11784_vm6, %v9273_v10, 0.0  ;;  %v1753_v45 = vmul.f32 %v9273_v10, %v9273_v10  ;;  %vm11799_vm6 = vmmov %vm11747_vm0 }
 0x35f   :  { %v1346_v20 = vadd.f32 %v1345_v42, %v9166_v25  ;;  %v1724_v49 = vadd.f32 %v1723_v39, %v1722_v37  ;;  %v1777_v14 = vadd.f32 %v1776_v19, %v1775_v31  ;;  %v9285_v53 = vadd.f32 %v9170_v29, %v1351_v23  ;;  %v9307_v39 = vpop.f32.mrf.mxu1 }
 0x360   :  { %v6889_v3 = vpop.f32.mrf.mxu0  ;;  %v1778_v50 = vsel %vm11786_vm14, %v1753_v45, 0.0  ;;  %v1780_v25 = vsel %vm11787_vm13, %v1754_v35, 0.0  ;;  %vm11801_vm14 = vmmov %vm11747_vm0 }
 0x361   :  { %v9293_v22 = vadd.f32 %v9170_v29, %v1346_v20  ;;  %v1361_v21 = vadd.f32 %v6889_v3, %v9168_v26  ;;  %v1779_v17 = vadd.f32 %v1778_v50, %v1777_v14  ;;  %v1756_v1 = vmul.f32 %v9285_v53, %v9285_v53  ;;  %v9315_v14 = vld [vmem:[#allocation16] ss:$0 sm:$0xff]  ;;  %vm11802_vm13 = vmmov %vm11747_vm0 }
 0x362   :  { %v1726_v6 = vadd.f32 %v1725_v24, %v1724_v49  ;;  %v1355_v27 = vpop.f32.mrf.mxu0  ;;  %v1729_v45 = vsel %vm11789_vm3, %v9285_v53, 0.0  ;;  %vm11804_vm3 = vmmov %vm11747_vm0 }
 0x363   :  { %v1727_v31 = vsel %vm11788_vm4, %v9293_v22, 0.0  ;;  %v1755_v37 = vmul.f32 %v9293_v22, %v9293_v22  ;;  %v9304_v23 = vadd.f32 %v9170_v29, %v1361_v21  ;;  %v1356_v42 = vadd.f32 %v1355_v27, %v9172_v30  ;;  %vm11803_vm4 = vmmov %vm11747_vm0 }
 0x364   :  { %v1728_v26 = vadd.f32 %v1727_v31, %v1726_v6  ;;  %v1781_v19 = vadd.f32 %v1780_v25, %v1779_v17  ;;  %v6928_v35 = vpop.f32.mrf.mxu0  ;;  %v1784_v25 = vsel %vm11791_vm7, %v1756_v1, 0.0  ;;  %vm11806_vm7 = vmmov %vm11747_vm0 }
 0x365   :  { %v1782_v20 = vsel %vm11790_vm12, %v1755_v37, 0.0  ;;  %v9313_v49 = vadd.f32 %v9170_v29, %v1356_v42  ;;  %v1758_v24 = vmul.f32 %v9304_v23, %v9304_v23  ;;  %v1606_v50 = vadd.f32 %v6928_v35, %v9180_v36  ;;  %vm11805_vm12 = vmmov %vm11747_vm0 }
 0x366   :  { %v1783_v3 = vadd.f32 %v1782_v20, %v1781_v19  ;;  %v1730_v30 = vadd.f32 %v1729_v45, %v1728_v26  ;;  %v1600_v21 = vpop.f32.mrf.mxu0  ;;  %v9329_v26 = vpop.f32.mrf.mxu1  ;;  %v1733_v36 = vsel %vm11793_vm15, %v9304_v23, 0.0  ;;  %vm11808_vm15 = vmmov %vm11747_vm0 }
 0x367   :  { %v1731_v17 = vsel %vm11792_vm2, %v9313_v49, 0.0  ;;  %v1757_v6 = vmul.f32 %v9313_v49, %v9313_v49  ;;  %v1601_v29 = vadd.f32 %v1600_v21, %v9191_v63  ;;  %v9327_v37 = vadd.f32 %v9315_v14, %v1606_v50  ;;  %vm11807_vm2 = vmmov %vm11747_vm0 }
 0x368   :  { %v1732_v27 = vadd.f32 %v1731_v17, %v1730_v30  ;;  %v1785_v31 = vadd.f32 %v1784_v25, %v1783_v3  ;;  %v6931_v42 = vpop.f32.mrf.mxu0  ;;  %v1788_v63 = vsel %vm11794_vm10, %v1758_v24, 0.0  ;;  %vm11809_vm10 = vmmov %vm11747_vm0 }
 0x369   :  { %v1786_v1 = vsel %vm11747_vm0, %v1757_v6, 0.0  ;;  %v9335_v19 = vadd.f32 %v9315_v14, %v1601_v29  ;;  %v1616_v35 = vadd.f32 %v6931_v42, %v9209_v28  ;;  %v1919_v3 = vmul.f32 %v9327_v37, %v9327_v37 }
 0x36a   :  { %v1734_v45 = vadd.f32 %v1733_v36, %v1732_v27  ;;  %v1787_v20 = vadd.f32 %v1786_v1, %v1785_v31  ;;  %v1610_v30 = vpop.f32.mrf.mxu0  ;;  %v1881_v24 = vsel %vm11796_vm1, %v9327_v37, 0.0  ;;  %v1495_v27 = vpop.f32.mrf.mxu1  ;;  %vm11811_vm1 = vmmov %vm11747_vm0 }
 0x36b   :  { %v1880_v50 = vsel %vm11795_vm9, %v9335_v19, 0.0  ;;  %v1918_v21 = vmul.f32 %v9335_v19, %v9335_v19  ;;  %v9346_v25 = vadd.f32 %v9315_v14, %v1616_v35  ;;  %v1611_v17 = vadd.f32 %v1610_v30, %v9227_v0  ;;  %vm11810_vm9 = vmmov %vm11747_vm0 }
 0x36c   :  { %v1735_v28 = vrot.slane %v1734_v45, 4  ;;  %v1789_v6 = vadd.f32 %v1788_v63, %v1787_v20  ;;  %v6934_v29 = vpop.f32.mrf.mxu0  ;;  %v1935_v31 = vsel %vm11797_vm11, %v1919_v3, 0.0  ;;  %v1882_v42 = vadd.f32 %v1881_v24, %v1880_v50  ;;  %v6911_v2 = vpop.f32.mrf.mxu1  ;;  %vm11812_vm11 = vmmov %vm11747_vm0 }
 0x36d   :  { %v1934_v36 = vsel %vm11798_vm8, %v1918_v21, 0.0  ;;  %v9354_v1 = vadd.f32 %v9315_v14, %v1611_v17  ;;  %v1921_v0 = vmul.f32 %v9346_v25, %v9346_v25  ;;  %v1626_v63 = vadd.f32 %v6934_v29, %v9247_v43  ;;  %vm11813_vm8 = vmmov %vm11747_vm0 }
 0x36e   :  { %v1736_v54 = vadd.f32 %v1735_v28, %v1734_v45  ;;  %v1790_v35 = vrot.slane %v1789_v6, 4  ;;  %v1620_v20 = vpop.f32.mrf.mxu0  ;;  %v1936_v30 = vadd.f32 %v1935_v31, %v1934_v36  ;;  %v1885_v43 = vsel %vm11800_vm5, %v9346_v25, 0.0  ;;  %vm11815_vm5 = vmmov %vm11747_vm0 }
 0x36f   :  { %v1883_v18 = vsel %vm11799_vm6, %v9354_v1, 0.0  ;;  %v1920_v3 = vmul.f32 %v9354_v1, %v9354_v1  ;;  %v1621_v50 = vadd.f32 %v1620_v20, %v9267_v5  ;;  %v9365_v45 = vadd.f32 %v9315_v14, %v1626_v63  ;;  %vm11814_vm6 = vmmov %vm11747_vm0 }
 0x370   :  { %v1737_v21 = vrot.slane %v1736_v54, 2  ;;  %v1791_v17 = vadd.f32 %v1790_v35, %v1789_v6  ;;  %v1884_v24 = vadd.f32 %v1883_v18, %v1882_v42  ;;  %v6937_v28 = vpop.f32.mrf.mxu0  ;;  %v1939_v6 = vsel %vm11802_vm13, %v1921_v0, 0.0  ;;  %v1505_v0 = vpop.f32.mrf.mxu1  ;;  %vm11817_vm13 = vmmov %vm11747_vm0 }
 0x371   :  { %v1937_v29 = vsel %vm11801_vm14, %v1920_v3, 0.0  ;;  %v9371_v31 = vadd.f32 %v9315_v14, %v1621_v50  ;;  %v1636_v36 = vadd.f32 %v6937_v28, %v9287_v58  ;;  %v1923_v35 = vmul.f32 %v9365_v45, %v9365_v45  ;;  %vm11816_vm14 = vmmov %vm11747_vm0 }
 0x372   :  { %v1738_v16 = vadd.f32 %v1737_v21, %v1736_v54  ;;  %v1792_v5 = vrot.slane %v1791_v17, 2  ;;  %v1938_v18 = vadd.f32 %v1937_v29, %v1936_v30  ;;  %v1630_v42 = vpop.f32.mrf.mxu0  ;;  %v1886_v63 = vadd.f32 %v1885_v43, %v1884_v24 }
 0x373   :  { %v1887_v20 = vsel %vm11803_vm4, %v9371_v31, 0.0  ;;  %v1922_v3 = vmul.f32 %v9371_v31, %v9371_v31  ;;  %v9382_v54 = vadd.f32 %v9315_v14, %v1636_v36  ;;  %v1889_v30 = vsel %vm11804_vm3, %v9365_v45, 0.0  ;;  %vm11818_vm4 = vmmov %vm11747_vm0 }
 0x374   :  { %v1739_v50 = vrot.slane %v1738_v16, 1  ;;  %v1793_v15 = vadd.f32 %v1792_v5, %v1791_v17  ;;  %v1940_v12 = vadd.f32 %v1939_v6, %v1938_v18  ;;  %v6940_v58 = vpop.f32.mrf.mxu0  ;;  %v1888_v21 = vadd.f32 %v1887_v20, %v1886_v63  ;;  %vm11819_vm3 = vmmov %vm11747_vm0 }
 0x375   :  { %v1941_v24 = vsel %vm11805_vm12, %v1922_v3, 0.0  ;;  %v1631_v28 = vadd.f32 %v1630_v42, %v9307_v39  ;;  %v1943_v11 = vsel %vm11806_vm7, %v1923_v35, 0.0  ;;  %v1925_v36 = vmul.f32 %v9382_v54, %v9382_v54  ;;  %v6914_v42 = vpop.f32.mrf.mxu1  ;;  %vm11820_vm12 = vmmov %vm11747_vm0 }
 0x376   :  { %v1740_v43 = vadd.f32 %v1739_v50, %v1738_v16  ;;  %v1794_v29 = vrot.slane %v1793_v15, 1  ;;  %v1942_v8 = vadd.f32 %v1941_v24, %v1940_v12  ;;  %v1640_v17 = vpop.f32.mrf.mxu0  ;;  %v1890_v6 = vadd.f32 %v1889_v30, %v1888_v21  ;;  %vm11821_vm7 = vmmov %vm11747_vm0 }
 0x377   :  { %v9392_v5 = vadd.f32 %v9315_v14, %v1631_v28  ;;  %v1646_v18 = vadd.f32 %v6940_v58, %v9329_v26  ;;  %v1641_v39 = vadd.f32 %v1640_v17, %v1495_v27  ;;  %v1947_v27 = vsel %vm11747_vm0, %v1925_v36, 0.0 }
 0x378   :  { %v9395_v63 = vmul.f32 0.0078125, %v1740_v43  ;;  %v1795_v20 = vadd.f32 %v1794_v29, %v1793_v15  ;;  %v1944_v3 = vadd.f32 %v1943_v11, %v1942_v8  ;;  %v6943_v16 = vpop.f32.mrf.mxu0  ;;  %v1893_v15 = vsel %vm11808_vm15, %v9382_v54, 0.0  ;;  %vm11823_vm15 = vmmov %vm11747_vm0 }
 0x379   :  { %v1891_v12 = vsel %vm11807_vm2, %v9392_v5, 0.0  ;;  %v1924_v35 = vmul.f32 %v9392_v5, %v9392_v5  ;;  %v9402_v50 = vadd.f32 %v9315_v14, %v1646_v18  ;;  %v9413_v21 = vadd.f32 %v9315_v14, %v1641_v39  ;;  %v1515_v18 = vpop.f32.mrf.mxu1  ;;  %vm11822_vm2 = vmmov %vm11747_vm0 }
 0x37a   :  { %v1796_v24 = vmul.f32 0.0078125, %v1795_v20  ;;  %v1797_v26 = vmul.f32 %v9395_v63, %v9395_v63  ;;  %v1892_v8 = vadd.f32 %v1891_v12, %v1890_v6  ;;  %v1650_v11 = vpop.f32.mrf.mxu0  ;;  %v1656_v17 = vadd.f32 %v6943_v16, %v6911_v2 }
 0x37b   :  { %v1945_v58 = vsel %vm11809_vm10, %v1924_v35, 0.0  ;;  %v1927_v30 = vmul.f32 %v9402_v50, %v9402_v50  ;;  %v1897_v6 = vsel %vm11810_vm9, %v9402_v50, 0.0  ;;  %v1895_v36 = vsel %vm11811_vm1, %v9413_v21, 0.0  ;;  %vm11824_vm10 = vmmov %vm11747_vm0 }
 0x37c   :  { %v1798_v28 = vsub.f32 %v1796_v24, %v1797_v26  ;;  %v1946_v43 = vadd.f32 %v1945_v58, %v1944_v3  ;;  %v1894_v29 = vadd.f32 %v1893_v15, %v1892_v8  ;;  %v6946_v20 = vpop.f32.mrf.mxu0  ;;  %v1926_v12 = vmul.f32 %v9413_v21, %v9413_v21 }
 0x37d   :  { %v1651_v35 = vadd.f32 %v1650_v11, %v1505_v0  ;;  %v9422_v24 = vadd.f32 %v9315_v14, %v1656_v17  ;;  %v1666_v26 = vadd.f32 %v6946_v20, %v6914_v42  ;;  %v1951_v58 = vsel %vm11813_vm8, %v1927_v30, 0.0  ;;  %v6917_v11 = vpop.f32.mrf.mxu1 }
 0x37e   :  { %v1799_v7 = vmax.f32 %v1798_v28, 0.0  ;;  %v1896_v4 = vadd.f32 %v1895_v36, %v1894_v29  ;;  %v1948_v39 = vadd.f32 %v1947_v27, %v1946_v43  ;;  %v1660_v3 = vpop.f32.mrf.mxu0  ;;  %v1949_v2 = vsel %vm11812_vm11, %v1926_v12, 0.0 }
 0x37f   :  { %v9426_v16 = vadd.f32 %v9315_v14, %v1651_v35  ;;  %v1661_v15 = vadd.f32 %v1660_v3, %v1515_v18  ;;  %v1929_v0 = vmul.f32 %v9422_v24, %v9422_v24  ;;  %v9436_v17 = vadd.f32 %v9315_v14, %v1666_v26  ;;  %v1525_v35 = vpop.f32.mrf.mxu1 }
 0x380   :  { %v1816_v8 = vadd.f32 1e-05, %v1799_v7  ;;  %v1950_v61 = vadd.f32 %v1949_v2, %v1948_v39  ;;  %v6949_v27 = vpop.f32.mrf.mxu0  ;;  %v1898_v28 = vadd.f32 %v1897_v6, %v1896_v4  ;;  %v1901_v18 = vsel %vm11815_vm5, %v9422_v24, 0.0 }
 0x381   :  { %v1899_v43 = vsel %vm11814_vm6, %v9426_v16, 0.0  ;;  %v1928_v29 = vmul.f32 %v9426_v16, %v9426_v16  ;;  %v9439_v42 = vadd.f32 %v9315_v14, %v1661_v15  ;;  %v1931_v6 = vmul.f32 %v9436_v17, %v9436_v17 }
 0x382   :  { %7451 = vrsqrt.f32 %v1816_v8  ;;  %v1952_v7 = vadd.f32 %v1951_v58, %v1950_v61  ;;  %v1670_v30 = vpop.f32.mrf.mxu0  ;;  %v1900_v20 = vadd.f32 %v1899_v43, %v1898_v28  ;;  %v1676_v39 = vadd.f32 %v6949_v27, %v6917_v11 }
 0x383   :  { %v1953_v4 = vsel %vm11816_vm14, %v1928_v29, 0.0  ;;  %v1903_v12 = vsel %vm11817_vm13, %v9439_v42, 0.0  ;;  %v1930_v61 = vmul.f32 %v9439_v42, %v9439_v42  ;;  %v1955_v3 = vsel %vm11818_vm4, %v1929_v0, 0.0 }
 0x384   :  { %v1954_v36 = vadd.f32 %v1953_v4, %v1952_v7  ;;  %v1902_v2 = vadd.f32 %v1901_v18, %v1900_v20  ;;  %v1671_v26 = vadd.f32 %v1670_v30, %v1525_v35  ;;  %v9453_v58 = vadd.f32 %v9315_v14, %v1676_v39 }
 0x385   :  { %v1957_v8 = vsel %vm11819_vm3, %v1930_v61, 0.0  ;;  %v1905_v29 = vsel %vm11820_vm12, %v9436_v17, 0.0  ;;  %v1959_v7 = vsel %vm11821_vm7, %v1931_v6, 0.0  ;;  %v1814_v35 = vsub.f32 %v9313_v49, %v9395_v63 }
 0x386   :  { %v1956_v15 = vadd.f32 %v1955_v3, %v1954_v36  ;;  %v1904_v28 = vadd.f32 %v1903_v12, %v1902_v2  ;;  %v9456_v43 = vadd.f32 %v9315_v14, %v1671_v26  ;;  %v1933_v0 = vmul.f32 %v9453_v58, %v9453_v58 }
 0x387   :  { %v1909_v36 = vsel %vm11747_vm0, %v9453_v58, 0.0  ;;  %v1815_v3 = vsub.f32 %v9304_v23, %v9395_v63  ;;  %v1813_v2 = vsub.f32 %v9285_v53, %v9395_v63  ;;  %v1810_v49 = vsub.f32 %v9273_v10, %v9395_v63 }
 0x388   :  { %v1958_v11 = vadd.f32 %v1957_v8, %v1956_v15  ;;  %v1906_v27 = vadd.f32 %v1905_v29, %v1904_v28  ;;  %v1907_v30 = vsel %vm11822_vm2, %v9456_v43, 0.0  ;;  %v1932_v18 = vmul.f32 %v9456_v43, %v9456_v43  ;;  %v9479_v15 = vld [vmem:[#allocation18] ss:$0 sm:$0xff] }
 0x389   :  { %v1963_v6 = vsel %vm11824_vm10, %v1933_v0, 0.0  ;;  %v1812_v28 = vsub.f32 %v9293_v22, %v9395_v63  ;;  %v1811_v29 = vsub.f32 %v9264_v40, %v9395_v63  ;;  %v9490_v0 = vld [vmem:[#allocation21] ss:$0 sm:$0xff] }
 0x38a   :  { %v1960_v20 = vadd.f32 %v1959_v7, %v1958_v11  ;;  %v1908_v4 = vadd.f32 %v1907_v30, %v1906_v27  ;;  %v1961_v14 = vsel %vm11823_vm15, %v1932_v18, 0.0 }
 0x38c   :  { %v1962_v12 = vadd.f32 %v1961_v14, %v1960_v20  ;;  %v1910_v61 = vadd.f32 %v1909_v36, %v1908_v4 }
 0x38e   :  { %v1964_v39 = vadd.f32 %v1963_v6, %v1962_v12  ;;  %v1911_v8 = vrot.slane %v1910_v61, 4 }
 0x38f   :  { %v9477_v26 = vpop.eup %7451 }
 0x390   :  { %v1832_v7 = vmul.f32 %v9477_v26, %v1814_v35  ;;  %v1965_v23 = vrot.slane %v1964_v39, 4  ;;  %v1833_v11 = vmul.f32 %v9477_v26, %v1815_v3  ;;  %v1831_v53 = vmul.f32 %v9477_v26, %v1813_v2 }
 0x391   :  { %v1912_v27 = vadd.f32 %v1911_v8, %v1910_v61  ;;  %v1830_v30 = vmul.f32 %v9477_v26, %v1812_v28  ;;  %v1829_v22 = vmul.f32 %v9477_v26, %v1811_v29  ;;  %v1828_v18 = vmul.f32 %v9477_v26, %v1810_v49 }
 0x392   :  { %v1854_v40 = vmul.f32 %v9479_v15, %v1832_v7  ;;  %v1966_v20 = vadd.f32 %v1965_v23, %v1964_v39  ;;  %v1855_v10 = vmul.f32 %v9479_v15, %v1833_v11  ;;  %v1853_v4 = vmul.f32 %v9479_v15, %v1831_v53 }
 0x393   :  { %v1913_v14 = vrot.slane %v1912_v27, 2  ;;  %v1852_v36 = vmul.f32 %v9479_v15, %v1830_v30  ;;  %v1851_v12 = vmul.f32 %v9479_v15, %v1829_v22  ;;  %v1850_v6 = vmul.f32 %v9479_v15, %v1828_v18 }
 0x394   :  { %v1876_v61 = vadd.f32 %v9490_v0, %v1854_v40  ;;  %v1967_v35 = vrot.slane %v1966_v20, 2  ;;  %v1877_v3 = vadd.f32 %v9490_v0, %v1855_v10  ;;  %v1875_v2 = vadd.f32 %v9490_v0, %v1853_v4 }
 0x395   :  { %v1914_v8 = vadd.f32 %v1913_v14, %v1912_v27  ;;  %v1874_v39 = vadd.f32 %v9490_v0, %v1852_v36  ;;  %v1873_v28 = vadd.f32 %v9490_v0, %v1851_v12  ;;  %v1872_v23 = vadd.f32 %v9490_v0, %v1850_v6 }
 0x396   :  { %v2067_v29 = vsub.f32 0.0, %v1876_v61  ;;  %v1968_v49 = vadd.f32 %v1967_v35, %v1966_v20  ;;  %v2068_v7 = vsub.f32 0.0, %v1877_v3  ;;  %v2066_v53 = vsub.f32 0.0, %v1875_v2 }
 0x397   :  { %v1915_v11 = vrot.slane %v1914_v8, 1  ;;  %v2065_v30 = vsub.f32 0.0, %v1874_v39  ;;  %v1809_v22 = vsub.f32 %v9245_v13, %v9395_v63  ;;  %v2064_v27 = vsub.f32 0.0, %v1873_v28 }
 0x398   :  { %v2097_v18 = vmul.f32 1.442695, %v2067_v29  ;;  %v1969_v40 = vrot.slane %v1968_v49, 1  ;;  %v2099_v4 = vmul.f32 1.442695, %v2068_v7  ;;  %v2063_v12 = vsub.f32 0.0, %v1872_v23 }
 0x399   :  { %v1916_v10 = vadd.f32 %v1915_v11, %v1914_v8  ;;  %v1827_v14 = vmul.f32 %v9477_v26, %v1809_v22  ;;  %v1808_v20 = vsub.f32 %v9253_v44, %v9395_v63  ;;  %v1807_v6 = vsub.f32 %v9225_v47, %v9395_v63 }
 0x39a   :  { %v1970_v36 = vadd.f32 %v1969_v40, %v1968_v49  ;;  %v2095_v35 = vmul.f32 1.442695, %v2066_v53  ;;  %v2093_v3 = vmul.f32 1.442695, %v2065_v30  ;;  %v1806_v13 = vsub.f32 %v9233_v62, %v9395_v63 }
 0x39b   :  { %v9514_v61 = vmul.f32 0.0078125, %v1916_v10  ;;  %7453 = vpow2.f32 %v2097_v18  ;;  %v1826_v8 = vmul.f32 %v9477_v26, %v1808_v20  ;;  %v1825_v39 = vmul.f32 %v9477_v26, %v1807_v6 }
 0x39c   :  { %v1971_v2 = vmul.f32 0.0078125, %v1970_v36  ;;  %7455 = vpow2.f32 %v2099_v4  ;;  %v2091_v44 = vmul.f32 1.442695, %v2064_v27  ;;  %v1849_v47 = vmul.f32 %v9479_v15, %v1827_v14 }
 0x39d   :  { %v1972_v28 = vmul.f32 %v9514_v61, %v9514_v61  ;;  %v2089_v29 = vmul.f32 1.442695, %v2063_v12  ;;  %v1824_v49 = vmul.f32 %v9477_v26, %v1806_v13  ;;  %7457 = vpow2.f32 %v2095_v35 }
 0x39e   :  { %7459 = vpow2.f32 %v2093_v3  ;;  %v1848_v62 = vmul.f32 %v9479_v15, %v1826_v8  ;;  %v1847_v23 = vmul.f32 %v9479_v15, %v1825_v39  ;;  %v1805_v11 = vsub.f32 %v9207_v9, %v9395_v63 }
 0x39f   :  { %v1973_v7 = vsub.f32 %v1971_v2, %v1972_v28  ;;  %7461 = vpow2.f32 %v2091_v44  ;;  %v1871_v30 = vadd.f32 %v9490_v0, %v1849_v47  ;;  %v1846_v18 = vmul.f32 %v9479_v15, %v1824_v49 }
 0x3a0   :  { %7463 = vpow2.f32 %v2089_v29  ;;  %v1870_v22 = vadd.f32 %v9490_v0, %v1848_v62  ;;  %v1823_v40 = vmul.f32 %v9477_v26, %v1805_v11  ;;  %v1869_v4 = vadd.f32 %v9490_v0, %v1847_v23 }
 0x3a1   :  { %v1974_v53 = vmax.f32 %v1973_v7, 0.0  ;;  %v1804_v27 = vsub.f32 %v9215_v56, %v9395_v63  ;;  %v623_v9 = vmul.u32 8, %v8616_v41  ;;  %v2062_v36 = vsub.f32 0.0, %v1871_v30 }
 0x3a2   :  { %v1845_v14 = vmul.f32 %v9479_v15, %v1823_v40  ;;  %v2061_v20 = vsub.f32 0.0, %v1870_v22  ;;  %v1868_v6 = vadd.f32 %v9490_v0, %v1846_v18  ;;  %v2060_v35 = vsub.f32 0.0, %v1869_v4 }
 0x3a3   :  { %v1991_v10 = vadd.f32 1e-05, %v1974_v53  ;;  %v1822_v12 = vmul.f32 %v9477_v26, %v1804_v27  ;;  %v1803_v3 = vsub.f32 %v9189_v60, %v9395_v63  ;;  %v1802_v13 = vsub.f32 %v9197_v52, %v9395_v63 }
 0x3a4   :  { %v1801_v56 = vsub.f32 %v9175_v32, %v9395_v63  ;;  %v1867_v2 = vadd.f32 %v9490_v0, %v1845_v14  ;;  %v1800_v41 = vsub.f32 %v9178_v33, %v9395_v63  ;;  %v625_v8 = vsub.s32 %v8609_v38, %v623_v9 }
 0x3a5   :  { %7465 = vrsqrt.f32 %v1991_v10  ;;  %v1989_v28 = vsub.f32 %v9456_v43, %v9514_v61  ;;  %v1990_v60 = vsub.f32 %v9453_v58, %v9514_v61  ;;  %v2087_v44 = vmul.f32 1.442695, %v2062_v36 }
 0x3a6   :  { %v1844_v52 = vmul.f32 %v9479_v15, %v1822_v12  ;;  %v1988_v29 = vsub.f32 %v9436_v17, %v9514_v61  ;;  %v1987_v49 = vsub.f32 %v9439_v42, %v9514_v61  ;;  %v2085_v7 = vmul.f32 1.442695, %v2061_v20 }
 0x3a7   :  { %v2059_v62 = vsub.f32 0.0, %v1868_v6  ;;  %v1986_v23 = vsub.f32 %v9422_v24, %v9514_v61  ;;  %v1985_v43 = vsub.f32 %v9426_v16, %v9514_v61  ;;  %v2083_v11 = vmul.f32 1.442695, %v2060_v35 }
 0x3a8   :  { %v7454_v39 = vpop.eup %7453  ;;  %v1821_v58 = vmul.f32 %v9477_v26, %v1803_v3  ;;  %v1984_v22 = vsub.f32 %v9402_v50, %v9514_v61  ;;  %v1983_v17 = vsub.f32 %v9413_v21, %v9514_v61  ;;  %v2058_v42 = vsub.f32 0.0, %v1867_v2  ;;  %v9589_v2 = vld [vmem:[#allocation19] ss:$0 sm:$0xff] }
 0x3a9   :  { %v7456_v47 = vpop.eup %7455  ;;  %v2115_v30 = vadd.f32 1.0, %v7454_v39  ;;  %7467 = vpow2.f32 %v2087_v44  ;;  %v1866_v24 = vadd.f32 %v9490_v0, %v1844_v52  ;;  %v1820_v10 = vmul.f32 %v9477_v26, %v1802_v13 }
 0x3aa   :  { %v7458_v53 = vpop.eup %7457  ;;  %v2116_v40 = vadd.f32 1.0, %v7456_v47  ;;  %7469 = vpow2.f32 %v2085_v7  ;;  %v1982_v4 = vsub.f32 %v9382_v54, %v9514_v61  ;;  %v1981_v27 = vsub.f32 %v9392_v5, %v9514_v61 }
 0x3ab   :  { %v7460_v18 = vpop.eup %7459  ;;  %v2081_v50 = vmul.f32 1.442695, %v2059_v62  ;;  %7471 = vpow2.f32 %v2083_v11  ;;  %v1980_v21 = vsub.f32 %v9365_v45, %v9514_v61  ;;  %v1979_v9 = vsub.f32 %v9371_v31, %v9514_v61 }
 0x3ac   :  { %v7462_v16 = vpop.eup %7461  ;;  %v9578_v36 = vmul.f32 %v9479_v15, %v1821_v58  ;;  %7473 = vrcp.f32 %v2115_v30  ;;  %v2079_v12 = vmul.f32 1.442695, %v2058_v42  ;;  %vm627_vm9 = vcmp.ge.s32.totalorder %v625_v8, 0  ;;  %v9598_v58 = vld [vmem:[#allocation22] ss:$0 sm:$0xff] }
 0x3ad   :  { %v7464_v14 = vpop.eup %7463  ;;  %vm629_vm1 = vcmp.lt.s32.totalorder %v625_v8, 8  ;;  %7475 = vrcp.f32 %v2116_v40  ;;  %v2114_v20 = vadd.f32 1.0, %v7458_v53  ;;  %v2057_v6 = vsub.f32 0.0, %v1866_v24 }
 0x3ae   :  { %v9581_v35 = vmul.f32 %v9479_v15, %v1820_v10  ;;  %vm9583_vm11 = vmand %vm627_vm9, %vm629_vm1  ;;  %v2113_v39 = vadd.f32 1.0, %v7460_v18  ;;  %v2112_v44 = vadd.f32 1.0, %v7462_v16  ;;  %v2111_v52 = vadd.f32 1.0, %v7464_v14 }
 0x3af   :  { %7477 = vpow2.f32 %v2081_v50  ;;  %v11588_v47 = vmov 1.0   ;;  %v1977_v31 = vsub.f32 %v9354_v1, %v9514_v61  ;;  %v1975_v63 = vsub.f32 %v9335_v19, %v9514_v61 }
 0x3b0   :  { %6982 = vmatprep.mubr.msk.f32.mxu1 %vm9583_vm11, %v11588_v47  ;;  %7479 = vpow2.f32 %v2079_v12 }
 0x3b1   :  { %7481 = vrcp.f32 %v2114_v20 }
 0x3b2   :  { %v9587_v13 = vpop.eup %7465  ;;  %7483 = vrcp.f32 %v2113_v39 }
 0x3b3   :  { %v2007_v8 = vmul.f32 %v9587_v13, %v1989_v28  ;;  %v2008_v7 = vmul.f32 %v9587_v13, %v1990_v60  ;;  %v2006_v62 = vmul.f32 %v9587_v13, %v1988_v29  ;;  %v2005_v11 = vmul.f32 %v9587_v13, %v1987_v49 }
 0x3b4   :  { %v2004_v53 = vmul.f32 %v9587_v13, %v1986_v23  ;;  %v2003_v30 = vmul.f32 %v9587_v13, %v1985_v43  ;;  %v2002_v42 = vmul.f32 %v9587_v13, %v1984_v22  ;;  %v2001_v23 = vmul.f32 %v9587_v13, %v1983_v17 }
 0x3b5   :  { %v2029_v18 = vmul.f32 %v9589_v2, %v2007_v8  ;;  %v2030_v40 = vmul.f32 %v9589_v2, %v2008_v7  ;;  %v2028_v28 = vmul.f32 %v9589_v2, %v2006_v62  ;;  %v2027_v60 = vmul.f32 %v9589_v2, %v2005_v11 }
 0x3b6   :  { %v2026_v29 = vmul.f32 %v9589_v2, %v2004_v53  ;;  %v2025_v49 = vmul.f32 %v9589_v2, %v2003_v30  ;;  %v2024_v24 = vmul.f32 %v9589_v2, %v2002_v42  ;;  %v2077_v17 = vmul.f32 1.442695, %v2057_v6  ;;  %v7468_v62 = vpop.eup %7467 }
 0x3b7   :  { %v9612_v43 = vadd.f32 %v9598_v58, %v2030_v40  ;;  %v9615_v22 = vadd.f32 %v9598_v58, %v2029_v18  ;;  %v9618_v10 = vadd.f32 %v9598_v58, %v2028_v28  ;;  %v9621_v16 = vadd.f32 %v9598_v58, %v2027_v60  ;;  %v7470_v30 = vpop.eup %7469 }
 0x3b8   :  { %v9624_v50 = vadd.f32 %v9598_v58, %v2026_v29  ;;  %v9627_v14 = vadd.f32 %v9598_v58, %v2025_v49  ;;  %v9632_v7 = vadd.f32 %v9598_v58, %v2024_v24  ;;  %7485 = vrcp.f32 %v2112_v44  ;;  %v7472_v40 = vpop.eup %7471 }
 0x3b9   :  { %v2180_v12 = vmin.f32 %v9612_v43, 20.0  ;;  %v2179_v8 = vmin.f32 %v9615_v22, 20.0  ;;  %v2178_v11 = vmin.f32 %v9618_v10, 20.0  ;;  %v2177_v20 = vmin.f32 %v9621_v16, 20.0  ;;  %v9639_v29 = vpop.eup %7473 }
 0x3ba   :  { %v2023_v53 = vmul.f32 %v9589_v2, %v2001_v23  ;;  %v2176_v6 = vmin.f32 %v9624_v50, 20.0  ;;  %7487 = vrcp.f32 %v2111_v52  ;;  %v2175_v60 = vmin.f32 %v9627_v14, 20.0  ;;  %v9644_v23 = vpop.eup %7475 }
 0x3bb   :  { %v2211_v42 = vmul.f32 1.442695, %v2180_v12  ;;  %v2209_v18 = vmul.f32 1.442695, %v2179_v8  ;;  %v2207_v28 = vmul.f32 1.442695, %v2178_v11  ;;  %7489 = vpow2.f32 %v2077_v17 }
 0x3bc   :  { %v2205_v39 = vmul.f32 1.442695, %v2177_v20  ;;  %v2203_v49 = vmul.f32 1.442695, %v2176_v6  ;;  %v2174_v44 = vmin.f32 %v9632_v7, 20.0  ;;  %v1978_v24 = vsub.f32 %v9346_v25, %v9514_v61  ;;  %v7478_v17 = vpop.eup %7477 }
 0x3bd   :  { %7491 = vpow2.f32 %v2211_v42  ;;  %v2201_v12 = vmul.f32 1.442695, %v2175_v60  ;;  %v9647_v52 = vadd.f32 %v9598_v58, %v2023_v53  ;;  %v9651_v8 = vadd.f32 %v9490_v0, %v9578_v36 }
 0x3be   :  { %7493 = vpow2.f32 %v2209_v18  ;;  %v2199_v11 = vmul.f32 1.442695, %v2174_v44  ;;  %v2000_v20 = vmul.f32 %v9587_v13, %v1982_v4  ;;  %v9659_v25 = vadd.f32 %v9490_v0, %v9581_v35  ;;  %v7480_v18 = vpop.eup %7479 }
 0x3bf   :  { %7495 = vpow2.f32 %v2207_v28  ;;  %v2110_v42 = vadd.f32 1.0, %v7468_v62  ;;  %v2173_v53 = vmin.f32 %v9647_v52, 20.0  ;;  %v1999_v36 = vmul.f32 %v9587_v13, %v1981_v27 }
 0x3c0   :  { %7497 = vpow2.f32 %v2205_v39  ;;  %v2109_v6 = vadd.f32 1.0, %v7470_v30  ;;  %v2022_v54 = vmul.f32 %v9589_v2, %v2000_v20  ;;  %v1998_v4 = vmul.f32 %v9587_v13, %v1980_v21  ;;  %v9684_v39 = vpop.eup %7481 }
 0x3c1   :  { %7499 = vpow2.f32 %v2203_v49  ;;  %v2197_v35 = vmul.f32 1.442695, %v2173_v53  ;;  %v2108_v62 = vadd.f32 1.0, %v7472_v40  ;;  %v2021_v28 = vmul.f32 %v9589_v2, %v1999_v36  ;;  %v9692_v44 = vpop.eup %7483 }
 0x3c2   :  { %7501 = vpow2.f32 %v2201_v12  ;;  %v9673_v5 = vadd.f32 %v9598_v58, %v2022_v54  ;;  %v2020_v27 = vmul.f32 %v9589_v2, %v1998_v4  ;;  %v1997_v30 = vmul.f32 %v9587_v13, %v1979_v9 }
 0x3c3   :  { %7503 = vpow2.f32 %v2199_v11  ;;  %v9681_v45 = vadd.f32 %v9598_v58, %v2021_v28  ;;  %v2107_v21 = vadd.f32 1.0, %v7478_v17  ;;  %v1996_v40 = vmul.f32 %v9587_v13, %v1978_v24 }
 0x3c4   :  { %7505 = vrcp.f32 %v2110_v42  ;;  %v2172_v60 = vmin.f32 %v9673_v5, 20.0  ;;  %v9688_v49 = vadd.f32 %v9598_v58, %v2020_v27  ;;  %v2019_v12 = vmul.f32 %v9589_v2, %v1997_v30 }
 0x3c5   :  { %7507 = vpow2.f32 %v2197_v35  ;;  %v2171_v9 = vmin.f32 %v9681_v45, 20.0  ;;  %v1976_v24 = vsub.f32 %v9327_v37, %v9514_v61  ;;  %v9698_v17 = vpop.eup %7485  ;;  %v2106_v20 = vadd.f32 1.0, %v7480_v18 }
 0x3c6   :  { %7509 = vrcp.f32 %v2109_v6  ;;  %v2195_v11 = vmul.f32 1.442695, %v2172_v60  ;;  %v2170_v42 = vmin.f32 %v9688_v49, 20.0  ;;  %v9704_v36 = vadd.f32 %v9598_v58, %v2019_v12 }
 0x3c7   :  { %7511 = vrcp.f32 %v2108_v62  ;;  %v9701_v53 = vpop.eup %7487  ;;  %v2193_v1 = vmul.f32 1.442695, %v2171_v9  ;;  %v2018_v6 = vmul.f32 %v9589_v2, %v1996_v40  ;;  %v1995_v4 = vmul.f32 %v9587_v13, %v1977_v31 }
 0x3c8   :  { %7513 = vrcp.f32 %v2107_v21  ;;  %v9707_v54 = vpop.eup %7489  ;;  %v2191_v37 = vmul.f32 1.442695, %v2170_v42  ;;  %v1819_v18 = vmul.f32 %v9477_v26, %v1801_v56  ;;  %v2056_v62 = vsub.f32 0.0, %v9651_v8 }
 0x3c9   :  { %7515 = vpow2.f32 %v2195_v11  ;;  %v1994_v28 = vmul.f32 %v9587_v13, %v1976_v24  ;;  %v9717_v21 = vadd.f32 %v9598_v58, %v2018_v6  ;;  %v1818_v40 = vmul.f32 %v9477_v26, %v1800_v41 }
 0x3ca   :  { %v7492_v35 = vpop.eup %7491  ;;  %7517 = vpow2.f32 %v2193_v1  ;;  %v2169_v56 = vmin.f32 %v9704_v36, 20.0  ;;  %v2017_v8 = vmul.f32 %v9589_v2, %v1995_v4  ;;  %v2055_v12 = vsub.f32 0.0, %v9659_v25 }
 0x3cb   :  { %v7494_v27 = vpop.eup %7493  ;;  %v2228_v30 = vadd.f32 1.0, %v7492_v35  ;;  %7519 = vpow2.f32 %v2191_v37  ;;  %v1841_v24 = vmul.f32 %v9479_v15, %v1819_v18  ;;  %v2016_v33 = vmul.f32 %v9589_v2, %v1994_v28 }
 0x3cc   :  { %v7496_v32 = vpop.eup %7495  ;;  %v2227_v60 = vadd.f32 1.0, %v7494_v27  ;;  %7521 = vrcp.f32 %v2106_v20  ;;  %v2168_v20 = vmin.f32 %v9717_v21, 20.0  ;;  %v1840_v1 = vmul.f32 %v9479_v15, %v1818_v40 }
 0x3cd   :  { %v7498_v31 = vpop.eup %7497  ;;  %7523 = vlog2.f32 %v2228_v30  ;;  %v2226_v9 = vadd.f32 1.0, %v7496_v32  ;;  %v2189_v37 = vmul.f32 1.442695, %v2169_v56  ;;  %v9733_v4 = vadd.f32 %v9598_v58, %v2017_v8 }
 0x3ce   :  { %v7500_v11 = vpop.eup %7499  ;;  %7525 = vlog2.f32 %v2227_v60  ;;  %v2225_v42 = vadd.f32 1.0, %v7498_v31  ;;  %v1863_v19 = vadd.f32 %v9490_v0, %v1841_v24  ;;  %v2075_v28 = vmul.f32 1.442695, %v2056_v62 }
 0x3cf   :  { %v7502_v26 = vpop.eup %7501  ;;  %7527 = vlog2.f32 %v2226_v9  ;;  %v2224_v41 = vadd.f32 1.0, %v7500_v11  ;;  %v9739_v27 = vadd.f32 %v9598_v58, %v2016_v33  ;;  %v1993_v15 = vmul.f32 %v9587_v13, %v1975_v63 }
 0x3d0   :  { %v7504_v6 = vpop.eup %7503  ;;  %7529 = vlog2.f32 %v2225_v42  ;;  %v2223_v25 = vadd.f32 1.0, %v7502_v26  ;;  %v2187_v32 = vmul.f32 1.442695, %v2168_v20  ;;  %v1862_v60 = vadd.f32 %v9490_v0, %v1840_v1 }
 0x3d1   :  { %v9735_v18 = vpop.eup %7505  ;;  %7531 = vlog2.f32 %v2224_v41  ;;  %v2222_v35 = vadd.f32 1.0, %v7504_v6  ;;  %v2073_v8 = vmul.f32 1.442695, %v2055_v12  ;;  %v2167_v31 = vmin.f32 %v9733_v4, 20.0 }
 0x3d2   :  { %v7508_v61 = vpop.eup %7507  ;;  %7533 = vlog2.f32 %v2223_v25  ;;  %v2015_v62 = vmul.f32 %v9589_v2, %v1993_v15  ;;  %v2054_v24 = vsub.f32 0.0, %v1863_v19  ;;  %v2166_v11 = vmin.f32 %v9739_v27, 20.0 }
 0x3d3   :  { %v9742_v30 = vpop.eup %7509  ;;  %7535 = vlog2.f32 %v2222_v35  ;;  %v2221_v40 = vadd.f32 1.0, %v7508_v61  ;;  %v2053_v63 = vsub.f32 0.0, %v1862_v60  ;;  %v2185_v41 = vmul.f32 1.442695, %v2167_v31 }
 0x3d4   :  { %v9745_v56 = vpop.eup %7511  ;;  %7537 = vpow2.f32 %v2189_v37  ;;  %v9753_v42 = vadd.f32 %v9598_v58, %v2015_v62  ;;  %v2071_v6 = vmul.f32 1.442695, %v2054_v24  ;;  %v2183_v37 = vmul.f32 1.442695, %v2166_v11 }
 0x3d5   :  { %v9749_v9 = vpop.eup %7513  ;;  %7539 = vlog2.f32 %v2221_v40  ;;  %vm2164_vm8 = vcmp.gt.f32.partialorder %v9612_v43, 20.0  ;;  %v2069_v19 = vmul.f32 1.442695, %v2053_v63  ;;  %vm2163_vm6 = vcmp.gt.f32.partialorder %v9615_v22, 20.0 }
 0x3d6   :  { %v7516_v13 = vpop.eup %7515  ;;  %7541 = vpow2.f32 %v2075_v28  ;;  %v2165_v2 = vmin.f32 %v9753_v42, 20.0  ;;  %vm2162_vm5 = vcmp.gt.f32.partialorder %v9618_v10, 20.0  ;;  %vm2161_vm14 = vcmp.gt.f32.partialorder %v9621_v16, 20.0 }
 0x3d7   :  { %v7518_v0 = vpop.eup %7517  ;;  %v2220_v33 = vadd.f32 1.0, %v7516_v13  ;;  %7543 = vpow2.f32 %v2187_v32  ;;  %vm2160_vm13 = vcmp.gt.f32.partialorder %v9624_v50, 20.0  ;;  %vm2159_vm4 = vcmp.gt.f32.partialorder %v9627_v14, 20.0 }
 0x3d8   :  { %v7520_v12 = vpop.eup %7519  ;;  %v2219_v26 = vadd.f32 1.0, %v7518_v0  ;;  %7545 = vpow2.f32 %v2073_v8  ;;  %v2181_v15 = vmul.f32 1.442695, %v2165_v2  ;;  %vm2158_vm3 = vcmp.gt.f32.partialorder %v9632_v7, 20.0 }
 0x3d9   :  { %v9756_v20 = vpop.eup %7521  ;;  %7547 = vlog2.f32 %v2220_v33  ;;  %v2218_v1 = vadd.f32 1.0, %v7520_v12  ;;  %vm2157_vm12 = vcmp.gt.f32.partialorder %v9647_v52, 20.0  ;;  %vm2156_vm7 = vcmp.gt.f32.partialorder %v9673_v5, 20.0 }
 0x3da   :  { %v7524_v25 = vpop.eup %7523  ;;  %7549 = vlog2.f32 %v2219_v26  ;;  %vm2155_vm2 = vcmp.gt.f32.partialorder %v9681_v45, 20.0  ;;  %vm2154_vm15 = vcmp.gt.f32.partialorder %v9688_v49, 20.0  ;;  %vm2153_vm0 = vcmp.gt.f32.partialorder %v9704_v36, 20.0 }
 0x3db   :  { %v7526_v58 = vpop.eup %7525  ;;  %v2260_v35 = vmul.f32 0.6931472, %v7524_v25  ;;  %7551 = vlog2.f32 %v2218_v1  ;;  %vm2152_vm10 = vcmp.gt.f32.partialorder %v9717_v21, 20.0  ;;  %vm2151_vm9 = vcmp.gt.f32.partialorder %v9733_v4, 20.0 }
 0x3dc   :  { %v7528_v61 = vpop.eup %7527  ;;  %v2258_v28 = vmul.f32 0.6931472, %v7526_v58  ;;  %7553 = vpow2.f32 %v2185_v41  ;;  %vm2150_vm1 = vcmp.gt.f32.partialorder %v9739_v27, 20.0 }
 0x3dd   :  { %v7530_v40 = vpop.eup %7529  ;;  %v2276_v32 = vsel %vm2164_vm8, %v9612_v43, %v2260_v35  ;;  %v2256_v60 = vmul.f32 0.6931472, %v7528_v61  ;;  %7555 = vpow2.f32 %v2071_v6  ;;  %vm2149_vm8 = vcmp.gt.f32.partialorder %v9753_v42, 20.0 }
 0x3de   :  { %v7532_v8 = vpop.eup %7531  ;;  %v2292_v31 = vmul.f32 %v9644_v23, %v2276_v32  ;;  %v2275_v62 = vsel %vm2163_vm6, %v9615_v22, %v2258_v28  ;;  %v2254_v24 = vmul.f32 0.6931472, %v7530_v40  ;;  %7557 = vpow2.f32 %v2183_v37 }
 0x3df   :  { %v7534_v13 = vpop.eup %7533  ;;  %v2274_v11 = vsel %vm2162_vm5, %v9618_v10, %v2256_v60  ;;  %v2252_v0 = vmul.f32 0.6931472, %v7532_v8  ;;  %7559 = vpow2.f32 %v2069_v19  ;;  %v2291_v43 = vmul.f32 %v9639_v29, %v2275_v62 }
 0x3e0   :  { %v7536_v33 = vpop.eup %7535  ;;  %6950 = vmatprep.subr.mxu1 %v2292_v31  ;;  %7561 = vpow2.f32 %v2181_v15  ;;  %v2273_v23 = vsel %vm2161_vm14, %v9621_v16, %v2254_v24  ;;  %v2250_v12 = vmul.f32 0.6931472, %v7534_v13  ;;  %v2105_v22 = vadd.f32 1.0, %v9707_v54 }
 0x3e1   :  { %v7538_v63 = vpop.eup %7537  ;;  %6951 = vmatpush3.msra.mxu1 %v2292_v31  ;;  %v2290_v10 = vmul.f32 %v9684_v39, %v2274_v11  ;;  %v2248_v41 = vmul.f32 0.6931472, %v7536_v33  ;;  %v2272_v29 = vsel %vm2160_vm13, %v9624_v50, %v2252_v0  ;;  %v2289_v16 = vmul.f32 %v9692_v44, %v2273_v23 }
 0x3e2   :  { %v7540_v26 = vpop.eup %7539  ;;  %6952 = vmatprep.subr.mxu1 %v2291_v43  ;;  %v2217_v2 = vadd.f32 1.0, %v7538_v63  ;;  %v2271_v54 = vsel %vm2159_vm4, %v9627_v14, %v2250_v12  ;;  %v2288_v35 = vmul.f32 %v9698_v17, %v2272_v29  ;;  %vm11829_vm13 = vcmask 261120  }
 0x3e3   :  { %v7542_v1 = vpop.eup %7541  ;;  %6953 = vmatpush3.msra.mxu1 %v2291_v43  ;;  %v2246_v6 = vmul.f32 0.6931472, %v7540_v26  ;;  %v2270_v19 = vsel %vm2158_vm3, %v9632_v7, %v2248_v41  ;;  %v2287_v14 = vmul.f32 %v9701_v53, %v2271_v54  ;;  %vm11830_vm4 = vmmov %vm11829_vm13 }
 0x3e4   :  { %v7544_v25 = vpop.eup %7543  ;;  %6954 = vmatprep.subr.mxu1 %v2290_v10  ;;  %7563 = vlog2.f32 %v2217_v2  ;;  %v2104_v61 = vadd.f32 1.0, %v7542_v1  ;;  %v2286_v7 = vmul.f32 %v9735_v18, %v2270_v19  ;;  %vm11831_vm3 = vmmov %vm11830_vm4 }
 0x3e5   :  { %v7546_v39 = vpop.eup %7545  ;;  %6955 = vmatpush3.msra.mxu1 %v2290_v10  ;;  %v2269_v37 = vsel %vm2157_vm12, %v9647_v52, %v2246_v6  ;;  %7565 = vrcp.f32 %v2105_v22  ;;  %v2216_v50 = vadd.f32 1.0, %v7544_v25  ;;  %v624_v10 = vmul.u32 8, %v8831_v46  ;;  %vm11832_vm12 = vmmov %vm11831_vm3 }
 0x3e6   :  { %v7548_v58 = vpop.eup %7547  ;;  %6956 = vmatprep.subr.mxu1 %v2289_v16  ;;  %v2285_v44 = vmul.f32 %v9742_v30, %v2269_v37  ;;  %v2103_v18 = vadd.f32 1.0, %v7546_v39 }
 0x3e7   :  { %v7550_v28 = vpop.eup %7549  ;;  %6957 = vmatpush3.msra.mxu1 %v2289_v16  ;;  %v2244_v15 = vmul.f32 0.6931472, %v7548_v58  ;;  %7567 = vlog2.f32 %v2216_v50 }
 0x3e8   :  { %v7552_v40 = vpop.eup %7551  ;;  %6958 = vmatprep.subr.mxu1 %v2288_v35  ;;  %v2242_v52 = vmul.f32 0.6931472, %v7550_v28  ;;  %7569 = vrcp.f32 %v2104_v61  ;;  %v6226_v61 = vld [vmem:[%s11615_s6 + $0x30] sm:$0xff]  ;;  %v2528_v28 = vld [vmem:[#allocation9 + $0x28] sm:$0xff] }
 0x3e9   :  { %v7554_v32 = vpop.eup %7553  ;;  %6959 = vmatpush3.msra.mxu1 %v2288_v35  ;;  %v2268_v17 = vsel %vm2156_vm7, %v9673_v5, %v2244_v15  ;;  %v2240_v30 = vmul.f32 0.6931472, %v7552_v40  ;;  %v6225_v15 = vld [vmem:[%s11615_s6 + $0x28] sm:$0xff]  ;;  %v2527_v40 = vld [vmem:[#allocation9 + $0x20] sm:$0xff] }
 0x3ea   :  { %v7556_v60 = vpop.eup %7555  ;;  %6960 = vmatprep.subr.mxu1 %v2287_v14  ;;  %v2284_v8 = vmul.f32 %v9745_v56, %v2268_v17  ;;  %v2267_v53 = vsel %vm2155_vm2, %v9681_v45, %v2242_v52  ;;  %v2215_v31 = vadd.f32 1.0, %v7554_v32  ;;  %v9823_v52 = vld [vmem:[#allocation7 + $0x38] sm:$0xff] }
 0x3eb   :  { %v7558_v62 = vpop.eup %7557  ;;  %6961 = vmatpush3.msra.mxu1 %v2287_v14  ;;  %v2283_v24 = vmul.f32 %v9749_v9, %v2267_v53  ;;  %v2266_v13 = vsel %vm2154_vm15, %v9688_v49, %v2240_v30  ;;  %v2102_v56 = vadd.f32 1.0, %v7556_v60  ;;  %v6224_v14 = vld [vmem:[%s11615_s6 + $0x20] sm:$0xff]  ;;  %v9825_v32 = vld [vmem:[#allocation10 + $0x38] sm:$0xff]  ;;  %vm11833_vm15 = vmmov %vm11831_vm3 }
 0x3ec   :  { %v7560_v11 = vpop.eup %7559  ;;  %6962 = vmatprep.subr.mxu1 %v2286_v7  ;;  %v2282_v5 = vmul.f32 %v9756_v20, %v2266_v13  ;;  %7571 = vlog2.f32 %v2215_v31  ;;  %v2214_v0 = vadd.f32 1.0, %v7558_v62 }
 0x3ed   :  { %v7562_v33 = vpop.eup %7561  ;;  %6963 = vmatpush3.msra.mxu1 %v2286_v7  ;;  %v2101_v43 = vadd.f32 1.0, %v7560_v11 }
 0x3ee   :  { %6964 = vmatprep.subr.mxu1 %v2285_v44  ;;  %7573 = vlog2.f32 %v2214_v0  ;;  %v2213_v45 = vadd.f32 1.0, %v7562_v33 }
 0x3ef   :  { %6965 = vmatpush3.msra.mxu1 %v2285_v44  ;;  %7575 = vrcp.f32 %v2103_v18  ;;  %v2529_v44 = vld [vmem:[#allocation9 + $0x30] sm:$0xff] }
 0x3f0   :  { %6966 = vmatprep.subr.mxu1 %v2284_v8  ;;  %7577 = vlog2.f32 %v2213_v45 }
 0x3f1   :  { %v7564_v9 = vpop.eup %7563  ;;  %6967 = vmatpush3.msra.mxu1 %v2284_v8  ;;  %7579 = vrcp.f32 %v2102_v56 }
 0x3f2   :  { %v7566_v49 = vpop.eup %7565  ;;  %6968 = vmatprep.subr.mxu1 %v2283_v24  ;;  %v2238_v63 = vmul.f32 0.6931472, %v7564_v9  ;;  %7581 = vrcp.f32 %v2101_v43 }
 0x3f3   :  { %6969 = vmatpush3.msra.mxu1 %v2283_v24 }
 0x3f4   :  { %v7568_v20 = vpop.eup %7567  ;;  %6970 = vmatprep.subr.mxu1 %v2282_v5  ;;  %v2265_v23 = vsel %vm2153_vm0, %v9704_v36, %v2238_v63  ;;  %v626_v36 = vsub.s32 %v8609_v38, %v624_v10  ;;  %vm11834_vm0 = vmmov %vm11831_vm3 }
 0x3f5   :  { %6971 = vmatpush3.msra.mxu1 %v2282_v5  ;;  %v2281_v12 = vmul.f32 %v7566_v49, %v2265_v23  ;;  %v2236_v22 = vmul.f32 0.6931472, %v7568_v20  ;;  %v7570_v26 = vpop.eup %7569 }
 0x3f6   :  { %vm628_vm6 = vcmp.ge.s32.totalorder %v626_v36, 0  ;;  %vm630_vm5 = vcmp.lt.s32.totalorder %v626_v36, 8 }
 0x3f7   :  { %6972 = vmatprep.subr.mxu1 %v2281_v12  ;;  %v2264_v41 = vsel %vm2152_vm10, %v9717_v21, %v2236_v22  ;;  %vm9804_vm14 = vmand %vm628_vm6, %vm630_vm5 }
 0x3f8   :  { %6973 = vmatpush3.msra.mxu1 %v2281_v12  ;;  %v2280_v2 = vmul.f32 %v7570_v26, %v2264_v41  ;;  %vm11835_vm10 = vmmov %vm11834_vm0 }
 0x3f9   :  { %v7572_v1 = vpop.eup %7571  ;;  %vm11839_vm6 = vmmov %vm11834_vm0 }
 0x3fa   :  { %6974 = vmatprep.subr.mxu1 %v2280_v2  ;;  %v2234_v29 = vmul.f32 0.6931472, %v7572_v1  ;;  %vm11840_vm5 = vmmov %vm11834_vm0 }
 0x3fb   :  { %v7574_v6 = vpop.eup %7573  ;;  %6975 = vmatpush3.msra.mxu1 %v2280_v2 }
 0x3fc   :  { %v7576_v25 = vpop.eup %7575  ;;  %v2263_v16 = vsel %vm2151_vm9, %v9733_v4, %v2234_v29  ;;  %v2232_v39 = vmul.f32 0.6931472, %v7574_v6  ;;  %v6222_v6 = vld [vmem:[#allocation24] ss:$0 sm:$0xff]  ;;  %vm11836_vm9 = vmmov %vm11834_vm0 }
 0x3fd   :  { %v7578_v54 = vpop.eup %7577  ;;  %v2279_v46 = vmul.f32 %v7576_v25, %v2263_v16  ;;  %v6223_v16 = vld [vmem:[#allocation25] ss:$0 sm:$0xff] }
 0x3fe   :  { %v7580_v21 = vpop.eup %7579  ;;  %v2262_v37 = vsel %vm2150_vm1, %v9739_v27, %v2232_v39  ;;  %v2230_v50 = vmul.f32 0.6931472, %v7578_v54  ;;  %v2530_v27 = vld [vmem:[#allocation9 + $0x38] sm:$0xff]  ;;  %vm11837_vm1 = vmmov %vm11834_vm0 }
 0x3ff   :  { %6976 = vmatprep.subr.mxu1 %v2279_v46  ;;  %v2278_v58 = vmul.f32 %v7580_v21, %v2262_v37  ;;  %v7582_v35 = vpop.eup %7581  ;;  %6996 = vmatprep.subr.mxu0 %v2530_v27  ;;  %v7885_v37 = vld [vmem:[#allocation2] sm:$0xff] }
 0x400   :  { %6977 = vmatpush3.msra.mxu1 %v2279_v46  ;;  %v2261_v38 = vsel %vm2149_vm8, %v9753_v42, %v2230_v50  ;;  %v6227_v42 = vld [vmem:[%s11615_s6 + $0x38] sm:$0xff]  ;;  %6997 = vmatpush3.msra.mxu0 %v2530_v27  ;;  %vm11838_vm8 = vmmov %vm11834_vm0 }
 0x401   :  { %6978 = vmatprep.subr.mxu1 %v2278_v58  ;;  %v2277_v4 = vmul.f32 %v7582_v35, %v2261_v38  ;;  %6998 = vmatprep.subr.mxu0 %v2529_v44 }
 0x402   :  { %6979 = vmatpush3.msra.mxu1 %v2278_v58  ;;  %6999 = vmatpush3.msra.mxu0 %v2529_v44  ;;  %v7886_v58 = vld [vmem:[#allocation2 + $0x8] sm:$0xff] }
 0x403   :  { %6980 = vmatprep.subr.mxu1 %v2277_v4  ;;  %7000 = vmatprep.subr.mxu0 %v2528_v28 }
 0x404   :  { %6981 = vmatpush3.msra.mxu1 %v2277_v4  ;;  %7001 = vmatpush3.msra.mxu0 %v2528_v28 }
 0x405   :  { %6983 = vmatmul.mubr.msk.f32.vlgmr.msra.gmra.mxu1 %vm9804_vm14, %v11588_v47  ;;  %6985 = vmatprep.subr.mxu1 %v6227_v42 }
 0x406   :  { %6986 = vmatpush3.msra.mxu1 %v6227_v42  ;;  %7002 = vmatprep.subr.mxu0 %v2527_v40 }
 0x407   :  { %6987 = vmatprep.subr.mxu1 %v6226_v61  ;;  %7003 = vmatpush3.msra.mxu0 %v2527_v40 }
 0x408   :  { %6988 = vmatpush3.msra.mxu1 %v6226_v61  ;;  %7018 = vmatprep.subr.mxu0 %v9825_v32 }
 0x409   :  { %6989 = vmatprep.subr.mxu1 %v6225_v15 }
 0x40a   :  { %6990 = vmatpush3.msra.mxu1 %v6225_v15 }
 0x40b   :  { %6991 = vmatprep.subr.mxu1 %v6224_v14 }
 0x40c   :  { %6992 = vmatpush3.msra.mxu1 %v6224_v14 }
 0x40d   :  { %7007 = vmatprep.subr.mxu1 %v9823_v52 }
 0x4c5   :  { %v6984_v7 = vpop.f32.mrf.mxu1 }
 0x4c6   :  { %v2382_v17 = vmul.f32 %v6984_v7, %v6984_v7  ;;  %v2371_v60 = vsel %vm11829_vm13, %v6984_v7, 0.0  ;;  %vm11841_vm13 = vmmov %vm11834_vm0 }
 0x4c7   :  { %v2359_v30 = vpop.f32.mrf.mxu1 }
 0x4c8   :  { %v2370_v8 = vsel %vm11830_vm4, %v2359_v30, 0.0  ;;  %v2381_v53 = vmul.f32 %v2359_v30, %v2359_v30  ;;  %v2384_v62 = vsel %vm11831_vm3, %v2382_v17, 0.0  ;;  %vm11842_vm4 = vmmov %vm11834_vm0 }
 0x4c9   :  { %v2372_v31 = vadd.f32 %v2371_v60, %v2370_v8  ;;  %vm11843_vm3 = vmmov %vm11834_vm0 }
 0x4ca   :  { %v2383_v24 = vsel %vm11832_vm12, %v2381_v53, 0.0  ;;  %vm11844_vm12 = vcmask 130048  }
 0x4cb   :  { %v2373_v13 = vrot.slane %v2372_v31, 4  ;;  %v2385_v18 = vadd.f32 %v2384_v62, %v2383_v24  ;;  %v2689_v62 = vld [vmem:[#allocation10 + $0x30] sm:$0xff]  ;;  %v2608_v24 = vld [vmem:[#allocation7 + $0x28] sm:$0xff] }
 0x4cd   :  { %v2374_v11 = vadd.f32 %v2373_v13, %v2372_v31  ;;  %v2386_v5 = vrot.slane %v2385_v18, 4  ;;  %v2609_v31 = vld [vmem:[#allocation7 + $0x30] sm:$0xff]  ;;  %v2688_v13 = vld [vmem:[#allocation10 + $0x28] sm:$0xff] }
 0x4cf   :  { %v2375_v0 = vrot.slane %v2374_v11, 2  ;;  %v2387_v33 = vadd.f32 %v2386_v5, %v2385_v18  ;;  %v2607_v18 = vld [vmem:[#allocation7 + $0x20] sm:$0xff]  ;;  %v2767_v5 = vld [vmem:[#allocation12 + $0x10] sm:$0xff] }
 0x4d1   :  { %v2376_v56 = vadd.f32 %v2375_v0, %v2374_v11  ;;  %v2388_v45 = vrot.slane %v2387_v33, 2  ;;  %v2687_v11 = vld [vmem:[#allocation10 + $0x20] sm:$0xff]  ;;  %v7888_v0 = vld [vmem:[%s11648_s1 + $0x8] sm:$0xff] }
 0x4d3   :  { %v2377_v43 = vrot.slane %v2376_v56, 1  ;;  %v2389_v9 = vadd.f32 %v2388_v45, %v2387_v33  ;;  %v7889_v33 = vld [vmem:[%s11648_s1 + $0x10] sm:$0xff]  ;;  %v7890_v45 = vld [vmem:[%s11648_s1 + $0x18] sm:$0xff] }
 0x4d5   :  { %v2378_v49 = vadd.f32 %v2377_v43, %v2376_v56  ;;  %v2390_v63 = vrot.slane %v2389_v9, 1  ;;  %v3085_v56 = vld [vmem:[#allocation13 + $0x18] sm:$0xff] }
 0x4d6   :  { %v7891_v43 = vld [vmem:[%s11648_s1 + $0x20] sm:$0xff] }
 0x4d7   :  { %v2380_v20 = vmul.f32 0.0625, %v2378_v49  ;;  %v2391_v23 = vadd.f32 %v2390_v63, %v2389_v9  ;;  %v7892_v9 = vld [vmem:[%s11648_s1 + $0x28] sm:$0xff]  ;;  %v7893_v49 = vld [vmem:[%s11648_s1 + $0x30] sm:$0xff]  ;;  %v7894_v63 = vld [vmem:[%s11648_s1 + $0x38] sm:$0xff] }
 0x4d9   :  { %v2392_v12 = vmul.f32 0.0625, %v2391_v23  ;;  %v2393_v22 = vmul.f32 %v2380_v20, %v2380_v20  ;;  %v2396_v2 = vsub.f32 %v2359_v30, %v2380_v20  ;;  %v2397_v1 = vsub.f32 %v6984_v7, %v2380_v20  ;;  %v7895_v20 = vld [vmem:[%s11648_s1 + $0x40] sm:$0xff]  ;;  %v7896_v23 = vld [vmem:[%s11648_s1 + $0x48] sm:$0xff] }
 0x4db   :  { %v2394_v26 = vsub.f32 %v2392_v12, %v2393_v22  ;;  %v7897_v12 = vld [vmem:[%s11648_s1 + $0x50] sm:$0xff] }
 0x4dc   :  { %v3084_v22 = vld [vmem:[#allocation13 + $0x10] sm:$0xff] }
 0x4dd   :  { %v2395_v10 = vmax.f32 %v2394_v26, 0.0  ;;  %v7898_v26 = vld [vmem:[%s11648_s1 + $0x58] sm:$0xff] }
 0x4df   :  { %v2398_v41 = vadd.f32 1e-05, %v2395_v10  ;;  %v7899_v10 = vld [vmem:[%s11648_s1 + $0x60] sm:$0xff] }
 0x4e1   :  { %7583 = vrsqrt.f32 %v2398_v41  ;;  %v7900_v41 = vld [vmem:[%s11648_s1 + $0x68] sm:$0xff] }
 0x4ee   :  { %v7584_v29 = vpop.eup %7583 }
 0x4ef   :  { %v2400_v36 = vmul.f32 %v7584_v29, %v2396_v2  ;;  %v2401_v25 = vmul.f32 %v7584_v29, %v2397_v1  ;;  %v7901_v2 = vld [vmem:[%s11648_s1 + $0x70] sm:$0xff]  ;;  %v7902_v1 = vld [vmem:[%s11648_s1 + $0x78] sm:$0xff] }
 0x4f1   :  { %v2408_v39 = vmul.f32 %v6222_v6, %v2400_v36  ;;  %v2409_v54 = vmul.f32 %v6222_v6, %v2401_v25 }
 0x4f3   :  { %v2416_v46 = vadd.f32 %v6223_v16, %v2408_v39  ;;  %v2417_v21 = vadd.f32 %v6223_v16, %v2409_v54 }
 0x4f5   :  { %v2418_v50 = vadd.f32 %v7885_v37, %v2416_v46  ;;  %v2419_v35 = vadd.f32 %v7886_v58, %v2417_v21  ;;  %v11880_v21 = vld [vmem:[#allocation41_spill] sm:$0xff]  ;;  %v11882_v37 = vld [vmem:[#allocation42_spill] sm:$0xff]  ;;  %v11886_v58 = vld [vmem:[#allocation44_spill] sm:$0xff] }
 0x4f7   :  { %v2422_v38 = vmin.f32 %v2418_v50, 20.0  ;;  %v2423_v4 = vmin.f32 %v2419_v35, 20.0  ;;  %vm2420_vm7 = vcmp.gt.f32.partialorder %v2418_v50, 20.0  ;;  %vm2421_vm2 = vcmp.gt.f32.partialorder %v2419_v35, 20.0 }
 0x4f9   :  { %v2424_v27 = vmul.f32 1.442695, %v2422_v38  ;;  %v2426_v44 = vmul.f32 1.442695, %v2423_v4  ;;  %v11890_v38 = vld [vmem:[#allocation46_spill] sm:$0xff]  ;;  %v11892_v4 = vld [vmem:[#allocation47_spill] sm:$0xff] }
 0x4fb   :  { %7585 = vpow2.f32 %v2424_v27  ;;  %v11894_v27 = vld [vmem:[#allocation48_spill] sm:$0xff] }
 0x4fc   :  { %7587 = vpow2.f32 %v2426_v44  ;;  %v11896_v44 = vld [vmem:[#allocation49_spill] sm:$0xff] }
 0x508   :  { %v7586_v42 = vpop.eup %7585 }
 0x509   :  { %v7588_v61 = vpop.eup %7587  ;;  %v2428_v28 = vadd.f32 1.0, %v7586_v42  ;;  %v11898_v42 = vld [vmem:[#allocation50_spill] sm:$0xff] }
 0x50a   :  { %v2429_v15 = vadd.f32 1.0, %v7588_v61 }
 0x50b   :  { %7589 = vlog2.f32 %v2428_v28 }
 0x50c   :  { %7591 = vlog2.f32 %v2429_v15 }
 0x518   :  { %v7590_v40 = vpop.eup %7589 }
 0x519   :  { %v7592_v14 = vpop.eup %7591  ;;  %v2431_v7 = vmul.f32 0.6931472, %v7590_v40 }
 0x51a   :  { %v2433_v17 = vmul.f32 0.6931472, %v7592_v14 }
 0x51b   :  { %v2434_v30 = vsel %vm2420_vm7, %v2418_v50, %v2431_v7  ;;  %vm11845_vm7 = vmmov %vm11844_vm12  ;;  %v11884_v50 = vld [vmem:[#allocation43_spill] sm:$0xff] }
 0x51c   :  { %v2435_v60 = vsel %vm2421_vm2, %v2419_v35, %v2433_v17  ;;  %2436 = vst.msk [vmem:[#allocation2] sm:$0xff] %vm11833_vm15, %v2434_v30  ;;  %vm11846_vm2 = vmmov %vm11845_vm7  ;;  %v11888_v35 = vld [vmem:[#allocation45_spill] sm:$0xff] }
 0x51d   :  { %2437 = vst.msk [vmem:[#allocation2 + $0x8] sm:$0xff] %vm11834_vm0, %v2435_v60  ;;  %vm11847_vm15 = vmmov %vm11846_vm2 }
 0x51e   :  { %vm11848_vm0 = vmmov %vm11846_vm2 }
 0x523   :  { %v2438_v8 = vld [vmem:[#allocation2] sm:$0xff] }
 0x524   :  { %6993 = vmatprep.mubr.msk.f32.mxu1 %vm11835_vm10, %v2438_v8  ;;  %7004 = vmatprep.mubr.msk.f32.mxu0 %vm11836_vm9, %v2438_v8  ;;  %v2439_v53 = vld [vmem:[#allocation2 + $0x8] sm:$0xff]  ;;  %vm11849_vm10 = vmmov %vm11848_vm0 }
 0x525   :  { %6994 = vmatmul.mubr.msk.f32.vlgmr.msra.gmra.mxu1 %vm11837_vm1, %v2439_v53  ;;  %7005 = vmatmul.mubr.msk.f32.vlgmr.msra.gmra.mxu0 %vm11838_vm8, %v2439_v53  ;;  %vm11850_vm9 = vmmov %vm11848_vm0 }
 0x526   :  { %7008 = vmatpush3.msra.mxu1 %v9823_v52  ;;  %7019 = vmatpush3.msra.mxu0 %v9825_v32  ;;  %v7887_v52 = vld [vmem:[%s11648_s1] sm:$0xff]  ;;  %v2768_v32 = vld [vmem:[#allocation12 + $0x18] sm:$0xff]  ;;  %vm11851_vm1 = vmmov %vm11848_vm0 }
 0x527   :  { %7009 = vmatprep.subr.mxu1 %v2609_v31  ;;  %7015 = vmatprep.mubr.msk.f32.mxu1 %vm11839_vm6, %v2438_v8  ;;  %vm11852_vm8 = vmmov %vm11848_vm0 }
 0x528   :  { %7020 = vmatprep.subr.mxu0 %v2689_v62  ;;  %7026 = vmatprep.mubr.msk.f32.mxu0 %vm11840_vm5, %v2438_v8  ;;  %vm11853_vm6 = vmmov %vm11848_vm0 }
 0x529   :  { %7010 = vmatpush3.msra.mxu1 %v2609_v31  ;;  %7021 = vmatpush3.msra.mxu0 %v2689_v62  ;;  %vm11854_vm5 = vmmov %vm11848_vm0 }
 0x52a   :  { %7011 = vmatprep.subr.mxu1 %v2608_v24  ;;  %7022 = vmatprep.subr.mxu0 %v2688_v13 }
 0x52b   :  { %7012 = vmatpush3.msra.mxu1 %v2608_v24  ;;  %7023 = vmatpush3.msra.mxu0 %v2688_v13 }
 0x52c   :  { %7013 = vmatprep.subr.mxu1 %v2607_v18  ;;  %7024 = vmatprep.subr.mxu0 %v2687_v11 }
 0x52d   :  { %7014 = vmatpush3.msra.mxu1 %v2607_v18  ;;  %7025 = vmatpush3.msra.mxu0 %v2687_v11 }
 0x52e   :  { %7016 = vmatmul.mubr.msk.f32.vlgmr.msra.gmra.mxu1 %vm11841_vm13, %v2439_v53  ;;  %7027 = vmatmul.mubr.msk.f32.vlgmr.msra.gmra.mxu0 %vm11842_vm4, %v2439_v53  ;;  %vm11855_vm13 = vmmov %vm11848_vm0 }
 0x52f   :  { %7065 = vmatprep.mubr.msk.f32.mxu0 %vm11843_vm3, %v8640_v55  ;;  %7033 = vmatprep.mubr.msk.f32.mxu1 %vm11844_vm12, %v7887_v52  ;;  %vm11856_vm4 = vmmov %vm11848_vm0 }
 0x530   :  { %7029 = vmatprep.subr.mxu1 %v2768_v32  ;;  %vm11857_vm3 = vmmov %vm11848_vm0 }
 0x531   :  { %7030 = vmatpush3.msra.mxu1 %v2768_v32  ;;  %vm11858_vm12 = vmmov %vm11848_vm0 }
 0x532   :  { %7031 = vmatprep.subr.mxu1 %v2767_v5 }
 0x533   :  { %7032 = vmatpush3.msra.mxu1 %v2767_v5 }
 0x534   :  { %7034 = vmatmul.mubr.msk.f32.vlgmr.msra.gmra.mxu1 %vm11845_vm7, %v7888_v0  ;;  %7089 = vmatprep.subr.mxu1 %v3085_v56  ;;  %vm11859_vm7 = vmmov %vm11848_vm0 }
 0x535   :  { %7036 = vmatprep.mubr.msk.f32.mxu1 %vm11846_vm2, %v7889_v33  ;;  %7090 = vmatpush3.msra.mxu1 %v3085_v56  ;;  %vm11860_vm2 = vmmov %vm11848_vm0 }
 0x536   :  { %7091 = vmatprep.subr.mxu1 %v3084_v22 }
 0x537   :  { %7092 = vmatpush3.msra.mxu1 %v3084_v22 }
 0x538   :  { %7037 = vmatmul.mubr.msk.f32.gmra.mxu1 %vm11847_vm15, %v7890_v45  ;;  %vm11861_vm15 = vmmov %vm11848_vm0 }
 0x539   :  { %7039 = vmatprep.mubr.msk.f32.mxu1 %vm11848_vm0, %v7891_v43 }
 0x53c   :  { %7040 = vmatmul.mubr.msk.f32.gmra.mxu1 %vm11849_vm10, %v7892_v9  ;;  %vm11862_vm10 = vmmov %vm11848_vm0 }
 0x53d   :  { %7042 = vmatprep.mubr.msk.f32.mxu1 %vm11850_vm9, %v7893_v49  ;;  %vm11863_vm9 = vmmov %vm11848_vm0 }
 0x540   :  { %7043 = vmatmul.mubr.msk.f32.gmra.mxu1 %vm11851_vm1, %v7894_v63  ;;  %vm11864_vm1 = vmmov %vm11848_vm0 }
 0x541   :  { %7045 = vmatprep.mubr.msk.f32.mxu1 %vm11852_vm8, %v7895_v20  ;;  %vm11865_vm8 = vmmov %vm11848_vm0 }
 0x544   :  { %7046 = vmatmul.mubr.msk.f32.gmra.mxu1 %vm11853_vm6, %v7896_v23  ;;  %vm11866_vm6 = vmmov %vm11848_vm0 }
 0x545   :  { %7048 = vmatprep.mubr.msk.f32.mxu1 %vm11854_vm5, %v7897_v12  ;;  %vm11867_vm5 = vmmov %vm11848_vm0 }
 0x548   :  { %7049 = vmatmul.mubr.msk.f32.gmra.mxu1 %vm11855_vm13, %v7898_v26  ;;  %vm11868_vm13 = vmmov %vm11848_vm0 }
 0x549   :  { %7051 = vmatprep.mubr.msk.f32.mxu1 %vm11856_vm4, %v7899_v10  ;;  %vm11869_vm4 = vmmov %vm11848_vm0 }
 0x54c   :  { %7052 = vmatmul.mubr.msk.f32.gmra.mxu1 %vm11857_vm3, %v7900_v41  ;;  %vm11870_vm3 = vmmov %vm11848_vm0 }
 0x54d   :  { %7054 = vmatprep.mubr.msk.f32.mxu1 %vm11858_vm12, %v7901_v2  ;;  %vm11871_vm12 = vmmov %vm11848_vm0 }
 0x550   :  { %7055 = vmatmul.mubr.msk.f32.gmra.mxu1 %vm11859_vm7, %v7902_v1  ;;  %vm11872_vm7 = vmmov %vm11848_vm0 }
 0x551   :  { %7093 = vmatprep.mubr.msk.f32.mxu1 %vm11860_vm2, %v7887_v52  ;;  %vm11873_vm2 = vmmov %vm11848_vm0  ;;  %v10006_v52 = vld [vmem:[#allocation15 + $0x1] ss:$0 sm:$0xff] }
 0x554   :  { %7094 = vmatmul.mubr.msk.f32.vlgmr.msra.gmra.mxu1 %vm11861_vm15, %v7888_v0  ;;  %vm11874_vm15 = vmmov %vm11848_vm0 }
 0x555   :  { %7096 = vmatprep.mubr.msk.f32.mxu1 %vm11848_vm0, %v7889_v33  ;;  %vm11875_vm0 = vcmask 261120  }
 0x558   :  { %7097 = vmatmul.mubr.msk.f32.gmra.mxu1 %vm11862_vm10, %v7890_v45  ;;  %vm11876_vm10 = vmmov %vm11875_vm0 }
 0x559   :  { %7099 = vmatprep.mubr.msk.f32.mxu1 %vm11863_vm9, %v7891_v43  ;;  %vm11877_vm9 = vmmov %vm11875_vm0 }
 0x55c   :  { %7100 = vmatmul.mubr.msk.f32.gmra.mxu1 %vm11864_vm1, %v7892_v9  ;;  %vm11878_vm1 = vmmov %vm11875_vm0 }
 0x55d   :  { %7102 = vmatprep.mubr.msk.f32.mxu1 %vm11865_vm8, %v7893_v49  ;;  %vm11879_vm8 = vmmov %vm11875_vm0 }
 0x560   :  { %7103 = vmatmul.mubr.msk.f32.gmra.mxu1 %vm11866_vm6, %v7894_v63  ;;  %vm11881_vm6 = vmmov %vm11875_vm0 }
 0x561   :  { %7105 = vmatprep.mubr.msk.f32.mxu1 %vm11867_vm5, %v7895_v20  ;;  %vm11883_vm5 = vmmov %vm11875_vm0 }
 0x564   :  { %7106 = vmatmul.mubr.msk.f32.gmra.mxu1 %vm11868_vm13, %v7896_v23  ;;  %vm11885_vm13 = vmmov %vm11875_vm0 }
 0x565   :  { %7108 = vmatprep.mubr.msk.f32.mxu1 %vm11869_vm4, %v7897_v12  ;;  %vm11887_vm4 = vmmov %vm11875_vm0 }
 0x568   :  { %7109 = vmatmul.mubr.msk.f32.gmra.mxu1 %vm11870_vm3, %v7898_v26  ;;  %vm11889_vm3 = vmmov %vm11875_vm0 }
 0x569   :  { %7111 = vmatprep.mubr.msk.f32.mxu1 %vm11871_vm12, %v7899_v10  ;;  %vm11891_vm12 = vmmov %vm11875_vm0 }
 0x56c   :  { %7112 = vmatmul.mubr.msk.f32.gmra.mxu1 %vm11872_vm7, %v7900_v41  ;;  %vm11893_vm7 = vmmov %vm11875_vm0 }
 0x56d   :  { %7114 = vmatprep.mubr.msk.f32.mxu1 %vm11873_vm2, %v7901_v2  ;;  %vm11895_vm2 = vmmov %vm11875_vm0 }
 0x570   :  { %7115 = vmatmul.mubr.msk.f32.gmra.mxu1 %vm11874_vm15, %v7902_v1  ;;  %vm11897_vm15 = vmmov %vm11875_vm0 }
 0x571   :  { %7181 = vmatprep.mubr.msk.f32.mxu1 %vm9583_vm11, %v11588_v47 }
 0x5e5   :  { %v7006_v29 = vpop.f32.mrf.mxu0  ;;  %v6995_v6 = vpop.f32.mrf.mxu1 }
 0x5e6   :  { %7057 = vmatprep.subr.mxu0 %v7006_v29 }
 0x5e7   :  { %v2597_v36 = vpop.f32.mrf.mxu0  ;;  %7058 = vmatpush3.msra.mxu0 %v7006_v29  ;;  %v2517_v25 = vpop.f32.mrf.mxu1 }
 0x5e8   :  { %7059 = vmatprep.subr.mxu0 %v2597_v36 }
 0x5e9   :  { %7060 = vmatpush3.msra.mxu0 %v2597_v36 }
 0x5ea   :  { %7061 = vmatprep.subr.mxu0 %v6995_v6 }
 0x5eb   :  { %7062 = vmatpush3.msra.mxu0 %v6995_v6 }
 0x5ec   :  { %7063 = vmatprep.subr.mxu0 %v2517_v25 }
 0x5ed   :  { %7064 = vmatpush3.msra.mxu0 %v2517_v25 }
 0x5ee   :  { %v7028_v16 = vpop.f32.mrf.mxu0  ;;  %7066 = vmatmul.mubr.msk.f32.vlgmr.msra.gmra.mxu0 %vm11875_vm0, %v8927_v34  ;;  %v7017_v39 = vpop.f32.mrf.mxu1 }
 0x5ef   :  { %7117 = vmatprep.subr.mxu0 %v7028_v16  ;;  %7068 = vmatprep.mubr.msk.f32.mxu0 %vm11876_vm10, %v8918_v59  ;;  %vm11899_vm10 = vmmov %vm11875_vm0 }
 0x5f0   :  { %v2757_v54 = vpop.f32.mrf.mxu0  ;;  %7118 = vmatpush3.msra.mxu0 %v7028_v16  ;;  %v2677_v46 = vpop.f32.mrf.mxu1 }
 0x5f1   :  { %7119 = vmatprep.subr.mxu0 %v2757_v54 }
 0x5f2   :  { %7120 = vmatpush3.msra.mxu0 %v2757_v54 }
 0x5f3   :  { %7069 = vmatmul.mubr.msk.f32.gmra.mxu0 %vm11877_vm9, %v8982_v48  ;;  %7121 = vmatprep.subr.mxu0 %v7017_v39  ;;  %vm11900_vm9 = vmmov %vm11875_vm0 }
 0x5f4   :  { %7071 = vmatprep.mubr.msk.f32.mxu0 %vm11878_vm1, %v8992_v51  ;;  %7122 = vmatpush3.msra.mxu0 %v7017_v39  ;;  %vm11901_vm1 = vmmov %vm11875_vm0  ;;  %v7035_v61 = vpop.f32.mrf.mxu1 }
 0x5f5   :  { %7123 = vmatprep.subr.mxu0 %v2677_v46 }
 0x5f6   :  { %7124 = vmatpush3.msra.mxu0 %v2677_v46  ;;  %v2835_v28 = vpop.f32.mrf.mxu1 }
 0x5f7   :  { %7072 = vmatmul.mubr.msk.f32.gmra.mxu0 %vm11879_vm8, %v9014_v57  ;;  %vm11902_vm8 = vmmov %vm11875_vm0 }
 0x5f8   :  { %7074 = vmatprep.mubr.msk.f32.mxu0 %vm11881_vm6, %v11880_v21  ;;  %vm11903_vm6 = vmmov %vm11875_vm0  ;;  %v7038_v15 = vpop.f32.mrf.mxu1 }
 0x5fa   :  { %v2845_v40 = vpop.f32.mrf.mxu1 }
 0x5fb   :  { %7075 = vmatmul.mubr.msk.f32.gmra.mxu0 %vm11883_vm5, %v11882_v37  ;;  %vm11904_vm5 = vmmov %vm11875_vm0 }
 0x5fc   :  { %7077 = vmatprep.mubr.msk.f32.mxu0 %vm11885_vm13, %v11884_v50  ;;  %vm11905_vm13 = vmmov %vm11875_vm0  ;;  %v7041_v14 = vpop.f32.mrf.mxu1 }
 0x5fe   :  { %v2855_v7 = vpop.f32.mrf.mxu1 }
 0x5ff   :  { %7078 = vmatmul.mubr.msk.f32.gmra.mxu0 %vm11887_vm4, %v11886_v58  ;;  %vm11906_vm4 = vmmov %vm11875_vm0 }
 0x600   :  { %7080 = vmatprep.mubr.msk.f32.mxu0 %vm11889_vm3, %v11888_v35  ;;  %vm11907_vm3 = vmmov %vm11875_vm0  ;;  %v7044_v17 = vpop.f32.mrf.mxu1 }
 0x602   :  { %v2865_v30 = vpop.f32.mrf.mxu1 }
 0x603   :  { %7081 = vmatmul.mubr.msk.f32.gmra.mxu0 %vm11891_vm12, %v11890_v38  ;;  %vm11908_vm12 = vmmov %vm11875_vm0 }
 0x604   :  { %7083 = vmatprep.mubr.msk.f32.mxu0 %vm11893_vm7, %v11892_v4  ;;  %vm11909_vm7 = vmmov %vm11875_vm0  ;;  %v9992_v60 = vpop.f32.mrf.mxu1 }
 0x606   :  { %v9994_v8 = vpop.f32.mrf.mxu1 }
 0x607   :  { %7084 = vmatmul.mubr.msk.f32.gmra.mxu0 %vm11895_vm2, %v11894_v27  ;;  %vm11910_vm2 = vmmov %vm11875_vm0 }
 0x608   :  { %7086 = vmatprep.mubr.msk.f32.mxu0 %vm11897_vm15, %v11896_v44  ;;  %vm11911_vm15 = vmmov %vm11875_vm0  ;;  %v9996_v53 = vpop.f32.mrf.mxu1 }
 0x60a   :  { %v9998_v31 = vpop.f32.mrf.mxu1 }
 0x60b   :  { %7087 = vmatmul.mubr.msk.f32.gmra.mxu0 %vm11875_vm0, %v11898_v42 }
 0x60c   :  { %7125 = vmatprep.mubr.msk.f32.mxu0 %vm11899_vm10, %v8640_v55  ;;  %vm11912_vm10 = vmmov %vm11875_vm0  ;;  %v10000_v62 = vpop.f32.mrf.mxu1 }
 0x60e   :  { %v10002_v24 = vpop.f32.mrf.mxu1 }
 0x60f   :  { %7126 = vmatmul.mubr.msk.f32.vlgmr.msra.gmra.mxu0 %vm11900_vm9, %v8927_v34  ;;  %vm11913_vm9 = vmmov %vm11875_vm0 }
 0x610   :  { %7128 = vmatprep.mubr.msk.f32.mxu0 %vm11901_vm1, %v8918_v59  ;;  %v10004_v13 = vpop.f32.mrf.mxu1  ;;  %vm11914_vm1 = vmmov %vm11875_vm0 }
 0x612   :  { %v10008_v32 = vpop.f32.mrf.mxu1 }
 0x613   :  { %7129 = vmatmul.mubr.msk.f32.gmra.mxu0 %vm11902_vm8, %v8982_v48  ;;  %vm11915_vm8 = vmmov %vm11875_vm0 }
 0x614   :  { %7131 = vmatprep.mubr.msk.f32.mxu0 %vm11903_vm6, %v8992_v51  ;;  %v10016_v43 = vpop.f32.mrf.mxu1  ;;  %vm11916_vm6 = vmmov %vm11875_vm0 }
 0x616   :  { %v10027_v10 = vpop.f32.mrf.mxu1 }
 0x617   :  { %7132 = vmatmul.mubr.msk.f32.gmra.mxu0 %vm11904_vm5, %v9014_v57  ;;  %vm11917_vm5 = vmmov %vm11875_vm0 }
 0x618   :  { %7134 = vmatprep.mubr.msk.f32.mxu0 %vm11905_vm13, %v11880_v21  ;;  %vm11918_vm13 = vmmov %vm11875_vm0 }
 0x61b   :  { %7135 = vmatmul.mubr.msk.f32.gmra.mxu0 %vm11906_vm4, %v11882_v37  ;;  %vm11919_vm4 = vmmov %vm11875_vm0 }
 0x61c   :  { %7137 = vmatprep.mubr.msk.f32.mxu0 %vm11907_vm3, %v11884_v50  ;;  %vm11920_vm3 = vmmov %vm11875_vm0 }
 0x61f   :  { %7138 = vmatmul.mubr.msk.f32.gmra.mxu0 %vm11908_vm12, %v11886_v58  ;;  %vm11921_vm12 = vmmov %vm11875_vm0 }
 0x620   :  { %7140 = vmatprep.mubr.msk.f32.mxu0 %vm11909_vm7, %v11888_v35  ;;  %vm11922_vm7 = vmmov %vm11875_vm0 }
 0x623   :  { %7141 = vmatmul.mubr.msk.f32.gmra.mxu0 %vm11910_vm2, %v11890_v38  ;;  %vm11923_vm2 = vmmov %vm11875_vm0 }
 0x624   :  { %7143 = vmatprep.mubr.msk.f32.mxu0 %vm11911_vm15, %v11892_v4  ;;  %vm11924_vm15 = vmmov %vm11875_vm0 }
 0x627   :  { %7144 = vmatmul.mubr.msk.f32.gmra.mxu0 %vm11875_vm0, %v11894_v27 }
 0x628   :  { %7146 = vmatprep.mubr.msk.f32.mxu0 %vm11912_vm10, %v11896_v44  ;;  %vm11925_vm10 = vmmov %vm11875_vm0 }
 0x62b   :  { %7147 = vmatmul.mubr.msk.f32.gmra.mxu0 %vm11913_vm9, %v11898_v42  ;;  %vm11926_vm9 = vmmov %vm11875_vm0 }
 0x6ae   :  { %v7067_v18 = vpop.f32.mrf.mxu0 }
 0x6af   :  { %v2986_v11 = vadd.f32 %v7067_v18, %v7035_v61  ;;  %v10045_v18 = vpop.f32.mrf.mxu1 }
 0x6b0   :  { %v2980_v5 = vpop.f32.mrf.mxu0 }
 0x6b1   :  { %v2981_v0 = vadd.f32 %v2980_v5, %v2835_v28  ;;  %v10011_v33 = vadd.f32 %v10006_v52, %v2986_v11 }
 0x6b3   :  { %v10014_v56 = vadd.f32 %v10006_v52, %v2981_v0  ;;  %v7070_v45 = vpop.f32.mrf.mxu0  ;;  %v3443_v20 = vmul.f32 %v10011_v33, %v10011_v33  ;;  %v3405_v41 = vsel %vm11915_vm8, %v10011_v33, 0.0  ;;  %vm11928_vm8 = vmmov %vm11875_vm0 }
 0x6b4   :  { %v2996_v9 = vadd.f32 %v7070_v45, %v7038_v15 }
 0x6b5   :  { %v3442_v49 = vmul.f32 %v10014_v56, %v10014_v56  ;;  %v2990_v63 = vpop.f32.mrf.mxu0  ;;  %v3404_v23 = vsel %vm11914_vm1, %v10014_v56, 0.0  ;;  %v3459_v16 = vsel %vm11917_vm5, %v3443_v20, 0.0  ;;  %vm11927_vm1 = vmmov %vm11875_vm0 }
 0x6b6   :  { %v10025_v12 = vadd.f32 %v10006_v52, %v2996_v9  ;;  %v2991_v22 = vadd.f32 %v2990_v63, %v2845_v40  ;;  %v3406_v29 = vadd.f32 %v3405_v41, %v3404_v23  ;;  %vm11930_vm5 = vmmov %vm11875_vm0 }
 0x6b7   :  { %v7073_v26 = vpop.f32.mrf.mxu0  ;;  %v3458_v2 = vsel %vm11916_vm6, %v3442_v49, 0.0  ;;  %vm11929_vm6 = vmmov %vm11875_vm0 }
 0x6b8   :  { %v10033_v1 = vadd.f32 %v10006_v52, %v2991_v22  ;;  %v3445_v6 = vmul.f32 %v10025_v12, %v10025_v12  ;;  %v3006_v36 = vadd.f32 %v7073_v26, %v7041_v14  ;;  %v3460_v61 = vadd.f32 %v3459_v16, %v3458_v2 }
 0x6b9   :  { %v3000_v25 = vpop.f32.mrf.mxu0  ;;  %v3409_v14 = vsel %vm11919_vm4, %v10025_v12, 0.0  ;;  %vm11932_vm4 = vmmov %vm11875_vm0 }
 0x6ba   :  { %v3407_v39 = vsel %vm11918_vm13, %v10033_v1, 0.0  ;;  %v3444_v54 = vmul.f32 %v10033_v1, %v10033_v1  ;;  %v3001_v46 = vadd.f32 %v3000_v25, %v2855_v7  ;;  %v10043_v15 = vadd.f32 %v10006_v52, %v3006_v36  ;;  %vm11931_vm13 = vmmov %vm11875_vm0 }
 0x6bb   :  { %v3408_v28 = vadd.f32 %v3407_v39, %v3406_v29  ;;  %v7076_v40 = vpop.f32.mrf.mxu0  ;;  %v3463_v45 = vsel %vm11921_vm12, %v3445_v6, 0.0  ;;  %v10063_v29 = vpop.f32.mrf.mxu1  ;;  %vm11934_vm12 = vmmov %vm11875_vm0 }
 0x6bc   :  { %v3461_v11 = vsel %vm11920_vm3, %v3444_v54, 0.0  ;;  %v10051_v5 = vadd.f32 %v10006_v52, %v3001_v46  ;;  %v3016_v0 = vadd.f32 %v7076_v40, %v7044_v17  ;;  %v3447_v9 = vmul.f32 %v10043_v15, %v10043_v15  ;;  %vm11933_vm3 = vmmov %vm11875_vm0 }
 0x6bd   :  { %v3462_v7 = vadd.f32 %v3461_v11, %v3460_v61  ;;  %v3410_v49 = vadd.f32 %v3409_v14, %v3408_v28  ;;  %v3010_v63 = vpop.f32.mrf.mxu0  ;;  %v3413_v6 = vsel %vm11923_vm2, %v10043_v15, 0.0  ;;  %vm11936_vm2 = vmmov %vm11875_vm0 }
 0x6be   :  { %v3411_v20 = vsel %vm11922_vm7, %v10051_v5, 0.0  ;;  %v3446_v23 = vmul.f32 %v10051_v5, %v10051_v5  ;;  %v10061_v22 = vadd.f32 %v10006_v52, %v3016_v0  ;;  %v3011_v26 = vadd.f32 %v3010_v63, %v2865_v30  ;;  %vm11935_vm7 = vmmov %vm11875_vm0 }
 0x6bf   :  { %v3412_v41 = vadd.f32 %v3411_v20, %v3410_v49  ;;  %v3464_v17 = vadd.f32 %v3463_v45, %v3462_v7  ;;  %v7079_v2 = vpop.f32.mrf.mxu0  ;;  %v3467_v61 = vsel %vm11875_vm0, %v3447_v9, 0.0  ;;  %v10083_v49 = vpop.f32.mrf.mxu1 }
 0x6c0   :  { %v3465_v36 = vsel %vm11924_vm15, %v3446_v23, 0.0  ;;  %v10069_v25 = vadd.f32 %v10006_v52, %v3011_v26  ;;  %v3449_v39 = vmul.f32 %v10061_v22, %v10061_v22  ;;  %v3026_v30 = vadd.f32 %v7079_v2, %v9992_v60  ;;  %vm11937_vm15 = vmmov %vm11875_vm0 }
 0x6c1   :  { %v3466_v16 = vadd.f32 %v3465_v36, %v3464_v17  ;;  %v3414_v54 = vadd.f32 %v3413_v6, %v3412_v41  ;;  %v3020_v46 = vpop.f32.mrf.mxu0  ;;  %v3417_v60 = vsel %vm11926_vm9, %v10061_v22, 0.0  ;;  %vm11939_vm9 = vmmov %vm11875_vm0 }
 0x6c2   :  { %v3415_v28 = vsel %vm11925_vm10, %v10069_v25, 0.0  ;;  %v3448_v40 = vmul.f32 %v10069_v25, %v10069_v25  ;;  %v3021_v14 = vadd.f32 %v3020_v46, %v9994_v8  ;;  %v10081_v45 = vadd.f32 %v10006_v52, %v3026_v30  ;;  %v10103_v30 = vpop.f32.mrf.mxu1  ;;  %vm11938_vm10 = vmmov %vm11875_vm0 }
 0x6c3   :  { %v3416_v11 = vadd.f32 %v3415_v28, %v3414_v54  ;;  %v3468_v0 = vadd.f32 %v3467_v61, %v3466_v16  ;;  %v7082_v7 = vpop.f32.mrf.mxu0  ;;  %v3471_v8 = vsel %vm11928_vm8, %v3449_v39, 0.0  ;;  %vm11941_vm8 = vmmov %vm11875_vm0 }
 0x6c4   :  { %v3469_v9 = vsel %vm11927_vm1, %v3448_v40, 0.0  ;;  %v10089_v63 = vadd.f32 %v10006_v52, %v3021_v14  ;;  %v3036_v20 = vadd.f32 %v7082_v7, %v9996_v53  ;;  %v3451_v26 = vmul.f32 %v10081_v45, %v10081_v45  ;;  %vm11940_vm1 = vmmov %vm11875_vm0 }
 0x6c5   :  { %v3470_v23 = vadd.f32 %v3469_v9, %v3468_v0  ;;  %v3418_v41 = vadd.f32 %v3417_v60, %v3416_v11  ;;  %v3030_v17 = vpop.f32.mrf.mxu0  ;;  %v3421_v46 = vsel %vm11930_vm5, %v10081_v45, 0.0  ;;  %vm11943_vm5 = vmmov %vm11875_vm0 }
 0x6c6   :  { %v3419_v2 = vsel %vm11929_vm6, %v10089_v63, 0.0  ;;  %v3450_v6 = vmul.f32 %v10089_v63, %v10089_v63  ;;  %v10100_v36 = vadd.f32 %v10006_v52, %v3036_v20  ;;  %v3031_v16 = vadd.f32 %v3030_v17, %v9998_v31  ;;  %vm11942_vm6 = vmmov %vm11875_vm0 }
 0x6c7   :  { %v3420_v53 = vadd.f32 %v3419_v2, %v3418_v41  ;;  %v3472_v54 = vadd.f32 %v3471_v8, %v3470_v23  ;;  %v7085_v39 = vpop.f32.mrf.mxu0  ;;  %v3475_v7 = vsel %vm11932_vm4, %v3451_v26, 0.0  ;;  %v10123_v2 = vpop.f32.mrf.mxu1  ;;  %vm11945_vm4 = vmmov %vm11875_vm0 }
 0x6c8   :  { %v3473_v61 = vsel %vm11931_vm13, %v3450_v6, 0.0  ;;  %v10109_v28 = vadd.f32 %v10006_v52, %v3031_v16  ;;  %v3453_v14 = vmul.f32 %v10100_v36, %v10100_v36  ;;  %v3046_v31 = vadd.f32 %v7085_v39, %v10000_v62  ;;  %vm11944_vm13 = vmmov %vm11875_vm0 }
 0x6c9   :  { %v3474_v40 = vadd.f32 %v3473_v61, %v3472_v54  ;;  %v3422_v11 = vadd.f32 %v3421_v46, %v3420_v53  ;;  %v3040_v0 = vpop.f32.mrf.mxu0  ;;  %v3425_v62 = vsel %vm11934_vm12, %v10100_v36, 0.0  ;;  %vm11947_vm12 = vmmov %vm11875_vm0 }
 0x6ca   :  { %v3423_v60 = vsel %vm11933_vm3, %v10109_v28, 0.0  ;;  %v3452_v9 = vmul.f32 %v10109_v28, %v10109_v28  ;;  %v3041_v20 = vadd.f32 %v3040_v0, %v10002_v24  ;;  %v10121_v41 = vadd.f32 %v10006_v52, %v3046_v31  ;;  %vm11946_vm3 = vmmov %vm11875_vm0 }
 0x6cb   :  { %v3424_v8 = vadd.f32 %v3423_v60, %v3422_v11  ;;  %v3476_v23 = vadd.f32 %v3475_v7, %v3474_v40  ;;  %v7088_v17 = vpop.f32.mrf.mxu0  ;;  %v3479_v24 = vsel %vm11936_vm2, %v3453_v14, 0.0  ;;  %v10143_v7 = vpop.f32.mrf.mxu1  ;;  %vm11949_vm2 = vmmov %vm11875_vm0 }
 0x6cc   :  { %v3477_v26 = vsel %vm11935_vm7, %v3452_v9, 0.0  ;;  %v10129_v6 = vadd.f32 %v10006_v52, %v3041_v20  ;;  %v3056_v16 = vadd.f32 %v7088_v17, %v10004_v13  ;;  %v3455_v54 = vmul.f32 %v10121_v41, %v10121_v41  ;;  %vm11948_vm7 = vmmov %vm11875_vm0 }
 0x6cd   :  { %v3478_v53 = vadd.f32 %v3477_v26, %v3476_v23  ;;  %v3426_v39 = vadd.f32 %v3425_v62, %v3424_v8  ;;  %v3050_v46 = vpop.f32.mrf.mxu0  ;;  %v3429_v60 = vsel %vm11875_vm0, %v10121_v41, 0.0  ;;  %v10151_v8 = vld [vmem:[#allocation16 + $0x1] ss:$0 sm:$0xff] }
 0x6ce   :  { %v3427_v61 = vsel %vm11937_vm15, %v10129_v6, 0.0  ;;  %v3454_v40 = vmul.f32 %v10129_v6, %v10129_v6  ;;  %v10140_v11 = vadd.f32 %v10006_v52, %v3056_v16  ;;  %v3051_v31 = vadd.f32 %v3050_v46, %v10008_v32  ;;  %vm11950_vm15 = vmmov %vm11875_vm0 }
 0x6cf   :  { %v3428_v13 = vadd.f32 %v3427_v61, %v3426_v39  ;;  %v3480_v0 = vadd.f32 %v3479_v24, %v3478_v53  ;;  %v7127_v14 = vpop.f32.mrf.mxu0  ;;  %v3483_v16 = vsel %vm11939_vm9, %v3455_v54, 0.0  ;;  %vm11952_vm9 = vmmov %vm11875_vm0 }
 0x6d0   :  { %v3481_v9 = vsel %vm11938_vm10, %v3454_v40, 0.0  ;;  %v10149_v20 = vadd.f32 %v10006_v52, %v3051_v31  ;;  %v3457_v17 = vmul.f32 %v10140_v11, %v10140_v11  ;;  %v3303_v62 = vadd.f32 %v7127_v14, %v10016_v43  ;;  %v10165_v31 = vpop.f32.mrf.mxu1  ;;  %vm11951_vm10 = vmmov %vm11875_vm0 }
 0x6d1   :  { %v3482_v23 = vadd.f32 %v3481_v9, %v3480_v0  ;;  %v3430_v32 = vadd.f32 %v3429_v60, %v3428_v13  ;;  %v3297_v26 = vpop.f32.mrf.mxu0  ;;  %v3433_v43 = vsel %vm11941_vm8, %v10140_v11, 0.0  ;;  %vm11954_vm8 = vmmov %vm11875_vm0 }
 0x6d2   :  { %v3431_v24 = vsel %vm11940_vm1, %v10149_v20, 0.0  ;;  %v3456_v53 = vmul.f32 %v10149_v20, %v10149_v20  ;;  %v3298_v52 = vadd.f32 %v3297_v26, %v10027_v10  ;;  %v10163_v61 = vadd.f32 %v10151_v8, %v3303_v62  ;;  %vm11953_vm1 = vmmov %vm11875_vm0 }
 0x6d3   :  { %v3432_v39 = vadd.f32 %v3431_v24, %v3430_v32  ;;  %v3484_v46 = vadd.f32 %v3483_v16, %v3482_v23  ;;  %v7130_v40 = vpop.f32.mrf.mxu0  ;;  %v3487_v10 = vsel %vm11943_vm5, %v3457_v17, 0.0  ;;  %vm11956_vm5 = vmmov %vm11875_vm0 }
 0x6d4   :  { %v3485_v54 = vsel %vm11942_vm6, %v3456_v53, 0.0  ;;  %v10171_v13 = vadd.f32 %v10151_v8, %v3298_v52  ;;  %v3313_v0 = vadd.f32 %v7130_v40, %v10045_v18  ;;  %v3620_v9 = vmul.f32 %v10163_v61, %v10163_v61  ;;  %v3192_v52 = vpop.f32.mrf.mxu1  ;;  %vm11955_vm6 = vmmov %vm11875_vm0 }
 0x6d5   :  { %v3434_v14 = vadd.f32 %v3433_v43, %v3432_v39  ;;  %v3486_v60 = vadd.f32 %v3485_v54, %v3484_v46  ;;  %v3307_v23 = vpop.f32.mrf.mxu0  ;;  %v3582_v17 = vsel %vm11945_vm4, %v10163_v61, 0.0  ;;  %vm11958_vm4 = vmmov %vm11875_vm0 }
 0x6d6   :  { %v3581_v32 = vsel %vm11944_vm13, %v10171_v13, 0.0  ;;  %v3619_v62 = vmul.f32 %v10171_v13, %v10171_v13  ;;  %v10182_v26 = vadd.f32 %v10151_v8, %v3313_v0  ;;  %v3308_v16 = vadd.f32 %v3307_v23, %v10063_v29  ;;  %v7110_v42 = vpop.f32.mrf.mxu1  ;;  %vm11957_vm13 = vmmov %vm11875_vm0 }
 0x6d7   :  { %v3435_v18 = vrot.slane %v3434_v14, 4  ;;  %v3488_v24 = vadd.f32 %v3487_v10, %v3486_v60  ;;  %v7133_v53 = vpop.f32.mrf.mxu0  ;;  %v3636_v39 = vsel %vm11946_vm3, %v3620_v9, 0.0  ;;  %v3583_v46 = vadd.f32 %v3582_v17, %v3581_v32  ;;  %vm11959_vm3 = vmmov %vm11875_vm0 }
 0x6d8   :  { %v3635_v40 = vsel %vm11947_vm12, %v3619_v62, 0.0  ;;  %v10190_v43 = vadd.f32 %v10151_v8, %v3308_v16  ;;  %v3622_v29 = vmul.f32 %v10182_v26, %v10182_v26  ;;  %v3323_v10 = vadd.f32 %v7133_v53, %v10083_v49  ;;  %vm11960_vm12 = vmmov %vm11875_vm0 }
 0x6d9   :  { %v3436_v54 = vadd.f32 %v3435_v18, %v3434_v14  ;;  %v3489_v0 = vrot.slane %v3488_v24, 4  ;;  %v3317_v60 = vpop.f32.mrf.mxu0  ;;  %v3637_v23 = vadd.f32 %v3636_v39, %v3635_v40  ;;  %v3586_v49 = vsel %vm11949_vm2, %v10182_v26, 0.0  ;;  %vm11962_vm2 = vmmov %vm11875_vm0 }
 0x6da   :  { %v3584_v47 = vsel %vm11948_vm7, %v10190_v43, 0.0  ;;  %v3621_v9 = vmul.f32 %v10190_v43, %v10190_v43  ;;  %v3318_v32 = vadd.f32 %v3317_v60, %v10103_v30  ;;  %v10201_v14 = vadd.f32 %v10151_v8, %v3323_v10  ;;  %vm11961_vm7 = vmmov %vm11875_vm0 }
 0x6db   :  { %v3437_v62 = vrot.slane %v3436_v54, 2  ;;  %v3490_v16 = vadd.f32 %v3489_v0, %v3488_v24  ;;  %v3585_v17 = vadd.f32 %v3584_v47, %v3583_v46  ;;  %v7136_v18 = vpop.f32.mrf.mxu0  ;;  %v3640_v24 = vsel %vm11875_vm0, %v3622_v29, 0.0  ;;  %v3202_v29 = vpop.f32.mrf.mxu1 }
 0x6dc   :  { %v3638_v53 = vsel %vm11950_vm15, %v3621_v9, 0.0  ;;  %v10207_v39 = vadd.f32 %v10151_v8, %v3318_v32  ;;  %v3333_v40 = vadd.f32 %v7136_v18, %v10123_v2  ;;  %v3624_v0 = vmul.f32 %v10201_v14, %v10201_v14  ;;  %vm11963_vm15 = vmmov %vm11875_vm0 }
 0x6dd   :  { %v3438_v44 = vadd.f32 %v3437_v62, %v3436_v54  ;;  %v3491_v30 = vrot.slane %v3490_v16, 2  ;;  %v3639_v47 = vadd.f32 %v3638_v53, %v3637_v23  ;;  %v3327_v46 = vpop.f32.mrf.mxu0  ;;  %v3587_v10 = vadd.f32 %v3586_v49, %v3585_v17 }
 0x6de   :  { %v3588_v60 = vsel %vm11951_vm10, %v10207_v39, 0.0  ;;  %v3623_v9 = vmul.f32 %v10207_v39, %v10207_v39  ;;  %v10218_v2 = vadd.f32 %v10151_v8, %v3333_v40  ;;  %v3590_v23 = vsel %vm11952_vm9, %v10201_v14, 0.0  ;;  %vm11964_vm10 = vmmov %vm11875_vm0 }
 0x6df   :  { %v3439_v32 = vrot.slane %v3438_v44, 1  ;;  %v3492_v27 = vadd.f32 %v3491_v30, %v3490_v16  ;;  %v3641_v4 = vadd.f32 %v3640_v24, %v3639_v47  ;;  %v7139_v54 = vpop.f32.mrf.mxu0  ;;  %v3589_v62 = vadd.f32 %v3588_v60, %v3587_v10  ;;  %vm11965_vm9 = vmmov %vm11875_vm0 }
 0x6e0   :  { %v3642_v17 = vsel %vm11953_vm1, %v3623_v9, 0.0  ;;  %v3328_v18 = vadd.f32 %v3327_v46, %v10143_v7  ;;  %v3644_v38 = vsel %vm11954_vm8, %v3624_v0, 0.0  ;;  %v3626_v40 = vmul.f32 %v10218_v2, %v10218_v2  ;;  %v7113_v46 = vpop.f32.mrf.mxu1  ;;  %vm11966_vm1 = vmmov %vm11875_vm0 }
 0x6e1   :  { %v3440_v49 = vadd.f32 %v3439_v32, %v3438_v44  ;;  %v3493_v53 = vrot.slane %v3492_v27, 1  ;;  %v3643_v35 = vadd.f32 %v3642_v17, %v3641_v4  ;;  %v3337_v16 = vpop.f32.mrf.mxu0  ;;  %v3591_v24 = vadd.f32 %v3590_v23, %v3589_v62  ;;  %vm11967_vm8 = vmmov %vm11875_vm0 }
 0x6e2   :  { %v10228_v30 = vadd.f32 %v10151_v8, %v3328_v18  ;;  %v3343_v47 = vadd.f32 %v7139_v54, %v10165_v31  ;;  %v3338_v7 = vadd.f32 %v3337_v16, %v3192_v52  ;;  %v3648_v52 = vsel %vm11957_vm13, %v3626_v40, 0.0  ;;  %vm11970_vm13 = vmmov %vm11875_vm0 }
 0x6e3   :  { %v10231_v10 = vmul.f32 0.0078125, %v3440_v49  ;;  %v3494_v60 = vadd.f32 %v3493_v53, %v3492_v27  ;;  %v3645_v9 = vadd.f32 %v3644_v38, %v3643_v35  ;;  %v7142_v44 = vpop.f32.mrf.mxu0  ;;  %v3594_v27 = vsel %vm11956_vm5, %v10218_v2, 0.0  ;;  %vm11969_vm5 = vmmov %vm11875_vm0 }
 0x6e4   :  { %v3592_v4 = vsel %vm11955_vm6, %v10228_v30, 0.0  ;;  %v3625_v0 = vmul.f32 %v10228_v30, %v10228_v30  ;;  %v10238_v32 = vadd.f32 %v10151_v8, %v3343_v47  ;;  %v10249_v62 = vadd.f32 %v10151_v8, %v3338_v7  ;;  %v3212_v47 = vpop.f32.mrf.mxu1  ;;  %vm11968_vm6 = vmmov %vm11875_vm0 }
 0x6e5   :  { %v3495_v17 = vmul.f32 0.0078125, %v3494_v60  ;;  %v3496_v31 = vmul.f32 %v10231_v10, %v10231_v10  ;;  %v3593_v35 = vadd.f32 %v3592_v4, %v3591_v24  ;;  %v3347_v38 = vpop.f32.mrf.mxu0  ;;  %v3353_v16 = vadd.f32 %v7142_v44, %v7110_v42 }
 0x6e6   :  { %v3646_v54 = vsel %vm11958_vm4, %v3625_v0, 0.0  ;;  %v3628_v23 = vmul.f32 %v10238_v32, %v10238_v32  ;;  %v3598_v24 = vsel %vm11959_vm3, %v10238_v32, 0.0  ;;  %v3596_v40 = vsel %vm11960_vm12, %v10249_v62, 0.0  ;;  %vm11971_vm4 = vmmov %vm11875_vm0 }
 0x6e7   :  { %v3497_v18 = vsub.f32 %v3495_v17, %v3496_v31  ;;  %v3647_v49 = vadd.f32 %v3646_v54, %v3645_v9  ;;  %v3595_v53 = vadd.f32 %v3594_v27, %v3593_v35  ;;  %v7145_v60 = vpop.f32.mrf.mxu0  ;;  %v3627_v4 = vmul.f32 %v10249_v62, %v10249_v62  ;;  %vm11972_vm3 = vmmov %vm11875_vm0 }
 0x6e8   :  { %v3348_v0 = vadd.f32 %v3347_v38, %v3202_v29  ;;  %v10258_v17 = vadd.f32 %v10151_v8, %v3353_v16  ;;  %v3363_v31 = vadd.f32 %v7145_v60, %v7113_v46  ;;  %v3652_v54 = vsel %vm11962_vm2, %v3628_v23, 0.0  ;;  %v7116_v38 = vpop.f32.mrf.mxu1  ;;  %vm11973_vm12 = vmmov %vm11875_vm0 }
 0x6e9   :  { %v3498_v58 = vmax.f32 %v3497_v18, 0.0  ;;  %v3597_v50 = vadd.f32 %v3596_v40, %v3595_v53  ;;  %v3649_v7 = vadd.f32 %v3648_v52, %v3647_v49  ;;  %v3357_v9 = vpop.f32.mrf.mxu0  ;;  %v3650_v42 = vsel %vm11961_vm7, %v3627_v4, 0.0 }
 0x6ea   :  { %v10262_v44 = vadd.f32 %v10151_v8, %v3348_v0  ;;  %v3358_v27 = vadd.f32 %v3357_v9, %v3212_v47  ;;  %v3630_v29 = vmul.f32 %v10258_v17, %v10258_v17  ;;  %v10272_v16 = vadd.f32 %v10151_v8, %v3363_v31  ;;  %v3222_v0 = vpop.f32.mrf.mxu1 }
 0x6eb   :  { %v3515_v35 = vadd.f32 1e-05, %v3498_v58  ;;  %v3651_v37 = vadd.f32 %v3650_v42, %v3649_v7  ;;  %v7148_v52 = vpop.f32.mrf.mxu0  ;;  %v3599_v18 = vadd.f32 %v3598_v24, %v3597_v50  ;;  %v3602_v47 = vsel %vm11875_vm0, %v10258_v17, 0.0 }
 0x6ec   :  { %v3600_v49 = vsel %vm11963_vm15, %v10262_v44, 0.0  ;;  %v3629_v53 = vmul.f32 %v10262_v44, %v10262_v44  ;;  %v10275_v46 = vadd.f32 %v10151_v8, %v3358_v27  ;;  %v3632_v24 = vmul.f32 %v10272_v16, %v10272_v16 }
 0x6ed   :  { %7593 = vrsqrt.f32 %v3515_v35  ;;  %v3653_v58 = vadd.f32 %v3652_v54, %v3651_v37  ;;  %v3367_v23 = vpop.f32.mrf.mxu0  ;;  %v3601_v60 = vadd.f32 %v3600_v49, %v3599_v18  ;;  %v3373_v7 = vadd.f32 %v7148_v52, %v7116_v38 }
 0x6ee   :  { %v3654_v50 = vsel %vm11964_vm10, %v3629_v53, 0.0  ;;  %v3604_v4 = vsel %vm11965_vm9, %v10275_v46, 0.0  ;;  %v3631_v37 = vmul.f32 %v10275_v46, %v10275_v46  ;;  %v3656_v9 = vsel %vm11966_vm1, %v3630_v29, 0.0 }
 0x6ef   :  { %v3655_v40 = vadd.f32 %v3654_v50, %v3653_v58  ;;  %v3603_v42 = vadd.f32 %v3602_v47, %v3601_v60  ;;  %v3368_v31 = vadd.f32 %v3367_v23, %v3222_v0  ;;  %v10289_v54 = vadd.f32 %v10151_v8, %v3373_v7 }
 0x6f0   :  { %v3658_v35 = vsel %vm11967_vm8, %v3631_v37, 0.0  ;;  %v3606_v53 = vsel %vm11968_vm6, %v10272_v16, 0.0  ;;  %v3660_v58 = vsel %vm11969_vm5, %v3632_v24, 0.0  ;;  %v3513_v0 = vsub.f32 %v10149_v20, %v10231_v10 }
 0x6f1   :  { %v3657_v27 = vadd.f32 %v3656_v9, %v3655_v40  ;;  %v3605_v18 = vadd.f32 %v3604_v4, %v3603_v42  ;;  %v10292_v49 = vadd.f32 %v10151_v8, %v3368_v31  ;;  %v3634_v29 = vmul.f32 %v10289_v54, %v10289_v54 }
 0x6f2   :  { %v3610_v40 = vsel %vm11972_vm3, %v10289_v54, 0.0  ;;  %v3514_v9 = vsub.f32 %v10140_v11, %v10231_v10  ;;  %v3512_v42 = vsub.f32 %v10121_v41, %v10231_v10  ;;  %v3509_v20 = vsub.f32 %v10109_v28, %v10231_v10 }
 0x6f3   :  { %v3659_v38 = vadd.f32 %v3658_v35, %v3657_v27  ;;  %v3607_v52 = vadd.f32 %v3606_v53, %v3605_v18  ;;  %v3608_v23 = vsel %vm11970_vm13, %v10292_v49, 0.0  ;;  %v3633_v47 = vmul.f32 %v10292_v49, %v10292_v49  ;;  %v10315_v27 = vld [vmem:[#allocation18 + $0x1] ss:$0 sm:$0xff] }
 0x6f4   :  { %v3664_v24 = vsel %vm11973_vm12, %v3634_v29, 0.0  ;;  %v3511_v18 = vsub.f32 %v10129_v6, %v10231_v10  ;;  %v3510_v53 = vsub.f32 %v10100_v36, %v10231_v10  ;;  %v10326_v29 = vld [vmem:[#allocation21 + $0x1] ss:$0 sm:$0xff] }
 0x6f5   :  { %v3661_v60 = vadd.f32 %v3660_v58, %v3659_v38  ;;  %v3609_v50 = vadd.f32 %v3608_v23, %v3607_v52  ;;  %v3662_v8 = vsel %vm11971_vm4, %v3633_v47, 0.0 }
 0x6f7   :  { %v3663_v4 = vadd.f32 %v3662_v8, %v3661_v60  ;;  %v3611_v37 = vadd.f32 %v3610_v40, %v3609_v50 }
 0x6f9   :  { %v3665_v7 = vadd.f32 %v3664_v24, %v3663_v4  ;;  %v3612_v35 = vrot.slane %v3611_v37, 4 }
 0x6fa   :  { %v10313_v31 = vpop.eup %7593 }
 0x6fb   :  { %v3531_v58 = vmul.f32 %v10313_v31, %v3513_v0  ;;  %v3666_v11 = vrot.slane %v3665_v7, 4  ;;  %v3532_v38 = vmul.f32 %v10313_v31, %v3514_v9  ;;  %v3530_v41 = vmul.f32 %v10313_v31, %v3512_v42 }
 0x6fc   :  { %v3613_v52 = vadd.f32 %v3612_v35, %v3611_v37  ;;  %v3529_v23 = vmul.f32 %v10313_v31, %v3511_v18  ;;  %v3528_v6 = vmul.f32 %v10313_v31, %v3510_v53  ;;  %v3527_v47 = vmul.f32 %v10313_v31, %v3509_v20 }
 0x6fd   :  { %v3553_v36 = vmul.f32 %v10315_v27, %v3531_v58  ;;  %v3667_v60 = vadd.f32 %v3666_v11, %v3665_v7  ;;  %v3554_v28 = vmul.f32 %v10315_v27, %v3532_v38  ;;  %v3552_v50 = vmul.f32 %v10315_v27, %v3530_v41 }
 0x6fe   :  { %v3614_v8 = vrot.slane %v3613_v52, 2  ;;  %v3551_v40 = vmul.f32 %v10315_v27, %v3529_v23  ;;  %v3550_v4 = vmul.f32 %v10315_v27, %v3528_v6  ;;  %v3549_v24 = vmul.f32 %v10315_v27, %v3527_v47 }
 0x6ff   :  { %v3575_v37 = vadd.f32 %v10326_v29, %v3553_v36  ;;  %v3668_v0 = vrot.slane %v3667_v60, 2  ;;  %v3576_v9 = vadd.f32 %v10326_v29, %v3554_v28  ;;  %v3574_v42 = vadd.f32 %v10326_v29, %v3552_v50 }
 0x700   :  { %v3615_v35 = vadd.f32 %v3614_v8, %v3613_v52  ;;  %v3573_v7 = vadd.f32 %v10326_v29, %v3551_v40  ;;  %v3572_v18 = vadd.f32 %v10326_v29, %v3550_v4  ;;  %v3571_v11 = vadd.f32 %v10326_v29, %v3549_v24 }
 0x701   :  { %v3768_v53 = vsub.f32 0.0, %v3575_v37  ;;  %v3669_v20 = vadd.f32 %v3668_v0, %v3667_v60  ;;  %v3769_v58 = vsub.f32 0.0, %v3576_v9  ;;  %v3767_v41 = vsub.f32 0.0, %v3574_v42 }
 0x702   :  { %v3616_v38 = vrot.slane %v3615_v35, 1  ;;  %v3766_v23 = vsub.f32 0.0, %v3573_v7  ;;  %v3508_v6 = vsub.f32 %v10081_v45, %v10231_v10  ;;  %v3765_v52 = vsub.f32 0.0, %v3572_v18 }
 0x703   :  { %v3798_v47 = vmul.f32 1.442695, %v3768_v53  ;;  %v3670_v36 = vrot.slane %v3669_v20, 1  ;;  %v3800_v50 = vmul.f32 1.442695, %v3769_v58  ;;  %v3764_v4 = vsub.f32 0.0, %v3571_v11 }
 0x704   :  { %v3617_v28 = vadd.f32 %v3616_v38, %v3615_v35  ;;  %v3526_v8 = vmul.f32 %v10313_v31, %v3508_v6  ;;  %v3507_v60 = vsub.f32 %v10089_v63, %v10231_v10  ;;  %v3506_v24 = vsub.f32 %v10061_v22, %v10231_v10 }
 0x705   :  { %v3671_v40 = vadd.f32 %v3670_v36, %v3669_v20  ;;  %v3796_v0 = vmul.f32 1.442695, %v3767_v41  ;;  %v3794_v9 = vmul.f32 1.442695, %v3766_v23  ;;  %v3505_v45 = vsub.f32 %v10069_v25, %v10231_v10 }
 0x706   :  { %v10350_v37 = vmul.f32 0.0078125, %v3617_v28  ;;  %7595 = vpow2.f32 %v3798_v47  ;;  %v3525_v35 = vmul.f32 %v10313_v31, %v3507_v60  ;;  %v3524_v7 = vmul.f32 %v10313_v31, %v3506_v24 }
 0x707   :  { %v3672_v42 = vmul.f32 0.0078125, %v3671_v40  ;;  %7597 = vpow2.f32 %v3800_v50  ;;  %v3792_v63 = vmul.f32 1.442695, %v3765_v52  ;;  %v3548_v22 = vmul.f32 %v10315_v27, %v3526_v8 }
 0x708   :  { %v3673_v18 = vmul.f32 %v10350_v37, %v10350_v37  ;;  %v3790_v53 = vmul.f32 1.442695, %v3764_v4  ;;  %v3523_v20 = vmul.f32 %v10313_v31, %v3505_v45  ;;  %7599 = vpow2.f32 %v3796_v0 }
 0x709   :  { %7601 = vpow2.f32 %v3794_v9  ;;  %v3547_v25 = vmul.f32 %v10315_v27, %v3525_v35  ;;  %v3546_v11 = vmul.f32 %v10315_v27, %v3524_v7  ;;  %v3504_v38 = vsub.f32 %v10043_v15, %v10231_v10 }
 0x70a   :  { %v3674_v58 = vsub.f32 %v3672_v42, %v3673_v18  ;;  %7603 = vpow2.f32 %v3792_v63  ;;  %v3570_v23 = vadd.f32 %v10326_v29, %v3548_v22  ;;  %v3545_v47 = vmul.f32 %v10315_v27, %v3523_v20 }
 0x70b   :  { %7605 = vpow2.f32 %v3790_v53  ;;  %v3569_v6 = vadd.f32 %v10326_v29, %v3547_v25  ;;  %v3522_v36 = vmul.f32 %v10313_v31, %v3504_v38  ;;  %v3568_v50 = vadd.f32 %v10326_v29, %v3546_v11 }
 0x70c   :  { %v3675_v41 = vmax.f32 %v3674_v58, 0.0  ;;  %v3503_v52 = vsub.f32 %v10051_v5, %v10231_v10  ;;  %v3763_v15 = vsub.f32 0.0, %v3570_v23  ;;  %v3567_v60 = vadd.f32 %v10326_v29, %v3545_v47 }
 0x70d   :  { %v3544_v8 = vmul.f32 %v10315_v27, %v3522_v36  ;;  %v3762_v4 = vsub.f32 0.0, %v3569_v6  ;;  %v3761_v24 = vsub.f32 0.0, %v3568_v50  ;;  %v3502_v9 = vsub.f32 %v10025_v12, %v10231_v10 }
 0x70e   :  { %v3692_v28 = vadd.f32 1e-05, %v3675_v41  ;;  %v3521_v40 = vmul.f32 %v10313_v31, %v3503_v52  ;;  %v3501_v45 = vsub.f32 %v10033_v1, %v10231_v10  ;;  %v3788_v5 = vmul.f32 1.442695, %v3763_v15 }
 0x70f   :  { %v3566_v0 = vadd.f32 %v10326_v29, %v3544_v8  ;;  %v3500_v7 = vsub.f32 %v10011_v33, %v10231_v10  ;;  %v3499_v18 = vsub.f32 %v10014_v56, %v10231_v10  ;;  %v3690_v22 = vsub.f32 %v10292_v49, %v10350_v37 }
 0x710   :  { %7607 = vrsqrt.f32 %v3692_v28  ;;  %v3543_v35 = vmul.f32 %v10315_v27, %v3521_v40  ;;  %v3691_v12 = vsub.f32 %v10289_v54, %v10350_v37  ;;  %v3786_v53 = vmul.f32 1.442695, %v3762_v4 }
 0x711   :  { %v3760_v20 = vsub.f32 0.0, %v3567_v60  ;;  %v3689_v1 = vsub.f32 %v10272_v16, %v10350_v37  ;;  %v3688_v58 = vsub.f32 %v10275_v46, %v10350_v37  ;;  %v3687_v25 = vsub.f32 %v10258_v17, %v10350_v37 }
 0x712   :  { %v3784_v11 = vmul.f32 1.442695, %v3761_v24  ;;  %v3686_v49 = vsub.f32 %v10262_v44, %v10350_v37  ;;  %v3759_v23 = vsub.f32 0.0, %v3566_v0  ;;  %v3520_v54 = vmul.f32 %v10313_v31, %v3502_v9  ;;  %v10419_v9 = vld [vmem:[#allocation19 + $0x1] ss:$0 sm:$0xff] }
 0x713   :  { %v7596_v42 = vpop.eup %7595  ;;  %7609 = vpow2.f32 %v3788_v5  ;;  %v3565_v16 = vadd.f32 %v10326_v29, %v3543_v35  ;;  %v3519_v36 = vmul.f32 %v10313_v31, %v3501_v45  ;;  %v3685_v17 = vsub.f32 %v10238_v32, %v10350_v37 }
 0x714   :  { %v7598_v63 = vpop.eup %7597  ;;  %v3816_v41 = vadd.f32 1.0, %v7596_v42  ;;  %v3684_v28 = vsub.f32 %v10249_v62, %v10350_v37  ;;  %7611 = vpow2.f32 %v3786_v53  ;;  %v3782_v50 = vmul.f32 1.442695, %v3760_v20 }
 0x715   :  { %v7600_v38 = vpop.eup %7599  ;;  %v3817_v47 = vadd.f32 1.0, %v7598_v63  ;;  %v3683_v52 = vsub.f32 %v10218_v2, %v10350_v37  ;;  %7613 = vpow2.f32 %v3784_v11  ;;  %v3682_v8 = vsub.f32 %v10228_v30, %v10350_v37  ;;  %v10425_v11 = vld [vmem:[#allocation22 + $0x1] ss:$0 sm:$0xff] }
 0x716   :  { %v7602_v6 = vpop.eup %7601  ;;  %v3681_v15 = vsub.f32 %v10201_v14, %v10350_v37  ;;  %7615 = vrcp.f32 %v3816_v41  ;;  %v3780_v40 = vmul.f32 1.442695, %v3759_v23  ;;  %v3680_v32 = vsub.f32 %v10207_v39, %v10350_v37 }
 0x717   :  { %v7604_v46 = vpop.eup %7603  ;;  %v10412_v62 = vmul.f32 %v10315_v27, %v3520_v54  ;;  %7617 = vrcp.f32 %v3817_v47  ;;  %v3815_v4 = vadd.f32 1.0, %v7600_v38  ;;  %v3758_v60 = vsub.f32 0.0, %v3565_v16 }
 0x718   :  { %v7606_v44 = vpop.eup %7605  ;;  %v10415_v24 = vmul.f32 %v10315_v27, %v3519_v36  ;;  %v3814_v45 = vadd.f32 1.0, %v7602_v6  ;;  %v3813_v42 = vadd.f32 1.0, %v7604_v46  ;;  %7619 = vpow2.f32 %v3782_v50 }
 0x719   :  { %v3812_v5 = vadd.f32 1.0, %v7606_v44  ;;  %7621 = vpow2.f32 %v3780_v40  ;;  %v3678_v39 = vsub.f32 %v10190_v43, %v10350_v37  ;;  %v3676_v10 = vsub.f32 %v10171_v13, %v10350_v37 }
 0x71a   :  { %7623 = vrcp.f32 %v3815_v4 }
 0x71b   :  { %7625 = vrcp.f32 %v3814_v45 }
 0x71c   :  { %7627 = vrcp.f32 %v3813_v42 }
 0x71d   :  { %v10417_v0 = vpop.eup %7607  ;;  %7629 = vrcp.f32 %v3812_v5 }
 0x71e   :  { %v3708_v35 = vmul.f32 %v10417_v0, %v3690_v22  ;;  %v3709_v63 = vmul.f32 %v10417_v0, %v3691_v12  ;;  %v3707_v53 = vmul.f32 %v10417_v0, %v3689_v1  ;;  %v3706_v20 = vmul.f32 %v10417_v0, %v3688_v58 }
 0x71f   :  { %v3705_v38 = vmul.f32 %v10417_v0, %v3687_v25  ;;  %v3704_v41 = vmul.f32 %v10417_v0, %v3686_v49  ;;  %v3703_v23 = vmul.f32 %v10417_v0, %v3685_v17  ;;  %v3702_v25 = vmul.f32 %v10417_v0, %v3684_v28 }
 0x720   :  { %v3730_v54 = vmul.f32 %v10419_v9, %v3708_v35  ;;  %v3731_v6 = vmul.f32 %v10419_v9, %v3709_v63  ;;  %v3729_v22 = vmul.f32 %v10419_v9, %v3707_v53  ;;  %v3728_v12 = vmul.f32 %v10419_v9, %v3706_v20  ;;  %v7610_v63 = vpop.eup %7609 }
 0x721   :  { %v3727_v1 = vmul.f32 %v10419_v9, %v3705_v38  ;;  %v3726_v58 = vmul.f32 %v10419_v9, %v3704_v41  ;;  %v3725_v47 = vmul.f32 %v10419_v9, %v3703_v23  ;;  %v3778_v28 = vmul.f32 1.442695, %v3758_v60  ;;  %v7612_v38 = vpop.eup %7611 }
 0x722   :  { %v10439_v49 = vadd.f32 %v10425_v11, %v3731_v6  ;;  %v10442_v16 = vadd.f32 %v10425_v11, %v3730_v54  ;;  %v10445_v36 = vadd.f32 %v10425_v11, %v3729_v22  ;;  %v10448_v46 = vadd.f32 %v10425_v11, %v3728_v12  ;;  %v7614_v54 = vpop.eup %7613 }
 0x723   :  { %v10451_v17 = vadd.f32 %v10425_v11, %v3727_v1  ;;  %v10454_v50 = vadd.f32 %v10425_v11, %v3726_v58  ;;  %v10459_v35 = vadd.f32 %v10425_v11, %v3725_v47  ;;  %v3724_v20 = vmul.f32 %v10419_v9, %v3702_v25  ;;  %v10466_v12 = vpop.eup %7615 }
 0x724   :  { %v3881_v44 = vmin.f32 %v10439_v49, 20.0  ;;  %v3880_v40 = vmin.f32 %v10442_v16, 20.0  ;;  %v3879_v53 = vmin.f32 %v10445_v36, 20.0  ;;  %v3878_v4 = vmin.f32 %v10448_v46, 20.0  ;;  %v10471_v47 = vpop.eup %7617 }
 0x725   :  { %v3877_v60 = vmin.f32 %v10451_v17, 20.0  ;;  %v3876_v22 = vmin.f32 %v10454_v50, 20.0  ;;  %7631 = vpow2.f32 %v3778_v28  ;;  %v3875_v42 = vmin.f32 %v10459_v35, 20.0  ;;  %v7620_v28 = vpop.eup %7619 }
 0x726   :  { %v3912_v41 = vmul.f32 1.442695, %v3881_v44  ;;  %v3910_v23 = vmul.f32 1.442695, %v3880_v40  ;;  %v3908_v6 = vmul.f32 1.442695, %v3879_v53  ;;  %v3679_v58 = vsub.f32 %v10182_v26, %v10350_v37 }
 0x727   :  { %v3906_v45 = vmul.f32 1.442695, %v3878_v4  ;;  %v3904_v1 = vmul.f32 1.442695, %v3877_v60  ;;  %v3902_v25 = vmul.f32 1.442695, %v3876_v22  ;;  %v10474_v5 = vadd.f32 %v10425_v11, %v3724_v20 }
 0x728   :  { %7633 = vpow2.f32 %v3912_v41  ;;  %v10478_v44 = vadd.f32 %v10326_v29, %v10412_v62  ;;  %v3900_v40 = vmul.f32 1.442695, %v3875_v42  ;;  %v3701_v53 = vmul.f32 %v10417_v0, %v3683_v52  ;;  %v7622_v41 = vpop.eup %7621 }
 0x729   :  { %7635 = vpow2.f32 %v3910_v23  ;;  %v10486_v26 = vadd.f32 %v10326_v29, %v10415_v24  ;;  %v3811_v4 = vadd.f32 1.0, %v7610_v63  ;;  %v3874_v20 = vmin.f32 %v10474_v5, 20.0 }
 0x72a   :  { %7637 = vpow2.f32 %v3908_v6  ;;  %v3700_v62 = vmul.f32 %v10417_v0, %v3682_v8  ;;  %v3810_v23 = vadd.f32 1.0, %v7612_v38  ;;  %v3723_v2 = vmul.f32 %v10419_v9, %v3701_v53  ;;  %v10511_v6 = vpop.eup %7623 }
 0x72b   :  { %7639 = vpow2.f32 %v3906_v45  ;;  %v3699_v52 = vmul.f32 %v10417_v0, %v3681_v15  ;;  %v3898_v24 = vmul.f32 1.442695, %v3874_v20  ;;  %v3809_v63 = vadd.f32 1.0, %v7614_v54 }
 0x72c   :  { %7641 = vpow2.f32 %v3904_v1  ;;  %v3722_v60 = vmul.f32 %v10419_v9, %v3700_v62  ;;  %v10500_v30 = vadd.f32 %v10425_v11, %v3723_v2  ;;  %v3698_v38 = vmul.f32 %v10417_v0, %v3680_v32  ;;  %v10519_v1 = vpop.eup %7625 }
 0x72d   :  { %7643 = vpow2.f32 %v3902_v25  ;;  %v3721_v8 = vmul.f32 %v10419_v9, %v3699_v52  ;;  %v3808_v15 = vadd.f32 1.0, %v7620_v28  ;;  %v3697_v54 = vmul.f32 %v10417_v0, %v3679_v58  ;;  %v10525_v25 = vpop.eup %7627 }
 0x72e   :  { %7645 = vpow2.f32 %v3900_v40  ;;  %v10508_v14 = vadd.f32 %v10425_v11, %v3722_v60  ;;  %v3873_v45 = vmin.f32 %v10500_v30, 20.0  ;;  %v3720_v42 = vmul.f32 %v10419_v9, %v3698_v38 }
 0x72f   :  { %7647 = vrcp.f32 %v3811_v4  ;;  %v10515_v22 = vadd.f32 %v10425_v11, %v3721_v8  ;;  %v3677_v58 = vsub.f32 %v10163_v61, %v10350_v37  ;;  %v3807_v40 = vadd.f32 1.0, %v7622_v41  ;;  %v10528_v4 = vpop.eup %7629 }
 0x730   :  { %7649 = vpow2.f32 %v3898_v24  ;;  %v3872_v32 = vmin.f32 %v10508_v14, 20.0  ;;  %v3896_v28 = vmul.f32 1.442695, %v3873_v45  ;;  %v10531_v20 = vadd.f32 %v10425_v11, %v3720_v42 }
 0x731   :  { %7651 = vrcp.f32 %v3810_v23  ;;  %v3871_v53 = vmin.f32 %v10515_v22, 20.0  ;;  %v3719_v62 = vmul.f32 %v10419_v9, %v3697_v54  ;;  %v3696_v2 = vmul.f32 %v10417_v0, %v3678_v39 }
 0x732   :  { %7653 = vrcp.f32 %v3809_v63  ;;  %v3894_v43 = vmul.f32 1.442695, %v3872_v32  ;;  %v10534_v23 = vpop.eup %7631  ;;  %v3518_v41 = vmul.f32 %v10313_v31, %v3500_v7  ;;  %v3757_v24 = vsub.f32 0.0, %v10478_v44 }
 0x733   :  { %7655 = vrcp.f32 %v3808_v15  ;;  %v3892_v61 = vmul.f32 1.442695, %v3871_v53  ;;  %v3695_v63 = vmul.f32 %v10417_v0, %v3677_v58  ;;  %v10544_v38 = vadd.f32 %v10425_v11, %v3719_v62 }
 0x734   :  { %7657 = vpow2.f32 %v3896_v28  ;;  %v3517_v15 = vmul.f32 %v10313_v31, %v3499_v18  ;;  %v3870_v7 = vmin.f32 %v10531_v20, 20.0  ;;  %v3718_v44 = vmul.f32 %v10419_v9, %v3696_v2 }
 0x735   :  { %v7634_v52 = vpop.eup %7633  ;;  %7659 = vpow2.f32 %v3894_v43  ;;  %v3756_v32 = vsub.f32 0.0, %v10486_v26  ;;  %v3540_v42 = vmul.f32 %v10315_v27, %v3518_v41  ;;  %v3717_v56 = vmul.f32 %v10419_v9, %v3695_v63 }
 0x736   :  { %v7636_v60 = vpop.eup %7635  ;;  %v3929_v8 = vadd.f32 1.0, %v7634_v52  ;;  %7661 = vpow2.f32 %v3892_v61  ;;  %v3539_v53 = vmul.f32 %v10315_v27, %v3517_v15  ;;  %v3890_v62 = vmul.f32 1.442695, %v3870_v7 }
 0x737   :  { %v7638_v33 = vpop.eup %7637  ;;  %v3928_v54 = vadd.f32 1.0, %v7636_v60  ;;  %7663 = vrcp.f32 %v3807_v40  ;;  %v3869_v40 = vmin.f32 %v10544_v38, 20.0  ;;  %v10560_v61 = vadd.f32 %v10425_v11, %v3718_v44 }
 0x738   :  { %v7640_v45 = vpop.eup %7639  ;;  %7665 = vlog2.f32 %v3929_v8  ;;  %v3927_v39 = vadd.f32 1.0, %v7638_v33  ;;  %v3562_v13 = vadd.f32 %v10326_v29, %v3540_v42  ;;  %v3776_v52 = vmul.f32 1.442695, %v3757_v24 }
 0x739   :  { %v7642_v58 = vpop.eup %7641  ;;  %7667 = vlog2.f32 %v3928_v54  ;;  %v3926_v28 = vadd.f32 1.0, %v7640_v45  ;;  %v10566_v63 = vadd.f32 %v10425_v11, %v3717_v56  ;;  %v3694_v27 = vmul.f32 %v10417_v0, %v3676_v10 }
 0x73a   :  { %v7644_v31 = vpop.eup %7643  ;;  %7669 = vlog2.f32 %v3927_v39  ;;  %v3925_v18 = vadd.f32 1.0, %v7642_v58  ;;  %v3888_v15 = vmul.f32 1.442695, %v3869_v40  ;;  %v3561_v33 = vadd.f32 %v10326_v29, %v3539_v53 }
 0x73b   :  { %v7646_v43 = vpop.eup %7645  ;;  %7671 = vlog2.f32 %v3926_v28  ;;  %v3924_v26 = vadd.f32 1.0, %v7644_v31  ;;  %v3774_v7 = vmul.f32 1.442695, %v3756_v32  ;;  %v3868_v44 = vmin.f32 %v10560_v61, 20.0 }
 0x73c   :  { %v10562_v2 = vpop.eup %7647  ;;  %7673 = vlog2.f32 %v3925_v18  ;;  %v3923_v41 = vadd.f32 1.0, %v7646_v43  ;;  %v3716_v24 = vmul.f32 %v10419_v9, %v3694_v27  ;;  %v3755_v39 = vsub.f32 0.0, %v3562_v13 }
 0x73d   :  { %v7650_v37 = vpop.eup %7649  ;;  %7675 = vlog2.f32 %v3924_v26  ;;  %v3867_v42 = vmin.f32 %v10566_v63, 20.0  ;;  %v3754_v56 = vsub.f32 0.0, %v3561_v33  ;;  %v3886_v31 = vmul.f32 1.442695, %v3868_v44 }
 0x73e   :  { %v10569_v60 = vpop.eup %7651  ;;  %7677 = vlog2.f32 %v3923_v41  ;;  %v3922_v8 = vadd.f32 1.0, %v7650_v37  ;;  %v10580_v58 = vadd.f32 %v10425_v11, %v3716_v24  ;;  %v3772_v53 = vmul.f32 1.442695, %v3755_v39 }
 0x73f   :  { %v10572_v54 = vpop.eup %7653  ;;  %7679 = vpow2.f32 %v3890_v62  ;;  %v3884_v26 = vmul.f32 1.442695, %v3867_v42  ;;  %vm3865_vm7 = vcmp.gt.f32.partialorder %v10439_v49, 20.0  ;;  %v3770_v41 = vmul.f32 1.442695, %v3754_v56 }
 0x740   :  { %v10576_v45 = vpop.eup %7655  ;;  %7681 = vlog2.f32 %v3922_v8  ;;  %v3866_v9 = vmin.f32 %v10580_v58, 20.0  ;;  %vm3864_vm2 = vcmp.gt.f32.partialorder %v10442_v16, 20.0  ;;  %vm3863_vm15 = vcmp.gt.f32.partialorder %v10445_v36, 20.0 }
 0x741   :  { %v7658_v0 = vpop.eup %7657  ;;  %7683 = vpow2.f32 %v3776_v52  ;;  %vm3862_vm0 = vcmp.gt.f32.partialorder %v10448_v46, 20.0  ;;  %vm3861_vm10 = vcmp.gt.f32.partialorder %v10451_v17, 20.0  ;;  %vm3860_vm9 = vcmp.gt.f32.partialorder %v10454_v50, 20.0 }
 0x742   :  { %v7660_v29 = vpop.eup %7659  ;;  %v3921_v28 = vadd.f32 1.0, %v7658_v0  ;;  %7685 = vpow2.f32 %v3888_v15  ;;  %v3882_v52 = vmul.f32 1.442695, %v3866_v9  ;;  %vm3859_vm1 = vcmp.gt.f32.partialorder %v10459_v35, 20.0 }
 0x743   :  { %v7662_v32 = vpop.eup %7661  ;;  %v3920_v10 = vadd.f32 1.0, %v7660_v29  ;;  %7687 = vpow2.f32 %v3774_v7  ;;  %vm3858_vm8 = vcmp.gt.f32.partialorder %v10474_v5, 20.0  ;;  %vm3857_vm6 = vcmp.gt.f32.partialorder %v10500_v30, 20.0 }
 0x744   :  { %v10583_v18 = vpop.eup %7663  ;;  %7689 = vlog2.f32 %v3921_v28  ;;  %v3919_v40 = vadd.f32 1.0, %v7662_v32  ;;  %vm3856_vm5 = vcmp.gt.f32.partialorder %v10508_v14, 20.0  ;;  %vm3855_vm13 = vcmp.gt.f32.partialorder %v10515_v22, 20.0 }
 0x745   :  { %v7666_v43 = vpop.eup %7665  ;;  %7691 = vlog2.f32 %v3920_v10  ;;  %vm3854_vm4 = vcmp.gt.f32.partialorder %v10531_v20, 20.0  ;;  %vm3853_vm3 = vcmp.gt.f32.partialorder %v10544_v38, 20.0  ;;  %vm3852_vm12 = vcmp.gt.f32.partialorder %v10560_v61, 20.0 }
 0x746   :  { %v7668_v11 = vpop.eup %7667  ;;  %v3961_v62 = vmul.f32 0.6931472, %v7666_v43  ;;  %7693 = vlog2.f32 %v3919_v40 }
 0x747   :  { %v7670_v13 = vpop.eup %7669  ;;  %v3959_v37 = vmul.f32 0.6931472, %v7668_v11  ;;  %7695 = vpow2.f32 %v3886_v31 }
 0x748   :  { %v7672_v27 = vpop.eup %7671  ;;  %v3977_v8 = vsel %vm3865_vm7, %v10439_v49, %v3961_v62  ;;  %v3957_v15 = vmul.f32 0.6931472, %v7670_v13  ;;  %7697 = vpow2.f32 %v3772_v53  ;;  %vm3851_vm7 = vcmp.gt.f32.partialorder %v10566_v63, 20.0 }
 0x749   :  { %v7674_v33 = vpop.eup %7673  ;;  %v3993_v7 = vmul.f32 %v10471_v47, %v3977_v8  ;;  %v3976_v44 = vsel %vm3864_vm2, %v10442_v16, %v3959_v37  ;;  %v3955_v24 = vmul.f32 0.6931472, %v7672_v27  ;;  %7699 = vpow2.f32 %v3884_v26 }
 0x74a   :  { %v7676_v39 = vpop.eup %7675  ;;  %v3975_v0 = vsel %vm3863_vm15, %v10445_v36, %v3957_v15  ;;  %v3953_v42 = vmul.f32 0.6931472, %v7674_v33  ;;  %7701 = vpow2.f32 %v3770_v41  ;;  %v3992_v49 = vmul.f32 %v10466_v12, %v3976_v44 }
 0x74b   :  { %v7678_v29 = vpop.eup %7677  ;;  %7149 = vmatprep.subr.mxu1 %v3993_v7  ;;  %7703 = vpow2.f32 %v3882_v52  ;;  %v3974_v47 = vsel %vm3862_vm0, %v10448_v46, %v3955_v24  ;;  %v3951_v56 = vmul.f32 0.6931472, %v7676_v39  ;;  %v3806_v16 = vadd.f32 1.0, %v10534_v23 }
 0x74c   :  { %v7680_v28 = vpop.eup %7679  ;;  %7150 = vmatpush3.msra.mxu1 %v3993_v7  ;;  %v3991_v36 = vmul.f32 %v10511_v6, %v3975_v0  ;;  %v3949_v10 = vmul.f32 0.6931472, %v7678_v29  ;;  %v3973_v12 = vsel %vm3861_vm10, %v10451_v17, %v3953_v42  ;;  %v3990_v46 = vmul.f32 %v10519_v1, %v3974_v47 }
 0x74d   :  { %v7682_v32 = vpop.eup %7681  ;;  %7151 = vmatprep.subr.mxu1 %v3992_v49  ;;  %v3918_v31 = vadd.f32 1.0, %v7680_v28  ;;  %v3972_v23 = vsel %vm3860_vm9, %v10454_v50, %v3951_v56  ;;  %v3989_v11 = vmul.f32 %v10525_v25, %v3973_v12  ;;  %vm3850_vm2 = vcmp.gt.f32.partialorder %v10580_v58, 20.0 }
 0x74e   :  { %v7684_v9 = vpop.eup %7683  ;;  %7152 = vmatpush3.msra.mxu1 %v3992_v49  ;;  %v3947_v40 = vmul.f32 0.6931472, %v7682_v32  ;;  %v3971_v62 = vsel %vm3859_vm1, %v10459_v35, %v3949_v10  ;;  %v3988_v50 = vmul.f32 %v10528_v4, %v3972_v23  ;;  %vm11975_vm15 = vcmask 261120  }
 0x74f   :  { %v7686_v53 = vpop.eup %7685  ;;  %7153 = vmatprep.subr.mxu1 %v3991_v36  ;;  %7705 = vlog2.f32 %v3918_v31  ;;  %v3805_v41 = vadd.f32 1.0, %v7684_v9  ;;  %v3987_v35 = vmul.f32 %v10562_v2, %v3971_v62  ;;  %v6312_v62 = vld [vmem:[%s11615_s6 + $0x50] sm:$0xff]  ;;  %vm11976_vm0 = vmmov %vm11975_vm15 }
 0x750   :  { %v7688_v6 = vpop.eup %7687  ;;  %7154 = vmatpush3.msra.mxu1 %v3991_v36  ;;  %v3970_v43 = vsel %vm3858_vm8, %v10474_v5, %v3947_v40  ;;  %7707 = vrcp.f32 %v3806_v16  ;;  %v3917_v17 = vadd.f32 1.0, %v7686_v53  ;;  %vm11977_vm10 = vmmov %vm11976_vm0 }
 0x751   :  { %v7690_v26 = vpop.eup %7689  ;;  %7155 = vmatprep.subr.mxu1 %v3990_v46  ;;  %v3986_v1 = vmul.f32 %v10569_v60, %v3970_v43  ;;  %v3804_v2 = vadd.f32 1.0, %v7688_v6  ;;  %vm11978_vm9 = vmmov %vm11976_vm0 }
 0x752   :  { %v7692_v13 = vpop.eup %7691  ;;  %7156 = vmatpush3.msra.mxu1 %v3990_v46  ;;  %v3945_v37 = vmul.f32 0.6931472, %v7690_v26  ;;  %7709 = vlog2.f32 %v3917_v17 }
 0x753   :  { %v7694_v52 = vpop.eup %7693  ;;  %7157 = vmatprep.subr.mxu1 %v3989_v11  ;;  %v3943_v5 = vmul.f32 0.6931472, %v7692_v13  ;;  %7711 = vrcp.f32 %v3805_v41  ;;  %v6311_v41 = vld [vmem:[%s11615_s6 + $0x48] sm:$0xff]  ;;  %v4230_v13 = vld [vmem:[#allocation9 + $0x48] sm:$0xff] }
 0x754   :  { %v7696_v27 = vpop.eup %7695  ;;  %7158 = vmatpush3.msra.mxu1 %v3989_v11  ;;  %v3969_v25 = vsel %vm3857_vm6, %v10500_v30, %v3945_v37  ;;  %v3941_v60 = vmul.f32 0.6931472, %v7694_v52  ;;  %v6310_v37 = vld [vmem:[%s11615_s6 + $0x40] sm:$0xff]  ;;  %v4229_v52 = vld [vmem:[#allocation9 + $0x40] sm:$0xff]  ;;  %vm11979_vm6 = vmmov %vm11976_vm0 }
 0x755   :  { %v7698_v8 = vpop.eup %7697  ;;  %7159 = vmatprep.subr.mxu1 %v3988_v50  ;;  %v3985_v15 = vmul.f32 %v10572_v54, %v3969_v25  ;;  %v3968_v4 = vsel %vm3856_vm5, %v10508_v14, %v3943_v5  ;;  %v3916_v33 = vadd.f32 1.0, %v7696_v27  ;;  %v10646_v5 = vld [vmem:[#allocation10 + $0x58] sm:$0xff]  ;;  %vm11980_vm5 = vmmov %vm11976_vm0 }
 0x756   :  { %v7700_v7 = vpop.eup %7699  ;;  %7160 = vmatpush3.msra.mxu1 %v3988_v50  ;;  %v3984_v44 = vmul.f32 %v10576_v45, %v3968_v4  ;;  %v3967_v24 = vsel %vm3855_vm13, %v10515_v22, %v3941_v60  ;;  %v3803_v54 = vadd.f32 1.0, %v7698_v8  ;;  %v10644_v50 = vld [vmem:[#allocation7 + $0x58] sm:$0xff]  ;;  %vm11981_vm13 = vmmov %vm11976_vm0 }
 0x757   :  { %v7702_v39 = vpop.eup %7701  ;;  %7161 = vmatprep.subr.mxu1 %v3987_v35  ;;  %v3983_v30 = vmul.f32 %v10583_v18, %v3967_v24  ;;  %7713 = vlog2.f32 %v3916_v33  ;;  %v3915_v0 = vadd.f32 1.0, %v7700_v7 }
 0x758   :  { %v7704_v42 = vpop.eup %7703  ;;  %7162 = vmatpush3.msra.mxu1 %v3987_v35  ;;  %v3802_v29 = vadd.f32 1.0, %v7702_v39 }
 0x759   :  { %7163 = vmatprep.subr.mxu1 %v3986_v1  ;;  %7715 = vlog2.f32 %v3915_v0  ;;  %v3914_v14 = vadd.f32 1.0, %v7704_v42 }
 0x75a   :  { %7164 = vmatpush3.msra.mxu1 %v3986_v1  ;;  %7717 = vrcp.f32 %v3804_v2  ;;  %v4232_v1 = vld [vmem:[#allocation9 + $0x58] sm:$0xff] }
 0x75b   :  { %7165 = vmatprep.subr.mxu1 %v3985_v15  ;;  %7719 = vlog2.f32 %v3914_v14 }
 0x75c   :  { %v7706_v45 = vpop.eup %7705  ;;  %7166 = vmatpush3.msra.mxu1 %v3985_v15  ;;  %7721 = vrcp.f32 %v3803_v54 }
 0x75d   :  { %v7708_v22 = vpop.eup %7707  ;;  %7167 = vmatprep.subr.mxu1 %v3984_v44  ;;  %v3939_v49 = vmul.f32 0.6931472, %v7706_v45  ;;  %7723 = vrcp.f32 %v3802_v29 }
 0x75e   :  { %7168 = vmatpush3.msra.mxu1 %v3984_v44 }
 0x75f   :  { %v7710_v18 = vpop.eup %7709  ;;  %7169 = vmatprep.subr.mxu1 %v3983_v30  ;;  %v3966_v28 = vsel %vm3854_vm4, %v10531_v20, %v3939_v49  ;;  %vm11982_vm4 = vmmov %vm11976_vm0 }
 0x760   :  { %7170 = vmatpush3.msra.mxu1 %v3983_v30  ;;  %v3982_v47 = vmul.f32 %v7708_v22, %v3966_v28  ;;  %v3937_v56 = vmul.f32 0.6931472, %v7710_v18  ;;  %v7712_v16 = vpop.eup %7711 }
 0x762   :  { %7171 = vmatprep.subr.mxu1 %v3982_v47  ;;  %v3965_v32 = vsel %vm3853_vm3, %v10544_v38, %v3937_v56  ;;  %vm11983_vm3 = vmmov %vm11976_vm0 }
 0x763   :  { %7172 = vmatpush3.msra.mxu1 %v3982_v47  ;;  %v3981_v36 = vmul.f32 %v7712_v16, %v3965_v32 }
 0x764   :  { %v7714_v10 = vpop.eup %7713 }
 0x765   :  { %7173 = vmatprep.subr.mxu1 %v3981_v36  ;;  %v3935_v31 = vmul.f32 0.6931472, %v7714_v10 }
 0x766   :  { %v7716_v9 = vpop.eup %7715  ;;  %7174 = vmatpush3.msra.mxu1 %v3981_v36 }
 0x767   :  { %v7718_v12 = vpop.eup %7717  ;;  %v3964_v20 = vsel %vm3852_vm12, %v10560_v61, %v3935_v31  ;;  %v3933_v40 = vmul.f32 0.6931472, %v7716_v9  ;;  %v11974_v61 = vmov 1.0   ;;  %v6308_v9 = vld [vmem:[#allocation24 + $0x1] ss:$0 sm:$0xff]  ;;  %vm11984_vm12 = vmmov %vm11976_vm0 }
 0x768   :  { %v7720_v53 = vpop.eup %7719  ;;  %v3980_v46 = vmul.f32 %v7718_v12, %v3964_v20 }
 0x769   :  { %v7722_v6 = vpop.eup %7721  ;;  %v3963_v38 = vsel %vm3851_vm7, %v10566_v63, %v3933_v40  ;;  %v3931_v23 = vmul.f32 0.6931472, %v7720_v53  ;;  %v6313_v63 = vld [vmem:[%s11615_s6 + $0x58] sm:$0xff]  ;;  %v6309_v40 = vld [vmem:[#allocation25 + $0x1] ss:$0 sm:$0xff]  ;;  %vm11985_vm7 = vmmov %vm11976_vm0 }
 0x76a   :  { %7175 = vmatprep.subr.mxu1 %v3980_v46  ;;  %v3979_v43 = vmul.f32 %v7722_v6, %v3963_v38  ;;  %v7724_v17 = vpop.eup %7723  ;;  %7184 = vmatprep.subr.mxu0 %v6313_v63 }
 0x76b   :  { %7176 = vmatpush3.msra.mxu1 %v3980_v46  ;;  %v3962_v26 = vsel %vm3850_vm2, %v10580_v58, %v3931_v23  ;;  %v4231_v58 = vld [vmem:[#allocation9 + $0x50] sm:$0xff]  ;;  %7185 = vmatpush3.msra.mxu0 %v6313_v63  ;;  %vm11986_vm2 = vmmov %vm11976_vm0 }
 0x76c   :  { %7177 = vmatprep.subr.mxu1 %v3979_v43  ;;  %v3978_v11 = vmul.f32 %v7724_v17, %v3962_v26  ;;  %7186 = vmatprep.subr.mxu0 %v6312_v62  ;;  %v7903_v23 = vld [vmem:[#allocation2] sm:$0xff]  ;;  %v7904_v17 = vld [vmem:[#allocation2 + $0x8] sm:$0xff] }
 0x76d   :  { %7178 = vmatpush3.msra.mxu1 %v3979_v43  ;;  %7187 = vmatpush3.msra.mxu0 %v6312_v62 }
 0x76e   :  { %7179 = vmatprep.subr.mxu1 %v3978_v11  ;;  %7188 = vmatprep.subr.mxu0 %v6311_v41 }
 0x76f   :  { %7180 = vmatpush3.msra.mxu1 %v3978_v11  ;;  %7189 = vmatpush3.msra.mxu0 %v6311_v41 }
 0x770   :  { %7182 = vmatmul.mubr.msk.f32.vlgmr.msra.gmra.mxu1 %vm9804_vm14, %v11974_v61  ;;  %7195 = vmatprep.subr.mxu1 %v4232_v1 }
 0x771   :  { %7196 = vmatpush3.msra.mxu1 %v4232_v1  ;;  %7190 = vmatprep.subr.mxu0 %v6310_v37 }
 0x772   :  { %7197 = vmatprep.subr.mxu1 %v4231_v58  ;;  %7191 = vmatpush3.msra.mxu0 %v6310_v37 }
 0x773   :  { %7198 = vmatpush3.msra.mxu1 %v4231_v58  ;;  %7206 = vmatprep.subr.mxu0 %v10644_v50 }
 0x774   :  { %7199 = vmatprep.subr.mxu1 %v4230_v13 }
 0x775   :  { %7200 = vmatpush3.msra.mxu1 %v4230_v13 }
 0x776   :  { %7201 = vmatprep.subr.mxu1 %v4229_v52 }
 0x777   :  { %7202 = vmatpush3.msra.mxu1 %v4229_v52 }
 0x778   :  { %7217 = vmatprep.subr.mxu1 %v10646_v5 }
 0x830   :  { %v7183_v27 = vpop.f32.mrf.mxu1 }
 0x831   :  { %v4084_v35 = vmul.f32 %v7183_v27, %v7183_v27  ;;  %v4074_v60 = vsel %vm11975_vm15, %v7183_v27, 0.0  ;;  %vm11987_vm15 = vmmov %vm11976_vm0 }
 0x832   :  { %v4060_v25 = vpop.f32.mrf.mxu1 }
 0x833   :  { %v4073_v8 = vsel %vm11976_vm0, %v4060_v25, 0.0  ;;  %v4083_v15 = vmul.f32 %v4060_v25, %v4060_v25  ;;  %v4086_v33 = vsel %vm11977_vm10, %v4084_v35, 0.0  ;;  %vm11988_vm10 = vcmask 130048  }
 0x834   :  { %v4075_v4 = vadd.f32 %v4074_v60, %v4073_v8 }
 0x835   :  { %v4085_v7 = vsel %vm11978_vm9, %v4083_v15, 0.0  ;;  %vm11989_vm9 = vmmov %vm11988_vm10 }
 0x836   :  { %v4076_v44 = vrot.slane %v4075_v4, 4  ;;  %v4087_v24 = vadd.f32 %v4086_v33, %v4085_v7  ;;  %v4311_v33 = vld [vmem:[#allocation7 + $0x50] sm:$0xff] }
 0x837   :  { %v4391_v7 = vld [vmem:[#allocation10 + $0x50] sm:$0xff] }
 0x838   :  { %v4077_v2 = vadd.f32 %v4076_v44, %v4075_v4  ;;  %v4088_v39 = vrot.slane %v4087_v24, 4  ;;  %v4310_v44 = vld [vmem:[#allocation7 + $0x48] sm:$0xff] }
 0x83a   :  { %v4078_v30 = vrot.slane %v4077_v2, 2  ;;  %v4089_v0 = vadd.f32 %v4088_v39, %v4087_v24  ;;  %v4390_v24 = vld [vmem:[#allocation10 + $0x48] sm:$0xff]  ;;  %v4389_v39 = vld [vmem:[#allocation10 + $0x40] sm:$0xff] }
 0x83c   :  { %v4079_v42 = vadd.f32 %v4078_v30, %v4077_v2  ;;  %v4090_v54 = vrot.slane %v4089_v0, 2  ;;  %v4309_v2 = vld [vmem:[#allocation7 + $0x40] sm:$0xff]  ;;  %v7905_v30 = vld [vmem:[%s11648_s1 + $0x60] sm:$0xff] }
 0x83e   :  { %v4080_v14 = vrot.slane %v4079_v42, 1  ;;  %v4091_v29 = vadd.f32 %v4090_v54, %v4089_v0  ;;  %v7906_v0 = vld [vmem:[%s11648_s1 + $0x68] sm:$0xff]  ;;  %v7908_v54 = vld [vmem:[%s11648_s1] sm:$0xff] }
 0x840   :  { %v4081_v45 = vadd.f32 %v4080_v14, %v4079_v42  ;;  %v4092_v22 = vrot.slane %v4091_v29, 1  ;;  %v7907_v42 = vld [vmem:[%s11648_s1 + $0x70] sm:$0xff]  ;;  %v7909_v14 = vld [vmem:[%s11648_s1 + $0x8] sm:$0xff] }
 0x842   :  { %v4082_v49 = vmul.f32 0.0625, %v4081_v45  ;;  %v4093_v18 = vadd.f32 %v4092_v22, %v4091_v29  ;;  %v7910_v29 = vld [vmem:[%s11648_s1 + $0x10] sm:$0xff]  ;;  %v7911_v45 = vld [vmem:[%s11648_s1 + $0x78] sm:$0xff] }
 0x843   :  { %v7912_v22 = vld [vmem:[%s11648_s1 + $0x18] sm:$0xff] }
 0x844   :  { %v4094_v28 = vmul.f32 0.0625, %v4093_v18  ;;  %v4095_v47 = vmul.f32 %v4082_v49, %v4082_v49  ;;  %v4098_v36 = vsub.f32 %v4060_v25, %v4082_v49  ;;  %v4099_v10 = vsub.f32 %v7183_v27, %v4082_v49  ;;  %v7913_v49 = vld [vmem:[%s11648_s1 + $0x20] sm:$0xff]  ;;  %v7914_v18 = vld [vmem:[%s11648_s1 + $0x28] sm:$0xff] }
 0x846   :  { %v4096_v56 = vsub.f32 %v4094_v28, %v4095_v47  ;;  %v7915_v28 = vld [vmem:[%s11648_s1 + $0x30] sm:$0xff]  ;;  %v7916_v47 = vld [vmem:[%s11648_s1 + $0x38] sm:$0xff] }
 0x848   :  { %v4097_v16 = vmax.f32 %v4096_v56, 0.0  ;;  %v7917_v56 = vld [vmem:[%s11648_s1 + $0x40] sm:$0xff] }
 0x84a   :  { %v4100_v32 = vadd.f32 1e-05, %v4097_v16  ;;  %v7918_v16 = vld [vmem:[%s11648_s1 + $0x48] sm:$0xff] }
 0x84c   :  { %7725 = vrsqrt.f32 %v4100_v32  ;;  %v7919_v32 = vld [vmem:[%s11648_s1 + $0x50] sm:$0xff] }
 0x859   :  { %v7726_v31 = vpop.eup %7725 }
 0x85a   :  { %v4102_v12 = vmul.f32 %v7726_v31, %v4098_v36  ;;  %v4103_v20 = vmul.f32 %v7726_v31, %v4099_v10  ;;  %v7920_v36 = vld [vmem:[%s11648_s1 + $0x58] sm:$0xff]  ;;  %v4787_v10 = vld [vmem:[#allocation13 + $0x28] sm:$0xff]  ;;  %v4786_v31 = vld [vmem:[#allocation13 + $0x20] sm:$0xff] }
 0x85c   :  { %v4110_v53 = vmul.f32 %v6308_v9, %v4102_v12  ;;  %v4111_v46 = vmul.f32 %v6308_v9, %v4103_v20 }
 0x85e   :  { %v4118_v6 = vadd.f32 %v6309_v40, %v4110_v53  ;;  %v4119_v38 = vadd.f32 %v6309_v40, %v4111_v46 }
 0x860   :  { %v4120_v43 = vadd.f32 %v7903_v23, %v4118_v6  ;;  %v4121_v26 = vadd.f32 %v7904_v17, %v4119_v38  ;;  %v12025_v38 = vmov 0.0   ;;  %v12027_v23 = vld [vmem:[#allocation42_spill] sm:$0xff]  ;;  %v12031_v17 = vld [vmem:[#allocation44_spill] sm:$0xff] }
 0x862   :  { %v4124_v11 = vmin.f32 %v4120_v43, 20.0  ;;  %v4125_v63 = vmin.f32 %v4121_v26, 20.0  ;;  %vm4122_vm1 = vcmp.gt.f32.partialorder %v4120_v43, 20.0  ;;  %vm4123_vm8 = vcmp.gt.f32.partialorder %v4121_v26, 20.0 }
 0x864   :  { %v4126_v62 = vmul.f32 1.442695, %v4124_v11  ;;  %v4128_v1 = vmul.f32 1.442695, %v4125_v63  ;;  %v12035_v11 = vld [vmem:[#allocation46_spill] sm:$0xff]  ;;  %v12037_v63 = vld [vmem:[#allocation47_spill] sm:$0xff] }
 0x866   :  { %7727 = vpow2.f32 %v4126_v62  ;;  %v12039_v62 = vld [vmem:[#allocation48_spill] sm:$0xff] }
 0x867   :  { %7729 = vpow2.f32 %v4128_v1  ;;  %v12041_v1 = vld [vmem:[#allocation49_spill] sm:$0xff] }
 0x873   :  { %v7728_v58 = vpop.eup %7727 }
 0x874   :  { %v7730_v41 = vpop.eup %7729  ;;  %v4130_v13 = vadd.f32 1.0, %v7728_v58  ;;  %v12043_v58 = vld [vmem:[#allocation50_spill] sm:$0xff] }
 0x875   :  { %v4131_v37 = vadd.f32 1.0, %v7730_v41 }
 0x876   :  { %7731 = vlog2.f32 %v4130_v13 }
 0x877   :  { %7733 = vlog2.f32 %v4131_v37 }
 0x883   :  { %v7732_v52 = vpop.eup %7731 }
 0x884   :  { %v7734_v27 = vpop.eup %7733  ;;  %v4133_v35 = vmul.f32 0.6931472, %v7732_v52 }
 0x885   :  { %v4135_v25 = vmul.f32 0.6931472, %v7734_v27 }
 0x886   :  { %v4136_v60 = vsel %vm4122_vm1, %v4120_v43, %v4133_v35  ;;  %vm11990_vm1 = vmmov %vm11989_vm9  ;;  %v12029_v43 = vld [vmem:[#allocation43_spill] sm:$0xff] }
 0x887   :  { %v4137_v8 = vsel %vm4123_vm8, %v4121_v26, %v4135_v25  ;;  %4138 = vst.msk [vmem:[#allocation2] sm:$0xff] %vm11979_vm6, %v4136_v60  ;;  %vm11991_vm8 = vmmov %vm11990_vm1  ;;  %v12033_v26 = vld [vmem:[#allocation45_spill] sm:$0xff] }
 0x888   :  { %4139 = vst.msk [vmem:[#allocation2 + $0x8] sm:$0xff] %vm11980_vm5, %v4137_v8  ;;  %vm11992_vm6 = vmmov %vm11990_vm1 }
 0x889   :  { %vm11993_vm5 = vmmov %vm11990_vm1 }
 0x88e   :  { %v4140_v15 = vld [vmem:[#allocation2] sm:$0xff] }
 0x88f   :  { %7192 = vmatprep.mubr.msk.f32.mxu0 %vm11981_vm13, %v4140_v15  ;;  %7203 = vmatprep.mubr.msk.f32.mxu1 %vm11982_vm4, %v4140_v15  ;;  %v4141_v4 = vld [vmem:[#allocation2 + $0x8] sm:$0xff]  ;;  %vm11994_vm13 = vmmov %vm11990_vm1 }
 0x890   :  { %7193 = vmatmul.mubr.msk.f32.vlgmr.msra.gmra.mxu0 %vm11983_vm3, %v4141_v4  ;;  %7204 = vmatmul.mubr.msk.f32.vlgmr.msra.gmra.mxu1 %vm11984_vm12, %v4141_v4  ;;  %vm11995_vm4 = vmmov %vm11976_vm0 }
 0x891   :  { %7207 = vmatpush3.msra.mxu0 %v10644_v50  ;;  %7218 = vmatpush3.msra.mxu1 %v10646_v5  ;;  %v4470_v50 = vld [vmem:[#allocation12 + $0x28] sm:$0xff]  ;;  %v4469_v5 = vld [vmem:[#allocation12 + $0x20] sm:$0xff]  ;;  %vm11996_vm3 = vmmov %vm11990_vm1 }
 0x892   :  { %7208 = vmatprep.subr.mxu0 %v4311_v33  ;;  %7214 = vmatprep.mubr.msk.f32.mxu0 %vm11985_vm7, %v4140_v15  ;;  %vm11997_vm12 = vmmov %vm11990_vm1 }
 0x893   :  { %7219 = vmatprep.subr.mxu1 %v4391_v7  ;;  %7225 = vmatprep.mubr.msk.f32.mxu1 %vm11986_vm2, %v4140_v15  ;;  %vm11998_vm7 = vmmov %vm11990_vm1 }
 0x894   :  { %7209 = vmatpush3.msra.mxu0 %v4311_v33  ;;  %7220 = vmatpush3.msra.mxu1 %v4391_v7  ;;  %vm11999_vm2 = vmmov %vm11990_vm1 }
 0x895   :  { %7210 = vmatprep.subr.mxu0 %v4310_v44  ;;  %7221 = vmatprep.subr.mxu1 %v4390_v24 }
 0x896   :  { %7211 = vmatpush3.msra.mxu0 %v4310_v44  ;;  %7222 = vmatpush3.msra.mxu1 %v4390_v24 }
 0x897   :  { %7212 = vmatprep.subr.mxu0 %v4309_v2  ;;  %7223 = vmatprep.subr.mxu1 %v4389_v39 }
 0x898   :  { %7213 = vmatpush3.msra.mxu0 %v4309_v2  ;;  %7224 = vmatpush3.msra.mxu1 %v4389_v39 }
 0x899   :  { %7215 = vmatmul.mubr.msk.f32.vlgmr.msra.gmra.mxu0 %vm11987_vm15, %v4141_v4  ;;  %7226 = vmatmul.mubr.msk.f32.vlgmr.msra.gmra.mxu1 %vm11976_vm0, %v4141_v4  ;;  %vm12000_vm15 = vmmov %vm11990_vm1  ;;  %v10828_v4 = vld [vmem:[#allocation15 + $0x2] ss:$0 sm:$0xff] }
 0x89a   :  { %7420 = vmatprep.subr.mxu1 %v4470_v50  ;;  %7250 = vmatprep.mubr.msk.f32.mxu1 %vm11988_vm10, %v7905_v30  ;;  %vm12001_vm0 = vmmov %vm11990_vm1 }
 0x89b   :  { %7422 = vmatpush3.msra.mxu1 %v4470_v50  ;;  %7228 = vmatprep.subr.mxu0 %v4470_v50  ;;  %vm12002_vm10 = vmmov %vm12001_vm0 }
 0x89c   :  { %7421 = vmatprep.subr.mxu1 %v4469_v5  ;;  %7229 = vmatpush3.msra.mxu0 %v4470_v50 }
 0x89d   :  { %7423 = vmatpush3.msra.mxu1 %v4469_v5  ;;  %7230 = vmatprep.subr.mxu0 %v4469_v5 }
 0x89e   :  { %7251 = vmatmul.mubr.msk.f32.vlgmr.msra.gmra.mxu1 %vm11989_vm9, %v7906_v0  ;;  %7231 = vmatpush3.msra.mxu0 %v4469_v5  ;;  %vm12003_vm9 = vmmov %vm12001_vm0 }
 0x89f   :  { %7253 = vmatprep.mubr.msk.f32.mxu1 %vm11990_vm1, %v7907_v42  ;;  %7232 = vmatprep.mubr.msk.f32.mxu0 %vm11991_vm8, %v7908_v54  ;;  %vm12004_vm1 = vmmov %vm12001_vm0 }
 0x8a0   :  { %7233 = vmatmul.mubr.msk.f32.vlgmr.msra.gmra.mxu0 %vm11992_vm6, %v7909_v14  ;;  %vm12005_vm8 = vmmov %vm12001_vm0  ;;  %7288 = vmatprep.subr.mxu0 %v4787_v10 }
 0x8a1   :  { %7235 = vmatprep.mubr.msk.f32.mxu0 %vm11993_vm5, %v7910_v29  ;;  %7289 = vmatpush3.msra.mxu0 %v4787_v10  ;;  %vm12006_vm6 = vmmov %vm12001_vm0 }
 0x8a2   :  { %7254 = vmatmul.mubr.msk.f32.gmra.mxu1 %vm11994_vm13, %v7911_v45  ;;  %7290 = vmatprep.subr.mxu0 %v4786_v31  ;;  %vm12007_vm5 = vmmov %vm12001_vm0 }
 0x8a3   :  { %7264 = vmatprep.mubr.msk.f32.mxu1 %vm11995_vm4, %v8640_v55  ;;  %7291 = vmatpush3.msra.mxu0 %v4786_v31  ;;  %vm12008_vm13 = vmmov %vm12001_vm0 }
 0x8a4   :  { %7236 = vmatmul.mubr.msk.f32.gmra.mxu0 %vm11996_vm3, %v7912_v22  ;;  %vm12009_vm4 = vmmov %vm12001_vm0 }
 0x8a5   :  { %7238 = vmatprep.mubr.msk.f32.mxu0 %vm11997_vm12, %v7913_v49  ;;  %vm12010_vm3 = vmmov %vm12001_vm0 }
 0x8a6   :  { %vm12011_vm12 = vmmov %vm12001_vm0 }
 0x8a8   :  { %7239 = vmatmul.mubr.msk.f32.gmra.mxu0 %vm11998_vm7, %v7914_v18  ;;  %vm12012_vm7 = vmmov %vm12001_vm0 }
 0x8a9   :  { %7241 = vmatprep.mubr.msk.f32.mxu0 %vm11999_vm2, %v7915_v28  ;;  %vm12013_vm2 = vmmov %vm12001_vm0 }
 0x8ac   :  { %7242 = vmatmul.mubr.msk.f32.gmra.mxu0 %vm12000_vm15, %v7916_v47  ;;  %vm12014_vm15 = vmmov %vm12001_vm0 }
 0x8ad   :  { %7244 = vmatprep.mubr.msk.f32.mxu0 %vm12001_vm0, %v7917_v56 }
 0x8b0   :  { %7245 = vmatmul.mubr.msk.f32.gmra.mxu0 %vm12002_vm10, %v7918_v16  ;;  %vm12015_vm10 = vmmov %vm12001_vm0 }
 0x8b1   :  { %7247 = vmatprep.mubr.msk.f32.mxu0 %vm12003_vm9, %v7919_v32  ;;  %vm12016_vm9 = vmmov %vm12001_vm0 }
 0x8b4   :  { %7248 = vmatmul.mubr.msk.f32.gmra.mxu0 %vm12004_vm1, %v7920_v36  ;;  %vm12017_vm1 = vmmov %vm12001_vm0 }
 0x8b5   :  { %7292 = vmatprep.mubr.msk.f32.mxu0 %vm12005_vm8, %v7908_v54  ;;  %vm12018_vm8 = vmmov %vm12001_vm0 }
 0x8b8   :  { %7293 = vmatmul.mubr.msk.f32.vlgmr.msra.gmra.mxu0 %vm12006_vm6, %v7909_v14  ;;  %vm12019_vm6 = vmmov %vm12001_vm0 }
 0x8b9   :  { %7295 = vmatprep.mubr.msk.f32.mxu0 %vm12007_vm5, %v7910_v29  ;;  %vm12020_vm5 = vcmask 261120  }
 0x8bc   :  { %7296 = vmatmul.mubr.msk.f32.gmra.mxu0 %vm12008_vm13, %v7912_v22  ;;  %vm12021_vm13 = vmmov %vm12020_vm5 }
 0x8bd   :  { %7298 = vmatprep.mubr.msk.f32.mxu0 %vm12009_vm4, %v7913_v49  ;;  %vm12023_vm4 = vmmov %vm12020_vm5 }
 0x8c0   :  { %7299 = vmatmul.mubr.msk.f32.gmra.mxu0 %vm12010_vm3, %v7914_v18  ;;  %vm12024_vm3 = vmmov %vm12023_vm4 }
 0x8c1   :  { %7301 = vmatprep.mubr.msk.f32.mxu0 %vm12011_vm12, %v7915_v28  ;;  %vm12026_vm12 = vmmov %vm12024_vm3 }
 0x8c4   :  { %7302 = vmatmul.mubr.msk.f32.gmra.mxu0 %vm12012_vm7, %v7916_v47  ;;  %vm12028_vm7 = vmmov %vm12024_vm3 }
 0x8c5   :  { %7304 = vmatprep.mubr.msk.f32.mxu0 %vm12013_vm2, %v7917_v56  ;;  %vm12030_vm2 = vmmov %vm12024_vm3 }
 0x8c8   :  { %7305 = vmatmul.mubr.msk.f32.gmra.mxu0 %vm12014_vm15, %v7918_v16  ;;  %vm12032_vm15 = vmmov %vm12030_vm2 }
 0x8c9   :  { %7307 = vmatprep.mubr.msk.f32.mxu0 %vm12001_vm0, %v7919_v32  ;;  %vm12034_vm0 = vmmov %vm12030_vm2 }
 0x8cc   :  { %7308 = vmatmul.mubr.msk.f32.gmra.mxu0 %vm12015_vm10, %v7920_v36  ;;  %vm12036_vm10 = vmmov %vm12034_vm0 }
 0x8cd   :  { %7310 = vmatprep.mubr.msk.f32.mxu0 %vm12016_vm9, %v7905_v30  ;;  %vm12038_vm9 = vmmov %vm12034_vm0 }
 0x8d0   :  { %7311 = vmatmul.mubr.msk.f32.gmra.mxu0 %vm12017_vm1, %v7906_v0  ;;  %vm12040_vm1 = vmmov %vm12034_vm0 }
 0x8d1   :  { %7313 = vmatprep.mubr.msk.f32.mxu0 %vm12018_vm8, %v7907_v42  ;;  %vm12042_vm8 = vmmov %vm12034_vm0 }
 0x8d4   :  { %7314 = vmatmul.mubr.msk.f32.gmra.mxu0 %vm12019_vm6, %v7911_v45  ;;  %vm12044_vm6 = vmmov %vm12034_vm0 }
 0x8d5   :  { %7380 = vmatprep.mubr.msk.f32.mxu0 %vm9583_vm11, %v11974_v61  ;;  %vm12022_vm11 = vmmov %vm12020_vm5 }
 0x950   :  { %v7205_v9 = vpop.f32.mrf.mxu1  ;;  %v7194_v12 = vpop.f32.mrf.mxu0 }
 0x951   :  { %7256 = vmatprep.subr.mxu1 %v7205_v9 }
 0x952   :  { %v4299_v20 = vpop.f32.mrf.mxu1  ;;  %7257 = vmatpush3.msra.mxu1 %v7205_v9  ;;  %v4219_v40 = vpop.f32.mrf.mxu0 }
 0x953   :  { %7258 = vmatprep.subr.mxu1 %v4299_v20 }
 0x954   :  { %7259 = vmatpush3.msra.mxu1 %v4299_v20 }
 0x955   :  { %7260 = vmatprep.subr.mxu1 %v7194_v12 }
 0x956   :  { %7261 = vmatpush3.msra.mxu1 %v7194_v12 }
 0x957   :  { %7262 = vmatprep.subr.mxu1 %v4219_v40 }
 0x958   :  { %7263 = vmatpush3.msra.mxu1 %v4219_v40 }
 0x959   :  { %v7227_v53 = vpop.f32.mrf.mxu1  ;;  %7265 = vmatmul.mubr.msk.f32.vlgmr.msra.gmra.mxu1 %vm12020_vm5, %v8927_v34  ;;  %v7216_v3 = vpop.f32.mrf.mxu0  ;;  %vm12045_vm5 = vmmov %vm12034_vm0 }
 0x95a   :  { %7316 = vmatprep.subr.mxu1 %v7227_v53  ;;  %7267 = vmatprep.mubr.msk.f32.mxu1 %vm12021_vm13, %v8918_v59  ;;  %vm12046_vm13 = vmmov %vm12034_vm0 }
 0x95b   :  { %v4459_v46 = vpop.f32.mrf.mxu1  ;;  %7317 = vmatpush3.msra.mxu1 %v7227_v53  ;;  %v4379_v6 = vpop.f32.mrf.mxu0 }
 0x95c   :  { %7318 = vmatprep.subr.mxu1 %v4459_v46 }
 0x95d   :  { %7319 = vmatpush3.msra.mxu1 %v4459_v46 }
 0x95e   :  { %7268 = vmatmul.mubr.msk.f32.gmra.mxu1 %vm12022_vm11, %v8982_v48  ;;  %7320 = vmatprep.subr.mxu1 %v7216_v3  ;;  %vm12047_vm11 = vmmov %vm12034_vm0  ;;  %v10814_v41 = vpop.f32.mrf.mxu1 }
 0x95f   :  { %7270 = vmatprep.mubr.msk.f32.mxu1 %vm12023_vm4, %v8992_v51  ;;  %7321 = vmatpush3.msra.mxu1 %v7216_v3  ;;  %vm12048_vm4 = vmmov %vm12034_vm0 }
 0x960   :  { %7322 = vmatprep.subr.mxu1 %v4379_v6  ;;  %v10816_v37 = vpop.f32.mrf.mxu1 }
 0x961   :  { %7323 = vmatpush3.msra.mxu1 %v4379_v6 }
 0x962   :  { %7271 = vmatmul.mubr.msk.f32.gmra.mxu1 %vm12024_vm3, %v9014_v57  ;;  %7390 = vmatprep.subr.mxu1 %v12025_v38  ;;  %vm12049_vm3 = vmmov %vm12034_vm0  ;;  %v10820_v27 = vpop.f32.mrf.mxu1 }
 0x963   :  { %7273 = vmatprep.mubr.msk.f32.mxu1 %vm12026_vm12, %v11880_v21  ;;  %vm12050_vm12 = vmmov %vm12034_vm0 }
 0x964   :  { %v10824_v25 = vpop.f32.mrf.mxu1 }
 0x966   :  { %7274 = vmatmul.mubr.msk.f32.gmra.mxu1 %vm12028_vm7, %v12027_v23  ;;  %vm12051_vm7 = vmmov %vm12034_vm0 }
 0x967   :  { %7276 = vmatprep.mubr.msk.f32.mxu1 %vm12030_vm2, %v12029_v43  ;;  %vm12052_vm2 = vmmov %vm12034_vm0 }
 0x96a   :  { %7277 = vmatmul.mubr.msk.f32.gmra.mxu1 %vm12032_vm15, %v12031_v17  ;;  %vm12053_vm15 = vmmov %vm12034_vm0 }
 0x96b   :  { %7279 = vmatprep.mubr.msk.f32.mxu1 %vm12034_vm0, %v12033_v26 }
 0x96e   :  { %7280 = vmatmul.mubr.msk.f32.gmra.mxu1 %vm12036_vm10, %v12035_v11  ;;  %vm12054_vm10 = vmmov %vm12034_vm0 }
 0x96f   :  { %7282 = vmatprep.mubr.msk.f32.mxu1 %vm12038_vm9, %v12037_v63  ;;  %vm12055_vm9 = vmmov %vm12034_vm0 }
 0x972   :  { %7283 = vmatmul.mubr.msk.f32.gmra.mxu1 %vm12040_vm1, %v12039_v62  ;;  %vm12056_vm1 = vmmov %vm12034_vm0 }
 0x973   :  { %7285 = vmatprep.mubr.msk.f32.mxu1 %vm12042_vm8, %v12041_v1  ;;  %vm12057_vm8 = vmmov %vm12034_vm0 }
 0x976   :  { %7286 = vmatmul.mubr.msk.f32.gmra.mxu1 %vm12044_vm6, %v12043_v58  ;;  %vm12058_vm6 = vmmov %vm12034_vm0 }
 0x977   :  { %7324 = vmatprep.mubr.msk.f32.mxu1 %vm12045_vm5, %v8640_v55  ;;  %vm12059_vm5 = vmmov %vm12034_vm0  ;;  %v7234_v55 = vpop.f32.mrf.mxu0 }
 0x97a   :  { %7325 = vmatmul.mubr.msk.f32.vlgmr.msra.gmra.mxu1 %vm12046_vm13, %v8927_v34  ;;  %vm12060_vm13 = vmmov %vm12034_vm0 }
 0x97b   :  { %7327 = vmatprep.mubr.msk.f32.mxu1 %vm12047_vm11, %v8918_v59  ;;  %v4537_v59 = vpop.f32.mrf.mxu0  ;;  %vm12061_vm11 = vmmov %vm12034_vm0 }
 0x97d   :  { %v7237_v34 = vpop.f32.mrf.mxu0 }
 0x97e   :  { %7328 = vmatmul.mubr.msk.f32.gmra.mxu1 %vm12048_vm4, %v8982_v48  ;;  %vm12062_vm4 = vmmov %vm12034_vm0 }
 0x97f   :  { %7330 = vmatprep.mubr.msk.f32.mxu1 %vm12049_vm3, %v8992_v51  ;;  %v4547_v48 = vpop.f32.mrf.mxu0  ;;  %vm12063_vm3 = vmmov %vm12034_vm0 }
 0x981   :  { %v7240_v51 = vpop.f32.mrf.mxu0 }
 0x982   :  { %7331 = vmatmul.mubr.msk.f32.gmra.mxu1 %vm12050_vm12, %v9014_v57  ;;  %vm12064_vm12 = vmmov %vm12034_vm0 }
 0x983   :  { %7333 = vmatprep.mubr.msk.f32.mxu1 %vm12051_vm7, %v11880_v21  ;;  %v4557_v57 = vpop.f32.mrf.mxu0  ;;  %vm12065_vm7 = vmmov %vm12034_vm0 }
 0x985   :  { %v7243_v21 = vpop.f32.mrf.mxu0 }
 0x986   :  { %7334 = vmatmul.mubr.msk.f32.gmra.mxu1 %vm12052_vm2, %v12027_v23  ;;  %vm12066_vm2 = vmmov %vm12034_vm0 }
 0x987   :  { %7336 = vmatprep.mubr.msk.f32.mxu1 %vm12053_vm15, %v12029_v43  ;;  %v4567_v13 = vpop.f32.mrf.mxu0  ;;  %vm12067_vm15 = vmmov %vm12034_vm0 }
 0x989   :  { %v10818_v52 = vpop.f32.mrf.mxu0 }
 0x98a   :  { %7337 = vmatmul.mubr.msk.f32.gmra.mxu1 %vm12034_vm0, %v12031_v17 }
 0x98b   :  { %7339 = vmatprep.mubr.msk.f32.mxu1 %vm12054_vm10, %v12033_v26  ;;  %v10822_v35 = vpop.f32.mrf.mxu0  ;;  %vm12068_vm10 = vmmov %vm12034_vm0 }
 0x98d   :  { %v10826_v60 = vpop.f32.mrf.mxu0 }
 0x98e   :  { %7340 = vmatmul.mubr.msk.f32.gmra.mxu1 %vm12055_vm9, %v12035_v11  ;;  %vm12069_vm9 = vmmov %vm12034_vm0 }
 0x98f   :  { %7342 = vmatprep.mubr.msk.f32.mxu1 %vm12056_vm1, %v12037_v63  ;;  %v10830_v44 = vpop.f32.mrf.mxu0  ;;  %vm12070_vm1 = vmmov %vm12034_vm0 }
 0x991   :  { %v10838_v50 = vpop.f32.mrf.mxu0 }
 0x992   :  { %7343 = vmatmul.mubr.msk.f32.gmra.mxu1 %vm12057_vm8, %v12039_v62  ;;  %vm12071_vm8 = vmmov %vm12034_vm0 }
 0x993   :  { %7345 = vmatprep.mubr.msk.f32.mxu1 %vm12058_vm6, %v12041_v1  ;;  %v10849_v22 = vpop.f32.mrf.mxu0  ;;  %vm12072_vm6 = vmmov %vm12034_vm0 }
 0x995   :  { %v10867_v3 = vpop.f32.mrf.mxu0 }
 0x996   :  { %7346 = vmatmul.mubr.msk.f32.gmra.mxu1 %vm12059_vm5, %v12043_v58  ;;  %vm12073_vm5 = vmmov %vm12034_vm0 }
 0xa19   :  { %v7266_v8 = vpop.f32.mrf.mxu1 }
 0xa1a   :  { %v4688_v15 = vadd.f32 %v7266_v8, %v7234_v55 }
 0xa1b   :  { %v4682_v33 = vpop.f32.mrf.mxu1 }
 0xa1c   :  { %v4683_v7 = vadd.f32 %v4682_v33, %v4537_v59  ;;  %v10833_v24 = vadd.f32 %v10828_v4, %v4688_v15 }
 0xa1e   :  { %v10836_v2 = vadd.f32 %v10828_v4, %v4683_v7  ;;  %v7269_v39 = vpop.f32.mrf.mxu1  ;;  %v5145_v42 = vmul.f32 %v10833_v24, %v10833_v24  ;;  %v5107_v49 = vsel %vm12061_vm11, %v10833_v24, 0.0  ;;  %vm12075_vm11 = vmmov %vm12034_vm0 }
 0xa1f   :  { %v4698_v5 = vadd.f32 %v7269_v39, %v7237_v34 }
 0xa20   :  { %v5144_v30 = vmul.f32 %v10836_v2, %v10836_v2  ;;  %v4692_v0 = vpop.f32.mrf.mxu1  ;;  %v5106_v54 = vsel %vm12060_vm13, %v10836_v2, 0.0  ;;  %v5161_v36 = vsel %vm12063_vm3, %v5145_v42, 0.0  ;;  %vm12074_vm13 = vmmov %vm12034_vm0 }
 0xa21   :  { %v10847_v14 = vadd.f32 %v10828_v4, %v4698_v5  ;;  %v4693_v29 = vadd.f32 %v4692_v0, %v4547_v48  ;;  %v5108_v47 = vadd.f32 %v5107_v49, %v5106_v54  ;;  %vm12077_vm3 = vmmov %vm12034_vm0 }
 0xa22   :  { %v7272_v45 = vpop.f32.mrf.mxu1  ;;  %v5160_v18 = vsel %vm12062_vm4, %v5144_v30, 0.0  ;;  %vm12076_vm4 = vmmov %vm12034_vm0 }
 0xa23   :  { %v10855_v28 = vadd.f32 %v10828_v4, %v4693_v29  ;;  %v5147_v56 = vmul.f32 %v10847_v14, %v10847_v14  ;;  %v4708_v16 = vadd.f32 %v7272_v45, %v7240_v51  ;;  %v5162_v12 = vadd.f32 %v5161_v36, %v5160_v18 }
 0xa24   :  { %v4702_v32 = vpop.f32.mrf.mxu1  ;;  %v5111_v46 = vsel %vm12065_vm7, %v10847_v14, 0.0  ;;  %vm12079_vm7 = vmmov %vm12034_vm0 }
 0xa25   :  { %v5109_v10 = vsel %vm12064_vm12, %v10855_v28, 0.0  ;;  %v5146_v31 = vmul.f32 %v10855_v28, %v10855_v28  ;;  %v4703_v9 = vadd.f32 %v4702_v32, %v4557_v57  ;;  %v10865_v40 = vadd.f32 %v10828_v4, %v4708_v16  ;;  %v10885_v57 = vpop.f32.mrf.mxu0  ;;  %vm12078_vm12 = vmmov %vm12034_vm0 }
 0xa26   :  { %v5110_v20 = vadd.f32 %v5109_v10, %v5108_v47  ;;  %v7275_v53 = vpop.f32.mrf.mxu1  ;;  %v5165_v17 = vsel %vm12067_vm15, %v5147_v56, 0.0  ;;  %vm12081_vm15 = vmmov %vm12034_vm0 }
 0xa27   :  { %v5163_v6 = vsel %vm12066_vm2, %v5146_v31, 0.0  ;;  %v10873_v23 = vadd.f32 %v10828_v4, %v4703_v9  ;;  %v4718_v43 = vadd.f32 %v7275_v53, %v7243_v21  ;;  %v5149_v11 = vmul.f32 %v10865_v40, %v10865_v40  ;;  %v10905_v47 = vpop.f32.mrf.mxu0  ;;  %vm12080_vm2 = vmmov %vm12034_vm0 }
 0xa28   :  { %v5164_v26 = vadd.f32 %v5163_v6, %v5162_v12  ;;  %v5112_v63 = vadd.f32 %v5111_v46, %v5110_v20  ;;  %v4712_v62 = vpop.f32.mrf.mxu1  ;;  %v5115_v21 = vsel %vm12068_vm10, %v10865_v40, 0.0  ;;  %vm12082_vm10 = vmmov %vm12034_vm0 }
 0xa29   :  { %v5113_v1 = vsel %vm12034_vm0, %v10873_v23, 0.0  ;;  %v5148_v58 = vmul.f32 %v10873_v23, %v10873_v23  ;;  %v10883_v55 = vadd.f32 %v10828_v4, %v4718_v43  ;;  %v4713_v59 = vadd.f32 %v4712_v62, %v4567_v13 }
 0xa2a   :  { %v5114_v34 = vadd.f32 %v5113_v1, %v5112_v63  ;;  %v5166_v48 = vadd.f32 %v5165_v17, %v5164_v26  ;;  %v7278_v51 = vpop.f32.mrf.mxu1  ;;  %v5169_v30 = vsel %vm12070_vm1, %v5149_v11, 0.0  ;;  %v10925_v17 = vpop.f32.mrf.mxu0  ;;  %vm12084_vm1 = vmmov %vm12034_vm0 }
 0xa2b   :  { %v5167_v8 = vsel %vm12069_vm9, %v5148_v58, 0.0  ;;  %v10891_v15 = vadd.f32 %v10828_v4, %v4713_v59  ;;  %v5151_v7 = vmul.f32 %v10883_v55, %v10883_v55  ;;  %v4728_v13 = vadd.f32 %v7278_v51, %v10818_v52  ;;  %vm12083_vm9 = vmmov %vm12034_vm0 }
 0xa2c   :  { %v5168_v33 = vadd.f32 %v5167_v8, %v5166_v48  ;;  %v5116_v39 = vadd.f32 %v5115_v21, %v5114_v34  ;;  %v4722_v5 = vpop.f32.mrf.mxu1  ;;  %v5119_v52 = vsel %vm12072_vm6, %v10883_v55, 0.0  ;;  %vm12086_vm6 = vmmov %vm12034_vm0 }
 0xa2d   :  { %v5117_v0 = vsel %vm12071_vm8, %v10891_v15, 0.0  ;;  %v5150_v42 = vmul.f32 %v10891_v15, %v10891_v15  ;;  %v4723_v54 = vadd.f32 %v4722_v5, %v10822_v35  ;;  %v10903_v49 = vadd.f32 %v10828_v4, %v4728_v13  ;;  %v10945_v13 = vpop.f32.mrf.mxu0  ;;  %vm12085_vm8 = vmmov %vm12034_vm0 }
 0xa2e   :  { %v5118_v29 = vadd.f32 %v5117_v0, %v5116_v39  ;;  %v5170_v45 = vadd.f32 %v5169_v30, %v5168_v33  ;;  %v7281_v18 = vpop.f32.mrf.mxu1  ;;  %v5173_v35 = vsel %vm12074_vm13, %v5151_v7, 0.0  ;;  %vm12088_vm13 = vmmov %vm12034_vm0 }
 0xa2f   :  { %v5171_v56 = vsel %vm12073_vm5, %v5150_v42, 0.0  ;;  %v10911_v16 = vadd.f32 %v10828_v4, %v4723_v54  ;;  %v4738_v32 = vadd.f32 %v7281_v18, %v10826_v60  ;;  %v5153_v10 = vmul.f32 %v10903_v49, %v10903_v49  ;;  %vm12087_vm5 = vmmov %vm12034_vm0 }
 0xa30   :  { %v5172_v36 = vadd.f32 %v5171_v56, %v5170_v45  ;;  %v5120_v31 = vadd.f32 %v5119_v52, %v5118_v29  ;;  %v4732_v9 = vpop.f32.mrf.mxu1  ;;  %v5123_v26 = vsel %vm12076_vm4, %v10903_v49, 0.0  ;;  %vm12090_vm4 = vmmov %vm12034_vm0 }
 0xa31   :  { %v5121_v12 = vsel %vm12075_vm11, %v10911_v16, 0.0  ;;  %v5152_v20 = vmul.f32 %v10911_v16, %v10911_v16  ;;  %v10922_v53 = vadd.f32 %v10828_v4, %v4738_v32  ;;  %v4733_v46 = vadd.f32 %v4732_v9, %v10830_v44  ;;  %vm12089_vm11 = vmmov %vm12034_vm0 }
 0xa32   :  { %v5122_v60 = vadd.f32 %v5121_v12, %v5120_v31  ;;  %v5174_v6 = vadd.f32 %v5173_v35, %v5172_v36  ;;  %v7284_v43 = vpop.f32.mrf.mxu1  ;;  %v5177_v34 = vsel %vm12078_vm12, %v5153_v10, 0.0  ;;  %v10965_v10 = vpop.f32.mrf.mxu0  ;;  %vm12092_vm12 = vmmov %vm12034_vm0 }
 0xa33   :  { %v5175_v11 = vsel %vm12077_vm3, %v5152_v20, 0.0  ;;  %v10931_v63 = vadd.f32 %v10828_v4, %v4733_v46  ;;  %v5155_v1 = vmul.f32 %v10922_v53, %v10922_v53  ;;  %v4748_v44 = vadd.f32 %v7284_v43, %v10814_v41  ;;  %v10973_v20 = vld [vmem:[#allocation16 + $0x2] ss:$0 sm:$0xff]  ;;  %vm12091_vm3 = vmmov %vm12034_vm0 }
 0xa34   :  { %v5176_v62 = vadd.f32 %v5175_v11, %v5174_v6  ;;  %v5124_v58 = vadd.f32 %v5123_v26, %v5122_v60  ;;  %v4742_v59 = vpop.f32.mrf.mxu1  ;;  %v5127_v41 = vsel %vm12080_vm2, %v10922_v53, 0.0  ;;  %vm12094_vm2 = vmmov %vm12034_vm0 }
 0xa35   :  { %v5125_v48 = vsel %vm12079_vm7, %v10931_v63, 0.0  ;;  %v5154_v51 = vmul.f32 %v10931_v63, %v10931_v63  ;;  %v4743_v21 = vadd.f32 %v4742_v59, %v10816_v37  ;;  %v10943_v7 = vadd.f32 %v10828_v4, %v4748_v44  ;;  %vm12093_vm7 = vmmov %vm12034_vm0 }
 0xa36   :  { %v5126_v8 = vadd.f32 %v5125_v48, %v5124_v58  ;;  %v5178_v33 = vadd.f32 %v5177_v34, %v5176_v62  ;;  %v7287_v39 = vpop.f32.mrf.mxu1  ;;  %v5181_v37 = vsel %vm12034_vm0, %v5155_v1, 0.0  ;;  %v10987_v34 = vpop.f32.mrf.mxu0 }
 0xa37   :  { %v5179_v5 = vsel %vm12081_vm15, %v5154_v51, 0.0  ;;  %v10951_v30 = vadd.f32 %v10828_v4, %v4743_v21  ;;  %v4758_v0 = vadd.f32 %v7287_v39, %v10820_v27  ;;  %v5157_v54 = vmul.f32 %v10943_v7, %v10943_v7  ;;  %vm12095_vm15 = vmmov %vm12034_vm0 }
 0xa38   :  { %v5180_v42 = vadd.f32 %v5179_v5, %v5178_v33  ;;  %v5128_v29 = vadd.f32 %v5127_v41, %v5126_v8  ;;  %v4752_v45 = vpop.f32.mrf.mxu1  ;;  %v5131_v31 = vsel %vm12083_vm9, %v10943_v7, 0.0  ;;  %vm12097_vm9 = vmmov %vm12034_vm0 }
 0xa39   :  { %v5129_v18 = vsel %vm12082_vm10, %v10951_v30, 0.0  ;;  %v5156_v52 = vmul.f32 %v10951_v30, %v10951_v30  ;;  %v10962_v56 = vadd.f32 %v10828_v4, %v4758_v0  ;;  %v4753_v32 = vadd.f32 %v4752_v45, %v10824_v25  ;;  %vm12096_vm10 = vmmov %vm12034_vm0 }
 0xa3a   :  { %v5130_v27 = vadd.f32 %v5129_v18, %v5128_v29  ;;  %v5182_v35 = vadd.f32 %v5181_v37, %v5180_v42  ;;  %v7326_v36 = vpop.f32.mrf.mxu1  ;;  %v5185_v26 = vsel %vm12085_vm8, %v5157_v54, 0.0  ;;  %v4894_v18 = vpop.f32.mrf.mxu0  ;;  %vm12099_vm8 = vmmov %vm12034_vm0 }
 0xa3b   :  { %v5183_v9 = vsel %vm12084_vm1, %v5156_v52, 0.0  ;;  %v10971_v12 = vadd.f32 %v10828_v4, %v4753_v32  ;;  %v5159_v60 = vmul.f32 %v10962_v56, %v10962_v56  ;;  %v5005_v6 = vadd.f32 %v7326_v36, %v10838_v50  ;;  %vm12098_vm1 = vmmov %vm12034_vm0 }
 0xa3c   :  { %v5184_v46 = vadd.f32 %v5183_v9, %v5182_v35  ;;  %v5132_v25 = vadd.f32 %v5131_v31, %v5130_v27  ;;  %v4999_v43 = vpop.f32.mrf.mxu1  ;;  %v5135_v50 = vsel %vm12087_vm5, %v10962_v56, 0.0  ;;  %vm12101_vm5 = vmmov %vm12034_vm0 }
 0xa3d   :  { %v5133_v11 = vsel %vm12086_vm6, %v10971_v12, 0.0  ;;  %v5158_v62 = vmul.f32 %v10971_v12, %v10971_v12  ;;  %v5000_v4 = vadd.f32 %v4999_v43, %v10849_v22  ;;  %v10985_v44 = vadd.f32 %v10973_v20, %v5005_v6  ;;  %vm12100_vm6 = vmmov %vm12034_vm0 }
 0xa3e   :  { %v5134_v1 = vadd.f32 %v5133_v11, %v5132_v25  ;;  %v5186_v58 = vadd.f32 %v5185_v26, %v5184_v46  ;;  %v7329_v59 = vpop.f32.mrf.mxu1  ;;  %v5189_v22 = vsel %vm12089_vm11, %v5159_v60, 0.0  ;;  %vm12103_vm11 = vmmov %vm12034_vm0 }
 0xa3f   :  { %v5187_v48 = vsel %vm12088_vm13, %v5158_v62, 0.0  ;;  %v10993_v51 = vadd.f32 %v10973_v20, %v5000_v4  ;;  %v5015_v21 = vadd.f32 %v7329_v59, %v10867_v3  ;;  %v5322_v39 = vmul.f32 %v10985_v44, %v10985_v44  ;;  %vm12102_vm13 = vmmov %vm12034_vm0 }
 0xa40   :  { %v5136_v8 = vadd.f32 %v5135_v50, %v5134_v1  ;;  %v5188_v33 = vadd.f32 %v5187_v48, %v5186_v58  ;;  %v5009_v41 = vpop.f32.mrf.mxu1  ;;  %v5284_v29 = vsel %vm12091_vm3, %v10985_v44, 0.0  ;;  %v7309_v58 = vpop.f32.mrf.mxu0  ;;  %vm12105_vm3 = vmmov %vm12034_vm0 }
 0xa41   :  { %v5283_v5 = vsel %vm12090_vm4, %v10993_v51, 0.0  ;;  %v5321_v0 = vmul.f32 %v10993_v51, %v10993_v51  ;;  %v11004_v37 = vadd.f32 %v10973_v20, %v5015_v21  ;;  %v5010_v42 = vadd.f32 %v5009_v41, %v10885_v57  ;;  %vm12104_vm4 = vmmov %vm12034_vm0 }
 0xa42   :  { %v5137_v3 = vrot.slane %v5136_v8, 4  ;;  %v5190_v54 = vadd.f32 %v5189_v22, %v5188_v33  ;;  %v7332_v45 = vpop.f32.mrf.mxu1  ;;  %v5338_v52 = vsel %vm12092_vm12, %v5322_v39, 0.0  ;;  %v5285_v32 = vadd.f32 %v5284_v29, %v5283_v5  ;;  %vm12106_vm12 = vmmov %vm12034_vm0 }
 0xa43   :  { %v5337_v27 = vsel %vm12093_vm7, %v5321_v0, 0.0  ;;  %v11012_v35 = vadd.f32 %v10973_v20, %v5010_v42  ;;  %v5324_v57 = vmul.f32 %v11004_v37, %v11004_v37  ;;  %v5025_v9 = vadd.f32 %v7332_v45, %v10905_v47  ;;  %v4904_v45 = vpop.f32.mrf.mxu0  ;;  %vm12107_vm7 = vmmov %vm12034_vm0 }
 0xa44   :  { %v5138_v36 = vadd.f32 %v5137_v3, %v5136_v8  ;;  %v5191_v31 = vrot.slane %v5190_v54, 4  ;;  %v5019_v46 = vpop.f32.mrf.mxu1  ;;  %v5339_v60 = vadd.f32 %v5338_v52, %v5337_v27  ;;  %v5288_v47 = vsel %vm12095_vm15, %v11004_v37, 0.0  ;;  %vm12109_vm15 = vmmov %vm12034_vm0 }
 0xa45   :  { %v5286_v25 = vsel %vm12094_vm2, %v11012_v35, 0.0  ;;  %v5323_v6 = vmul.f32 %v11012_v35, %v11012_v35  ;;  %v5020_v43 = vadd.f32 %v5019_v46, %v10925_v17  ;;  %v11023_v4 = vadd.f32 %v10973_v20, %v5025_v9  ;;  %vm12108_vm2 = vmmov %vm12034_vm0 }
 0xa46   :  { %v5139_v26 = vrot.slane %v5138_v36, 2  ;;  %v5192_v11 = vadd.f32 %v5191_v31, %v5190_v54  ;;  %v5287_v62 = vadd.f32 %v5286_v25, %v5285_v32  ;;  %v7335_v1 = vpop.f32.mrf.mxu1  ;;  %v5342_v22 = vsel %vm12096_vm10, %v5324_v57, 0.0  ;;  %vm12110_vm10 = vmmov %vm12034_vm0 }
 0xa47   :  { %v5340_v59 = vsel %vm12034_vm0, %v5323_v6, 0.0  ;;  %v11029_v50 = vadd.f32 %v10973_v20, %v5020_v43  ;;  %v5035_v48 = vadd.f32 %v7335_v1, %v10945_v13  ;;  %v5326_v39 = vmul.f32 %v11023_v4, %v11023_v4 }
 0xa48   :  { %v5140_v21 = vadd.f32 %v5139_v26, %v5138_v36  ;;  %v5193_v17 = vrot.slane %v5192_v11, 2  ;;  %v5341_v8 = vadd.f32 %v5340_v59, %v5339_v60  ;;  %v5029_v33 = vpop.f32.mrf.mxu1  ;;  %v5289_v41 = vadd.f32 %v5288_v47, %v5287_v62  ;;  %v7312_v59 = vpop.f32.mrf.mxu0 }
 0xa49   :  { %v5290_v5 = vsel %vm12097_vm9, %v11029_v50, 0.0  ;;  %v5325_v0 = vmul.f32 %v11029_v50, %v11029_v50  ;;  %v11040_v13 = vadd.f32 %v10973_v20, %v5035_v48  ;;  %v5292_v52 = vsel %vm12098_vm1, %v11023_v4, 0.0  ;;  %vm12111_vm9 = vmmov %vm12034_vm0 }
 0xa4a   :  { %v5141_v42 = vrot.slane %v5140_v21, 1  ;;  %v5194_v3 = vadd.f32 %v5193_v17, %v5192_v11  ;;  %v5343_v54 = vadd.f32 %v5342_v22, %v5341_v8  ;;  %v7338_v29 = vpop.f32.mrf.mxu1  ;;  %v5291_v32 = vadd.f32 %v5290_v5, %v5289_v41  ;;  %vm12112_vm1 = vmmov %vm12034_vm0 }
 0xa4b   :  { %v5344_v27 = vsel %vm12099_vm8, %v5325_v0, 0.0  ;;  %v5030_v36 = vadd.f32 %v5029_v33, %v10965_v10  ;;  %v5346_v9 = vsel %vm12100_vm6, %v5326_v39, 0.0  ;;  %v5328_v25 = vmul.f32 %v11040_v13, %v11040_v13  ;;  %vm12113_vm8 = vmmov %vm12034_vm0 }
 0xa4c   :  { %v5142_v31 = vadd.f32 %v5141_v42, %v5140_v21  ;;  %v5195_v57 = vrot.slane %v5194_v3, 1  ;;  %v5345_v46 = vadd.f32 %v5344_v27, %v5343_v54  ;;  %v5039_v60 = vpop.f32.mrf.mxu1  ;;  %v5293_v43 = vadd.f32 %v5292_v52, %v5291_v32  ;;  %v4914_v52 = vpop.f32.mrf.mxu0  ;;  %vm12114_vm6 = vmmov %vm12034_vm0 }
 0xa4d   :  { %v11050_v6 = vadd.f32 %v10973_v20, %v5030_v36  ;;  %v5045_v26 = vadd.f32 %v7338_v29, %v10987_v34  ;;  %v5040_v10 = vadd.f32 %v5039_v60, %v4894_v18  ;;  %v5296_v8 = vsel %vm12102_vm13, %v11040_v13, 0.0  ;;  %vm12116_vm13 = vmmov %vm12034_vm0 }
 0xa4e   :  { %v11053_v11 = vmul.f32 0.0078125, %v5142_v31  ;;  %v5196_v62 = vadd.f32 %v5195_v57, %v5194_v3  ;;  %v5347_v1 = vadd.f32 %v5346_v9, %v5345_v46  ;;  %v7341_v47 = vpop.f32.mrf.mxu1  ;;  %v5350_v39 = vsel %vm12103_vm11, %v5328_v25, 0.0  ;;  %vm12117_vm11 = vmmov %vm12034_vm0 }
 0xa4f   :  { %v5294_v48 = vsel %vm12101_vm5, %v11050_v6, 0.0  ;;  %v5327_v21 = vmul.f32 %v11050_v6, %v11050_v6  ;;  %v11060_v17 = vadd.f32 %v10973_v20, %v5045_v26  ;;  %v11071_v0 = vadd.f32 %v10973_v20, %v5040_v10  ;;  %vm12115_vm5 = vmmov %vm12034_vm0 }
 0xa50   :  { %v5197_v22 = vmul.f32 0.0078125, %v5196_v62  ;;  %v5198_v34 = vmul.f32 %v11053_v11, %v11053_v11  ;;  %v5295_v33 = vadd.f32 %v5294_v48, %v5293_v43  ;;  %v5049_v18 = vpop.f32.mrf.mxu1  ;;  %v5055_v29 = vadd.f32 %v7341_v47, %v7309_v58 }
 0xa51   :  { %v5348_v41 = vsel %vm12104_vm4, %v5327_v21, 0.0  ;;  %v5330_v5 = vmul.f32 %v11060_v17, %v11060_v17  ;;  %v5300_v27 = vsel %vm12105_vm3, %v11060_v17, 0.0  ;;  %v5298_v36 = vsel %vm12106_vm12, %v11071_v0, 0.0  ;;  %v7315_v21 = vpop.f32.mrf.mxu0  ;;  %vm12118_vm4 = vmmov %vm12034_vm0 }
 0xa52   :  { %v5199_v42 = vsub.f32 %v5197_v22, %v5198_v34  ;;  %v5349_v3 = vadd.f32 %v5348_v41, %v5347_v1  ;;  %v5297_v54 = vadd.f32 %v5296_v8, %v5295_v33  ;;  %v7344_v32 = vpop.f32.mrf.mxu1  ;;  %v5329_v31 = vmul.f32 %v11071_v0, %v11071_v0  ;;  %vm12119_vm3 = vmmov %vm12034_vm0 }
 0xa53   :  { %v5050_v57 = vadd.f32 %v5049_v18, %v4904_v45  ;;  %v11080_v25 = vadd.f32 %v10973_v20, %v5055_v29  ;;  %v5065_v62 = vadd.f32 %v7344_v32, %v7312_v59  ;;  %v5354_v47 = vsel %vm12108_vm2, %v5330_v5, 0.0 }
 0xa54   :  { %v5200_v9 = vmax.f32 %v5199_v42, 0.0  ;;  %v5299_v46 = vadd.f32 %v5298_v36, %v5297_v54  ;;  %v5351_v60 = vadd.f32 %v5350_v39, %v5349_v3  ;;  %v5059_v43 = vpop.f32.mrf.mxu1  ;;  %v5352_v58 = vsel %vm12107_vm7, %v5329_v31, 0.0 }
 0xa55   :  { %v11084_v26 = vadd.f32 %v10973_v20, %v5050_v57  ;;  %v5060_v1 = vadd.f32 %v5059_v43, %v4914_v52  ;;  %v5332_v45 = vmul.f32 %v11080_v25, %v11080_v25  ;;  %v11094_v18 = vadd.f32 %v10973_v20, %v5065_v62 }
 0xa56   :  { %v5217_v10 = vadd.f32 1e-05, %v5200_v9  ;;  %v5353_v48 = vadd.f32 %v5352_v58, %v5351_v60  ;;  %v7347_v22 = vpop.f32.mrf.mxu1  ;;  %v5301_v34 = vadd.f32 %v5300_v27, %v5299_v46  ;;  %v5304_v5 = vsel %vm12034_vm0, %v11080_v25, 0.0  ;;  %v4924_v27 = vpop.f32.mrf.mxu0 }
 0xa57   :  { %v5302_v8 = vsel %vm12109_vm15, %v11084_v26, 0.0  ;;  %v5331_v33 = vmul.f32 %v11084_v26, %v11084_v26  ;;  %v11097_v39 = vadd.f32 %v10973_v20, %v5060_v1  ;;  %v5334_v54 = vmul.f32 %v11094_v18, %v11094_v18 }
 0xa58   :  { %7735 = vrsqrt.f32 %v5217_v10  ;;  %v5355_v59 = vadd.f32 %v5354_v47, %v5353_v48  ;;  %v5069_v41 = vpop.f32.mrf.mxu1  ;;  %v5303_v42 = vadd.f32 %v5302_v8, %v5301_v34  ;;  %v5075_v36 = vadd.f32 %v7347_v22, %v7315_v21 }
 0xa59   :  { %v5356_v3 = vsel %vm12110_vm10, %v5331_v33, 0.0  ;;  %v5306_v52 = vsel %vm12111_vm9, %v11097_v39, 0.0  ;;  %v5333_v32 = vmul.f32 %v11097_v39, %v11097_v39  ;;  %v5358_v31 = vsel %vm12112_vm1, %v5332_v45, 0.0 }
 0xa5a   :  { %v5357_v29 = vadd.f32 %v5356_v3, %v5355_v59  ;;  %v5305_v57 = vadd.f32 %v5304_v5, %v5303_v42  ;;  %v5070_v9 = vadd.f32 %v5069_v41, %v4924_v27  ;;  %v11111_v43 = vadd.f32 %v10973_v20, %v5075_v36 }
 0xa5b   :  { %v5360_v60 = vsel %vm12113_vm8, %v5333_v32, 0.0  ;;  %v5308_v1 = vsel %vm12114_vm6, %v11094_v18, 0.0  ;;  %v5362_v10 = vsel %vm12115_vm5, %v5334_v54, 0.0  ;;  %v5209_v8 = vsub.f32 %v10911_v16, %v11053_v11 }
 0xa5c   :  { %v5359_v46 = vadd.f32 %v5358_v31, %v5357_v29  ;;  %v5307_v58 = vadd.f32 %v5306_v52, %v5305_v57  ;;  %v11114_v62 = vadd.f32 %v10973_v20, %v5070_v9  ;;  %v5336_v48 = vmul.f32 %v11111_v43, %v11111_v43 }
 0xa5d   :  { %v5312_v20 = vsel %vm12117_vm11, %v11111_v43, 0.0  ;;  %v5208_v33 = vsub.f32 %v10883_v55, %v11053_v11  ;;  %v5207_v5 = vsub.f32 %v10891_v15, %v11053_v11  ;;  %v5206_v42 = vsub.f32 %v10865_v40, %v11053_v11 }
 0xa5e   :  { %v5361_v47 = vadd.f32 %v5360_v60, %v5359_v46  ;;  %v5309_v45 = vadd.f32 %v5308_v1, %v5307_v58  ;;  %v5310_v21 = vsel %vm12116_vm13, %v11114_v62, 0.0  ;;  %v5335_v22 = vmul.f32 %v11114_v62, %v11114_v62  ;;  %v11151_v60 = vld [vmem:[#allocation18 + $0x2] ss:$0 sm:$0xff] }
 0xa5f   :  { %v5205_v54 = vsub.f32 %v10873_v23, %v11053_v11  ;;  %v5204_v29 = vsub.f32 %v10847_v14, %v11053_v11  ;;  %v5366_v32 = vsel %vm12119_vm3, %v5336_v48, 0.0  ;;  %v5215_v36 = vsub.f32 %v10971_v12, %v11053_v11 }
 0xa60   :  { %v5363_v34 = vadd.f32 %v5362_v10, %v5361_v47  ;;  %v5311_v59 = vadd.f32 %v5310_v21, %v5309_v45  ;;  %v5364_v41 = vsel %vm12118_vm4, %v5335_v22, 0.0  ;;  %v5216_v57 = vsub.f32 %v10962_v56, %v11053_v11  ;;  %v11162_v45 = vld [vmem:[#allocation21 + $0x2] ss:$0 sm:$0xff] }
 0xa61   :  { %v5214_v9 = vsub.f32 %v10943_v7, %v11053_v11  ;;  %v5213_v1 = vsub.f32 %v10951_v30, %v11053_v11  ;;  %v5212_v10 = vsub.f32 %v10922_v53, %v11053_v11  ;;  %v5211_v12 = vsub.f32 %v10931_v63, %v11053_v11 }
 0xa62   :  { %v5365_v3 = vadd.f32 %v5364_v41, %v5363_v34  ;;  %v5313_v27 = vadd.f32 %v5312_v20, %v5311_v59 }
 0xa64   :  { %v5367_v31 = vadd.f32 %v5366_v32, %v5365_v3  ;;  %v5314_v58 = vrot.slane %v5313_v27, 4 }
 0xa65   :  { %v11149_v46 = vpop.eup %7735 }
 0xa66   :  { %v5233_v47 = vmul.f32 %v11149_v46, %v5215_v36  ;;  %v5368_v56 = vrot.slane %v5367_v31, 4  ;;  %v5234_v48 = vmul.f32 %v11149_v46, %v5216_v57  ;;  %v5232_v7 = vmul.f32 %v11149_v46, %v5214_v9 }
 0xa67   :  { %v5315_v21 = vadd.f32 %v5314_v58, %v5313_v27  ;;  %v5231_v22 = vmul.f32 %v11149_v46, %v5213_v1  ;;  %v5230_v30 = vmul.f32 %v11149_v46, %v5212_v10  ;;  %v5229_v20 = vmul.f32 %v11149_v46, %v5211_v12 }
 0xa68   :  { %v5255_v53 = vmul.f32 %v11151_v60, %v5233_v47  ;;  %v5369_v34 = vadd.f32 %v5368_v56, %v5367_v31  ;;  %v5256_v63 = vmul.f32 %v11151_v60, %v5234_v48  ;;  %v5254_v59 = vmul.f32 %v11151_v60, %v5232_v7 }
 0xa69   :  { %v5316_v41 = vrot.slane %v5315_v21, 2  ;;  %v5253_v3 = vmul.f32 %v11151_v60, %v5231_v22  ;;  %v5252_v32 = vmul.f32 %v11151_v60, %v5230_v30  ;;  %v5251_v27 = vmul.f32 %v11151_v60, %v5229_v20 }
 0xa6a   :  { %v5277_v36 = vadd.f32 %v11162_v45, %v5255_v53  ;;  %v5370_v57 = vrot.slane %v5369_v34, 2  ;;  %v5278_v9 = vadd.f32 %v11162_v45, %v5256_v63  ;;  %v5276_v58 = vadd.f32 %v11162_v45, %v5254_v59 }
 0xa6b   :  { %v5317_v1 = vadd.f32 %v5316_v41, %v5315_v21  ;;  %v5275_v31 = vadd.f32 %v11162_v45, %v5253_v3  ;;  %v5274_v10 = vadd.f32 %v11162_v45, %v5252_v32  ;;  %v5273_v48 = vadd.f32 %v11162_v45, %v5251_v27 }
 0xa6c   :  { %v5470_v12 = vsub.f32 0.0, %v5277_v36  ;;  %v5371_v47 = vadd.f32 %v5370_v57, %v5369_v34  ;;  %v5471_v56 = vsub.f32 0.0, %v5278_v9  ;;  %v5469_v22 = vsub.f32 0.0, %v5276_v58 }
 0xa6d   :  { %v5318_v7 = vrot.slane %v5317_v1, 1  ;;  %v5210_v30 = vsub.f32 %v10903_v49, %v11053_v11  ;;  %v5468_v63 = vsub.f32 0.0, %v5275_v31  ;;  %v5467_v21 = vsub.f32 0.0, %v5274_v10 }
 0xa6e   :  { %v5500_v20 = vmul.f32 1.442695, %v5470_v12  ;;  %v5372_v53 = vrot.slane %v5371_v47, 1  ;;  %v5502_v59 = vmul.f32 1.442695, %v5471_v56  ;;  %v5466_v32 = vsub.f32 0.0, %v5273_v48 }
 0xa6f   :  { %v5319_v52 = vadd.f32 %v5318_v7, %v5317_v1  ;;  %v5228_v41 = vmul.f32 %v11149_v46, %v5210_v30  ;;  %v5498_v34 = vmul.f32 1.442695, %v5469_v22  ;;  %v5227_v27 = vmul.f32 %v11149_v46, %v5209_v8 }
 0xa70   :  { %v5373_v3 = vadd.f32 %v5372_v53, %v5371_v47  ;;  %v5226_v49 = vmul.f32 %v11149_v46, %v5208_v33  ;;  %7737 = vpow2.f32 %v5500_v20  ;;  %v5496_v9 = vmul.f32 1.442695, %v5468_v63 }
 0xa71   :  { %v11182_v36 = vmul.f32 0.0078125, %v5319_v52  ;;  %v5225_v52 = vmul.f32 %v11149_v46, %v5207_v5  ;;  %7739 = vpow2.f32 %v5502_v59  ;;  %v5494_v16 = vmul.f32 1.442695, %v5467_v21 }
 0xa72   :  { %v5374_v57 = vmul.f32 0.0078125, %v5373_v3  ;;  %v5250_v8 = vmul.f32 %v11151_v60, %v5228_v41  ;;  %v5492_v1 = vmul.f32 1.442695, %v5466_v32  ;;  %7741 = vpow2.f32 %v5498_v34 }
 0xa73   :  { %v5375_v58 = vmul.f32 %v11182_v36, %v11182_v36  ;;  %7743 = vpow2.f32 %v5496_v9  ;;  %v5249_v55 = vmul.f32 %v11151_v60, %v5227_v27  ;;  %v5248_v33 = vmul.f32 %v11151_v60, %v5226_v49 }
 0xa74   :  { %7745 = vpow2.f32 %v5494_v16  ;;  %v5272_v15 = vadd.f32 %v11162_v45, %v5250_v8  ;;  %v5247_v12 = vmul.f32 %v11151_v60, %v5225_v52  ;;  %v5224_v47 = vmul.f32 %v11149_v46, %v5206_v42 }
 0xa75   :  { %v5376_v31 = vsub.f32 %v5374_v57, %v5375_v58  ;;  %7747 = vpow2.f32 %v5492_v1  ;;  %v5271_v5 = vadd.f32 %v11162_v45, %v5249_v55  ;;  %v5270_v48 = vadd.f32 %v11162_v45, %v5248_v33 }
 0xa76   :  { %v5246_v7 = vmul.f32 %v11151_v60, %v5224_v47  ;;  %v5223_v22 = vmul.f32 %v11149_v46, %v5205_v54  ;;  %v5465_v30 = vsub.f32 0.0, %v5272_v15  ;;  %v5222_v20 = vmul.f32 %v11149_v46, %v5204_v29 }
 0xa77   :  { %v5377_v10 = vmax.f32 %v5376_v31, 0.0  ;;  %v5464_v40 = vsub.f32 0.0, %v5271_v5  ;;  %v5269_v42 = vadd.f32 %v11162_v45, %v5247_v12  ;;  %v5463_v53 = vsub.f32 0.0, %v5270_v48 }
 0xa78   :  { %v12120_v63 = vsub.f32 %v10855_v28, %v11053_v11  ;;  %v5268_v23 = vadd.f32 %v11162_v45, %v5246_v7  ;;  %v5490_v54 = vmul.f32 1.442695, %v5465_v30  ;;  %v5245_v41 = vmul.f32 %v11151_v60, %v5223_v22  ;;  %v11262_v7 = vld [vmem:[#allocation19 + $0x2] ss:$0 sm:$0xff] }
 0xa79   :  { %v5394_v56 = vadd.f32 1e-05, %v5377_v10  ;;  %v5488_v32 = vmul.f32 1.442695, %v5464_v40  ;;  %v5462_v14 = vsub.f32 0.0, %v5269_v42  ;;  %v5202_v29 = vsub.f32 %v10833_v24, %v11053_v11 }
 0xa7a   :  { %v5221_v59 = vmul.f32 %v11149_v46, %v12120_v63  ;;  %v5201_v34 = vsub.f32 %v10836_v2, %v11053_v11  ;;  %v5392_v28 = vsub.f32 %v11114_v62, %v11182_v36  ;;  %v5393_v27 = vsub.f32 %v11111_v43, %v11182_v36 }
 0xa7b   :  { %7749 = vrsqrt.f32 %v5394_v56  ;;  %v5391_v49 = vsub.f32 %v11094_v18, %v11182_v36  ;;  %v5486_v57 = vmul.f32 1.442695, %v5463_v53  ;;  %v5390_v58 = vsub.f32 %v11097_v39, %v11182_v36 }
 0xa7c   :  { %v5389_v16 = vsub.f32 %v11080_v25, %v11182_v36  ;;  %v5461_v8 = vsub.f32 0.0, %v5268_v23  ;;  %v5388_v62 = vsub.f32 %v11084_v26, %v11182_v36  ;;  %7751 = vpow2.f32 %v5490_v54  ;;  %v11268_v23 = vld [vmem:[#allocation22 + $0x2] ss:$0 sm:$0xff] }
 0xa7d   :  { %v7738_v21 = vpop.eup %7737  ;;  %v5267_v43 = vadd.f32 %v11162_v45, %v5245_v41  ;;  %v5387_v18 = vsub.f32 %v11060_v17, %v11182_v36  ;;  %v5386_v33 = vsub.f32 %v11071_v0, %v11182_v36  ;;  %7753 = vpow2.f32 %v5488_v32 }
 0xa7e   :  { %v7740_v3 = vpop.eup %7739  ;;  %v5518_v52 = vadd.f32 1.0, %v7738_v21  ;;  %v5484_v39 = vmul.f32 1.442695, %v5462_v14  ;;  %v5385_v25 = vsub.f32 %v11040_v13, %v11182_v36  ;;  %7755 = vpow2.f32 %v5486_v57 }
 0xa7f   :  { %v7742_v9 = vpop.eup %7741  ;;  %v5519_v31 = vadd.f32 1.0, %v7740_v3  ;;  %v5384_v26 = vsub.f32 %v11050_v6, %v11182_v36  ;;  %v5383_v15 = vsub.f32 %v11023_v4, %v11182_v36  ;;  %v5482_v5 = vmul.f32 1.442695, %v5461_v8 }
 0xa80   :  { %v7744_v1 = vpop.eup %7743  ;;  %7757 = vrcp.f32 %v5518_v52  ;;  %v5382_v17 = vsub.f32 %v11029_v50, %v11182_v36  ;;  %v11255_v0 = vmul.f32 %v11151_v60, %v5222_v20  ;;  %v5517_v12 = vadd.f32 1.0, %v7742_v9 }
 0xa81   :  { %v7746_v55 = vpop.eup %7745  ;;  %7759 = vrcp.f32 %v5519_v31  ;;  %v5460_v47 = vsub.f32 0.0, %v5267_v43  ;;  %v11258_v56 = vmul.f32 %v11151_v60, %v5221_v59  ;;  %v5516_v22 = vadd.f32 1.0, %v7744_v1 }
 0xa82   :  { %v7748_v10 = vpop.eup %7747  ;;  %v5515_v30 = vadd.f32 1.0, %v7746_v55  ;;  %7761 = vpow2.f32 %v5484_v39  ;;  %v5380_v50 = vsub.f32 %v11012_v35, %v11182_v36  ;;  %v5378_v11 = vsub.f32 %v10993_v51, %v11182_v36 }
 0xa83   :  { %v5514_v40 = vadd.f32 1.0, %v7748_v10  ;;  %7763 = vpow2.f32 %v5482_v5  ;;  %v5480_v31 = vmul.f32 1.442695, %v5460_v47 }
 0xa84   :  { %7765 = vrcp.f32 %v5517_v12 }
 0xa85   :  { %7767 = vrcp.f32 %v5516_v22 }
 0xa86   :  { %7769 = vrcp.f32 %v5515_v30 }
 0xa87   :  { %7771 = vrcp.f32 %v5514_v40 }
 0xa88   :  { %v11260_v48 = vpop.eup %7749  ;;  %7773 = vpow2.f32 %v5480_v31 }
 0xa89   :  { %v5410_v42 = vmul.f32 %v11260_v48, %v5392_v28  ;;  %v5411_v53 = vmul.f32 %v11260_v48, %v5393_v27  ;;  %v5409_v20 = vmul.f32 %v11260_v48, %v5391_v49  ;;  %v5408_v63 = vmul.f32 %v11260_v48, %v5390_v58 }
 0xa8a   :  { %v5407_v59 = vmul.f32 %v11260_v48, %v5389_v16  ;;  %v5406_v21 = vmul.f32 %v11260_v48, %v5388_v62  ;;  %v5405_v54 = vmul.f32 %v11260_v48, %v5387_v18  ;;  %v5404_v57 = vmul.f32 %v11260_v48, %v5386_v33  ;;  %v7752_v18 = vpop.eup %7751 }
 0xa8b   :  { %v5432_v41 = vmul.f32 %v11262_v7, %v5410_v42  ;;  %v5433_v3 = vmul.f32 %v11262_v7, %v5411_v53  ;;  %v5431_v32 = vmul.f32 %v11262_v7, %v5409_v20  ;;  %v5430_v14 = vmul.f32 %v11262_v7, %v5408_v63  ;;  %v7754_v5 = vpop.eup %7753 }
 0xa8c   :  { %v5429_v28 = vmul.f32 %v11262_v7, %v5407_v59  ;;  %v5428_v27 = vmul.f32 %v11262_v7, %v5406_v21  ;;  %v5427_v49 = vmul.f32 %v11262_v7, %v5405_v54  ;;  %v5426_v10 = vmul.f32 %v11262_v7, %v5404_v57  ;;  %v7756_v53 = vpop.eup %7755 }
 0xa8d   :  { %v11282_v9 = vadd.f32 %v11268_v23, %v5433_v3  ;;  %v11285_v52 = vadd.f32 %v11268_v23, %v5432_v41  ;;  %v11288_v58 = vadd.f32 %v11268_v23, %v5431_v32  ;;  %v11291_v16 = vadd.f32 %v11268_v23, %v5430_v14  ;;  %v11309_v59 = vpop.eup %7757 }
 0xa8e   :  { %v11294_v8 = vadd.f32 %v11268_v23, %v5429_v28  ;;  %v11297_v1 = vadd.f32 %v11268_v23, %v5428_v27  ;;  %v11302_v55 = vadd.f32 %v11268_v23, %v5427_v49  ;;  %v5381_v54 = vsub.f32 %v11004_v37, %v11182_v36  ;;  %v11314_v41 = vpop.eup %7759 }
 0xa8f   :  { %v5583_v62 = vmin.f32 %v11282_v9, 20.0  ;;  %v5582_v43 = vmin.f32 %v11285_v52, 20.0  ;;  %v5581_v33 = vmin.f32 %v11288_v58, 20.0  ;;  %v5580_v39 = vmin.f32 %v11291_v16, 20.0  ;;  %v7762_v14 = vpop.eup %7761 }
 0xa90   :  { %v5579_v47 = vmin.f32 %v11294_v8, 20.0  ;;  %v5578_v63 = vmin.f32 %v11297_v1, 20.0  ;;  %v5577_v30 = vmin.f32 %v11302_v55, 20.0  ;;  %v11317_v40 = vadd.f32 %v11268_v23, %v5426_v10  ;;  %v7764_v31 = vpop.eup %7763 }
 0xa91   :  { %v5614_v12 = vmul.f32 1.442695, %v5583_v62  ;;  %v5612_v42 = vmul.f32 1.442695, %v5582_v43  ;;  %v5610_v20 = vmul.f32 1.442695, %v5581_v33  ;;  %v11321_v32 = vadd.f32 %v11162_v45, %v11255_v0  ;;  %v11354_v10 = vpop.eup %7765 }
 0xa92   :  { %v5608_v22 = vmul.f32 1.442695, %v5580_v39  ;;  %v5606_v21 = vmul.f32 1.442695, %v5579_v47  ;;  %v5604_v3 = vmul.f32 1.442695, %v5578_v63  ;;  %v5403_v27 = vmul.f32 %v11260_v48, %v5385_v25 }
 0xa93   :  { %7775 = vpow2.f32 %v5614_v12  ;;  %v5602_v28 = vmul.f32 1.442695, %v5577_v30  ;;  %v11329_v37 = vadd.f32 %v11162_v45, %v11258_v56  ;;  %v5513_v49 = vadd.f32 1.0, %v7752_v18 }
 0xa94   :  { %7777 = vpow2.f32 %v5612_v42  ;;  %v5576_v57 = vmin.f32 %v11317_v40, 20.0  ;;  %v5402_v0 = vmul.f32 %v11260_v48, %v5384_v26  ;;  %v5512_v62 = vadd.f32 1.0, %v7754_v5  ;;  %v11362_v42 = vpop.eup %7767 }
 0xa95   :  { %7779 = vpow2.f32 %v5610_v20  ;;  %v5425_v13 = vmul.f32 %v11262_v7, %v5403_v27  ;;  %v5401_v25 = vmul.f32 %v11260_v48, %v5383_v15  ;;  %v5511_v43 = vadd.f32 1.0, %v7756_v53  ;;  %v11368_v20 = vpop.eup %7769 }
 0xa96   :  { %7781 = vpow2.f32 %v5608_v22  ;;  %v5600_v56 = vmul.f32 1.442695, %v5576_v57  ;;  %v5424_v18 = vmul.f32 %v11262_v7, %v5402_v0  ;;  %v5400_v33 = vmul.f32 %v11260_v48, %v5382_v17  ;;  %v11371_v30 = vpop.eup %7771 }
 0xa97   :  { %7783 = vpow2.f32 %v5606_v21  ;;  %v11343_v6 = vadd.f32 %v11268_v23, %v5425_v13  ;;  %v5423_v26 = vmul.f32 %v11262_v7, %v5401_v25  ;;  %v5510_v15 = vadd.f32 1.0, %v7762_v14  ;;  %v11377_v14 = vpop.eup %7773 }
 0xa98   :  { %7785 = vpow2.f32 %v5604_v3  ;;  %v11351_v4 = vadd.f32 %v11268_v23, %v5424_v18  ;;  %v5399_v39 = vmul.f32 %v11260_v48, %v5381_v54  ;;  %v5422_v47 = vmul.f32 %v11262_v7, %v5400_v33 }
 0xa99   :  { %7787 = vpow2.f32 %v5602_v28  ;;  %v5575_v5 = vmin.f32 %v11343_v6, 20.0  ;;  %v11358_v12 = vadd.f32 %v11268_v23, %v5423_v26  ;;  %v5379_v53 = vsub.f32 %v10985_v44, %v11182_v36 }
 0xa9a   :  { %7789 = vrcp.f32 %v5513_v49  ;;  %v5574_v17 = vmin.f32 %v11351_v4, 20.0  ;;  %v5509_v63 = vadd.f32 1.0, %v7764_v31  ;;  %v11374_v54 = vadd.f32 %v11268_v23, %v5422_v47 }
 0xa9b   :  { %7791 = vpow2.f32 %v5600_v56  ;;  %v5598_v22 = vmul.f32 1.442695, %v5575_v5  ;;  %v5573_v21 = vmin.f32 %v11358_v12, 20.0  ;;  %v5421_v3 = vmul.f32 %v11262_v7, %v5399_v39 }
 0xa9c   :  { %7793 = vrcp.f32 %v5512_v62  ;;  %v5596_v35 = vmul.f32 1.442695, %v5574_v17  ;;  %v5398_v28 = vmul.f32 %v11260_v48, %v5380_v50  ;;  %v5220_v27 = vmul.f32 %v11149_v46, %v5202_v29 }
 0xa9d   :  { %7795 = vrcp.f32 %v5511_v43  ;;  %v5594_v44 = vmul.f32 1.442695, %v5573_v21  ;;  %v5459_v57 = vsub.f32 0.0, %v11321_v32  ;;  %v5397_v0 = vmul.f32 %v11260_v48, %v5379_v53 }
 0xa9e   :  { %7797 = vrcp.f32 %v5510_v15  ;;  %v11387_v13 = vadd.f32 %v11268_v23, %v5421_v3  ;;  %v5219_v25 = vmul.f32 %v11149_v46, %v5201_v34  ;;  %v5572_v29 = vmin.f32 %v11374_v54, 20.0 }
 0xa9f   :  { %7799 = vpow2.f32 %v5598_v22  ;;  %v5420_v32 = vmul.f32 %v11262_v7, %v5398_v28  ;;  %v5458_v26 = vsub.f32 0.0, %v11329_v37  ;;  %v5242_v33 = vmul.f32 %v11151_v60, %v5220_v27 }
 0xaa0   :  { %v7776_v49 = vpop.eup %7775  ;;  %7801 = vpow2.f32 %v5596_v35  ;;  %v5419_v2 = vmul.f32 %v11262_v7, %v5397_v0  ;;  %v5571_v5 = vmin.f32 %v11387_v13, 20.0  ;;  %v5241_v50 = vmul.f32 %v11151_v60, %v5219_v25 }
 0xaa1   :  { %v7778_v31 = vpop.eup %7777  ;;  %v5631_v62 = vadd.f32 1.0, %v7776_v49  ;;  %7803 = vpow2.f32 %v5594_v44  ;;  %v5592_v47 = vmul.f32 1.442695, %v5572_v29  ;;  %v11403_v53 = vadd.f32 %v11268_v23, %v5420_v32 }
 0xaa2   :  { %v7780_v24 = vpop.eup %7779  ;;  %v5630_v56 = vadd.f32 1.0, %v7778_v31  ;;  %7805 = vrcp.f32 %v5509_v63  ;;  %v5264_v51 = vadd.f32 %v11162_v45, %v5242_v33  ;;  %v5478_v21 = vmul.f32 1.442695, %v5459_v57 }
 0xaa3   :  { %v7782_v43 = vpop.eup %7781  ;;  %7807 = vlog2.f32 %v5631_v62  ;;  %v5629_v18 = vadd.f32 1.0, %v7780_v24  ;;  %v11409_v35 = vadd.f32 %v11268_v23, %v5419_v2  ;;  %v5396_v60 = vmul.f32 %v11260_v48, %v5378_v11 }
 0xaa4   :  { %v7784_v15 = vpop.eup %7783  ;;  %7809 = vlog2.f32 %v5630_v56  ;;  %v5628_v39 = vadd.f32 1.0, %v7782_v43  ;;  %v5590_v28 = vmul.f32 1.442695, %v5571_v5  ;;  %v5263_v27 = vadd.f32 %v11162_v45, %v5241_v50 }
 0xaa5   :  { %v7786_v46 = vpop.eup %7785  ;;  %7811 = vlog2.f32 %v5629_v18  ;;  %v5627_v34 = vadd.f32 1.0, %v7784_v15  ;;  %v5476_v0 = vmul.f32 1.442695, %v5458_v26  ;;  %v5570_v31 = vmin.f32 %v11403_v53, 20.0 }
 0xaa6   :  { %v7788_v17 = vpop.eup %7787  ;;  %7813 = vlog2.f32 %v5628_v39  ;;  %v5626_v37 = vadd.f32 1.0, %v7786_v46  ;;  %v5418_v57 = vmul.f32 %v11262_v7, %v5396_v60  ;;  %v5457_v25 = vsub.f32 0.0, %v5264_v51 }
 0xaa7   :  { %v11405_v22 = vpop.eup %7789  ;;  %7815 = vlog2.f32 %v5627_v34  ;;  %v5625_v63 = vadd.f32 1.0, %v7788_v17  ;;  %v5569_v24 = vmin.f32 %v11409_v35, 20.0  ;;  %v5456_v32 = vsub.f32 0.0, %v5263_v27 }
 0xaa8   :  { %v7792_v36 = vpop.eup %7791  ;;  %7817 = vlog2.f32 %v5626_v37  ;;  %v11423_v56 = vadd.f32 %v11268_v23, %v5418_v57  ;;  %v5588_v26 = vmul.f32 1.442695, %v5570_v31  ;;  %v5474_v39 = vmul.f32 1.442695, %v5457_v25 }
 0xaa9   :  { %v11412_v3 = vpop.eup %7793  ;;  %7819 = vlog2.f32 %v5625_v63  ;;  %v5624_v44 = vadd.f32 1.0, %v7792_v36  ;;  %v5586_v11 = vmul.f32 1.442695, %v5569_v24  ;;  %vm5567_vm12 = vcmp.gt.f32.partialorder %v11282_v9, 20.0 }
 0xaaa   :  { %v11415_v49 = vpop.eup %7795  ;;  %7821 = vpow2.f32 %v5592_v47  ;;  %v5568_v7 = vmin.f32 %v11423_v56, 20.0  ;;  %v5472_v34 = vmul.f32 1.442695, %v5456_v32  ;;  %vm5566_vm7 = vcmp.gt.f32.partialorder %v11285_v52, 20.0 }
 0xaab   :  { %v11419_v62 = vpop.eup %7797  ;;  %7823 = vlog2.f32 %v5624_v44  ;;  %vm5565_vm2 = vcmp.gt.f32.partialorder %v11288_v58, 20.0  ;;  %vm5564_vm15 = vcmp.gt.f32.partialorder %v11291_v16, 20.0  ;;  %vm5563_vm0 = vcmp.gt.f32.partialorder %v11294_v8, 20.0 }
 0xaac   :  { %v7800_v48 = vpop.eup %7799  ;;  %7825 = vpow2.f32 %v5478_v21  ;;  %v5584_v17 = vmul.f32 1.442695, %v5568_v7  ;;  %vm5562_vm10 = vcmp.gt.f32.partialorder %v11297_v1, 20.0  ;;  %vm5561_vm9 = vcmp.gt.f32.partialorder %v11302_v55, 20.0 }
 0xaad   :  { %v7802_v45 = vpop.eup %7801  ;;  %v5623_v29 = vadd.f32 1.0, %v7800_v48  ;;  %7827 = vpow2.f32 %v5590_v28  ;;  %vm5560_vm1 = vcmp.gt.f32.partialorder %v11317_v40, 20.0  ;;  %vm5559_vm8 = vcmp.gt.f32.partialorder %v11343_v6, 20.0 }
 0xaae   :  { %v7804_v43 = vpop.eup %7803  ;;  %v5622_v18 = vadd.f32 1.0, %v7802_v45  ;;  %7829 = vpow2.f32 %v5476_v0  ;;  %vm5558_vm6 = vcmp.gt.f32.partialorder %v11351_v4, 20.0  ;;  %vm5557_vm5 = vcmp.gt.f32.partialorder %v11358_v12, 20.0 }
 0xaaf   :  { %v11426_v33 = vpop.eup %7805  ;;  %7831 = vlog2.f32 %v5623_v29  ;;  %v5621_v15 = vadd.f32 1.0, %v7804_v43  ;;  %vm5556_vm13 = vcmp.gt.f32.partialorder %v11374_v54, 20.0  ;;  %vm5555_vm11 = vcmp.gt.f32.partialorder %v11387_v13, 20.0 }
 0xab0   :  { %v7808_v2 = vpop.eup %7807  ;;  %7833 = vlog2.f32 %v5622_v18  ;;  %vm5554_vm4 = vcmp.gt.f32.partialorder %v11403_v53, 20.0  ;;  %vm5553_vm3 = vcmp.gt.f32.partialorder %v11409_v35, 20.0 }
 0xab1   :  { %v7810_v23 = vpop.eup %7809  ;;  %v5663_v46 = vmul.f32 0.6931472, %v7808_v2  ;;  %7835 = vlog2.f32 %v5621_v15 }
 0xab2   :  { %v7812_v5 = vpop.eup %7811  ;;  %v5661_v50 = vmul.f32 0.6931472, %v7810_v23  ;;  %7837 = vpow2.f32 %v5588_v26 }
 0xab3   :  { %v7814_v37 = vpop.eup %7813  ;;  %v5679_v47 = vsel %vm5567_vm12, %v11282_v9, %v5663_v46  ;;  %v5659_v63 = vmul.f32 0.6931472, %v7812_v5  ;;  %7839 = vpow2.f32 %v5474_v39  ;;  %vm5552_vm12 = vcmp.gt.f32.partialorder %v11423_v56, 20.0 }
 0xab4   :  { %v7816_v51 = vpop.eup %7815  ;;  %v5695_v36 = vmul.f32 %v11314_v41, %v5679_v47  ;;  %v5678_v21 = vsel %vm5566_vm7, %v11285_v52, %v5661_v50  ;;  %v5657_v60 = vmul.f32 0.6931472, %v7814_v37  ;;  %7841 = vpow2.f32 %v5586_v11 }
 0xab5   :  { %v7818_v44 = vpop.eup %7817  ;;  %v5677_v28 = vsel %vm5565_vm2, %v11288_v58, %v5659_v63  ;;  %v5655_v27 = vmul.f32 0.6931472, %v7816_v51  ;;  %7843 = vpow2.f32 %v5472_v34  ;;  %v5694_v9 = vmul.f32 %v11309_v59, %v5678_v21 }
 0xab6   :  { %v7820_v0 = vpop.eup %7819  ;;  %7348 = vmatprep.subr.mxu0 %v5695_v36  ;;  %7845 = vpow2.f32 %v5584_v17  ;;  %v5676_v41 = vsel %vm5564_vm15, %v11291_v16, %v5657_v60  ;;  %v5653_v57 = vmul.f32 0.6931472, %v7818_v44  ;;  %v5508_v52 = vadd.f32 1.0, %v11377_v14 }
 0xab7   :  { %v7822_v31 = vpop.eup %7821  ;;  %7349 = vmatpush3.msra.mxu0 %v5695_v36  ;;  %v5693_v58 = vmul.f32 %v11354_v10, %v5677_v28  ;;  %v5651_v48 = vmul.f32 0.6931472, %v7820_v0  ;;  %v5675_v59 = vsel %vm5563_vm0, %v11294_v8, %v5655_v27  ;;  %v5692_v16 = vmul.f32 %v11362_v42, %v5676_v41 }
 0xab8   :  { %v7824_v25 = vpop.eup %7823  ;;  %7350 = vmatprep.subr.mxu0 %v5694_v9  ;;  %v5620_v24 = vadd.f32 1.0, %v7822_v31  ;;  %v5674_v14 = vsel %vm5562_vm10, %v11297_v1, %v5653_v57  ;;  %v5691_v26 = vmul.f32 %v11368_v20, %v5675_v59  ;;  %vm8306_vm7 = vmmov 0  }
 0xab9   :  { %v7826_v45 = vpop.eup %7825  ;;  %7351 = vmatpush3.msra.mxu0 %v5694_v9  ;;  %v5649_v29 = vmul.f32 0.6931472, %v7824_v25  ;;  %v5673_v7 = vsel %vm5561_vm9, %v11302_v55, %v5651_v48  ;;  %v5690_v1 = vmul.f32 %v11371_v30, %v5674_v14  ;;  %7398 = vmatprep.mubr.msk.f32.mxu1 %vm8306_vm7, %v12025_v38  ;;  %vm12121_vm2 = vcmask 261120  }
 0xaba   :  { %v7828_v32 = vpop.eup %7827  ;;  %7352 = vmatprep.subr.mxu0 %v5693_v58  ;;  %7847 = vlog2.f32 %v5620_v24  ;;  %v5507_v15 = vadd.f32 1.0, %v7826_v45  ;;  %v5689_v55 = vmul.f32 %v11405_v22, %v5673_v7  ;;  %vm12122_vm15 = vmmov %vm12121_vm2 }
 0xabb   :  { %v7830_v10 = vpop.eup %7829  ;;  %7353 = vmatpush3.msra.mxu0 %v5693_v58  ;;  %v5672_v43 = vsel %vm5560_vm1, %v11317_v40, %v5649_v29  ;;  %7849 = vrcp.f32 %v5508_v52  ;;  %v5619_v8 = vadd.f32 1.0, %v7828_v32  ;;  %vm12123_vm0 = vmmov %vm12121_vm2 }
 0xabc   :  { %v7832_v18 = vpop.eup %7831  ;;  %7354 = vmatprep.subr.mxu0 %v5692_v16  ;;  %v5688_v42 = vmul.f32 %v11412_v3, %v5672_v43  ;;  %v5506_v22 = vadd.f32 1.0, %v7830_v10  ;;  %vm12125_vm1 = vmmov %vm12123_vm0 }
 0xabd   :  { %v7834_v39 = vpop.eup %7833  ;;  %7355 = vmatpush3.msra.mxu0 %v5692_v16  ;;  %v5647_v2 = vmul.f32 0.6931472, %v7832_v18  ;;  %7851 = vlog2.f32 %v5619_v8 }
 0xabe   :  { %v7836_v11 = vpop.eup %7835  ;;  %7356 = vmatprep.subr.mxu0 %v5691_v26  ;;  %v5645_v40 = vmul.f32 0.6931472, %v7834_v39  ;;  %7853 = vrcp.f32 %v5507_v15 }
 0xabf   :  { %v7838_v23 = vpop.eup %7837  ;;  %7357 = vmatpush3.msra.mxu0 %v5691_v26  ;;  %v5671_v20 = vsel %vm5559_vm8, %v11343_v6, %v5647_v2  ;;  %v5643_v3 = vmul.f32 0.6931472, %v7836_v11  ;;  %vm12126_vm8 = vmmov %vm12123_vm0 }
 0xac0   :  { %v7840_v46 = vpop.eup %7839  ;;  %7358 = vmatprep.subr.mxu0 %v5690_v1  ;;  %v5687_v34 = vmul.f32 %v11415_v49, %v5671_v20  ;;  %v5670_v30 = vsel %vm5558_vm6, %v11351_v4, %v5645_v40  ;;  %v5618_v5 = vadd.f32 1.0, %v7838_v23  ;;  %vm12127_vm6 = vcmask 130048  }
 0xac1   :  { %v7842_v50 = vpop.eup %7841  ;;  %7359 = vmatpush3.msra.mxu0 %v5690_v1  ;;  %v5686_v17 = vmul.f32 %v11419_v62, %v5670_v30  ;;  %v5669_v37 = vsel %vm5557_vm5, %v11358_v12, %v5643_v3  ;;  %v5505_v49 = vadd.f32 1.0, %v7840_v46 }
 0xac2   :  { %v7844_v47 = vpop.eup %7843  ;;  %7360 = vmatprep.subr.mxu0 %v5689_v55  ;;  %v5685_v6 = vmul.f32 %v11426_v33, %v5669_v37  ;;  %7855 = vlog2.f32 %v5618_v5  ;;  %v5617_v63 = vadd.f32 1.0, %v7842_v50 }
 0xac3   :  { %v7846_v51 = vpop.eup %7845  ;;  %7361 = vmatpush3.msra.mxu0 %v5689_v55  ;;  %v5504_v36 = vadd.f32 1.0, %v7844_v47  ;;  %v6394_v47 = vld [vmem:[#allocation24 + $0x2] ss:$0 sm:$0xff] }
 0xac4   :  { %7362 = vmatprep.subr.mxu0 %v5688_v42  ;;  %7857 = vlog2.f32 %v5617_v63  ;;  %v5616_v4 = vadd.f32 1.0, %v7846_v51  ;;  %v6395_v51 = vld [vmem:[#allocation25 + $0x2] ss:$0 sm:$0xff] }
 0xac5   :  { %7363 = vmatpush3.msra.mxu0 %v5688_v42  ;;  %7859 = vrcp.f32 %v5506_v22 }
 0xac6   :  { %7364 = vmatprep.subr.mxu0 %v5687_v34  ;;  %7861 = vlog2.f32 %v5616_v4 }
 0xac7   :  { %v7848_v62 = vpop.eup %7847  ;;  %7365 = vmatpush3.msra.mxu0 %v5687_v34  ;;  %7863 = vrcp.f32 %v5505_v49 }
 0xac8   :  { %v7850_v12 = vpop.eup %7849  ;;  %7366 = vmatprep.subr.mxu0 %v5686_v17  ;;  %v5641_v21 = vmul.f32 0.6931472, %v7848_v62  ;;  %7865 = vrcp.f32 %v5504_v36 }
 0xac9   :  { %7367 = vmatpush3.msra.mxu0 %v5686_v17 }
 0xaca   :  { %v7852_v33 = vpop.eup %7851  ;;  %7368 = vmatprep.subr.mxu0 %v5685_v6  ;;  %v5668_v60 = vsel %vm5556_vm13, %v11374_v54, %v5641_v21  ;;  %vm12128_vm13 = vmmov %vm12123_vm0 }
 0xacb   :  { %7369 = vmatpush3.msra.mxu0 %v5685_v6  ;;  %v5684_v44 = vmul.f32 %v7850_v12, %v5668_v60  ;;  %v5639_v28 = vmul.f32 0.6931472, %v7852_v33  ;;  %v7854_v27 = vpop.eup %7853  ;;  %v7921_v12 = vld [vmem:[#allocation2] sm:$0xff]  ;;  %v7922_v33 = vld [vmem:[#allocation2 + $0x8] sm:$0xff] }
 0xacd   :  { %7370 = vmatprep.subr.mxu0 %v5684_v44  ;;  %v5667_v0 = vsel %vm5555_vm11, %v11387_v13, %v5639_v28  ;;  %vm6035_vm11 = vcmask 523264  }
 0xace   :  { %7371 = vmatpush3.msra.mxu0 %v5684_v44  ;;  %v5683_v9 = vmul.f32 %v7854_v27, %v5667_v0 }
 0xacf   :  { %v7856_v31 = vpop.eup %7855 }
 0xad0   :  { %7372 = vmatprep.subr.mxu0 %v5683_v9  ;;  %v5637_v41 = vmul.f32 0.6931472, %v7856_v31 }
 0xad1   :  { %v7858_v57 = vpop.eup %7857  ;;  %7373 = vmatpush3.msra.mxu0 %v5683_v9 }
 0xad2   :  { %v7860_v52 = vpop.eup %7859  ;;  %v5666_v54 = vsel %vm5554_vm4, %v11403_v53, %v5637_v41  ;;  %v5635_v25 = vmul.f32 0.6931472, %v7858_v57  ;;  %vm6018_vm4 = vcmask 517120  }
 0xad3   :  { %v7862_v58 = vpop.eup %7861  ;;  %v5682_v48 = vmul.f32 %v7860_v52, %v5666_v54 }
 0xad4   :  { %v7864_v24 = vpop.eup %7863  ;;  %v5665_v13 = vsel %vm5553_vm3, %v11409_v35, %v5635_v25  ;;  %v5633_v45 = vmul.f32 0.6931472, %v7862_v58 }
 0xad5   :  { %7374 = vmatprep.subr.mxu0 %v5682_v48  ;;  %v5681_v59 = vmul.f32 %v7864_v24, %v5665_v13  ;;  %v7866_v29 = vpop.eup %7865 }
 0xad6   :  { %7375 = vmatpush3.msra.mxu0 %v5682_v48  ;;  %v5664_v32 = vsel %vm5552_vm12, %v11423_v56, %v5633_v45  ;;  %v5842_v45 = vld [vmem:[#allocation4] sm:$0x3] }
 0xad7   :  { %7376 = vmatprep.subr.mxu0 %v5681_v59  ;;  %v5680_v16 = vmul.f32 %v7866_v29, %v5664_v32  ;;  %v5929_v29 = vld [vmem:[#allocation27 + $0x18] sm:$0xff]  ;;  %v5928_v32 = vld [vmem:[#allocation27 + $0x10] sm:$0xff] }
 0xad8   :  { %7377 = vmatpush3.msra.mxu0 %v5681_v59  ;;  %7391 = vmatpush3.msra.mxu1 %v5929_v29 }
 0xad9   :  { %7378 = vmatprep.subr.mxu0 %v5680_v16  ;;  %7392 = vmatprep.subr.mxu1 %v12025_v38 }
 0xada   :  { %7379 = vmatpush3.msra.mxu0 %v5680_v16  ;;  %v5927_v16 = vld [vmem:[#allocation27 + $0x8] sm:$0xff]  ;;  %7393 = vmatpush3.msra.mxu1 %v5928_v32 }
 0xadb   :  { %7381 = vmatmul.mubr.msk.f32.vlgmr.msra.gmra.mxu0 %vm9804_vm14, %v11974_v61  ;;  %7383 = vmatprep.subr.mxu0 %v12025_v38  ;;  %vm12124_vm14 = vmmov %vm12123_vm0 }
 0xadc   :  { %7387 = vmatprep.mubr.msk.f32.mxu0 %vm8306_vm7, %v12025_v38  ;;  %7394 = vmatprep.subr.mxu1 %v12025_v38 }
 0xadd   :  { %7395 = vmatpush3.msra.mxu1 %v5927_v16 }
 0xade   :  { %7396 = vmatprep.subr.mxu1 %v12025_v38 }
 0xb9b   :  { %v7382_v53 = vpop.f32.mrf.mxu0 }
 0xb9c   :  { %v5786_v35 = vmul.f32 %v7382_v53, %v7382_v53  ;;  %v5776_v10 = vsel %vm12121_vm2, %v7382_v53, 0.0 }
 0xb9d   :  { %v5762_v56 = vpop.f32.mrf.mxu0 }
 0xb9e   :  { %v5775_v14 = vsel %vm12122_vm15, %v5762_v56, 0.0  ;;  %v5785_v43 = vmul.f32 %v5762_v56, %v5762_v56  ;;  %v5788_v19 = vsel %vm12123_vm0, %v5786_v35, 0.0 }
 0xb9f   :  { %v5777_v8 = vadd.f32 %v5776_v10, %v5775_v14 }
 0xba0   :  { %v5787_v61 = vsel %vm12124_vm14, %v5785_v43, 0.0 }
 0xba1   :  { %v5778_v18 = vrot.slane %v5777_v8, 4  ;;  %v5789_v26 = vadd.f32 %v5788_v19, %v5787_v61 }
 0xba3   :  { %v5779_v7 = vadd.f32 %v5778_v18, %v5777_v8  ;;  %v5790_v42 = vrot.slane %v5789_v26, 4 }
 0xba5   :  { %v5780_v15 = vrot.slane %v5779_v7, 2  ;;  %v5791_v39 = vadd.f32 %v5790_v42, %v5789_v26  ;;  %v6027_v26 = vld [vmem:[%s11554_s22 + $0x38] sm:$0xff]  ;;  %v6025_v42 = vld [vmem:[%s11554_s22 + $0x28] sm:$0xff] }
 0xba7   :  { %v5781_v2 = vadd.f32 %v5780_v15, %v5779_v7  ;;  %v5792_v11 = vrot.slane %v5791_v39, 2  ;;  %v6026_v7 = vld [vmem:[%s11554_s22 + $0x30] sm:$0xff]  ;;  %v6024_v15 = vld [vmem:[%s11554_s22 + $0x20] sm:$0xff] }
 0xba9   :  { %v5782_v1 = vrot.slane %v5781_v2, 1  ;;  %v5793_v40 = vadd.f32 %v5792_v11, %v5791_v39  ;;  %v6023_v39 = vld [vmem:[%s11554_s22 + $0x18] sm:$0xff]  ;;  %v6021_v11 = vld [vmem:[%s11554_s22 + $0x8] sm:$0xff] }
 0xbab   :  { %v5783_v23 = vadd.f32 %v5782_v1, %v5781_v2  ;;  %v5794_v55 = vrot.slane %v5793_v40, 1  ;;  %v6022_v2 = vld [vmem:[%s11554_s22 + $0x10] sm:$0xff]  ;;  %v6020_v1 = vld [vmem:[%s11554_s22] sm:$0xff]  ;;  %s8307_s22 = smov [#allocation30]  }
 0xbac   :  { %s6119_s5 = sshll.u32 %s8307_s22, 4  ;;  %s6120_s5 = int_to_ptr.vmem [resolvable:$true] %s6119_s5 }
 0xbad   :  { %v5784_v20 = vmul.f32 0.0625, %v5783_v23  ;;  %v5795_v3 = vadd.f32 %v5794_v55, %v5793_v40  ;;  %v6397_v40 = vld [vmem:[#allocation28] ss:$0 sm:$0xff]  ;;  %s8243_s0 = scalar_lea.vmem %s6120_s5, 32  ;;  %p8248_p11 = scmp.lt.s32.totalorder %s6120_s5, %s6120_s5 }
 0xbae   :  { %p8244_p10 = scmp.ne.s32.totalorder %s6120_s5, %s8243_s0  ;;  %p8249_p12 = scmp.lt.s32.totalorder %s8243_s0, %s8243_s0 }
 0xbaf   :  { %v5796_v46 = vmul.f32 0.0625, %v5795_v3  ;;  %v5797_v34 = vmul.f32 %v5784_v20, %v5784_v20  ;;  %v5800_v17 = vsub.f32 %v5762_v56, %v5784_v20  ;;  %v5801_v37 = vsub.f32 %v7382_v53, %v5784_v20  ;;  %v5926_v53 = vld [vmem:[#allocation27] sm:$0xff] }
 0xbb0   :  { %7397 = vmatpush3.msra.mxu1 %v5926_v53  ;;  %p8250_p13 = por %p8249_p12, %p8248_p11 }
 0xbb1   :  { %v5798_v30 = vsub.f32 %v5796_v46, %v5797_v34 }
 0xbb2   :  { %p8251_p0 = pnand %p8250_p13, %p8244_p10 }
 0xbb3   :  { %v5799_v5 = vmax.f32 %v5798_v30, 0.0 }
 0xbb5   :  { %v5802_v50 = vadd.f32 1e-05, %v5799_v5 }
 0xbb7   :  { %7867 = vrsqrt.f32 %v5802_v50 }
 0xbc4   :  { %v7868_v22 = vpop.eup %7867 }
 0xbc5   :  { %v5804_v6 = vmul.f32 %v7868_v22, %v5800_v17  ;;  %v5805_v63 = vmul.f32 %v7868_v22, %v5801_v37 }
 0xbc7   :  { %v5812_v49 = vmul.f32 %v6394_v47, %v5804_v6  ;;  %v5813_v4 = vmul.f32 %v6394_v47, %v5805_v63 }
 0xbc9   :  { %v5820_v36 = vadd.f32 %v6395_v51, %v5812_v49  ;;  %v5821_v62 = vadd.f32 %v6395_v51, %v5813_v4 }
 0xbcb   :  { %v5822_v21 = vadd.f32 %v7921_v12, %v5820_v36  ;;  %v5823_v60 = vadd.f32 %v7922_v33, %v5821_v62 }
 0xbcd   :  { %v5826_v44 = vmin.f32 %v5822_v21, 20.0  ;;  %v5827_v28 = vmin.f32 %v5823_v60, 20.0  ;;  %vm5824_vm10 = vcmp.gt.f32.partialorder %v5822_v21, 20.0  ;;  %vm5825_vm9 = vcmp.gt.f32.partialorder %v5823_v60, 20.0 }
 0xbcf   :  { %v5828_v27 = vmul.f32 1.442695, %v5826_v44  ;;  %v5830_v0 = vmul.f32 1.442695, %v5827_v28 }
 0xbd1   :  { %7869 = vpow2.f32 %v5828_v27 }
 0xbd2   :  { %7871 = vpow2.f32 %v5830_v0 }
 0xbde   :  { %v7870_v9 = vpop.eup %7869 }
 0xbdf   :  { %v7872_v31 = vpop.eup %7871  ;;  %v5832_v41 = vadd.f32 1.0, %v7870_v9 }
 0xbe0   :  { %v5833_v57 = vadd.f32 1.0, %v7872_v31 }
 0xbe1   :  { %7873 = vlog2.f32 %v5832_v41 }
 0xbe2   :  { %7875 = vlog2.f32 %v5833_v57 }
 0xbee   :  { %v7874_v52 = vpop.eup %7873 }
 0xbef   :  { %v7876_v54 = vpop.eup %7875  ;;  %v5835_v25 = vmul.f32 0.6931472, %v7874_v52 }
 0xbf0   :  { %v5837_v58 = vmul.f32 0.6931472, %v7876_v54 }
 0xbf1   :  { %v5838_v48 = vsel %vm5824_vm10, %v5822_v21, %v5835_v25 }
 0xbf2   :  { %v5839_v24 = vsel %vm5825_vm9, %v5823_v60, %v5837_v58  ;;  %5840 = vst.msk [vmem:[#allocation2] sm:$0xff] %vm12125_vm1, %v5838_v48 }
 0xbf3   :  { %5841 = vst.msk [vmem:[#allocation2 + $0x8] sm:$0xff] %vm12126_vm8, %v5839_v24 }
 0xbf9   :  { %v5843_v59 = vld [vmem:[#allocation2] sm:$0xff] }
 0xbfa   :  { %v5844_v13 = vld [vmem:[#allocation2 + $0x8] sm:$0xff] }
 0xbfb   :  { %7384 = vmatpush3.msra.mxu0 %v5844_v13 }
 0xbfc   :  { %7385 = vmatprep.subr.mxu0 %v12025_v38 }
 0xbfd   :  { %7386 = vmatpush3.msra.mxu0 %v5843_v59 }
 0xbfe   :  { %7388 = vmatmul.mubr.msk.f32.vlgmr.msra.gmra.mxu0 %vm12127_vm6, %v5842_v45  ;;  %7401 = vmatprep.subr.mxu0 %v12025_v38 }
 0xbff   :  { %7417 = vmatprep.mubr.msk.f32.mxu0 %vm8306_vm7, %v12025_v38  ;;  %7402 = vmatpush3.msra.mxu0 %v6027_v26 }
 0xc00   :  { %7403 = vmatprep.subr.mxu0 %v12025_v38 }
 0xc01   :  { %7404 = vmatpush3.msra.mxu0 %v6026_v7 }
 0xc02   :  { %7405 = vmatprep.subr.mxu0 %v12025_v38 }
 0xc03   :  { %7406 = vmatpush3.msra.mxu0 %v6025_v42 }
 0xc04   :  { %7407 = vmatprep.subr.mxu0 %v12025_v38 }
 0xc05   :  { %7408 = vmatpush3.msra.mxu0 %v6024_v15 }
 0xc06   :  { %7409 = vmatprep.subr.mxu0 %v12025_v38 }
 0xc07   :  { %7410 = vmatpush3.msra.mxu0 %v6023_v39 }
 0xc08   :  { %7411 = vmatprep.subr.mxu0 %v12025_v38 }
 0xc09   :  { %7412 = vmatpush3.msra.mxu0 %v6022_v2 }
 0xc0a   :  { %7413 = vmatprep.subr.mxu0 %v12025_v38 }
 0xc0b   :  { %7414 = vmatpush3.msra.mxu0 %v6021_v11 }
 0xc0c   :  { %7415 = vmatprep.subr.mxu0 %v12025_v38 }
 0xc0d   :  { %7416 = vmatpush3.msra.mxu0 %v6020_v1 }
 0xcbe   :  { %v5914_v35 = vpop.f32.mrf.mxu0 }
 0xcbf   :  { %v5919_v56 = vmin.f32 %v5914_v35, 20.0  ;;  %vm5918_vm5 = vcmp.gt.f32.partialorder %v5914_v35, 20.0 }
 0xcc0   :  { %v7389_v10 = vpop.f32.mrf.mxu0 }
 0xcc1   :  { %v5920_v14 = vmul.f32 1.442695, %v5919_v56 }
 0xcc3   :  { %7877 = vpow2.f32 %v5920_v14 }
 0xcd0   :  { %v7878_v43 = vpop.eup %7877 }
 0xcd1   :  { %v5922_v8 = vadd.f32 1.0, %v7878_v43 }
 0xcd3   :  { %7879 = vlog2.f32 %v5922_v8 }
 0xce0   :  { %v7880_v19 = vpop.eup %7879 }
 0xce1   :  { %v5924_v61 = vmul.f32 0.6931472, %v7880_v19 }
 0xce3   :  { %v5925_v18 = vsel %vm5918_vm5, %v5914_v35, %v5924_v61 }
 0xce4   :  { %7399 = vmatmul.mubr.msk.f32.vlgmr.msra.gmra.mxu1 %vm12128_vm13, %v5925_v18 }
 0xda4   :  { %v6006_v23 = vpop.f32.mrf.mxu1 }
 0xda5   :  { %v6007_v55 = vadd.f32 %v6397_v40, %v6006_v23 }
 0xda6   :  { %v7400_v20 = vpop.f32.mrf.mxu1 }
 0xda7   :  { %v6011_v3 = vmin.f32 %v6007_v55, 20.0  ;;  %vm6010_vm3 = vcmp.gt.f32.partialorder %v6007_v55, 20.0 }
 0xda9   :  { %v6012_v46 = vmul.f32 1.442695, %v6011_v3 }
 0xdab   :  { %7881 = vpow2.f32 %v6012_v46 }
 0xdb8   :  { %v7882_v34 = vpop.eup %7881 }
 0xdb9   :  { %v6014_v30 = vadd.f32 1.0, %v7882_v34 }
 0xdbb   :  { %7883 = vlog2.f32 %v6014_v30 }
 0xdc8   :  { %v7884_v5 = vpop.eup %7883 }
 0xdc9   :  { %v6016_v50 = vmul.f32 0.6931472, %v7884_v5 }
 0xdcb   :  { %v6017_v17 = vsel %vm6010_vm3, %v6007_v55, %v6016_v50 }
 0xdcc   :  { %7418 = vmatmul.mubr.msk.f32.vlgmr.msra.gmra.mxu0 %vm6035_vm11, %v6017_v17  ;;  %6019 = vst.msk [vmem:[#allocation30] sm:$0x3] %vm6018_vm4, %v6017_v17 }
 0xdcd   :  { %8254 = shalt.err (!%p8251_p0)
}
 0xdce   :  { %6122 = dma.vmem_to_hbm [thread:$0]  %s6120_s5, 32, %s11557_s25, [#allocation6]   ;;  %v6399_v38 = vld [vmem:[#allocation3] ss:$0 sm:$0xff]  ;;  %vm6109_vm12 = vcmask 1024  }
 0xe8c   :  { %v6105_v37 = vpop.f32.mrf.mxu0 }
 0xe8d   :  { %v6106_v22 = vadd.f32 %v6399_v38, %v6105_v37 }
 0xe8e   :  { %v7419_v47 = vpop.f32.mrf.mxu0 }
 0xe8f   :  { %6110 = vst.msk [vmem:[%s11556_s24] sm:$0x3] %vm6109_vm12, %v6106_v22 }
 0xe90   :  { %8281 = dma.done.wait [#allocation6], 32  }
 0xe91   :  { %8282 = vsyncadd [#allocation6], 4294967264 }
 0xe92   :  { %6128 = vsyncpa [#allocation5], 1 }
 0xe93   :  { %6129 = vsyncpa [#allocation8], 1 }
 0xe94   :  { %6130 = vsyncpa [#allocation11], 1 }
 0xe95   :  { %6131 = vsyncpa [#allocation14], 1 }
 0xe96   :  { %6132 = vsyncpa [#allocation17], 1 }
 0xe97   :  { %6133 = vsyncpa [#allocation20], 1 }
 0xe98   :  { %6134 = vsyncpa [#allocation23], 1 }
 0xe99   :  { %6135 = vsyncpa [#allocation26], 1 }
 0xe9a   :  { %6136 = vsyncpa [#allocation29], 1 }
 0xe9b   :  { %6137 = vsyncpa [#allocation6], 1 }

</bundles_post_ra>
